<compile_context>
chip_gen: v7x
topology: tpu7x:2x2x1
jax: 0.10.0
libtpu: 0.0.40
codegen_flags: <defaults>
</compile_context>

<pallas_src>
import functools

import jax
import jax.numpy as jnp
from jax.experimental import pallas as pl
from jax.experimental.pallas import tpu as pltpu


def _round_up(x, m):
    return (x + m - 1) // m * m


# Tile caps: bf16 operands + f32 acc at these caps use < 8 MiB VMEM with
# double buffering, comfortably inside v7x's 64 MiB (and v5e/v6e's 128 MiB).
_TM_MAX, _TN_MAX, _TK_MAX = 512, 512, 512


# ----------------------------------------------------------------------------
# Tiled matmul kernel: act(A @ B + bias), bf16 operands, f32 accumulate.
# ----------------------------------------------------------------------------
def _mm_bias_act_kernel(a_ref, b_ref, bias_ref, o_ref, acc_ref, *, act):
    @pl.when(pl.program_id(2) == 0)
    def _():
        acc_ref[...] = jnp.zeros_like(acc_ref)

    acc_ref[...] += jnp.dot(a_ref[...], b_ref[...],
                            preferred_element_type=jnp.float32)

    @pl.when(pl.program_id(2) == pl.num_programs(2) - 1)
    def _():
        acc = acc_ref[...] + bias_ref[...]           # f32 epilogue (v5e-safe)
        if act == "relu":
            acc = jnp.maximum(acc, 0.0)
        elif act == "sigmoid":
            acc = jax.nn.sigmoid(acc)
        o_ref[...] = acc.astype(o_ref.dtype)


def matmul_bias_act(a, b, bias, act="none"):
    """act(a @ b + bias). a:(M,K) b:(K,N) bias:(N,) -> (M,N) f32."""
    M, K = a.shape
    K2, N = b.shape
    assert K == K2

    tm = min(_TM_MAX, _round_up(M, 8))
    tn = min(_TN_MAX, _round_up(N, 128))          # lane-dense output tiles
    tk = min(_TK_MAX, _round_up(K, 128))
    Mp, Np, Kp = _round_up(M, tm), _round_up(N, tn), _round_up(K, tk)

    a_p = jnp.pad(a.astype(jnp.bfloat16), ((0, Mp - M), (0, Kp - K)))
    b_p = jnp.pad(b.astype(jnp.bfloat16), ((0, Kp - K), (0, Np - N)))
    bias_p = jnp.pad(bias.astype(jnp.float32), (0, Np - N)).reshape(1, Np)

    grid = (Mp // tm, Np // tn, Kp // tk)
    out = pl.pallas_call(
        functools.partial(_mm_bias_act_kernel, act=act),
        out_shape=jax.ShapeDtypeStruct((Mp, Np), jnp.float32),
        grid_spec=pltpu.PrefetchScalarGridSpec(
            num_scalar_prefetch=0,
            grid=grid,
            in_specs=[
                pl.BlockSpec((tm, tk), lambda i, j, k: (i, k)),
                pl.BlockSpec((tk, tn), lambda i, j, k: (k, j)),
                pl.BlockSpec((1, tn), lambda i, j, k: (0, j)),
            ],
            out_specs=pl.BlockSpec((tm, tn), lambda i, j, k: (i, j)),
            scratch_shapes=[pltpu.VMEM((tm, tn), jnp.float32)],
        ),
        compiler_params=pltpu.CompilerParams(
            dimension_semantics=("parallel", "parallel", "arbitrary"),
            vmem_limit_bytes=48 * 1024 * 1024,
        ),
        cost_estimate=pl.CostEstimate(
            flops=2 * Mp * Np * Kp,
            transcendentals=Mp * Np if act == "sigmoid" else 0,
            bytes_accessed=(Mp * Kp + Kp * Np) * 2 + Mp * Np * 4,
        ),
    )(a_p, b_p, bias_p)
    return out[:M, :N]


# ----------------------------------------------------------------------------
# Fused SE-scale + residual add + ReLU (tiled; gate broadcast stays in VMEM).
# ----------------------------------------------------------------------------
def _scale_add_relu_kernel(x_ref, g_ref, r_ref, o_ref):
    o_ref[...] = jnp.maximum(x_ref[...] * g_ref[...] + r_ref[...], 0.0)


def scale_add_relu(x, gate, residual):
    """relu(x * gate[:, None, :] + residual); x, residual (B,HW,C), gate (B,C)."""
    B, HW, C = x.shape
    thw = HW
    for cand in (2048, 1024, 512, 256, 128, 64, 32, 16, 8):
        if HW % cand == 0:
            thw = cand
            break
    grid = (B, HW // thw)
    return pl.pallas_call(
        _scale_add_relu_kernel,
        out_shape=jax.ShapeDtypeStruct((B, HW, C), jnp.float32),
        grid=grid,
        in_specs=[
            pl.BlockSpec((1, thw, C), lambda b, t: (b, t, 0)),
            pl.BlockSpec((1, 1, C), lambda b, t: (b, 0, 0)),
            pl.BlockSpec((1, thw, C), lambda b, t: (b, t, 0)),
        ],
        out_specs=pl.BlockSpec((1, thw, C), lambda b, t: (b, t, 0)),
        compiler_params=pltpu.CompilerParams(
            dimension_semantics=("parallel", "parallel")),
    )(x.astype(jnp.float32), gate.reshape(B, 1, C).astype(jnp.float32),
      residual.astype(jnp.float32))


# ----------------------------------------------------------------------------
# Conv = (bf16) im2col glue + Pallas tiled matmul (hot path)
# ----------------------------------------------------------------------------
def conv2d(x, w, b, stride, padding, act="none"):
    """x: (B,H,W,Cin) NHWC, w: (kh,kw,Cin,Cout), b: (Cout,)."""
    B, H, W, Cin = x.shape
    kh, kw, _, Cout = w.shape
    Ho = (H + 2 * padding - kh) // stride + 1
    Wo = (W + 2 * padding - kw) // stride + 1
    x = x.astype(jnp.bfloat16)   # halve im2col HBM bytes; accumulation is f32

    if kh == 1 and kw == 1:
        # 1x1 conv needs no im2col: strided spatial subsample + matmul.
        assert padding == 0
        xs = x[:, ::stride, ::stride, :]
        a = xs.reshape(B * Ho * Wo, Cin)
        wm = w.reshape(Cin, Cout)
    else:
        # TODO(synk): move this kh*kw patch gather into the matmul grid
        # (shifted index_maps over the padded NHWC input) to avoid the ~9x
        # HBM materialization for large H,W; kept in glue here for robustness.
        xp = jnp.pad(x, ((0, 0), (padding, padding), (padding, padding), (0, 0)))
        cols = []
        for i in range(kh):
            for j in range(kw):
                cols.append(
                    xp[:, i:i + stride * (Ho - 1) + 1:stride,
                          j:j + stride * (Wo - 1) + 1:stride, :])
        patches = jnp.concatenate(cols, axis=-1)        # (B,Ho,Wo,kh*kw*Cin)
        a = patches.reshape(B * Ho * Wo, kh * kw * Cin)
        wm = w.reshape(kh * kw * Cin, Cout)             # (i,j,c) order matches

    y = matmul_bias_act(a, wm, b, act=act)
    return y.reshape(B, Ho, Wo, Cout)


# ----------------------------------------------------------------------------
# Network pieces
# ----------------------------------------------------------------------------
def se_block(x, p):
    """SE gate (B, C).  M=B=2 FCs stay as XLA dots per perf review."""
    pooled = jnp.mean(x, axis=(1, 2))                    # (B, C)
    h = jax.nn.relu(pooled @ p["w1"] + p["b1"])
    return jax.nn.sigmoid(h @ p["w2"] + p["b2"])


def conv_block(x, p, stride):
    """ConvBlock: conv+bn+relu, conv+bn, SE, residual add, relu (bn folded)."""
    residual = conv2d(x, p["ws"], p["bs"], stride=stride, padding=0, act="none")
    out = conv2d(x, p["w1"], p["b1"], stride=stride, padding=1, act="relu")
    out = conv2d(out, p["w2"], p["b2"], stride=1, padding=1, act="none")
    B, Ho, Wo, C = out.shape
    gate = se_block(out, p["se"])                        # (B, C)
    y = scale_add_relu(out.reshape(B, Ho * Wo, C), gate,
                       residual.reshape(B, Ho * Wo, C))
    return y.reshape(B, Ho, Wo, C)


def bilinear_resize(x, out_h, out_w):
    """F.interpolate(mode='bilinear', align_corners=False).  x: (B,H,W,C)."""
    B, H, W, C = x.shape

    def coords(out_size, in_size):
        d = (jnp.arange(out_size, dtype=jnp.float32) + 0.5) * (in_size / out_size) - 0.5
        d = jnp.clip(d, 0.0, in_size - 1)
        i0 = jnp.floor(d).astype(jnp.int32)
        i1 = jnp.minimum(i0 + 1, in_size - 1)
        return i0, i1, d - i0.astype(jnp.float32)

    y0, y1, wy = coords(out_h, H)
    x0, x1, wx = coords(out_w, W)

    def mix_cols(rows):
        c0 = rows[:, :, x0]
        c1 = rows[:, :, x1]
        return c0 * (1 - wx)[None, None, :, None] + c1 * wx[None, None, :, None]

    top = mix_cols(x[:, y0])
    bot = mix_cols(x[:, y1])
    return top * (1 - wy)[None, :, None, None] + bot * wy[None, :, None, None]


def quality_net_forward(params, x_nchw):
    x = jnp.transpose(x_nchw, (0, 2, 3, 1)).astype(jnp.float32)   # NCHW -> NHWC
    feat = x
    for p, stride in zip(params["backbone"], (1, 2, 2, 2, 2)):
        feat = conv_block(feat, p, stride)

    # Global head (Dropout is identity in eval mode).  M=B=2 -> plain XLA dots.
    pooled = jnp.mean(feat, axis=(1, 2))                           # (B, 512)
    g = params["global_head"]
    h = jax.nn.relu(pooled @ g["w1"] + g["b1"])
    h = jax.nn.relu(h @ g["w2"] + g["b2"])
    gq = jax.nn.sigmoid(h @ g["w3"] + g["b3"])                     # (B, 4)

    # Local head (Pallas convs; the K=9*512 reduction is the hot matmul).
    l = params["local_head"]
    lq = conv2d(feat, l["w1"], l["b1"], stride=1, padding=1, act="relu")
    lq = conv2d(lq, l["w2"], l["b2"], stride=1, padding=1, act="relu")
    lq = conv2d(lq, l["w3"], l["b3"], stride=1, padding=1, act="sigmoid")
    lq = bilinear_resize(lq, x.shape[1], x.shape[2])[..., 0]       # (B, H, W)

    return {
        "overall_quality": gq[:, 0],
        "clarity": gq[:, 1],
        "contrast": gq[:, 2],
        "sharpness": gq[:, 3],
        "local_quality": lq,
        "features": jnp.transpose(feat, (0, 3, 1, 2)),             # back to NCHW
    }


# ----------------------------------------------------------------------------
# Deterministic parameter init (synthetic; BatchNorm folded at init, eps=1e-5)
# ----------------------------------------------------------------------------
def init_params(key):
    keys = iter(jax.random.split(key, 512))

    def nrm(shape, scale=0.05):
        return scale * jax.random.normal(next(keys), shape, dtype=jnp.float32)

    def bn(c):
        gamma = 1.0 + 0.1 * jax.random.normal(next(keys), (c,), jnp.float32)
        beta = 0.05 * jax.random.normal(next(keys), (c,), jnp.float32)
        mean = 0.05 * jax.random.normal(next(keys), (c,), jnp.float32)
        var = 0.9 + 0.2 * jax.random.uniform(next(keys), (c,), jnp.float32)
        return gamma, beta, mean, var

    def fold(w, b, bn_p):
        gamma, beta, mean, var = bn_p
        s = gamma / jnp.sqrt(var + 1e-5)
        return w * s, (b - mean) * s + beta

    specs = [(1, 32, 1), (32, 64, 2), (64, 128, 2), (128, 256, 2), (256, 512, 2)]
    backbone = []
    for cin, cout, _stride in specs:
        w1, b1 = fold(nrm((3, 3, cin, cout)), nrm((cout,)), bn(cout))
        w2, b2 = fold(nrm((3, 3, cout, cout)), nrm((cout,)), bn(cout))
        ws, bs = fold(nrm((1, 1, cin, cout)), nrm((cout,)), bn(cout))
        se = {"w1": nrm((cout, cout // 16)), "b1": nrm((cout // 16,)),
              "w2": nrm((cout // 16, cout)), "b2": nrm((cout,))}
        backbone.append({"w1": w1, "b1": b1, "w2": w2, "b2": b2,
                         "ws": ws, "bs": bs, "se": se})

    global_head = {"w1": nrm((512, 256)), "b1": nrm((256,)),
                   "w2": nrm((256, 128)), "b2": nrm((128,)),
                   "w3": nrm((128, 4)), "b3": nrm((4,))}
    local_head = {"w1": nrm((3, 3, 512, 256)), "b1": nrm((256,)),
                  "w2": nrm((3, 3, 256, 128)), "b2": nrm((128,)),
                  "w3": nrm((3, 3, 128, 1)), "b3": nrm((1,))}
    return {"backbone": backbone, "global_head": global_head,
            "local_head": local_head}


if __name__ == "__main__":
    key = jax.random.PRNGKey(0)
    pkey, xkey = jax.random.split(key)
    params = init_params(pkey)
    x = jax.random.normal(xkey, (2, 1, 16, 16), dtype=jnp.float32)   # NCHW

    fwd = jax.jit(quality_net_forward)
    out = fwd(params, x)
    jax.block_until_ready(out)

    assert out["overall_quality"].shape == (2,)
    assert out["clarity"].shape == (2,)
    assert out["contrast"].shape == (2,)
    assert out["sharpness"].shape == (2,)
    assert out["local_quality"].shape == (2, 16, 16)
    assert out["features"].shape == (2, 512, 1, 1)
    print("KERNEL_OK")
</pallas_src>

<mosaic_0001>
module attributes {stable_mosaic.version = 11 : i64} {
  func.func @_mm_bias_act_kernel(%arg0: i32, %arg1: i32, %arg2: i32, %arg3: memref<512x128xbf16, #tpu.memory_space<vmem>>, %arg4: memref<128x128xbf16, #tpu.memory_space<vmem>>, %arg5: memref<1x128xf32, #tpu.memory_space<vmem>>, %arg6: memref<512x128xf32, #tpu.memory_space<vmem>>, %arg7: memref<512x128xf32, #tpu.memory_space<vmem>>) attributes {dimension_semantics = [#tpu.dimension_semantics<parallel>, #tpu.dimension_semantics<parallel>, #tpu.dimension_semantics<arbitrary>], iteration_bounds = array<i64: 1, 1, 1>, scalar_prefetch = 0 : i64, scratch_operands = 1 : i64, tpu.core_type = #tpu.core_type<tc>, window_params = [{transform_indices = @transform_0, window_bounds = array<i64: 512, 128>}, {transform_indices = @transform_1, window_bounds = array<i64: 128, 128>}, {transform_indices = @transform_2, window_bounds = array<i64: 1, 128>}, {transform_indices = @transform_3, window_bounds = array<i64: 512, 128>}]} {
    %c0_i32 = arith.constant 0 : i32
    %0 = arith.cmpi eq, %arg2, %c0_i32 : i32
    %1 = arith.extui %0 : i1 to i32
    %c0_i32_0 = arith.constant 0 : i32
    %2 = arith.cmpi ne, %1, %c0_i32_0 : i32
    scf.if %2 {
      %cst_10 = arith.constant 0.000000e+00 : f32
      %12 = vector.broadcast %cst_10 : f32 to vector<512x128xf32>
      %c0_11 = arith.constant 0 : index
      %c0_12 = arith.constant 0 : index
      %13 = vector.load %arg7[%c0_11, %c0_12] : memref<512x128xf32, #tpu.memory_space<vmem>>, vector<512x128xf32>
      tpu.vector_store %arg7[%c0_11, %c0_12], %12 {strides = array<i32>} : memref<512x128xf32, #tpu.memory_space<vmem>>, vector<512x128xf32>,
    } else {
    }
    %c0 = arith.constant 0 : index
    %c0_1 = arith.constant 0 : index
    %3 = vector.load %arg7[%c0, %c0_1] : memref<512x128xf32, #tpu.memory_space<vmem>>, vector<512x128xf32>
    %c0_2 = arith.constant 0 : index
    %c0_3 = arith.constant 0 : index
    %4 = vector.load %arg3[%c0_2, %c0_3] : memref<512x128xbf16, #tpu.memory_space<vmem>>, vector<512x128xbf16>
    %c0_4 = arith.constant 0 : index
    %c0_5 = arith.constant 0 : index
    %5 = vector.load %arg4[%c0_4, %c0_5] : memref<128x128xbf16, #tpu.memory_space<vmem>>, vector<128x128xbf16>
    %cst = arith.constant dense<0.000000e+00> : vector<512x128xf32>
    %6 = tpu.matmul %4, %5, %cst {dimension_numbers = #tpu.dot_dimension_numbers<[1], [0], [0], [1], [0, 0, 1, 1], [], []>} : vector<512x128xbf16>, vector<128x128xbf16>, vector<512x128xf32> -> vector<512x128xf32>
    %7 = arith.addf %3, %6 : vector<512x128xf32>
    %c0_6 = arith.constant 0 : index
    %c0_7 = arith.constant 0 : index
    %8 = vector.load %arg7[%c0_6, %c0_7] : memref<512x128xf32, #tpu.memory_space<vmem>>, vector<512x128xf32>
    tpu.vector_store %arg7[%c0_6, %c0_7], %7 {strides = array<i32>} : memref<512x128xf32, #tpu.memory_space<vmem>>, vector<512x128xf32>,
    %c0_i32_8 = arith.constant 0 : i32
    %9 = arith.cmpi eq, %arg2, %c0_i32_8 : i32
    %10 = arith.extui %9 : i1 to i32
    %c0_i32_9 = arith.constant 0 : i32
    %11 = arith.cmpi ne, %10, %c0_i32_9 : i32
    scf.if %11 {
      %c0_10 = arith.constant 0 : index
      %c0_11 = arith.constant 0 : index
      %12 = vector.load %arg7[%c0_10, %c0_11] : memref<512x128xf32, #tpu.memory_space<vmem>>, vector<512x128xf32>
      %c0_12 = arith.constant 0 : index
      %c0_13 = arith.constant 0 : index
      %13 = vector.load %arg5[%c0_12, %c0_13] : memref<1x128xf32, #tpu.memory_space<vmem>>, vector<1x128xf32>
      %14 = vector.broadcast %13 : vector<1x128xf32> to vector<512x128xf32>
      %15 = arith.addf %12, %14 : vector<512x128xf32>
      %cst_14 = arith.constant 0.000000e+00 : f32
      %16 = vector.broadcast %cst_14 : f32 to vector<512x128xf32>
      %17 = arith.maximumf %15, %16 : vector<512x128xf32>
      %c0_15 = arith.constant 0 : index
      %c0_16 = arith.constant 0 : index
      %18 = vector.load %arg6[%c0_15, %c0_16] : memref<512x128xf32, #tpu.memory_space<vmem>>, vector<512x128xf32>
      tpu.vector_store %arg6[%c0_15, %c0_16], %17 {strides = array<i32>} : memref<512x128xf32, #tpu.memory_space<vmem>>, vector<512x128xf32>,
    } else {
    }
    return
  }
  func.func @transform_0(%arg0: i32, %arg1: i32, %arg2: i32) -> (i32, i32) {
    %c0_i32 = arith.constant 0 : i32
    return %arg0, %arg2 : i32, i32
  }
  func.func @transform_1(%arg0: i32, %arg1: i32, %arg2: i32) -> (i32, i32) {
    %c0_i32 = arith.constant 0 : i32
    return %arg2, %arg1 : i32, i32
  }
  func.func @transform_2(%arg0: i32, %arg1: i32, %arg2: i32) -> (i32, i32) {
    %c0_i32 = arith.constant 0 : i32
    %c0_i32_0 = arith.constant 0 : i32
    return %c0_i32, %arg1 : i32, i32
  }
  func.func @transform_3(%arg0: i32, %arg1: i32, %arg2: i32) -> (i32, i32) {
    %c0_i32 = arith.constant 0 : i32
    return %arg0, %arg1 : i32, i32
  }
}

module attributes {stable_mosaic.version = 11 : i64} {
  func.func @_mm_bias_act_kernel(%arg0: i32, %arg1: i32, %arg2: i32, %arg3: memref<512x384xbf16, #tpu.memory_space<vmem>>, %arg4: memref<384x128xbf16, #tpu.memory_space<vmem>>, %arg5: memref<1x128xf32, #tpu.memory_space<vmem>>, %arg6: memref<512x128xf32, #tpu.memory_space<vmem>>, %arg7: memref<512x128xf32, #tpu.memory_space<vmem>>) attributes {dimension_semantics = [#tpu.dimension_semantics<parallel>, #tpu.dimension_semantics<parallel>, #tpu.dimension_semantics<arbitrary>], iteration_bounds = array<i64: 1, 1, 1>, scalar_prefetch = 0 : i64, scratch_operands = 1 : i64, tpu.core_type = #tpu.core_type<tc>, window_params = [{transform_indices = @transform_0, window_bounds = array<i64: 512, 384>}, {transform_indices = @transform_1, window_bounds = array<i64: 384, 128>}, {transform_indices = @transform_2, window_bounds = array<i64: 1, 128>}, {transform_indices = @transform_3, window_bounds = array<i64: 512, 128>}]} {
    %c0_i32 = arith.constant 0 : i32
    %0 = arith.cmpi eq, %arg2, %c0_i32 : i32
    %1 = arith.extui %0 : i1 to i32
    %c0_i32_0 = arith.constant 0 : i32
    %2 = arith.cmpi ne, %1, %c0_i32_0 : i32
    scf.if %2 {
      %cst_10 = arith.constant 0.000000e+00 : f32
      %12 = vector.broadcast %cst_10 : f32 to vector<512x128xf32>
      %c0_11 = arith.constant 0 : index
      %c0_12 = arith.constant 0 : index
      %13 = vector.load %arg7[%c0_11, %c0_12] : memref<512x128xf32, #tpu.memory_space<vmem>>, vector<512x128xf32>
      tpu.vector_store %arg7[%c0_11, %c0_12], %12 {strides = array<i32>} : memref<512x128xf32, #tpu.memory_space<vmem>>, vector<512x128xf32>,
    } else {
    }
    %c0 = arith.constant 0 : index
    %c0_1 = arith.constant 0 : index
    %3 = vector.load %arg7[%c0, %c0_1] : memref<512x128xf32, #tpu.memory_space<vmem>>, vector<512x128xf32>
    %c0_2 = arith.constant 0 : index
    %c0_3 = arith.constant 0 : index
    %4 = vector.load %arg3[%c0_2, %c0_3] : memref<512x384xbf16, #tpu.memory_space<vmem>>, vector<512x384xbf16>
    %c0_4 = arith.constant 0 : index
    %c0_5 = arith.constant 0 : index
    %5 = vector.load %arg4[%c0_4, %c0_5] : memref<384x128xbf16, #tpu.memory_space<vmem>>, vector<384x128xbf16>
    %cst = arith.constant dense<0.000000e+00> : vector<512x128xf32>
    %6 = tpu.matmul %4, %5, %cst {dimension_numbers = #tpu.dot_dimension_numbers<[1], [0], [0], [1], [0, 0, 1, 1], [], []>} : vector<512x384xbf16>, vector<384x128xbf16>, vector<512x128xf32> -> vector<512x128xf32>
    %7 = arith.addf %3, %6 : vector<512x128xf32>
    %c0_6 = arith.constant 0 : index
    %c0_7 = arith.constant 0 : index
    %8 = vector.load %arg7[%c0_6, %c0_7] : memref<512x128xf32, #tpu.memory_space<vmem>>, vector<512x128xf32>
    tpu.vector_store %arg7[%c0_6, %c0_7], %7 {strides = array<i32>} : memref<512x128xf32, #tpu.memory_space<vmem>>, vector<512x128xf32>,
    %c0_i32_8 = arith.constant 0 : i32
    %9 = arith.cmpi eq, %arg2, %c0_i32_8 : i32
    %10 = arith.extui %9 : i1 to i32
    %c0_i32_9 = arith.constant 0 : i32
    %11 = arith.cmpi ne, %10, %c0_i32_9 : i32
    scf.if %11 {
      %c0_10 = arith.constant 0 : index
      %c0_11 = arith.constant 0 : index
      %12 = vector.load %arg7[%c0_10, %c0_11] : memref<512x128xf32, #tpu.memory_space<vmem>>, vector<512x128xf32>
      %c0_12 = arith.constant 0 : index
      %c0_13 = arith.constant 0 : index
      %13 = vector.load %arg5[%c0_12, %c0_13] : memref<1x128xf32, #tpu.memory_space<vmem>>, vector<1x128xf32>
      %14 = vector.broadcast %13 : vector<1x128xf32> to vector<512x128xf32>
      %15 = arith.addf %12, %14 : vector<512x128xf32>
      %c0_14 = arith.constant 0 : index
      %c0_15 = arith.constant 0 : index
      %16 = vector.load %arg6[%c0_14, %c0_15] : memref<512x128xf32, #tpu.memory_space<vmem>>, vector<512x128xf32>
      tpu.vector_store %arg6[%c0_14, %c0_15], %15 {strides = array<i32>} : memref<512x128xf32, #tpu.memory_space<vmem>>, vector<512x128xf32>,
    } else {
    }
    return
  }
  func.func @transform_0(%arg0: i32, %arg1: i32, %arg2: i32) -> (i32, i32) {
    %c0_i32 = arith.constant 0 : i32
    return %arg0, %arg2 : i32, i32
  }
  func.func @transform_1(%arg0: i32, %arg1: i32, %arg2: i32) -> (i32, i32) {
    %c0_i32 = arith.constant 0 : i32
    return %arg2, %arg1 : i32, i32
  }
  func.func @transform_2(%arg0: i32, %arg1: i32, %arg2: i32) -> (i32, i32) {
    %c0_i32 = arith.constant 0 : i32
    %c0_i32_0 = arith.constant 0 : i32
    return %c0_i32, %arg1 : i32, i32
  }
  func.func @transform_3(%arg0: i32, %arg1: i32, %arg2: i32) -> (i32, i32) {
    %c0_i32 = arith.constant 0 : i32
    return %arg0, %arg1 : i32, i32
  }
}

module attributes {stable_mosaic.version = 11 : i64} {
  func.func @_scale_add_relu_kernel(%arg0: i32, %arg1: i32, %arg2: memref<1x256x32xf32, #tpu.memory_space<vmem>>, %arg3: memref<1x1x32xf32, #tpu.memory_space<vmem>>, %arg4: memref<1x256x32xf32, #tpu.memory_space<vmem>>, %arg5: memref<1x256x32xf32, #tpu.memory_space<vmem>>) attributes {dimension_semantics = [#tpu.dimension_semantics<parallel>, #tpu.dimension_semantics<parallel>], iteration_bounds = array<i64: 2, 1>, scalar_prefetch = 0 : i64, scratch_operands = 0 : i64, tpu.core_type = #tpu.core_type<tc>, window_params = [{transform_indices = @transform_0, window_bounds = array<i64: 1, 256, 32>}, {transform_indices = @transform_1, window_bounds = array<i64: 1, 1, 32>}, {transform_indices = @transform_2, window_bounds = array<i64: 1, 256, 32>}, {transform_indices = @transform_3, window_bounds = array<i64: 1, 256, 32>}]} {
    %c0 = arith.constant 0 : index
    %c0_0 = arith.constant 0 : index
    %c0_1 = arith.constant 0 : index
    %0 = vector.load %arg2[%c0, %c0_0, %c0_1] : memref<1x256x32xf32, #tpu.memory_space<vmem>>, vector<1x256x32xf32>
    %c0_2 = arith.constant 0 : index
    %c0_3 = arith.constant 0 : index
    %c0_4 = arith.constant 0 : index
    %1 = vector.load %arg3[%c0_2, %c0_3, %c0_4] : memref<1x1x32xf32, #tpu.memory_space<vmem>>, vector<1x1x32xf32>
    %2 = vector.broadcast %1 : vector<1x1x32xf32> to vector<1x256x32xf32>
    %3 = arith.mulf %0, %2 : vector<1x256x32xf32>
    %c0_5 = arith.constant 0 : index
    %c0_6 = arith.constant 0 : index
    %c0_7 = arith.constant 0 : index
    %4 = vector.load %arg4[%c0_5, %c0_6, %c0_7] : memref<1x256x32xf32, #tpu.memory_space<vmem>>, vector<1x256x32xf32>
    %5 = arith.addf %3, %4 : vector<1x256x32xf32>
    %cst = arith.constant 0.000000e+00 : f32
    %6 = vector.broadcast %cst : f32 to vector<1x256x32xf32>
    %7 = arith.maximumf %5, %6 : vector<1x256x32xf32>
    %c0_8 = arith.constant 0 : index
    %c0_9 = arith.constant 0 : index
    %c0_10 = arith.constant 0 : index
    %8 = vector.load %arg5[%c0_8, %c0_9, %c0_10] : memref<1x256x32xf32, #tpu.memory_space<vmem>>, vector<1x256x32xf32>
    tpu.vector_store %arg5[%c0_8, %c0_9, %c0_10], %7 {strides = array<i32>} : memref<1x256x32xf32, #tpu.memory_space<vmem>>, vector<1x256x32xf32>,
    return
  }
  func.func @transform_0(%arg0: i32, %arg1: i32) -> (i32, i32, i32) {
    %c0_i32 = arith.constant 0 : i32
    %c0_i32_0 = arith.constant 0 : i32
    return %arg0, %arg1, %c0_i32 : i32, i32, i32
  }
  func.func @transform_1(%arg0: i32, %arg1: i32) -> (i32, i32, i32) {
    %c0_i32 = arith.constant 0 : i32
    %c0_i32_0 = arith.constant 0 : i32
    %c0_i32_1 = arith.constant 0 : i32
    return %arg0, %c0_i32, %c0_i32_0 : i32, i32, i32
  }
  func.func @transform_2(%arg0: i32, %arg1: i32) -> (i32, i32, i32) {
    %c0_i32 = arith.constant 0 : i32
    %c0_i32_0 = arith.constant 0 : i32
    return %arg0, %arg1, %c0_i32 : i32, i32, i32
  }
  func.func @transform_3(%arg0: i32, %arg1: i32) -> (i32, i32, i32) {
    %c0_i32 = arith.constant 0 : i32
    %c0_i32_0 = arith.constant 0 : i32
    return %arg0, %arg1, %c0_i32 : i32, i32, i32
  }
}

module attributes {stable_mosaic.version = 11 : i64} {
  func.func @_mm_bias_act_kernel(%arg0: i32, %arg1: i32, %arg2: i32, %arg3: memref<512x128xbf16, #tpu.memory_space<vmem>>, %arg4: memref<128x128xbf16, #tpu.memory_space<vmem>>, %arg5: memref<1x128xf32, #tpu.memory_space<vmem>>, %arg6: memref<512x128xf32, #tpu.memory_space<vmem>>, %arg7: memref<512x128xf32, #tpu.memory_space<vmem>>) attributes {dimension_semantics = [#tpu.dimension_semantics<parallel>, #tpu.dimension_semantics<parallel>, #tpu.dimension_semantics<arbitrary>], iteration_bounds = array<i64: 1, 1, 1>, scalar_prefetch = 0 : i64, scratch_operands = 1 : i64, tpu.core_type = #tpu.core_type<tc>, window_params = [{transform_indices = @transform_0, window_bounds = array<i64: 512, 128>}, {transform_indices = @transform_1, window_bounds = array<i64: 128, 128>}, {transform_indices = @transform_2, window_bounds = array<i64: 1, 128>}, {transform_indices = @transform_3, window_bounds = array<i64: 512, 128>}]} {
    %c0_i32 = arith.constant 0 : i32
    %0 = arith.cmpi eq, %arg2, %c0_i32 : i32
    %1 = arith.extui %0 : i1 to i32
    %c0_i32_0 = arith.constant 0 : i32
    %2 = arith.cmpi ne, %1, %c0_i32_0 : i32
    scf.if %2 {
      %cst_10 = arith.constant 0.000000e+00 : f32
      %12 = vector.broadcast %cst_10 : f32 to vector<512x128xf32>
      %c0_11 = arith.constant 0 : index
      %c0_12 = arith.constant 0 : index
      %13 = vector.load %arg7[%c0_11, %c0_12] : memref<512x128xf32, #tpu.memory_space<vmem>>, vector<512x128xf32>
      tpu.vector_store %arg7[%c0_11, %c0_12], %12 {strides = array<i32>} : memref<512x128xf32, #tpu.memory_space<vmem>>, vector<512x128xf32>,
    } else {
    }
    %c0 = arith.constant 0 : index
    %c0_1 = arith.constant 0 : index
    %3 = vector.load %arg7[%c0, %c0_1] : memref<512x128xf32, #tpu.memory_space<vmem>>, vector<512x128xf32>
    %c0_2 = arith.constant 0 : index
    %c0_3 = arith.constant 0 : index
    %4 = vector.load %arg3[%c0_2, %c0_3] : memref<512x128xbf16, #tpu.memory_space<vmem>>, vector<512x128xbf16>
    %c0_4 = arith.constant 0 : index
    %c0_5 = arith.constant 0 : index
    %5 = vector.load %arg4[%c0_4, %c0_5] : memref<128x128xbf16, #tpu.memory_space<vmem>>, vector<128x128xbf16>
    %cst = arith.constant dense<0.000000e+00> : vector<512x128xf32>
    %6 = tpu.matmul %4, %5, %cst {dimension_numbers = #tpu.dot_dimension_numbers<[1], [0], [0], [1], [0, 0, 1, 1], [], []>} : vector<512x128xbf16>, vector<128x128xbf16>, vector<512x128xf32> -> vector<512x128xf32>
    %7 = arith.addf %3, %6 : vector<512x128xf32>
    %c0_6 = arith.constant 0 : index
    %c0_7 = arith.constant 0 : index
    %8 = vector.load %arg7[%c0_6, %c0_7] : memref<512x128xf32, #tpu.memory_space<vmem>>, vector<512x128xf32>
    tpu.vector_store %arg7[%c0_6, %c0_7], %7 {strides = array<i32>} : memref<512x128xf32, #tpu.memory_space<vmem>>, vector<512x128xf32>,
    %c0_i32_8 = arith.constant 0 : i32
    %9 = arith.cmpi eq, %arg2, %c0_i32_8 : i32
    %10 = arith.extui %9 : i1 to i32
    %c0_i32_9 = arith.constant 0 : i32
    %11 = arith.cmpi ne, %10, %c0_i32_9 : i32
    scf.if %11 {
      %c0_10 = arith.constant 0 : index
      %c0_11 = arith.constant 0 : index
      %12 = vector.load %arg7[%c0_10, %c0_11] : memref<512x128xf32, #tpu.memory_space<vmem>>, vector<512x128xf32>
      %c0_12 = arith.constant 0 : index
      %c0_13 = arith.constant 0 : index
      %13 = vector.load %arg5[%c0_12, %c0_13] : memref<1x128xf32, #tpu.memory_space<vmem>>, vector<1x128xf32>
      %14 = vector.broadcast %13 : vector<1x128xf32> to vector<512x128xf32>
      %15 = arith.addf %12, %14 : vector<512x128xf32>
      %c0_14 = arith.constant 0 : index
      %c0_15 = arith.constant 0 : index
      %16 = vector.load %arg6[%c0_14, %c0_15] : memref<512x128xf32, #tpu.memory_space<vmem>>, vector<512x128xf32>
      tpu.vector_store %arg6[%c0_14, %c0_15], %15 {strides = array<i32>} : memref<512x128xf32, #tpu.memory_space<vmem>>, vector<512x128xf32>,
    } else {
    }
    return
  }
  func.func @transform_0(%arg0: i32, %arg1: i32, %arg2: i32) -> (i32, i32) {
    %c0_i32 = arith.constant 0 : i32
    return %arg0, %arg2 : i32, i32
  }
  func.func @transform_1(%arg0: i32, %arg1: i32, %arg2: i32) -> (i32, i32) {
    %c0_i32 = arith.constant 0 : i32
    return %arg2, %arg1 : i32, i32
  }
  func.func @transform_2(%arg0: i32, %arg1: i32, %arg2: i32) -> (i32, i32) {
    %c0_i32 = arith.constant 0 : i32
    %c0_i32_0 = arith.constant 0 : i32
    return %c0_i32, %arg1 : i32, i32
  }
  func.func @transform_3(%arg0: i32, %arg1: i32, %arg2: i32) -> (i32, i32) {
    %c0_i32 = arith.constant 0 : i32
    return %arg0, %arg1 : i32, i32
  }
}

module attributes {stable_mosaic.version = 11 : i64} {
  func.func @_mm_bias_act_kernel(%arg0: i32, %arg1: i32, %arg2: i32, %arg3: memref<128x384xbf16, #tpu.memory_space<vmem>>, %arg4: memref<384x128xbf16, #tpu.memory_space<vmem>>, %arg5: memref<1x128xf32, #tpu.memory_space<vmem>>, %arg6: memref<128x128xf32, #tpu.memory_space<vmem>>, %arg7: memref<128x128xf32, #tpu.memory_space<vmem>>) attributes {dimension_semantics = [#tpu.dimension_semantics<parallel>, #tpu.dimension_semantics<parallel>, #tpu.dimension_semantics<arbitrary>], iteration_bounds = array<i64: 1, 1, 1>, scalar_prefetch = 0 : i64, scratch_operands = 1 : i64, tpu.core_type = #tpu.core_type<tc>, window_params = [{transform_indices = @transform_0, window_bounds = array<i64: 128, 384>}, {transform_indices = @transform_1, window_bounds = array<i64: 384, 128>}, {transform_indices = @transform_2, window_bounds = array<i64: 1, 128>}, {transform_indices = @transform_3, window_bounds = array<i64: 128, 128>}]} {
    %c0_i32 = arith.constant 0 : i32
    %0 = arith.cmpi eq, %arg2, %c0_i32 : i32
    %1 = arith.extui %0 : i1 to i32
    %c0_i32_0 = arith.constant 0 : i32
    %2 = arith.cmpi ne, %1, %c0_i32_0 : i32
    scf.if %2 {
      %cst_10 = arith.constant 0.000000e+00 : f32
      %12 = vector.broadcast %cst_10 : f32 to vector<128x128xf32>
      %c0_11 = arith.constant 0 : index
      %c0_12 = arith.constant 0 : index
      %13 = vector.load %arg7[%c0_11, %c0_12] : memref<128x128xf32, #tpu.memory_space<vmem>>, vector<128x128xf32>
      tpu.vector_store %arg7[%c0_11, %c0_12], %12 {strides = array<i32>} : memref<128x128xf32, #tpu.memory_space<vmem>>, vector<128x128xf32>,
    } else {
    }
    %c0 = arith.constant 0 : index
    %c0_1 = arith.constant 0 : index
    %3 = vector.load %arg7[%c0, %c0_1] : memref<128x128xf32, #tpu.memory_space<vmem>>, vector<128x128xf32>
    %c0_2 = arith.constant 0 : index
    %c0_3 = arith.constant 0 : index
    %4 = vector.load %arg3[%c0_2, %c0_3] : memref<128x384xbf16, #tpu.memory_space<vmem>>, vector<128x384xbf16>
    %c0_4 = arith.constant 0 : index
    %c0_5 = arith.constant 0 : index
    %5 = vector.load %arg4[%c0_4, %c0_5] : memref<384x128xbf16, #tpu.memory_space<vmem>>, vector<384x128xbf16>
    %cst = arith.constant dense<0.000000e+00> : vector<128x128xf32>
    %6 = tpu.matmul %4, %5, %cst {dimension_numbers = #tpu.dot_dimension_numbers<[1], [0], [0], [1], [0, 0, 1, 1], [], []>} : vector<128x384xbf16>, vector<384x128xbf16>, vector<128x128xf32> -> vector<128x128xf32>
    %7 = arith.addf %3, %6 : vector<128x128xf32>
    %c0_6 = arith.constant 0 : index
    %c0_7 = arith.constant 0 : index
    %8 = vector.load %arg7[%c0_6, %c0_7] : memref<128x128xf32, #tpu.memory_space<vmem>>, vector<128x128xf32>
    tpu.vector_store %arg7[%c0_6, %c0_7], %7 {strides = array<i32>} : memref<128x128xf32, #tpu.memory_space<vmem>>, vector<128x128xf32>,
    %c0_i32_8 = arith.constant 0 : i32
    %9 = arith.cmpi eq, %arg2, %c0_i32_8 : i32
    %10 = arith.extui %9 : i1 to i32
    %c0_i32_9 = arith.constant 0 : i32
    %11 = arith.cmpi ne, %10, %c0_i32_9 : i32
    scf.if %11 {
      %c0_10 = arith.constant 0 : index
      %c0_11 = arith.constant 0 : index
      %12 = vector.load %arg7[%c0_10, %c0_11] : memref<128x128xf32, #tpu.memory_space<vmem>>, vector<128x128xf32>
      %c0_12 = arith.constant 0 : index
      %c0_13 = arith.constant 0 : index
      %13 = vector.load %arg5[%c0_12, %c0_13] : memref<1x128xf32, #tpu.memory_space<vmem>>, vector<1x128xf32>
      %14 = vector.broadcast %13 : vector<1x128xf32> to vector<128x128xf32>
      %15 = arith.addf %12, %14 : vector<128x128xf32>
      %cst_14 = arith.constant 0.000000e+00 : f32
      %16 = vector.broadcast %cst_14 : f32 to vector<128x128xf32>
      %17 = arith.maximumf %15, %16 : vector<128x128xf32>
      %c0_15 = arith.constant 0 : index
      %c0_16 = arith.constant 0 : index
      %18 = vector.load %arg6[%c0_15, %c0_16] : memref<128x128xf32, #tpu.memory_space<vmem>>, vector<128x128xf32>
      tpu.vector_store %arg6[%c0_15, %c0_16], %17 {strides = array<i32>} : memref<128x128xf32, #tpu.memory_space<vmem>>, vector<128x128xf32>,
    } else {
    }
    return
  }
  func.func @transform_0(%arg0: i32, %arg1: i32, %arg2: i32) -> (i32, i32) {
    %c0_i32 = arith.constant 0 : i32
    return %arg0, %arg2 : i32, i32
  }
  func.func @transform_1(%arg0: i32, %arg1: i32, %arg2: i32) -> (i32, i32) {
    %c0_i32 = arith.constant 0 : i32
    return %arg2, %arg1 : i32, i32
  }
  func.func @transform_2(%arg0: i32, %arg1: i32, %arg2: i32) -> (i32, i32) {
    %c0_i32 = arith.constant 0 : i32
    %c0_i32_0 = arith.constant 0 : i32
    return %c0_i32, %arg1 : i32, i32
  }
  func.func @transform_3(%arg0: i32, %arg1: i32, %arg2: i32) -> (i32, i32) {
    %c0_i32 = arith.constant 0 : i32
    return %arg0, %arg1 : i32, i32
  }
}

module attributes {stable_mosaic.version = 11 : i64} {
  func.func @_mm_bias_act_kernel(%arg0: i32, %arg1: i32, %arg2: i32, %arg3: memref<128x128xbf16, #tpu.memory_space<vmem>>, %arg4: memref<128x128xbf16, #tpu.memory_space<vmem>>, %arg5: memref<1x128xf32, #tpu.memory_space<vmem>>, %arg6: memref<128x128xf32, #tpu.memory_space<vmem>>, %arg7: memref<128x128xf32, #tpu.memory_space<vmem>>) attributes {dimension_semantics = [#tpu.dimension_semantics<parallel>, #tpu.dimension_semantics<parallel>, #tpu.dimension_semantics<arbitrary>], iteration_bounds = array<i64: 1, 1, 1>, scalar_prefetch = 0 : i64, scratch_operands = 1 : i64, tpu.core_type = #tpu.core_type<tc>, window_params = [{transform_indices = @transform_0, window_bounds = array<i64: 128, 128>}, {transform_indices = @transform_1, window_bounds = array<i64: 128, 128>}, {transform_indices = @transform_2, window_bounds = array<i64: 1, 128>}, {transform_indices = @transform_3, window_bounds = array<i64: 128, 128>}]} {
    %c0_i32 = arith.constant 0 : i32
    %0 = arith.cmpi eq, %arg2, %c0_i32 : i32
    %1 = arith.extui %0 : i1 to i32
    %c0_i32_0 = arith.constant 0 : i32
    %2 = arith.cmpi ne, %1, %c0_i32_0 : i32
    scf.if %2 {
      %cst_10 = arith.constant 0.000000e+00 : f32
      %12 = vector.broadcast %cst_10 : f32 to vector<128x128xf32>
      %c0_11 = arith.constant 0 : index
      %c0_12 = arith.constant 0 : index
      %13 = vector.load %arg7[%c0_11, %c0_12] : memref<128x128xf32, #tpu.memory_space<vmem>>, vector<128x128xf32>
      tpu.vector_store %arg7[%c0_11, %c0_12], %12 {strides = array<i32>} : memref<128x128xf32, #tpu.memory_space<vmem>>, vector<128x128xf32>,
    } else {
    }
    %c0 = arith.constant 0 : index
    %c0_1 = arith.constant 0 : index
    %3 = vector.load %arg7[%c0, %c0_1] : memref<128x128xf32, #tpu.memory_space<vmem>>, vector<128x128xf32>
    %c0_2 = arith.constant 0 : index
    %c0_3 = arith.constant 0 : index
    %4 = vector.load %arg3[%c0_2, %c0_3] : memref<128x128xbf16, #tpu.memory_space<vmem>>, vector<128x128xbf16>
    %c0_4 = arith.constant 0 : index
    %c0_5 = arith.constant 0 : index
    %5 = vector.load %arg4[%c0_4, %c0_5] : memref<128x128xbf16, #tpu.memory_space<vmem>>, vector<128x128xbf16>
    %cst = arith.constant dense<0.000000e+00> : vector<128x128xf32>
    %6 = tpu.matmul %4, %5, %cst {dimension_numbers = #tpu.dot_dimension_numbers<[1], [0], [0], [1], [0, 0, 1, 1], [], []>} : vector<128x128xbf16>, vector<128x128xbf16>, vector<128x128xf32> -> vector<128x128xf32>
    %7 = arith.addf %3, %6 : vector<128x128xf32>
    %c0_6 = arith.constant 0 : index
    %c0_7 = arith.constant 0 : index
    %8 = vector.load %arg7[%c0_6, %c0_7] : memref<128x128xf32, #tpu.memory_space<vmem>>, vector<128x128xf32>
    tpu.vector_store %arg7[%c0_6, %c0_7], %7 {strides = array<i32>} : memref<128x128xf32, #tpu.memory_space<vmem>>, vector<128x128xf32>,
    %c0_i32_8 = arith.constant 0 : i32
    %9 = arith.cmpi eq, %arg2, %c0_i32_8 : i32
    %10 = arith.extui %9 : i1 to i32
    %c0_i32_9 = arith.constant 0 : i32
    %11 = arith.cmpi ne, %10, %c0_i32_9 : i32
    scf.if %11 {
      %c0_10 = arith.constant 0 : index
      %c0_11 = arith.constant 0 : index
      %12 = vector.load %arg7[%c0_10, %c0_11] : memref<128x128xf32, #tpu.memory_space<vmem>>, vector<128x128xf32>
      %c0_12 = arith.constant 0 : index
      %c0_13 = arith.constant 0 : index
      %13 = vector.load %arg5[%c0_12, %c0_13] : memref<1x128xf32, #tpu.memory_space<vmem>>, vector<1x128xf32>
      %14 = vector.broadcast %13 : vector<1x128xf32> to vector<128x128xf32>
      %15 = arith.addf %12, %14 : vector<128x128xf32>
      %c0_14 = arith.constant 0 : index
      %c0_15 = arith.constant 0 : index
      %16 = vector.load %arg6[%c0_14, %c0_15] : memref<128x128xf32, #tpu.memory_space<vmem>>, vector<128x128xf32>
      tpu.vector_store %arg6[%c0_14, %c0_15], %15 {strides = array<i32>} : memref<128x128xf32, #tpu.memory_space<vmem>>, vector<128x128xf32>,
    } else {
    }
    return
  }
  func.func @transform_0(%arg0: i32, %arg1: i32, %arg2: i32) -> (i32, i32) {
    %c0_i32 = arith.constant 0 : i32
    return %arg0, %arg2 : i32, i32
  }
  func.func @transform_1(%arg0: i32, %arg1: i32, %arg2: i32) -> (i32, i32) {
    %c0_i32 = arith.constant 0 : i32
    return %arg2, %arg1 : i32, i32
  }
  func.func @transform_2(%arg0: i32, %arg1: i32, %arg2: i32) -> (i32, i32) {
    %c0_i32 = arith.constant 0 : i32
    %c0_i32_0 = arith.constant 0 : i32
    return %c0_i32, %arg1 : i32, i32
  }
  func.func @transform_3(%arg0: i32, %arg1: i32, %arg2: i32) -> (i32, i32) {
    %c0_i32 = arith.constant 0 : i32
    return %arg0, %arg1 : i32, i32
  }
}

module attributes {stable_mosaic.version = 11 : i64} {
  func.func @_mm_bias_act_kernel(%arg0: i32, %arg1: i32, %arg2: i32, %arg3: memref<128x512xbf16, #tpu.memory_space<vmem>>, %arg4: memref<512x128xbf16, #tpu.memory_space<vmem>>, %arg5: memref<1x128xf32, #tpu.memory_space<vmem>>, %arg6: memref<128x128xf32, #tpu.memory_space<vmem>>, %arg7: memref<128x128xf32, #tpu.memory_space<vmem>>) attributes {dimension_semantics = [#tpu.dimension_semantics<parallel>, #tpu.dimension_semantics<parallel>, #tpu.dimension_semantics<arbitrary>], iteration_bounds = array<i64: 1, 1, 2>, scalar_prefetch = 0 : i64, scratch_operands = 1 : i64, tpu.core_type = #tpu.core_type<tc>, window_params = [{transform_indices = @transform_0, window_bounds = array<i64: 128, 512>}, {transform_indices = @transform_1, window_bounds = array<i64: 512, 128>}, {transform_indices = @transform_2, window_bounds = array<i64: 1, 128>}, {transform_indices = @transform_3, window_bounds = array<i64: 128, 128>}]} {
    %c0_i32 = arith.constant 0 : i32
    %0 = arith.cmpi eq, %arg2, %c0_i32 : i32
    %1 = arith.extui %0 : i1 to i32
    %c0_i32_0 = arith.constant 0 : i32
    %2 = arith.cmpi ne, %1, %c0_i32_0 : i32
    scf.if %2 {
      %cst_9 = arith.constant 0.000000e+00 : f32
      %12 = vector.broadcast %cst_9 : f32 to vector<128x128xf32>
      %c0_10 = arith.constant 0 : index
      %c0_11 = arith.constant 0 : index
      %13 = vector.load %arg7[%c0_10, %c0_11] : memref<128x128xf32, #tpu.memory_space<vmem>>, vector<128x128xf32>
      tpu.vector_store %arg7[%c0_10, %c0_11], %12 {strides = array<i32>} : memref<128x128xf32, #tpu.memory_space<vmem>>, vector<128x128xf32>,
    } else {
    }
    %c0 = arith.constant 0 : index
    %c0_1 = arith.constant 0 : index
    %3 = vector.load %arg7[%c0, %c0_1] : memref<128x128xf32, #tpu.memory_space<vmem>>, vector<128x128xf32>
    %c0_2 = arith.constant 0 : index
    %c0_3 = arith.constant 0 : index
    %4 = vector.load %arg3[%c0_2, %c0_3] : memref<128x512xbf16, #tpu.memory_space<vmem>>, vector<128x512xbf16>
    %c0_4 = arith.constant 0 : index
    %c0_5 = arith.constant 0 : index
    %5 = vector.load %arg4[%c0_4, %c0_5] : memref<512x128xbf16, #tpu.memory_space<vmem>>, vector<512x128xbf16>
    %cst = arith.constant dense<0.000000e+00> : vector<128x128xf32>
    %6 = tpu.matmul %4, %5, %cst {dimension_numbers = #tpu.dot_dimension_numbers<[1], [0], [0], [1], [0, 0, 1, 1], [], []>} : vector<128x512xbf16>, vector<512x128xbf16>, vector<128x128xf32> -> vector<128x128xf32>
    %7 = arith.addf %3, %6 : vector<128x128xf32>
    %c0_6 = arith.constant 0 : index
    %c0_7 = arith.constant 0 : index
    %8 = vector.load %arg7[%c0_6, %c0_7] : memref<128x128xf32, #tpu.memory_space<vmem>>, vector<128x128xf32>
    tpu.vector_store %arg7[%c0_6, %c0_7], %7 {strides = array<i32>} : memref<128x128xf32, #tpu.memory_space<vmem>>, vector<128x128xf32>,
    %c1_i32 = arith.constant 1 : i32
    %9 = arith.cmpi eq, %arg2, %c1_i32 : i32
    %10 = arith.extui %9 : i1 to i32
    %c0_i32_8 = arith.constant 0 : i32
    %11 = arith.cmpi ne, %10, %c0_i32_8 : i32
    scf.if %11 {
      %c0_9 = arith.constant 0 : index
      %c0_10 = arith.constant 0 : index
      %12 = vector.load %arg7[%c0_9, %c0_10] : memref<128x128xf32, #tpu.memory_space<vmem>>, vector<128x128xf32>
      %c0_11 = arith.constant 0 : index
      %c0_12 = arith.constant 0 : index
      %13 = vector.load %arg5[%c0_11, %c0_12] : memref<1x128xf32, #tpu.memory_space<vmem>>, vector<1x128xf32>
      %14 = vector.broadcast %13 : vector<1x128xf32> to vector<128x128xf32>
      %15 = arith.addf %12, %14 : vector<128x128xf32>
      %c0_13 = arith.constant 0 : index
      %c0_14 = arith.constant 0 : index
      %16 = vector.load %arg6[%c0_13, %c0_14] : memref<128x128xf32, #tpu.memory_space<vmem>>, vector<128x128xf32>
      tpu.vector_store %arg6[%c0_13, %c0_14], %15 {strides = array<i32>} : memref<128x128xf32, #tpu.memory_space<vmem>>, vector<128x128xf32>,
    } else {
    }
    return
  }
  func.func @transform_0(%arg0: i32, %arg1: i32, %arg2: i32) -> (i32, i32) {
    %c0_i32 = arith.constant 0 : i32
    return %arg0, %arg2 : i32, i32
  }
  func.func @transform_1(%arg0: i32, %arg1: i32, %arg2: i32) -> (i32, i32) {
    %c0_i32 = arith.constant 0 : i32
    return %arg2, %arg1 : i32, i32
  }
  func.func @transform_2(%arg0: i32, %arg1: i32, %arg2: i32) -> (i32, i32) {
    %c0_i32 = arith.constant 0 : i32
    %c0_i32_0 = arith.constant 0 : i32
    return %c0_i32, %arg1 : i32, i32
  }
  func.func @transform_3(%arg0: i32, %arg1: i32, %arg2: i32) -> (i32, i32) {
    %c0_i32 = arith.constant 0 : i32
    return %arg0, %arg1 : i32, i32
  }
}

module attributes {stable_mosaic.version = 11 : i64} {
  func.func @_scale_add_relu_kernel(%arg0: i32, %arg1: i32, %arg2: memref<1x64x64xf32, #tpu.memory_space<vmem>>, %arg3: memref<1x1x64xf32, #tpu.memory_space<vmem>>, %arg4: memref<1x64x64xf32, #tpu.memory_space<vmem>>, %arg5: memref<1x64x64xf32, #tpu.memory_space<vmem>>) attributes {dimension_semantics = [#tpu.dimension_semantics<parallel>, #tpu.dimension_semantics<parallel>], iteration_bounds = array<i64: 2, 1>, scalar_prefetch = 0 : i64, scratch_operands = 0 : i64, tpu.core_type = #tpu.core_type<tc>, window_params = [{transform_indices = @transform_0, window_bounds = array<i64: 1, 64, 64>}, {transform_indices = @transform_1, window_bounds = array<i64: 1, 1, 64>}, {transform_indices = @transform_2, window_bounds = array<i64: 1, 64, 64>}, {transform_indices = @transform_3, window_bounds = array<i64: 1, 64, 64>}]} {
    %c0 = arith.constant 0 : index
    %c0_0 = arith.constant 0 : index
    %c0_1 = arith.constant 0 : index
    %0 = vector.load %arg2[%c0, %c0_0, %c0_1] : memref<1x64x64xf32, #tpu.memory_space<vmem>>, vector<1x64x64xf32>
    %c0_2 = arith.constant 0 : index
    %c0_3 = arith.constant 0 : index
    %c0_4 = arith.constant 0 : index
    %1 = vector.load %arg3[%c0_2, %c0_3, %c0_4] : memref<1x1x64xf32, #tpu.memory_space<vmem>>, vector<1x1x64xf32>
    %2 = vector.broadcast %1 : vector<1x1x64xf32> to vector<1x64x64xf32>
    %3 = arith.mulf %0, %2 : vector<1x64x64xf32>
    %c0_5 = arith.constant 0 : index
    %c0_6 = arith.constant 0 : index
    %c0_7 = arith.constant 0 : index
    %4 = vector.load %arg4[%c0_5, %c0_6, %c0_7] : memref<1x64x64xf32, #tpu.memory_space<vmem>>, vector<1x64x64xf32>
    %5 = arith.addf %3, %4 : vector<1x64x64xf32>
    %cst = arith.constant 0.000000e+00 : f32
    %6 = vector.broadcast %cst : f32 to vector<1x64x64xf32>
    %7 = arith.maximumf %5, %6 : vector<1x64x64xf32>
    %c0_8 = arith.constant 0 : index
    %c0_9 = arith.constant 0 : index
    %c0_10 = arith.constant 0 : index
    %8 = vector.load %arg5[%c0_8, %c0_9, %c0_10] : memref<1x64x64xf32, #tpu.memory_space<vmem>>, vector<1x64x64xf32>
    tpu.vector_store %arg5[%c0_8, %c0_9, %c0_10], %7 {strides = array<i32>} : memref<1x64x64xf32, #tpu.memory_space<vmem>>, vector<1x64x64xf32>,
    return
  }
  func.func @transform_0(%arg0: i32, %arg1: i32) -> (i32, i32, i32) {
    %c0_i32 = arith.constant 0 : i32
    %c0_i32_0 = arith.constant 0 : i32
    return %arg0, %arg1, %c0_i32 : i32, i32, i32
  }
  func.func @transform_1(%arg0: i32, %arg1: i32) -> (i32, i32, i32) {
    %c0_i32 = arith.constant 0 : i32
    %c0_i32_0 = arith.constant 0 : i32
    %c0_i32_1 = arith.constant 0 : i32
    return %arg0, %c0_i32, %c0_i32_0 : i32, i32, i32
  }
  func.func @transform_2(%arg0: i32, %arg1: i32) -> (i32, i32, i32) {
    %c0_i32 = arith.constant 0 : i32
    %c0_i32_0 = arith.constant 0 : i32
    return %arg0, %arg1, %c0_i32 : i32, i32, i32
  }
  func.func @transform_3(%arg0: i32, %arg1: i32) -> (i32, i32, i32) {
    %c0_i32 = arith.constant 0 : i32
    %c0_i32_0 = arith.constant 0 : i32
    return %arg0, %arg1, %c0_i32 : i32, i32, i32
  }
}

module attributes {stable_mosaic.version = 11 : i64} {
  func.func @_mm_bias_act_kernel(%arg0: i32, %arg1: i32, %arg2: i32, %arg3: memref<32x512xbf16, #tpu.memory_space<vmem>>, %arg4: memref<512x128xbf16, #tpu.memory_space<vmem>>, %arg5: memref<1x128xf32, #tpu.memory_space<vmem>>, %arg6: memref<32x128xf32, #tpu.memory_space<vmem>>, %arg7: memref<32x128xf32, #tpu.memory_space<vmem>>) attributes {dimension_semantics = [#tpu.dimension_semantics<parallel>, #tpu.dimension_semantics<parallel>, #tpu.dimension_semantics<arbitrary>], iteration_bounds = array<i64: 1, 1, 2>, scalar_prefetch = 0 : i64, scratch_operands = 1 : i64, tpu.core_type = #tpu.core_type<tc>, window_params = [{transform_indices = @transform_0, window_bounds = array<i64: 32, 512>}, {transform_indices = @transform_1, window_bounds = array<i64: 512, 128>}, {transform_indices = @transform_2, window_bounds = array<i64: 1, 128>}, {transform_indices = @transform_3, window_bounds = array<i64: 32, 128>}]} {
    %c0_i32 = arith.constant 0 : i32
    %0 = arith.cmpi eq, %arg2, %c0_i32 : i32
    %1 = arith.extui %0 : i1 to i32
    %c0_i32_0 = arith.constant 0 : i32
    %2 = arith.cmpi ne, %1, %c0_i32_0 : i32
    scf.if %2 {
      %cst_9 = arith.constant 0.000000e+00 : f32
      %12 = vector.broadcast %cst_9 : f32 to vector<32x128xf32>
      %c0_10 = arith.constant 0 : index
      %c0_11 = arith.constant 0 : index
      %13 = vector.load %arg7[%c0_10, %c0_11] : memref<32x128xf32, #tpu.memory_space<vmem>>, vector<32x128xf32>
      tpu.vector_store %arg7[%c0_10, %c0_11], %12 {strides = array<i32>} : memref<32x128xf32, #tpu.memory_space<vmem>>, vector<32x128xf32>,
    } else {
    }
    %c0 = arith.constant 0 : index
    %c0_1 = arith.constant 0 : index
    %3 = vector.load %arg7[%c0, %c0_1] : memref<32x128xf32, #tpu.memory_space<vmem>>, vector<32x128xf32>
    %c0_2 = arith.constant 0 : index
    %c0_3 = arith.constant 0 : index
    %4 = vector.load %arg3[%c0_2, %c0_3] : memref<32x512xbf16, #tpu.memory_space<vmem>>, vector<32x512xbf16>
    %c0_4 = arith.constant 0 : index
    %c0_5 = arith.constant 0 : index
    %5 = vector.load %arg4[%c0_4, %c0_5] : memref<512x128xbf16, #tpu.memory_space<vmem>>, vector<512x128xbf16>
    %cst = arith.constant dense<0.000000e+00> : vector<32x128xf32>
    %6 = tpu.matmul %4, %5, %cst {dimension_numbers = #tpu.dot_dimension_numbers<[1], [0], [0], [1], [0, 0, 1, 1], [], []>} : vector<32x512xbf16>, vector<512x128xbf16>, vector<32x128xf32> -> vector<32x128xf32>
    %7 = arith.addf %3, %6 : vector<32x128xf32>
    %c0_6 = arith.constant 0 : index
    %c0_7 = arith.constant 0 : index
    %8 = vector.load %arg7[%c0_6, %c0_7] : memref<32x128xf32, #tpu.memory_space<vmem>>, vector<32x128xf32>
    tpu.vector_store %arg7[%c0_6, %c0_7], %7 {strides = array<i32>} : memref<32x128xf32, #tpu.memory_space<vmem>>, vector<32x128xf32>,
    %c1_i32 = arith.constant 1 : i32
    %9 = arith.cmpi eq, %arg2, %c1_i32 : i32
    %10 = arith.extui %9 : i1 to i32
    %c0_i32_8 = arith.constant 0 : i32
    %11 = arith.cmpi ne, %10, %c0_i32_8 : i32
    scf.if %11 {
      %c0_9 = arith.constant 0 : index
      %c0_10 = arith.constant 0 : index
      %12 = vector.load %arg7[%c0_9, %c0_10] : memref<32x128xf32, #tpu.memory_space<vmem>>, vector<32x128xf32>
      %c0_11 = arith.constant 0 : index
      %c0_12 = arith.constant 0 : index
      %13 = vector.load %arg5[%c0_11, %c0_12] : memref<1x128xf32, #tpu.memory_space<vmem>>, vector<1x128xf32>
      %14 = vector.broadcast %13 : vector<1x128xf32> to vector<32x128xf32>
      %15 = arith.addf %12, %14 : vector<32x128xf32>
      %cst_13 = arith.constant 0.000000e+00 : f32
      %16 = vector.broadcast %cst_13 : f32 to vector<32x128xf32>
      %17 = arith.maximumf %15, %16 : vector<32x128xf32>
      %c0_14 = arith.constant 0 : index
      %c0_15 = arith.constant 0 : index
      %18 = vector.load %arg6[%c0_14, %c0_15] : memref<32x128xf32, #tpu.memory_space<vmem>>, vector<32x128xf32>
      tpu.vector_store %arg6[%c0_14, %c0_15], %17 {strides = array<i32>} : memref<32x128xf32, #tpu.memory_space<vmem>>, vector<32x128xf32>,
    } else {
    }
    return
  }
  func.func @transform_0(%arg0: i32, %arg1: i32, %arg2: i32) -> (i32, i32) {
    %c0_i32 = arith.constant 0 : i32
    return %arg0, %arg2 : i32, i32
  }
  func.func @transform_1(%arg0: i32, %arg1: i32, %arg2: i32) -> (i32, i32) {
    %c0_i32 = arith.constant 0 : i32
    return %arg2, %arg1 : i32, i32
  }
  func.func @transform_2(%arg0: i32, %arg1: i32, %arg2: i32) -> (i32, i32) {
    %c0_i32 = arith.constant 0 : i32
    %c0_i32_0 = arith.constant 0 : i32
    return %c0_i32, %arg1 : i32, i32
  }
  func.func @transform_3(%arg0: i32, %arg1: i32, %arg2: i32) -> (i32, i32) {
    %c0_i32 = arith.constant 0 : i32
    return %arg0, %arg1 : i32, i32
  }
}

module attributes {stable_mosaic.version = 11 : i64} {
  func.func @_scale_add_relu_kernel(%arg0: i32, %arg1: i32, %arg2: memref<1x16x128xf32, #tpu.memory_space<vmem>>, %arg3: memref<1x1x128xf32, #tpu.memory_space<vmem>>, %arg4: memref<1x16x128xf32, #tpu.memory_space<vmem>>, %arg5: memref<1x16x128xf32, #tpu.memory_space<vmem>>) attributes {dimension_semantics = [#tpu.dimension_semantics<parallel>, #tpu.dimension_semantics<parallel>], iteration_bounds = array<i64: 2, 1>, scalar_prefetch = 0 : i64, scratch_operands = 0 : i64, tpu.core_type = #tpu.core_type<tc>, window_params = [{transform_indices = @transform_0, window_bounds = array<i64: 1, 16, 128>}, {transform_indices = @transform_1, window_bounds = array<i64: 1, 1, 128>}, {transform_indices = @transform_2, window_bounds = array<i64: 1, 16, 128>}, {transform_indices = @transform_3, window_bounds = array<i64: 1, 16, 128>}]} {
    %c0 = arith.constant 0 : index
    %c0_0 = arith.constant 0 : index
    %c0_1 = arith.constant 0 : index
    %0 = vector.load %arg2[%c0, %c0_0, %c0_1] : memref<1x16x128xf32, #tpu.memory_space<vmem>>, vector<1x16x128xf32>
    %c0_2 = arith.constant 0 : index
    %c0_3 = arith.constant 0 : index
    %c0_4 = arith.constant 0 : index
    %1 = vector.load %arg3[%c0_2, %c0_3, %c0_4] : memref<1x1x128xf32, #tpu.memory_space<vmem>>, vector<1x1x128xf32>
    %2 = vector.broadcast %1 : vector<1x1x128xf32> to vector<1x16x128xf32>
    %3 = arith.mulf %0, %2 : vector<1x16x128xf32>
    %c0_5 = arith.constant 0 : index
    %c0_6 = arith.constant 0 : index
    %c0_7 = arith.constant 0 : index
    %4 = vector.load %arg4[%c0_5, %c0_6, %c0_7] : memref<1x16x128xf32, #tpu.memory_space<vmem>>, vector<1x16x128xf32>
    %5 = arith.addf %3, %4 : vector<1x16x128xf32>
    %cst = arith.constant 0.000000e+00 : f32
    %6 = vector.broadcast %cst : f32 to vector<1x16x128xf32>
    %7 = arith.maximumf %5, %6 : vector<1x16x128xf32>
    %c0_8 = arith.constant 0 : index
    %c0_9 = arith.constant 0 : index
    %c0_10 = arith.constant 0 : index
    %8 = vector.load %arg5[%c0_8, %c0_9, %c0_10] : memref<1x16x128xf32, #tpu.memory_space<vmem>>, vector<1x16x128xf32>
    tpu.vector_store %arg5[%c0_8, %c0_9, %c0_10], %7 {strides = array<i32>} : memref<1x16x128xf32, #tpu.memory_space<vmem>>, vector<1x16x128xf32>,
    return
  }
  func.func @transform_0(%arg0: i32, %arg1: i32) -> (i32, i32, i32) {
    %c0_i32 = arith.constant 0 : i32
    %c0_i32_0 = arith.constant 0 : i32
    return %arg0, %arg1, %c0_i32 : i32, i32, i32
  }
  func.func @transform_1(%arg0: i32, %arg1: i32) -> (i32, i32, i32) {
    %c0_i32 = arith.constant 0 : i32
    %c0_i32_0 = arith.constant 0 : i32
    %c0_i32_1 = arith.constant 0 : i32
    return %arg0, %c0_i32, %c0_i32_0 : i32, i32, i32
  }
  func.func @transform_2(%arg0: i32, %arg1: i32) -> (i32, i32, i32) {
    %c0_i32 = arith.constant 0 : i32
    %c0_i32_0 = arith.constant 0 : i32
    return %arg0, %arg1, %c0_i32 : i32, i32, i32
  }
  func.func @transform_3(%arg0: i32, %arg1: i32) -> (i32, i32, i32) {
    %c0_i32 = arith.constant 0 : i32
    %c0_i32_0 = arith.constant 0 : i32
    return %arg0, %arg1, %c0_i32 : i32, i32, i32
  }
}

module attributes {stable_mosaic.version = 11 : i64} {
  func.func @_mm_bias_act_kernel(%arg0: i32, %arg1: i32, %arg2: i32, %arg3: memref<32x128xbf16, #tpu.memory_space<vmem>>, %arg4: memref<128x128xbf16, #tpu.memory_space<vmem>>, %arg5: memref<1x128xf32, #tpu.memory_space<vmem>>, %arg6: memref<32x128xf32, #tpu.memory_space<vmem>>, %arg7: memref<32x128xf32, #tpu.memory_space<vmem>>) attributes {dimension_semantics = [#tpu.dimension_semantics<parallel>, #tpu.dimension_semantics<parallel>, #tpu.dimension_semantics<arbitrary>], iteration_bounds = array<i64: 1, 1, 1>, scalar_prefetch = 0 : i64, scratch_operands = 1 : i64, tpu.core_type = #tpu.core_type<tc>, window_params = [{transform_indices = @transform_0, window_bounds = array<i64: 32, 128>}, {transform_indices = @transform_1, window_bounds = array<i64: 128, 128>}, {transform_indices = @transform_2, window_bounds = array<i64: 1, 128>}, {transform_indices = @transform_3, window_bounds = array<i64: 32, 128>}]} {
    %c0_i32 = arith.constant 0 : i32
    %0 = arith.cmpi eq, %arg2, %c0_i32 : i32
    %1 = arith.extui %0 : i1 to i32
    %c0_i32_0 = arith.constant 0 : i32
    %2 = arith.cmpi ne, %1, %c0_i32_0 : i32
    scf.if %2 {
      %cst_10 = arith.constant 0.000000e+00 : f32
      %12 = vector.broadcast %cst_10 : f32 to vector<32x128xf32>
      %c0_11 = arith.constant 0 : index
      %c0_12 = arith.constant 0 : index
      %13 = vector.load %arg7[%c0_11, %c0_12] : memref<32x128xf32, #tpu.memory_space<vmem>>, vector<32x128xf32>
      tpu.vector_store %arg7[%c0_11, %c0_12], %12 {strides = array<i32>} : memref<32x128xf32, #tpu.memory_space<vmem>>, vector<32x128xf32>,
    } else {
    }
    %c0 = arith.constant 0 : index
    %c0_1 = arith.constant 0 : index
    %3 = vector.load %arg7[%c0, %c0_1] : memref<32x128xf32, #tpu.memory_space<vmem>>, vector<32x128xf32>
    %c0_2 = arith.constant 0 : index
    %c0_3 = arith.constant 0 : index
    %4 = vector.load %arg3[%c0_2, %c0_3] : memref<32x128xbf16, #tpu.memory_space<vmem>>, vector<32x128xbf16>
    %c0_4 = arith.constant 0 : index
    %c0_5 = arith.constant 0 : index
    %5 = vector.load %arg4[%c0_4, %c0_5] : memref<128x128xbf16, #tpu.memory_space<vmem>>, vector<128x128xbf16>
    %cst = arith.constant dense<0.000000e+00> : vector<32x128xf32>
    %6 = tpu.matmul %4, %5, %cst {dimension_numbers = #tpu.dot_dimension_numbers<[1], [0], [0], [1], [0, 0, 1, 1], [], []>} : vector<32x128xbf16>, vector<128x128xbf16>, vector<32x128xf32> -> vector<32x128xf32>
    %7 = arith.addf %3, %6 : vector<32x128xf32>
    %c0_6 = arith.constant 0 : index
    %c0_7 = arith.constant 0 : index
    %8 = vector.load %arg7[%c0_6, %c0_7] : memref<32x128xf32, #tpu.memory_space<vmem>>, vector<32x128xf32>
    tpu.vector_store %arg7[%c0_6, %c0_7], %7 {strides = array<i32>} : memref<32x128xf32, #tpu.memory_space<vmem>>, vector<32x128xf32>,
    %c0_i32_8 = arith.constant 0 : i32
    %9 = arith.cmpi eq, %arg2, %c0_i32_8 : i32
    %10 = arith.extui %9 : i1 to i32
    %c0_i32_9 = arith.constant 0 : i32
    %11 = arith.cmpi ne, %10, %c0_i32_9 : i32
    scf.if %11 {
      %c0_10 = arith.constant 0 : index
      %c0_11 = arith.constant 0 : index
      %12 = vector.load %arg7[%c0_10, %c0_11] : memref<32x128xf32, #tpu.memory_space<vmem>>, vector<32x128xf32>
      %c0_12 = arith.constant 0 : index
      %c0_13 = arith.constant 0 : index
      %13 = vector.load %arg5[%c0_12, %c0_13] : memref<1x128xf32, #tpu.memory_space<vmem>>, vector<1x128xf32>
      %14 = vector.broadcast %13 : vector<1x128xf32> to vector<32x128xf32>
      %15 = arith.addf %12, %14 : vector<32x128xf32>
      %c0_14 = arith.constant 0 : index
      %c0_15 = arith.constant 0 : index
      %16 = vector.load %arg6[%c0_14, %c0_15] : memref<32x128xf32, #tpu.memory_space<vmem>>, vector<32x128xf32>
      tpu.vector_store %arg6[%c0_14, %c0_15], %15 {strides = array<i32>} : memref<32x128xf32, #tpu.memory_space<vmem>>, vector<32x128xf32>,
    } else {
    }
    return
  }
  func.func @transform_0(%arg0: i32, %arg1: i32, %arg2: i32) -> (i32, i32) {
    %c0_i32 = arith.constant 0 : i32
    return %arg0, %arg2 : i32, i32
  }
  func.func @transform_1(%arg0: i32, %arg1: i32, %arg2: i32) -> (i32, i32) {
    %c0_i32 = arith.constant 0 : i32
    return %arg2, %arg1 : i32, i32
  }
  func.func @transform_2(%arg0: i32, %arg1: i32, %arg2: i32) -> (i32, i32) {
    %c0_i32 = arith.constant 0 : i32
    %c0_i32_0 = arith.constant 0 : i32
    return %c0_i32, %arg1 : i32, i32
  }
  func.func @transform_3(%arg0: i32, %arg1: i32, %arg2: i32) -> (i32, i32) {
    %c0_i32 = arith.constant 0 : i32
    return %arg0, %arg1 : i32, i32
  }
}

module attributes {stable_mosaic.version = 11 : i64} {
  func.func @_mm_bias_act_kernel(%arg0: i32, %arg1: i32, %arg2: i32, %arg3: memref<32x512xbf16, #tpu.memory_space<vmem>>, %arg4: memref<512x128xbf16, #tpu.memory_space<vmem>>, %arg5: memref<1x128xf32, #tpu.memory_space<vmem>>, %arg6: memref<32x128xf32, #tpu.memory_space<vmem>>, %arg7: memref<32x128xf32, #tpu.memory_space<vmem>>) attributes {dimension_semantics = [#tpu.dimension_semantics<parallel>, #tpu.dimension_semantics<parallel>, #tpu.dimension_semantics<arbitrary>], iteration_bounds = array<i64: 1, 1, 3>, scalar_prefetch = 0 : i64, scratch_operands = 1 : i64, tpu.core_type = #tpu.core_type<tc>, window_params = [{transform_indices = @transform_0, window_bounds = array<i64: 32, 512>}, {transform_indices = @transform_1, window_bounds = array<i64: 512, 128>}, {transform_indices = @transform_2, window_bounds = array<i64: 1, 128>}, {transform_indices = @transform_3, window_bounds = array<i64: 32, 128>}]} {
    %c0_i32 = arith.constant 0 : i32
    %0 = arith.cmpi eq, %arg2, %c0_i32 : i32
    %1 = arith.extui %0 : i1 to i32
    %c0_i32_0 = arith.constant 0 : i32
    %2 = arith.cmpi ne, %1, %c0_i32_0 : i32
    scf.if %2 {
      %cst_9 = arith.constant 0.000000e+00 : f32
      %12 = vector.broadcast %cst_9 : f32 to vector<32x128xf32>
      %c0_10 = arith.constant 0 : index
      %c0_11 = arith.constant 0 : index
      %13 = vector.load %arg7[%c0_10, %c0_11] : memref<32x128xf32, #tpu.memory_space<vmem>>, vector<32x128xf32>
      tpu.vector_store %arg7[%c0_10, %c0_11], %12 {strides = array<i32>} : memref<32x128xf32, #tpu.memory_space<vmem>>, vector<32x128xf32>,
    } else {
    }
    %c0 = arith.constant 0 : index
    %c0_1 = arith.constant 0 : index
    %3 = vector.load %arg7[%c0, %c0_1] : memref<32x128xf32, #tpu.memory_space<vmem>>, vector<32x128xf32>
    %c0_2 = arith.constant 0 : index
    %c0_3 = arith.constant 0 : index
    %4 = vector.load %arg3[%c0_2, %c0_3] : memref<32x512xbf16, #tpu.memory_space<vmem>>, vector<32x512xbf16>
    %c0_4 = arith.constant 0 : index
    %c0_5 = arith.constant 0 : index
    %5 = vector.load %arg4[%c0_4, %c0_5] : memref<512x128xbf16, #tpu.memory_space<vmem>>, vector<512x128xbf16>
    %cst = arith.constant dense<0.000000e+00> : vector<32x128xf32>
    %6 = tpu.matmul %4, %5, %cst {dimension_numbers = #tpu.dot_dimension_numbers<[1], [0], [0], [1], [0, 0, 1, 1], [], []>} : vector<32x512xbf16>, vector<512x128xbf16>, vector<32x128xf32> -> vector<32x128xf32>
    %7 = arith.addf %3, %6 : vector<32x128xf32>
    %c0_6 = arith.constant 0 : index
    %c0_7 = arith.constant 0 : index
    %8 = vector.load %arg7[%c0_6, %c0_7] : memref<32x128xf32, #tpu.memory_space<vmem>>, vector<32x128xf32>
    tpu.vector_store %arg7[%c0_6, %c0_7], %7 {strides = array<i32>} : memref<32x128xf32, #tpu.memory_space<vmem>>, vector<32x128xf32>,
    %c2_i32 = arith.constant 2 : i32
    %9 = arith.cmpi eq, %arg2, %c2_i32 : i32
    %10 = arith.extui %9 : i1 to i32
    %c0_i32_8 = arith.constant 0 : i32
    %11 = arith.cmpi ne, %10, %c0_i32_8 : i32
    scf.if %11 {
      %c0_9 = arith.constant 0 : index
      %c0_10 = arith.constant 0 : index
      %12 = vector.load %arg7[%c0_9, %c0_10] : memref<32x128xf32, #tpu.memory_space<vmem>>, vector<32x128xf32>
      %c0_11 = arith.constant 0 : index
      %c0_12 = arith.constant 0 : index
      %13 = vector.load %arg5[%c0_11, %c0_12] : memref<1x128xf32, #tpu.memory_space<vmem>>, vector<1x128xf32>
      %14 = vector.broadcast %13 : vector<1x128xf32> to vector<32x128xf32>
      %15 = arith.addf %12, %14 : vector<32x128xf32>
      %c0_13 = arith.constant 0 : index
      %c0_14 = arith.constant 0 : index
      %16 = vector.load %arg6[%c0_13, %c0_14] : memref<32x128xf32, #tpu.memory_space<vmem>>, vector<32x128xf32>
      tpu.vector_store %arg6[%c0_13, %c0_14], %15 {strides = array<i32>} : memref<32x128xf32, #tpu.memory_space<vmem>>, vector<32x128xf32>,
    } else {
    }
    return
  }
  func.func @transform_0(%arg0: i32, %arg1: i32, %arg2: i32) -> (i32, i32) {
    %c0_i32 = arith.constant 0 : i32
    return %arg0, %arg2 : i32, i32
  }
  func.func @transform_1(%arg0: i32, %arg1: i32, %arg2: i32) -> (i32, i32) {
    %c0_i32 = arith.constant 0 : i32
    return %arg2, %arg1 : i32, i32
  }
  func.func @transform_2(%arg0: i32, %arg1: i32, %arg2: i32) -> (i32, i32) {
    %c0_i32 = arith.constant 0 : i32
    %c0_i32_0 = arith.constant 0 : i32
    return %c0_i32, %arg1 : i32, i32
  }
  func.func @transform_3(%arg0: i32, %arg1: i32, %arg2: i32) -> (i32, i32) {
    %c0_i32 = arith.constant 0 : i32
    return %arg0, %arg1 : i32, i32
  }
}

module attributes {stable_mosaic.version = 11 : i64} {
  func.func @_mm_bias_act_kernel(%arg0: i32, %arg1: i32, %arg2: i32, %arg3: memref<8x512xbf16, #tpu.memory_space<vmem>>, %arg4: memref<512x256xbf16, #tpu.memory_space<vmem>>, %arg5: memref<1x256xf32, #tpu.memory_space<vmem>>, %arg6: memref<8x256xf32, #tpu.memory_space<vmem>>, %arg7: memref<8x256xf32, #tpu.memory_space<vmem>>) attributes {dimension_semantics = [#tpu.dimension_semantics<parallel>, #tpu.dimension_semantics<parallel>, #tpu.dimension_semantics<arbitrary>], iteration_bounds = array<i64: 1, 1, 3>, scalar_prefetch = 0 : i64, scratch_operands = 1 : i64, tpu.core_type = #tpu.core_type<tc>, window_params = [{transform_indices = @transform_0, window_bounds = array<i64: 8, 512>}, {transform_indices = @transform_1, window_bounds = array<i64: 512, 256>}, {transform_indices = @transform_2, window_bounds = array<i64: 1, 256>}, {transform_indices = @transform_3, window_bounds = array<i64: 8, 256>}]} {
    %c0_i32 = arith.constant 0 : i32
    %0 = arith.cmpi eq, %arg2, %c0_i32 : i32
    %1 = arith.extui %0 : i1 to i32
    %c0_i32_0 = arith.constant 0 : i32
    %2 = arith.cmpi ne, %1, %c0_i32_0 : i32
    scf.if %2 {
      %cst_9 = arith.constant 0.000000e+00 : f32
      %12 = vector.broadcast %cst_9 : f32 to vector<8x256xf32>
      %c0_10 = arith.constant 0 : index
      %c0_11 = arith.constant 0 : index
      %13 = vector.load %arg7[%c0_10, %c0_11] : memref<8x256xf32, #tpu.memory_space<vmem>>, vector<8x256xf32>
      tpu.vector_store %arg7[%c0_10, %c0_11], %12 {strides = array<i32>} : memref<8x256xf32, #tpu.memory_space<vmem>>, vector<8x256xf32>,
    } else {
    }
    %c0 = arith.constant 0 : index
    %c0_1 = arith.constant 0 : index
    %3 = vector.load %arg7[%c0, %c0_1] : memref<8x256xf32, #tpu.memory_space<vmem>>, vector<8x256xf32>
    %c0_2 = arith.constant 0 : index
    %c0_3 = arith.constant 0 : index
    %4 = vector.load %arg3[%c0_2, %c0_3] : memref<8x512xbf16, #tpu.memory_space<vmem>>, vector<8x512xbf16>
    %c0_4 = arith.constant 0 : index
    %c0_5 = arith.constant 0 : index
    %5 = vector.load %arg4[%c0_4, %c0_5] : memref<512x256xbf16, #tpu.memory_space<vmem>>, vector<512x256xbf16>
    %cst = arith.constant dense<0.000000e+00> : vector<8x256xf32>
    %6 = tpu.matmul %4, %5, %cst {dimension_numbers = #tpu.dot_dimension_numbers<[1], [0], [0], [1], [0, 0, 1, 1], [], []>} : vector<8x512xbf16>, vector<512x256xbf16>, vector<8x256xf32> -> vector<8x256xf32>
    %7 = arith.addf %3, %6 : vector<8x256xf32>
    %c0_6 = arith.constant 0 : index
    %c0_7 = arith.constant 0 : index
    %8 = vector.load %arg7[%c0_6, %c0_7] : memref<8x256xf32, #tpu.memory_space<vmem>>, vector<8x256xf32>
    tpu.vector_store %arg7[%c0_6, %c0_7], %7 {strides = array<i32>} : memref<8x256xf32, #tpu.memory_space<vmem>>, vector<8x256xf32>,
    %c2_i32 = arith.constant 2 : i32
    %9 = arith.cmpi eq, %arg2, %c2_i32 : i32
    %10 = arith.extui %9 : i1 to i32
    %c0_i32_8 = arith.constant 0 : i32
    %11 = arith.cmpi ne, %10, %c0_i32_8 : i32
    scf.if %11 {
      %c0_9 = arith.constant 0 : index
      %c0_10 = arith.constant 0 : index
      %12 = vector.load %arg7[%c0_9, %c0_10] : memref<8x256xf32, #tpu.memory_space<vmem>>, vector<8x256xf32>
      %c0_11 = arith.constant 0 : index
      %c0_12 = arith.constant 0 : index
      %13 = vector.load %arg5[%c0_11, %c0_12] : memref<1x256xf32, #tpu.memory_space<vmem>>, vector<1x256xf32>
      %14 = vector.broadcast %13 : vector<1x256xf32> to vector<8x256xf32>
      %15 = arith.addf %12, %14 : vector<8x256xf32>
      %cst_13 = arith.constant 0.000000e+00 : f32
      %16 = vector.broadcast %cst_13 : f32 to vector<8x256xf32>
      %17 = arith.maximumf %15, %16 : vector<8x256xf32>
      %c0_14 = arith.constant 0 : index
      %c0_15 = arith.constant 0 : index
      %18 = vector.load %arg6[%c0_14, %c0_15] : memref<8x256xf32, #tpu.memory_space<vmem>>, vector<8x256xf32>
      tpu.vector_store %arg6[%c0_14, %c0_15], %17 {strides = array<i32>} : memref<8x256xf32, #tpu.memory_space<vmem>>, vector<8x256xf32>,
    } else {
    }
    return
  }
  func.func @transform_0(%arg0: i32, %arg1: i32, %arg2: i32) -> (i32, i32) {
    %c0_i32 = arith.constant 0 : i32
    return %arg0, %arg2 : i32, i32
  }
  func.func @transform_1(%arg0: i32, %arg1: i32, %arg2: i32) -> (i32, i32) {
    %c0_i32 = arith.constant 0 : i32
    return %arg2, %arg1 : i32, i32
  }
  func.func @transform_2(%arg0: i32, %arg1: i32, %arg2: i32) -> (i32, i32) {
    %c0_i32 = arith.constant 0 : i32
    %c0_i32_0 = arith.constant 0 : i32
    return %c0_i32, %arg1 : i32, i32
  }
  func.func @transform_3(%arg0: i32, %arg1: i32, %arg2: i32) -> (i32, i32) {
    %c0_i32 = arith.constant 0 : i32
    return %arg0, %arg1 : i32, i32
  }
}

module attributes {stable_mosaic.version = 11 : i64} {
  func.func @_mm_bias_act_kernel(%arg0: i32, %arg1: i32, %arg2: i32, %arg3: memref<8x512xbf16, #tpu.memory_space<vmem>>, %arg4: memref<512x256xbf16, #tpu.memory_space<vmem>>, %arg5: memref<1x256xf32, #tpu.memory_space<vmem>>, %arg6: memref<8x256xf32, #tpu.memory_space<vmem>>, %arg7: memref<8x256xf32, #tpu.memory_space<vmem>>) attributes {dimension_semantics = [#tpu.dimension_semantics<parallel>, #tpu.dimension_semantics<parallel>, #tpu.dimension_semantics<arbitrary>], iteration_bounds = array<i64: 1, 1, 5>, scalar_prefetch = 0 : i64, scratch_operands = 1 : i64, tpu.core_type = #tpu.core_type<tc>, window_params = [{transform_indices = @transform_0, window_bounds = array<i64: 8, 512>}, {transform_indices = @transform_1, window_bounds = array<i64: 512, 256>}, {transform_indices = @transform_2, window_bounds = array<i64: 1, 256>}, {transform_indices = @transform_3, window_bounds = array<i64: 8, 256>}]} {
    %c0_i32 = arith.constant 0 : i32
    %0 = arith.cmpi eq, %arg2, %c0_i32 : i32
    %1 = arith.extui %0 : i1 to i32
    %c0_i32_0 = arith.constant 0 : i32
    %2 = arith.cmpi ne, %1, %c0_i32_0 : i32
    scf.if %2 {
      %cst_9 = arith.constant 0.000000e+00 : f32
      %12 = vector.broadcast %cst_9 : f32 to vector<8x256xf32>
      %c0_10 = arith.constant 0 : index
      %c0_11 = arith.constant 0 : index
      %13 = vector.load %arg7[%c0_10, %c0_11] : memref<8x256xf32, #tpu.memory_space<vmem>>, vector<8x256xf32>
      tpu.vector_store %arg7[%c0_10, %c0_11], %12 {strides = array<i32>} : memref<8x256xf32, #tpu.memory_space<vmem>>, vector<8x256xf32>,
    } else {
    }
    %c0 = arith.constant 0 : index
    %c0_1 = arith.constant 0 : index
    %3 = vector.load %arg7[%c0, %c0_1] : memref<8x256xf32, #tpu.memory_space<vmem>>, vector<8x256xf32>
    %c0_2 = arith.constant 0 : index
    %c0_3 = arith.constant 0 : index
    %4 = vector.load %arg3[%c0_2, %c0_3] : memref<8x512xbf16, #tpu.memory_space<vmem>>, vector<8x512xbf16>
    %c0_4 = arith.constant 0 : index
    %c0_5 = arith.constant 0 : index
    %5 = vector.load %arg4[%c0_4, %c0_5] : memref<512x256xbf16, #tpu.memory_space<vmem>>, vector<512x256xbf16>
    %cst = arith.constant dense<0.000000e+00> : vector<8x256xf32>
    %6 = tpu.matmul %4, %5, %cst {dimension_numbers = #tpu.dot_dimension_numbers<[1], [0], [0], [1], [0, 0, 1, 1], [], []>} : vector<8x512xbf16>, vector<512x256xbf16>, vector<8x256xf32> -> vector<8x256xf32>
    %7 = arith.addf %3, %6 : vector<8x256xf32>
    %c0_6 = arith.constant 0 : index
    %c0_7 = arith.constant 0 : index
    %8 = vector.load %arg7[%c0_6, %c0_7] : memref<8x256xf32, #tpu.memory_space<vmem>>, vector<8x256xf32>
    tpu.vector_store %arg7[%c0_6, %c0_7], %7 {strides = array<i32>} : memref<8x256xf32, #tpu.memory_space<vmem>>, vector<8x256xf32>,
    %c4_i32 = arith.constant 4 : i32
    %9 = arith.cmpi eq, %arg2, %c4_i32 : i32
    %10 = arith.extui %9 : i1 to i32
    %c0_i32_8 = arith.constant 0 : i32
    %11 = arith.cmpi ne, %10, %c0_i32_8 : i32
    scf.if %11 {
      %c0_9 = arith.constant 0 : index
      %c0_10 = arith.constant 0 : index
      %12 = vector.load %arg7[%c0_9, %c0_10] : memref<8x256xf32, #tpu.memory_space<vmem>>, vector<8x256xf32>
      %c0_11 = arith.constant 0 : index
      %c0_12 = arith.constant 0 : index
      %13 = vector.load %arg5[%c0_11, %c0_12] : memref<1x256xf32, #tpu.memory_space<vmem>>, vector<1x256xf32>
      %14 = vector.broadcast %13 : vector<1x256xf32> to vector<8x256xf32>
      %15 = arith.addf %12, %14 : vector<8x256xf32>
      %c0_13 = arith.constant 0 : index
      %c0_14 = arith.constant 0 : index
      %16 = vector.load %arg6[%c0_13, %c0_14] : memref<8x256xf32, #tpu.memory_space<vmem>>, vector<8x256xf32>
      tpu.vector_store %arg6[%c0_13, %c0_14], %15 {strides = array<i32>} : memref<8x256xf32, #tpu.memory_space<vmem>>, vector<8x256xf32>,
    } else {
    }
    return
  }
  func.func @transform_0(%arg0: i32, %arg1: i32, %arg2: i32) -> (i32, i32) {
    %c0_i32 = arith.constant 0 : i32
    return %arg0, %arg2 : i32, i32
  }
  func.func @transform_1(%arg0: i32, %arg1: i32, %arg2: i32) -> (i32, i32) {
    %c0_i32 = arith.constant 0 : i32
    return %arg2, %arg1 : i32, i32
  }
  func.func @transform_2(%arg0: i32, %arg1: i32, %arg2: i32) -> (i32, i32) {
    %c0_i32 = arith.constant 0 : i32
    %c0_i32_0 = arith.constant 0 : i32
    return %c0_i32, %arg1 : i32, i32
  }
  func.func @transform_3(%arg0: i32, %arg1: i32, %arg2: i32) -> (i32, i32) {
    %c0_i32 = arith.constant 0 : i32
    return %arg0, %arg1 : i32, i32
  }
}

module attributes {stable_mosaic.version = 11 : i64} {
  func.func @_mm_bias_act_kernel(%arg0: i32, %arg1: i32, %arg2: i32, %arg3: memref<8x128xbf16, #tpu.memory_space<vmem>>, %arg4: memref<128x256xbf16, #tpu.memory_space<vmem>>, %arg5: memref<1x256xf32, #tpu.memory_space<vmem>>, %arg6: memref<8x256xf32, #tpu.memory_space<vmem>>, %arg7: memref<8x256xf32, #tpu.memory_space<vmem>>) attributes {dimension_semantics = [#tpu.dimension_semantics<parallel>, #tpu.dimension_semantics<parallel>, #tpu.dimension_semantics<arbitrary>], iteration_bounds = array<i64: 1, 1, 1>, scalar_prefetch = 0 : i64, scratch_operands = 1 : i64, tpu.core_type = #tpu.core_type<tc>, window_params = [{transform_indices = @transform_0, window_bounds = array<i64: 8, 128>}, {transform_indices = @transform_1, window_bounds = array<i64: 128, 256>}, {transform_indices = @transform_2, window_bounds = array<i64: 1, 256>}, {transform_indices = @transform_3, window_bounds = array<i64: 8, 256>}]} {
    %c0_i32 = arith.constant 0 : i32
    %0 = arith.cmpi eq, %arg2, %c0_i32 : i32
    %1 = arith.extui %0 : i1 to i32
    %c0_i32_0 = arith.constant 0 : i32
    %2 = arith.cmpi ne, %1, %c0_i32_0 : i32
    scf.if %2 {
      %cst_10 = arith.constant 0.000000e+00 : f32
      %12 = vector.broadcast %cst_10 : f32 to vector<8x256xf32>
      %c0_11 = arith.constant 0 : index
      %c0_12 = arith.constant 0 : index
      %13 = vector.load %arg7[%c0_11, %c0_12] : memref<8x256xf32, #tpu.memory_space<vmem>>, vector<8x256xf32>
      tpu.vector_store %arg7[%c0_11, %c0_12], %12 {strides = array<i32>} : memref<8x256xf32, #tpu.memory_space<vmem>>, vector<8x256xf32>,
    } else {
    }
    %c0 = arith.constant 0 : index
    %c0_1 = arith.constant 0 : index
    %3 = vector.load %arg7[%c0, %c0_1] : memref<8x256xf32, #tpu.memory_space<vmem>>, vector<8x256xf32>
    %c0_2 = arith.constant 0 : index
    %c0_3 = arith.constant 0 : index
    %4 = vector.load %arg3[%c0_2, %c0_3] : memref<8x128xbf16, #tpu.memory_space<vmem>>, vector<8x128xbf16>
    %c0_4 = arith.constant 0 : index
    %c0_5 = arith.constant 0 : index
    %5 = vector.load %arg4[%c0_4, %c0_5] : memref<128x256xbf16, #tpu.memory_space<vmem>>, vector<128x256xbf16>
    %cst = arith.constant dense<0.000000e+00> : vector<8x256xf32>
    %6 = tpu.matmul %4, %5, %cst {dimension_numbers = #tpu.dot_dimension_numbers<[1], [0], [0], [1], [0, 0, 1, 1], [], []>} : vector<8x128xbf16>, vector<128x256xbf16>, vector<8x256xf32> -> vector<8x256xf32>
    %7 = arith.addf %3, %6 : vector<8x256xf32>
    %c0_6 = arith.constant 0 : index
    %c0_7 = arith.constant 0 : index
    %8 = vector.load %arg7[%c0_6, %c0_7] : memref<8x256xf32, #tpu.memory_space<vmem>>, vector<8x256xf32>
    tpu.vector_store %arg7[%c0_6, %c0_7], %7 {strides = array<i32>} : memref<8x256xf32, #tpu.memory_space<vmem>>, vector<8x256xf32>,
    %c0_i32_8 = arith.constant 0 : i32
    %9 = arith.cmpi eq, %arg2, %c0_i32_8 : i32
    %10 = arith.extui %9 : i1 to i32
    %c0_i32_9 = arith.constant 0 : i32
    %11 = arith.cmpi ne, %10, %c0_i32_9 : i32
    scf.if %11 {
      %c0_10 = arith.constant 0 : index
      %c0_11 = arith.constant 0 : index
      %12 = vector.load %arg7[%c0_10, %c0_11] : memref<8x256xf32, #tpu.memory_space<vmem>>, vector<8x256xf32>
      %c0_12 = arith.constant 0 : index
      %c0_13 = arith.constant 0 : index
      %13 = vector.load %arg5[%c0_12, %c0_13] : memref<1x256xf32, #tpu.memory_space<vmem>>, vector<1x256xf32>
      %14 = vector.broadcast %13 : vector<1x256xf32> to vector<8x256xf32>
      %15 = arith.addf %12, %14 : vector<8x256xf32>
      %c0_14 = arith.constant 0 : index
      %c0_15 = arith.constant 0 : index
      %16 = vector.load %arg6[%c0_14, %c0_15] : memref<8x256xf32, #tpu.memory_space<vmem>>, vector<8x256xf32>
      tpu.vector_store %arg6[%c0_14, %c0_15], %15 {strides = array<i32>} : memref<8x256xf32, #tpu.memory_space<vmem>>, vector<8x256xf32>,
    } else {
    }
    return
  }
  func.func @transform_0(%arg0: i32, %arg1: i32, %arg2: i32) -> (i32, i32) {
    %c0_i32 = arith.constant 0 : i32
    return %arg0, %arg2 : i32, i32
  }
  func.func @transform_1(%arg0: i32, %arg1: i32, %arg2: i32) -> (i32, i32) {
    %c0_i32 = arith.constant 0 : i32
    return %arg2, %arg1 : i32, i32
  }
  func.func @transform_2(%arg0: i32, %arg1: i32, %arg2: i32) -> (i32, i32) {
    %c0_i32 = arith.constant 0 : i32
    %c0_i32_0 = arith.constant 0 : i32
    return %c0_i32, %arg1 : i32, i32
  }
  func.func @transform_3(%arg0: i32, %arg1: i32, %arg2: i32) -> (i32, i32) {
    %c0_i32 = arith.constant 0 : i32
    return %arg0, %arg1 : i32, i32
  }
}

module attributes {stable_mosaic.version = 11 : i64} {
  func.func @_scale_add_relu_kernel(%arg0: i32, %arg1: i32, %arg2: memref<1x4x256xf32, #tpu.memory_space<vmem>>, %arg3: memref<1x1x256xf32, #tpu.memory_space<vmem>>, %arg4: memref<1x4x256xf32, #tpu.memory_space<vmem>>, %arg5: memref<1x4x256xf32, #tpu.memory_space<vmem>>) attributes {dimension_semantics = [#tpu.dimension_semantics<parallel>, #tpu.dimension_semantics<parallel>], iteration_bounds = array<i64: 2, 1>, scalar_prefetch = 0 : i64, scratch_operands = 0 : i64, tpu.core_type = #tpu.core_type<tc>, window_params = [{transform_indices = @transform_0, window_bounds = array<i64: 1, 4, 256>}, {transform_indices = @transform_1, window_bounds = array<i64: 1, 1, 256>}, {transform_indices = @transform_2, window_bounds = array<i64: 1, 4, 256>}, {transform_indices = @transform_3, window_bounds = array<i64: 1, 4, 256>}]} {
    %c0 = arith.constant 0 : index
    %c0_0 = arith.constant 0 : index
    %c0_1 = arith.constant 0 : index
    %0 = vector.load %arg2[%c0, %c0_0, %c0_1] : memref<1x4x256xf32, #tpu.memory_space<vmem>>, vector<1x4x256xf32>
    %c0_2 = arith.constant 0 : index
    %c0_3 = arith.constant 0 : index
    %c0_4 = arith.constant 0 : index
    %1 = vector.load %arg3[%c0_2, %c0_3, %c0_4] : memref<1x1x256xf32, #tpu.memory_space<vmem>>, vector<1x1x256xf32>
    %2 = vector.broadcast %1 : vector<1x1x256xf32> to vector<1x4x256xf32>
    %3 = arith.mulf %0, %2 : vector<1x4x256xf32>
    %c0_5 = arith.constant 0 : index
    %c0_6 = arith.constant 0 : index
    %c0_7 = arith.constant 0 : index
    %4 = vector.load %arg4[%c0_5, %c0_6, %c0_7] : memref<1x4x256xf32, #tpu.memory_space<vmem>>, vector<1x4x256xf32>
    %5 = arith.addf %3, %4 : vector<1x4x256xf32>
    %cst = arith.constant 0.000000e+00 : f32
    %6 = vector.broadcast %cst : f32 to vector<1x4x256xf32>
    %7 = arith.maximumf %5, %6 : vector<1x4x256xf32>
    %c0_8 = arith.constant 0 : index
    %c0_9 = arith.constant 0 : index
    %c0_10 = arith.constant 0 : index
    %8 = vector.load %arg5[%c0_8, %c0_9, %c0_10] : memref<1x4x256xf32, #tpu.memory_space<vmem>>, vector<1x4x256xf32>
    tpu.vector_store %arg5[%c0_8, %c0_9, %c0_10], %7 {strides = array<i32>} : memref<1x4x256xf32, #tpu.memory_space<vmem>>, vector<1x4x256xf32>,
    return
  }
  func.func @transform_0(%arg0: i32, %arg1: i32) -> (i32, i32, i32) {
    %c0_i32 = arith.constant 0 : i32
    %c0_i32_0 = arith.constant 0 : i32
    return %arg0, %arg1, %c0_i32 : i32, i32, i32
  }
  func.func @transform_1(%arg0: i32, %arg1: i32) -> (i32, i32, i32) {
    %c0_i32 = arith.constant 0 : i32
    %c0_i32_0 = arith.constant 0 : i32
    %c0_i32_1 = arith.constant 0 : i32
    return %arg0, %c0_i32, %c0_i32_0 : i32, i32, i32
  }
  func.func @transform_2(%arg0: i32, %arg1: i32) -> (i32, i32, i32) {
    %c0_i32 = arith.constant 0 : i32
    %c0_i32_0 = arith.constant 0 : i32
    return %arg0, %arg1, %c0_i32 : i32, i32, i32
  }
  func.func @transform_3(%arg0: i32, %arg1: i32) -> (i32, i32, i32) {
    %c0_i32 = arith.constant 0 : i32
    %c0_i32_0 = arith.constant 0 : i32
    return %arg0, %arg1, %c0_i32 : i32, i32, i32
  }
}

module attributes {stable_mosaic.version = 11 : i64} {
  func.func @_mm_bias_act_kernel(%arg0: i32, %arg1: i32, %arg2: i32, %arg3: memref<8x512xbf16, #tpu.memory_space<vmem>>, %arg4: memref<512x512xbf16, #tpu.memory_space<vmem>>, %arg5: memref<1x512xf32, #tpu.memory_space<vmem>>, %arg6: memref<8x512xf32, #tpu.memory_space<vmem>>, %arg7: memref<8x512xf32, #tpu.memory_space<vmem>>) attributes {dimension_semantics = [#tpu.dimension_semantics<parallel>, #tpu.dimension_semantics<parallel>, #tpu.dimension_semantics<arbitrary>], iteration_bounds = array<i64: 1, 1, 5>, scalar_prefetch = 0 : i64, scratch_operands = 1 : i64, tpu.core_type = #tpu.core_type<tc>, window_params = [{transform_indices = @transform_0, window_bounds = array<i64: 8, 512>}, {transform_indices = @transform_1, window_bounds = array<i64: 512, 512>}, {transform_indices = @transform_2, window_bounds = array<i64: 1, 512>}, {transform_indices = @transform_3, window_bounds = array<i64: 8, 512>}]} {
    %c0_i32 = arith.constant 0 : i32
    %0 = arith.cmpi eq, %arg2, %c0_i32 : i32
    %1 = arith.extui %0 : i1 to i32
    %c0_i32_0 = arith.constant 0 : i32
    %2 = arith.cmpi ne, %1, %c0_i32_0 : i32
    scf.if %2 {
      %cst_9 = arith.constant 0.000000e+00 : f32
      %12 = vector.broadcast %cst_9 : f32 to vector<8x512xf32>
      %c0_10 = arith.constant 0 : index
      %c0_11 = arith.constant 0 : index
      %13 = vector.load %arg7[%c0_10, %c0_11] : memref<8x512xf32, #tpu.memory_space<vmem>>, vector<8x512xf32>
      tpu.vector_store %arg7[%c0_10, %c0_11], %12 {strides = array<i32>} : memref<8x512xf32, #tpu.memory_space<vmem>>, vector<8x512xf32>,
    } else {
    }
    %c0 = arith.constant 0 : index
    %c0_1 = arith.constant 0 : index
    %3 = vector.load %arg7[%c0, %c0_1] : memref<8x512xf32, #tpu.memory_space<vmem>>, vector<8x512xf32>
    %c0_2 = arith.constant 0 : index
    %c0_3 = arith.constant 0 : index
    %4 = vector.load %arg3[%c0_2, %c0_3] : memref<8x512xbf16, #tpu.memory_space<vmem>>, vector<8x512xbf16>
    %c0_4 = arith.constant 0 : index
    %c0_5 = arith.constant 0 : index
    %5 = vector.load %arg4[%c0_4, %c0_5] : memref<512x512xbf16, #tpu.memory_space<vmem>>, vector<512x512xbf16>
    %cst = arith.constant dense<0.000000e+00> : vector<8x512xf32>
    %6 = tpu.matmul %4, %5, %cst {dimension_numbers = #tpu.dot_dimension_numbers<[1], [0], [0], [1], [0, 0, 1, 1], [], []>} : vector<8x512xbf16>, vector<512x512xbf16>, vector<8x512xf32> -> vector<8x512xf32>
    %7 = arith.addf %3, %6 : vector<8x512xf32>
    %c0_6 = arith.constant 0 : index
    %c0_7 = arith.constant 0 : index
    %8 = vector.load %arg7[%c0_6, %c0_7] : memref<8x512xf32, #tpu.memory_space<vmem>>, vector<8x512xf32>
    tpu.vector_store %arg7[%c0_6, %c0_7], %7 {strides = array<i32>} : memref<8x512xf32, #tpu.memory_space<vmem>>, vector<8x512xf32>,
    %c4_i32 = arith.constant 4 : i32
    %9 = arith.cmpi eq, %arg2, %c4_i32 : i32
    %10 = arith.extui %9 : i1 to i32
    %c0_i32_8 = arith.constant 0 : i32
    %11 = arith.cmpi ne, %10, %c0_i32_8 : i32
    scf.if %11 {
      %c0_9 = arith.constant 0 : index
      %c0_10 = arith.constant 0 : index
      %12 = vector.load %arg7[%c0_9, %c0_10] : memref<8x512xf32, #tpu.memory_space<vmem>>, vector<8x512xf32>
      %c0_11 = arith.constant 0 : index
      %c0_12 = arith.constant 0 : index
      %13 = vector.load %arg5[%c0_11, %c0_12] : memref<1x512xf32, #tpu.memory_space<vmem>>, vector<1x512xf32>
      %14 = vector.broadcast %13 : vector<1x512xf32> to vector<8x512xf32>
      %15 = arith.addf %12, %14 : vector<8x512xf32>
      %cst_13 = arith.constant 0.000000e+00 : f32
      %16 = vector.broadcast %cst_13 : f32 to vector<8x512xf32>
      %17 = arith.maximumf %15, %16 : vector<8x512xf32>
      %c0_14 = arith.constant 0 : index
      %c0_15 = arith.constant 0 : index
      %18 = vector.load %arg6[%c0_14, %c0_15] : memref<8x512xf32, #tpu.memory_space<vmem>>, vector<8x512xf32>
      tpu.vector_store %arg6[%c0_14, %c0_15], %17 {strides = array<i32>} : memref<8x512xf32, #tpu.memory_space<vmem>>, vector<8x512xf32>,
    } else {
    }
    return
  }
  func.func @transform_0(%arg0: i32, %arg1: i32, %arg2: i32) -> (i32, i32) {
    %c0_i32 = arith.constant 0 : i32
    return %arg0, %arg2 : i32, i32
  }
  func.func @transform_1(%arg0: i32, %arg1: i32, %arg2: i32) -> (i32, i32) {
    %c0_i32 = arith.constant 0 : i32
    return %arg2, %arg1 : i32, i32
  }
  func.func @transform_2(%arg0: i32, %arg1: i32, %arg2: i32) -> (i32, i32) {
    %c0_i32 = arith.constant 0 : i32
    %c0_i32_0 = arith.constant 0 : i32
    return %c0_i32, %arg1 : i32, i32
  }
  func.func @transform_3(%arg0: i32, %arg1: i32, %arg2: i32) -> (i32, i32) {
    %c0_i32 = arith.constant 0 : i32
    return %arg0, %arg1 : i32, i32
  }
}

module attributes {stable_mosaic.version = 11 : i64} {
  func.func @_mm_bias_act_kernel(%arg0: i32, %arg1: i32, %arg2: i32, %arg3: memref<8x512xbf16, #tpu.memory_space<vmem>>, %arg4: memref<512x512xbf16, #tpu.memory_space<vmem>>, %arg5: memref<1x512xf32, #tpu.memory_space<vmem>>, %arg6: memref<8x512xf32, #tpu.memory_space<vmem>>, %arg7: memref<8x512xf32, #tpu.memory_space<vmem>>) attributes {dimension_semantics = [#tpu.dimension_semantics<parallel>, #tpu.dimension_semantics<parallel>, #tpu.dimension_semantics<arbitrary>], iteration_bounds = array<i64: 1, 1, 9>, scalar_prefetch = 0 : i64, scratch_operands = 1 : i64, tpu.core_type = #tpu.core_type<tc>, window_params = [{transform_indices = @transform_0, window_bounds = array<i64: 8, 512>}, {transform_indices = @transform_1, window_bounds = array<i64: 512, 512>}, {transform_indices = @transform_2, window_bounds = array<i64: 1, 512>}, {transform_indices = @transform_3, window_bounds = array<i64: 8, 512>}]} {
    %c0_i32 = arith.constant 0 : i32
    %0 = arith.cmpi eq, %arg2, %c0_i32 : i32
    %1 = arith.extui %0 : i1 to i32
    %c0_i32_0 = arith.constant 0 : i32
    %2 = arith.cmpi ne, %1, %c0_i32_0 : i32
    scf.if %2 {
      %cst_9 = arith.constant 0.000000e+00 : f32
      %12 = vector.broadcast %cst_9 : f32 to vector<8x512xf32>
      %c0_10 = arith.constant 0 : index
      %c0_11 = arith.constant 0 : index
      %13 = vector.load %arg7[%c0_10, %c0_11] : memref<8x512xf32, #tpu.memory_space<vmem>>, vector<8x512xf32>
      tpu.vector_store %arg7[%c0_10, %c0_11], %12 {strides = array<i32>} : memref<8x512xf32, #tpu.memory_space<vmem>>, vector<8x512xf32>,
    } else {
    }
    %c0 = arith.constant 0 : index
    %c0_1 = arith.constant 0 : index
    %3 = vector.load %arg7[%c0, %c0_1] : memref<8x512xf32, #tpu.memory_space<vmem>>, vector<8x512xf32>
    %c0_2 = arith.constant 0 : index
    %c0_3 = arith.constant 0 : index
    %4 = vector.load %arg3[%c0_2, %c0_3] : memref<8x512xbf16, #tpu.memory_space<vmem>>, vector<8x512xbf16>
    %c0_4 = arith.constant 0 : index
    %c0_5 = arith.constant 0 : index
    %5 = vector.load %arg4[%c0_4, %c0_5] : memref<512x512xbf16, #tpu.memory_space<vmem>>, vector<512x512xbf16>
    %cst = arith.constant dense<0.000000e+00> : vector<8x512xf32>
    %6 = tpu.matmul %4, %5, %cst {dimension_numbers = #tpu.dot_dimension_numbers<[1], [0], [0], [1], [0, 0, 1, 1], [], []>} : vector<8x512xbf16>, vector<512x512xbf16>, vector<8x512xf32> -> vector<8x512xf32>
    %7 = arith.addf %3, %6 : vector<8x512xf32>
    %c0_6 = arith.constant 0 : index
    %c0_7 = arith.constant 0 : index
    %8 = vector.load %arg7[%c0_6, %c0_7] : memref<8x512xf32, #tpu.memory_space<vmem>>, vector<8x512xf32>
    tpu.vector_store %arg7[%c0_6, %c0_7], %7 {strides = array<i32>} : memref<8x512xf32, #tpu.memory_space<vmem>>, vector<8x512xf32>,
    %c8_i32 = arith.constant 8 : i32
    %9 = arith.cmpi eq, %arg2, %c8_i32 : i32
    %10 = arith.extui %9 : i1 to i32
    %c0_i32_8 = arith.constant 0 : i32
    %11 = arith.cmpi ne, %10, %c0_i32_8 : i32
    scf.if %11 {
      %c0_9 = arith.constant 0 : index
      %c0_10 = arith.constant 0 : index
      %12 = vector.load %arg7[%c0_9, %c0_10] : memref<8x512xf32, #tpu.memory_space<vmem>>, vector<8x512xf32>
      %c0_11 = arith.constant 0 : index
      %c0_12 = arith.constant 0 : index
      %13 = vector.load %arg5[%c0_11, %c0_12] : memref<1x512xf32, #tpu.memory_space<vmem>>, vector<1x512xf32>
      %14 = vector.broadcast %13 : vector<1x512xf32> to vector<8x512xf32>
      %15 = arith.addf %12, %14 : vector<8x512xf32>
      %c0_13 = arith.constant 0 : index
      %c0_14 = arith.constant 0 : index
      %16 = vector.load %arg6[%c0_13, %c0_14] : memref<8x512xf32, #tpu.memory_space<vmem>>, vector<8x512xf32>
      tpu.vector_store %arg6[%c0_13, %c0_14], %15 {strides = array<i32>} : memref<8x512xf32, #tpu.memory_space<vmem>>, vector<8x512xf32>,
    } else {
    }
    return
  }
  func.func @transform_0(%arg0: i32, %arg1: i32, %arg2: i32) -> (i32, i32) {
    %c0_i32 = arith.constant 0 : i32
    return %arg0, %arg2 : i32, i32
  }
  func.func @transform_1(%arg0: i32, %arg1: i32, %arg2: i32) -> (i32, i32) {
    %c0_i32 = arith.constant 0 : i32
    return %arg2, %arg1 : i32, i32
  }
  func.func @transform_2(%arg0: i32, %arg1: i32, %arg2: i32) -> (i32, i32) {
    %c0_i32 = arith.constant 0 : i32
    %c0_i32_0 = arith.constant 0 : i32
    return %c0_i32, %arg1 : i32, i32
  }
  func.func @transform_3(%arg0: i32, %arg1: i32, %arg2: i32) -> (i32, i32) {
    %c0_i32 = arith.constant 0 : i32
    return %arg0, %arg1 : i32, i32
  }
}

module attributes {stable_mosaic.version = 11 : i64} {
  func.func @_mm_bias_act_kernel(%arg0: i32, %arg1: i32, %arg2: i32, %arg3: memref<8x256xbf16, #tpu.memory_space<vmem>>, %arg4: memref<256x512xbf16, #tpu.memory_space<vmem>>, %arg5: memref<1x512xf32, #tpu.memory_space<vmem>>, %arg6: memref<8x512xf32, #tpu.memory_space<vmem>>, %arg7: memref<8x512xf32, #tpu.memory_space<vmem>>) attributes {dimension_semantics = [#tpu.dimension_semantics<parallel>, #tpu.dimension_semantics<parallel>, #tpu.dimension_semantics<arbitrary>], iteration_bounds = array<i64: 1, 1, 1>, scalar_prefetch = 0 : i64, scratch_operands = 1 : i64, tpu.core_type = #tpu.core_type<tc>, window_params = [{transform_indices = @transform_0, window_bounds = array<i64: 8, 256>}, {transform_indices = @transform_1, window_bounds = array<i64: 256, 512>}, {transform_indices = @transform_2, window_bounds = array<i64: 1, 512>}, {transform_indices = @transform_3, window_bounds = array<i64: 8, 512>}]} {
    %c0_i32 = arith.constant 0 : i32
    %0 = arith.cmpi eq, %arg2, %c0_i32 : i32
    %1 = arith.extui %0 : i1 to i32
    %c0_i32_0 = arith.constant 0 : i32
    %2 = arith.cmpi ne, %1, %c0_i32_0 : i32
    scf.if %2 {
      %cst_10 = arith.constant 0.000000e+00 : f32
      %12 = vector.broadcast %cst_10 : f32 to vector<8x512xf32>
      %c0_11 = arith.constant 0 : index
      %c0_12 = arith.constant 0 : index
      %13 = vector.load %arg7[%c0_11, %c0_12] : memref<8x512xf32, #tpu.memory_space<vmem>>, vector<8x512xf32>
      tpu.vector_store %arg7[%c0_11, %c0_12], %12 {strides = array<i32>} : memref<8x512xf32, #tpu.memory_space<vmem>>, vector<8x512xf32>,
    } else {
    }
    %c0 = arith.constant 0 : index
    %c0_1 = arith.constant 0 : index
    %3 = vector.load %arg7[%c0, %c0_1] : memref<8x512xf32, #tpu.memory_space<vmem>>, vector<8x512xf32>
    %c0_2 = arith.constant 0 : index
    %c0_3 = arith.constant 0 : index
    %4 = vector.load %arg3[%c0_2, %c0_3] : memref<8x256xbf16, #tpu.memory_space<vmem>>, vector<8x256xbf16>
    %c0_4 = arith.constant 0 : index
    %c0_5 = arith.constant 0 : index
    %5 = vector.load %arg4[%c0_4, %c0_5] : memref<256x512xbf16, #tpu.memory_space<vmem>>, vector<256x512xbf16>
    %cst = arith.constant dense<0.000000e+00> : vector<8x512xf32>
    %6 = tpu.matmul %4, %5, %cst {dimension_numbers = #tpu.dot_dimension_numbers<[1], [0], [0], [1], [0, 0, 1, 1], [], []>} : vector<8x256xbf16>, vector<256x512xbf16>, vector<8x512xf32> -> vector<8x512xf32>
    %7 = arith.addf %3, %6 : vector<8x512xf32>
    %c0_6 = arith.constant 0 : index
    %c0_7 = arith.constant 0 : index
    %8 = vector.load %arg7[%c0_6, %c0_7] : memref<8x512xf32, #tpu.memory_space<vmem>>, vector<8x512xf32>
    tpu.vector_store %arg7[%c0_6, %c0_7], %7 {strides = array<i32>} : memref<8x512xf32, #tpu.memory_space<vmem>>, vector<8x512xf32>,
    %c0_i32_8 = arith.constant 0 : i32
    %9 = arith.cmpi eq, %arg2, %c0_i32_8 : i32
    %10 = arith.extui %9 : i1 to i32
    %c0_i32_9 = arith.constant 0 : i32
    %11 = arith.cmpi ne, %10, %c0_i32_9 : i32
    scf.if %11 {
      %c0_10 = arith.constant 0 : index
      %c0_11 = arith.constant 0 : index
      %12 = vector.load %arg7[%c0_10, %c0_11] : memref<8x512xf32, #tpu.memory_space<vmem>>, vector<8x512xf32>
      %c0_12 = arith.constant 0 : index
      %c0_13 = arith.constant 0 : index
      %13 = vector.load %arg5[%c0_12, %c0_13] : memref<1x512xf32, #tpu.memory_space<vmem>>, vector<1x512xf32>
      %14 = vector.broadcast %13 : vector<1x512xf32> to vector<8x512xf32>
      %15 = arith.addf %12, %14 : vector<8x512xf32>
      %c0_14 = arith.constant 0 : index
      %c0_15 = arith.constant 0 : index
      %16 = vector.load %arg6[%c0_14, %c0_15] : memref<8x512xf32, #tpu.memory_space<vmem>>, vector<8x512xf32>
      tpu.vector_store %arg6[%c0_14, %c0_15], %15 {strides = array<i32>} : memref<8x512xf32, #tpu.memory_space<vmem>>, vector<8x512xf32>,
    } else {
    }
    return
  }
  func.func @transform_0(%arg0: i32, %arg1: i32, %arg2: i32) -> (i32, i32) {
    %c0_i32 = arith.constant 0 : i32
    return %arg0, %arg2 : i32, i32
  }
  func.func @transform_1(%arg0: i32, %arg1: i32, %arg2: i32) -> (i32, i32) {
    %c0_i32 = arith.constant 0 : i32
    return %arg2, %arg1 : i32, i32
  }
  func.func @transform_2(%arg0: i32, %arg1: i32, %arg2: i32) -> (i32, i32) {
    %c0_i32 = arith.constant 0 : i32
    %c0_i32_0 = arith.constant 0 : i32
    return %c0_i32, %arg1 : i32, i32
  }
  func.func @transform_3(%arg0: i32, %arg1: i32, %arg2: i32) -> (i32, i32) {
    %c0_i32 = arith.constant 0 : i32
    return %arg0, %arg1 : i32, i32
  }
}

module attributes {stable_mosaic.version = 11 : i64} {
  func.func @_scale_add_relu_kernel(%arg0: i32, %arg1: i32, %arg2: memref<1x1x512xf32, #tpu.memory_space<vmem>>, %arg3: memref<1x1x512xf32, #tpu.memory_space<vmem>>, %arg4: memref<1x1x512xf32, #tpu.memory_space<vmem>>, %arg5: memref<1x1x512xf32, #tpu.memory_space<vmem>>) attributes {dimension_semantics = [#tpu.dimension_semantics<parallel>, #tpu.dimension_semantics<parallel>], iteration_bounds = array<i64: 2, 1>, scalar_prefetch = 0 : i64, scratch_operands = 0 : i64, tpu.core_type = #tpu.core_type<tc>, window_params = [{transform_indices = @transform_0, window_bounds = array<i64: 1, 1, 512>}, {transform_indices = @transform_1, window_bounds = array<i64: 1, 1, 512>}, {transform_indices = @transform_2, window_bounds = array<i64: 1, 1, 512>}, {transform_indices = @transform_3, window_bounds = array<i64: 1, 1, 512>}]} {
    %c0 = arith.constant 0 : index
    %c0_0 = arith.constant 0 : index
    %c0_1 = arith.constant 0 : index
    %0 = vector.load %arg2[%c0, %c0_0, %c0_1] : memref<1x1x512xf32, #tpu.memory_space<vmem>>, vector<1x1x512xf32>
    %c0_2 = arith.constant 0 : index
    %c0_3 = arith.constant 0 : index
    %c0_4 = arith.constant 0 : index
    %1 = vector.load %arg3[%c0_2, %c0_3, %c0_4] : memref<1x1x512xf32, #tpu.memory_space<vmem>>, vector<1x1x512xf32>
    %2 = arith.mulf %0, %1 : vector<1x1x512xf32>
    %c0_5 = arith.constant 0 : index
    %c0_6 = arith.constant 0 : index
    %c0_7 = arith.constant 0 : index
    %3 = vector.load %arg4[%c0_5, %c0_6, %c0_7] : memref<1x1x512xf32, #tpu.memory_space<vmem>>, vector<1x1x512xf32>
    %4 = arith.addf %2, %3 : vector<1x1x512xf32>
    %cst = arith.constant 0.000000e+00 : f32
    %5 = vector.broadcast %cst : f32 to vector<1x1x512xf32>
    %6 = arith.maximumf %4, %5 : vector<1x1x512xf32>
    %c0_8 = arith.constant 0 : index
    %c0_9 = arith.constant 0 : index
    %c0_10 = arith.constant 0 : index
    %7 = vector.load %arg5[%c0_8, %c0_9, %c0_10] : memref<1x1x512xf32, #tpu.memory_space<vmem>>, vector<1x1x512xf32>
    tpu.vector_store %arg5[%c0_8, %c0_9, %c0_10], %6 {strides = array<i32>} : memref<1x1x512xf32, #tpu.memory_space<vmem>>, vector<1x1x512xf32>,
    return
  }
  func.func @transform_0(%arg0: i32, %arg1: i32) -> (i32, i32, i32) {
    %c0_i32 = arith.constant 0 : i32
    %c0_i32_0 = arith.constant 0 : i32
    return %arg0, %arg1, %c0_i32 : i32, i32, i32
  }
  func.func @transform_1(%arg0: i32, %arg1: i32) -> (i32, i32, i32) {
    %c0_i32 = arith.constant 0 : i32
    %c0_i32_0 = arith.constant 0 : i32
    %c0_i32_1 = arith.constant 0 : i32
    return %arg0, %c0_i32, %c0_i32_0 : i32, i32, i32
  }
  func.func @transform_2(%arg0: i32, %arg1: i32) -> (i32, i32, i32) {
    %c0_i32 = arith.constant 0 : i32
    %c0_i32_0 = arith.constant 0 : i32
    return %arg0, %arg1, %c0_i32 : i32, i32, i32
  }
  func.func @transform_3(%arg0: i32, %arg1: i32) -> (i32, i32, i32) {
    %c0_i32 = arith.constant 0 : i32
    %c0_i32_0 = arith.constant 0 : i32
    return %arg0, %arg1, %c0_i32 : i32, i32, i32
  }
}

module attributes {stable_mosaic.version = 11 : i64} {
  func.func @_mm_bias_act_kernel(%arg0: i32, %arg1: i32, %arg2: i32, %arg3: memref<8x512xbf16, #tpu.memory_space<vmem>>, %arg4: memref<512x256xbf16, #tpu.memory_space<vmem>>, %arg5: memref<1x256xf32, #tpu.memory_space<vmem>>, %arg6: memref<8x256xf32, #tpu.memory_space<vmem>>, %arg7: memref<8x256xf32, #tpu.memory_space<vmem>>) attributes {dimension_semantics = [#tpu.dimension_semantics<parallel>, #tpu.dimension_semantics<parallel>, #tpu.dimension_semantics<arbitrary>], iteration_bounds = array<i64: 1, 1, 9>, scalar_prefetch = 0 : i64, scratch_operands = 1 : i64, tpu.core_type = #tpu.core_type<tc>, window_params = [{transform_indices = @transform_0, window_bounds = array<i64: 8, 512>}, {transform_indices = @transform_1, window_bounds = array<i64: 512, 256>}, {transform_indices = @transform_2, window_bounds = array<i64: 1, 256>}, {transform_indices = @transform_3, window_bounds = array<i64: 8, 256>}]} {
    %c0_i32 = arith.constant 0 : i32
    %0 = arith.cmpi eq, %arg2, %c0_i32 : i32
    %1 = arith.extui %0 : i1 to i32
    %c0_i32_0 = arith.constant 0 : i32
    %2 = arith.cmpi ne, %1, %c0_i32_0 : i32
    scf.if %2 {
      %cst_9 = arith.constant 0.000000e+00 : f32
      %12 = vector.broadcast %cst_9 : f32 to vector<8x256xf32>
      %c0_10 = arith.constant 0 : index
      %c0_11 = arith.constant 0 : index
      %13 = vector.load %arg7[%c0_10, %c0_11] : memref<8x256xf32, #tpu.memory_space<vmem>>, vector<8x256xf32>
      tpu.vector_store %arg7[%c0_10, %c0_11], %12 {strides = array<i32>} : memref<8x256xf32, #tpu.memory_space<vmem>>, vector<8x256xf32>,
    } else {
    }
    %c0 = arith.constant 0 : index
    %c0_1 = arith.constant 0 : index
    %3 = vector.load %arg7[%c0, %c0_1] : memref<8x256xf32, #tpu.memory_space<vmem>>, vector<8x256xf32>
    %c0_2 = arith.constant 0 : index
    %c0_3 = arith.constant 0 : index
    %4 = vector.load %arg3[%c0_2, %c0_3] : memref<8x512xbf16, #tpu.memory_space<vmem>>, vector<8x512xbf16>
    %c0_4 = arith.constant 0 : index
    %c0_5 = arith.constant 0 : index
    %5 = vector.load %arg4[%c0_4, %c0_5] : memref<512x256xbf16, #tpu.memory_space<vmem>>, vector<512x256xbf16>
    %cst = arith.constant dense<0.000000e+00> : vector<8x256xf32>
    %6 = tpu.matmul %4, %5, %cst {dimension_numbers = #tpu.dot_dimension_numbers<[1], [0], [0], [1], [0, 0, 1, 1], [], []>} : vector<8x512xbf16>, vector<512x256xbf16>, vector<8x256xf32> -> vector<8x256xf32>
    %7 = arith.addf %3, %6 : vector<8x256xf32>
    %c0_6 = arith.constant 0 : index
    %c0_7 = arith.constant 0 : index
    %8 = vector.load %arg7[%c0_6, %c0_7] : memref<8x256xf32, #tpu.memory_space<vmem>>, vector<8x256xf32>
    tpu.vector_store %arg7[%c0_6, %c0_7], %7 {strides = array<i32>} : memref<8x256xf32, #tpu.memory_space<vmem>>, vector<8x256xf32>,
    %c8_i32 = arith.constant 8 : i32
    %9 = arith.cmpi eq, %arg2, %c8_i32 : i32
    %10 = arith.extui %9 : i1 to i32
    %c0_i32_8 = arith.constant 0 : i32
    %11 = arith.cmpi ne, %10, %c0_i32_8 : i32
    scf.if %11 {
      %c0_9 = arith.constant 0 : index
      %c0_10 = arith.constant 0 : index
      %12 = vector.load %arg7[%c0_9, %c0_10] : memref<8x256xf32, #tpu.memory_space<vmem>>, vector<8x256xf32>
      %c0_11 = arith.constant 0 : index
      %c0_12 = arith.constant 0 : index
      %13 = vector.load %arg5[%c0_11, %c0_12] : memref<1x256xf32, #tpu.memory_space<vmem>>, vector<1x256xf32>
      %14 = vector.broadcast %13 : vector<1x256xf32> to vector<8x256xf32>
      %15 = arith.addf %12, %14 : vector<8x256xf32>
      %cst_13 = arith.constant 0.000000e+00 : f32
      %16 = vector.broadcast %cst_13 : f32 to vector<8x256xf32>
      %17 = arith.maximumf %15, %16 : vector<8x256xf32>
      %c0_14 = arith.constant 0 : index
      %c0_15 = arith.constant 0 : index
      %18 = vector.load %arg6[%c0_14, %c0_15] : memref<8x256xf32, #tpu.memory_space<vmem>>, vector<8x256xf32>
      tpu.vector_store %arg6[%c0_14, %c0_15], %17 {strides = array<i32>} : memref<8x256xf32, #tpu.memory_space<vmem>>, vector<8x256xf32>,
    } else {
    }
    return
  }
  func.func @transform_0(%arg0: i32, %arg1: i32, %arg2: i32) -> (i32, i32) {
    %c0_i32 = arith.constant 0 : i32
    return %arg0, %arg2 : i32, i32
  }
  func.func @transform_1(%arg0: i32, %arg1: i32, %arg2: i32) -> (i32, i32) {
    %c0_i32 = arith.constant 0 : i32
    return %arg2, %arg1 : i32, i32
  }
  func.func @transform_2(%arg0: i32, %arg1: i32, %arg2: i32) -> (i32, i32) {
    %c0_i32 = arith.constant 0 : i32
    %c0_i32_0 = arith.constant 0 : i32
    return %c0_i32, %arg1 : i32, i32
  }
  func.func @transform_3(%arg0: i32, %arg1: i32, %arg2: i32) -> (i32, i32) {
    %c0_i32 = arith.constant 0 : i32
    return %arg0, %arg1 : i32, i32
  }
}

module attributes {stable_mosaic.version = 11 : i64} {
  func.func @_mm_bias_act_kernel(%arg0: i32, %arg1: i32, %arg2: i32, %arg3: memref<8x512xbf16, #tpu.memory_space<vmem>>, %arg4: memref<512x128xbf16, #tpu.memory_space<vmem>>, %arg5: memref<1x128xf32, #tpu.memory_space<vmem>>, %arg6: memref<8x128xf32, #tpu.memory_space<vmem>>, %arg7: memref<8x128xf32, #tpu.memory_space<vmem>>) attributes {dimension_semantics = [#tpu.dimension_semantics<parallel>, #tpu.dimension_semantics<parallel>, #tpu.dimension_semantics<arbitrary>], iteration_bounds = array<i64: 1, 1, 5>, scalar_prefetch = 0 : i64, scratch_operands = 1 : i64, tpu.core_type = #tpu.core_type<tc>, window_params = [{transform_indices = @transform_0, window_bounds = array<i64: 8, 512>}, {transform_indices = @transform_1, window_bounds = array<i64: 512, 128>}, {transform_indices = @transform_2, window_bounds = array<i64: 1, 128>}, {transform_indices = @transform_3, window_bounds = array<i64: 8, 128>}]} {
    %c0_i32 = arith.constant 0 : i32
    %0 = arith.cmpi eq, %arg2, %c0_i32 : i32
    %1 = arith.extui %0 : i1 to i32
    %c0_i32_0 = arith.constant 0 : i32
    %2 = arith.cmpi ne, %1, %c0_i32_0 : i32
    scf.if %2 {
      %cst_9 = arith.constant 0.000000e+00 : f32
      %12 = vector.broadcast %cst_9 : f32 to vector<8x128xf32>
      %c0_10 = arith.constant 0 : index
      %c0_11 = arith.constant 0 : index
      %13 = vector.load %arg7[%c0_10, %c0_11] : memref<8x128xf32, #tpu.memory_space<vmem>>, vector<8x128xf32>
      tpu.vector_store %arg7[%c0_10, %c0_11], %12 {strides = array<i32>} : memref<8x128xf32, #tpu.memory_space<vmem>>, vector<8x128xf32>,
    } else {
    }
    %c0 = arith.constant 0 : index
    %c0_1 = arith.constant 0 : index
    %3 = vector.load %arg7[%c0, %c0_1] : memref<8x128xf32, #tpu.memory_space<vmem>>, vector<8x128xf32>
    %c0_2 = arith.constant 0 : index
    %c0_3 = arith.constant 0 : index
    %4 = vector.load %arg3[%c0_2, %c0_3] : memref<8x512xbf16, #tpu.memory_space<vmem>>, vector<8x512xbf16>
    %c0_4 = arith.constant 0 : index
    %c0_5 = arith.constant 0 : index
    %5 = vector.load %arg4[%c0_4, %c0_5] : memref<512x128xbf16, #tpu.memory_space<vmem>>, vector<512x128xbf16>
    %cst = arith.constant dense<0.000000e+00> : vector<8x128xf32>
    %6 = tpu.matmul %4, %5, %cst {dimension_numbers = #tpu.dot_dimension_numbers<[1], [0], [0], [1], [0, 0, 1, 1], [], []>} : vector<8x512xbf16>, vector<512x128xbf16>, vector<8x128xf32> -> vector<8x128xf32>
    %7 = arith.addf %3, %6 : vector<8x128xf32>
    %c0_6 = arith.constant 0 : index
    %c0_7 = arith.constant 0 : index
    %8 = vector.load %arg7[%c0_6, %c0_7] : memref<8x128xf32, #tpu.memory_space<vmem>>, vector<8x128xf32>
    tpu.vector_store %arg7[%c0_6, %c0_7], %7 {strides = array<i32>} : memref<8x128xf32, #tpu.memory_space<vmem>>, vector<8x128xf32>,
    %c4_i32 = arith.constant 4 : i32
    %9 = arith.cmpi eq, %arg2, %c4_i32 : i32
    %10 = arith.extui %9 : i1 to i32
    %c0_i32_8 = arith.constant 0 : i32
    %11 = arith.cmpi ne, %10, %c0_i32_8 : i32
    scf.if %11 {
      %c0_9 = arith.constant 0 : index
      %c0_10 = arith.constant 0 : index
      %12 = vector.load %arg7[%c0_9, %c0_10] : memref<8x128xf32, #tpu.memory_space<vmem>>, vector<8x128xf32>
      %c0_11 = arith.constant 0 : index
      %c0_12 = arith.constant 0 : index
      %13 = vector.load %arg5[%c0_11, %c0_12] : memref<1x128xf32, #tpu.memory_space<vmem>>, vector<1x128xf32>
      %14 = vector.broadcast %13 : vector<1x128xf32> to vector<8x128xf32>
      %15 = arith.addf %12, %14 : vector<8x128xf32>
      %cst_13 = arith.constant 0.000000e+00 : f32
      %16 = vector.broadcast %cst_13 : f32 to vector<8x128xf32>
      %17 = arith.maximumf %15, %16 : vector<8x128xf32>
      %c0_14 = arith.constant 0 : index
      %c0_15 = arith.constant 0 : index
      %18 = vector.load %arg6[%c0_14, %c0_15] : memref<8x128xf32, #tpu.memory_space<vmem>>, vector<8x128xf32>
      tpu.vector_store %arg6[%c0_14, %c0_15], %17 {strides = array<i32>} : memref<8x128xf32, #tpu.memory_space<vmem>>, vector<8x128xf32>,
    } else {
    }
    return
  }
  func.func @transform_0(%arg0: i32, %arg1: i32, %arg2: i32) -> (i32, i32) {
    %c0_i32 = arith.constant 0 : i32
    return %arg0, %arg2 : i32, i32
  }
  func.func @transform_1(%arg0: i32, %arg1: i32, %arg2: i32) -> (i32, i32) {
    %c0_i32 = arith.constant 0 : i32
    return %arg2, %arg1 : i32, i32
  }
  func.func @transform_2(%arg0: i32, %arg1: i32, %arg2: i32) -> (i32, i32) {
    %c0_i32 = arith.constant 0 : i32
    %c0_i32_0 = arith.constant 0 : i32
    return %c0_i32, %arg1 : i32, i32
  }
  func.func @transform_3(%arg0: i32, %arg1: i32, %arg2: i32) -> (i32, i32) {
    %c0_i32 = arith.constant 0 : i32
    return %arg0, %arg1 : i32, i32
  }
}

module attributes {stable_mosaic.version = 11 : i64} {
  func.func @_mm_bias_act_kernel(%arg0: i32, %arg1: i32, %arg2: i32, %arg3: memref<8x512xbf16, #tpu.memory_space<vmem>>, %arg4: memref<512x128xbf16, #tpu.memory_space<vmem>>, %arg5: memref<1x128xf32, #tpu.memory_space<vmem>>, %arg6: memref<8x128xf32, #tpu.memory_space<vmem>>, %arg7: memref<8x128xf32, #tpu.memory_space<vmem>>) attributes {dimension_semantics = [#tpu.dimension_semantics<parallel>, #tpu.dimension_semantics<parallel>, #tpu.dimension_semantics<arbitrary>], iteration_bounds = array<i64: 1, 1, 3>, scalar_prefetch = 0 : i64, scratch_operands = 1 : i64, tpu.core_type = #tpu.core_type<tc>, window_params = [{transform_indices = @transform_0, window_bounds = array<i64: 8, 512>}, {transform_indices = @transform_1, window_bounds = array<i64: 512, 128>}, {transform_indices = @transform_2, window_bounds = array<i64: 1, 128>}, {transform_indices = @transform_3, window_bounds = array<i64: 8, 128>}]} {
    %c0_i32 = arith.constant 0 : i32
    %0 = arith.cmpi eq, %arg2, %c0_i32 : i32
    %1 = arith.extui %0 : i1 to i32
    %c0_i32_0 = arith.constant 0 : i32
    %2 = arith.cmpi ne, %1, %c0_i32_0 : i32
    scf.if %2 {
      %cst_9 = arith.constant 0.000000e+00 : f32
      %12 = vector.broadcast %cst_9 : f32 to vector<8x128xf32>
      %c0_10 = arith.constant 0 : index
      %c0_11 = arith.constant 0 : index
      %13 = vector.load %arg7[%c0_10, %c0_11] : memref<8x128xf32, #tpu.memory_space<vmem>>, vector<8x128xf32>
      tpu.vector_store %arg7[%c0_10, %c0_11], %12 {strides = array<i32>} : memref<8x128xf32, #tpu.memory_space<vmem>>, vector<8x128xf32>,
    } else {
    }
    %c0 = arith.constant 0 : index
    %c0_1 = arith.constant 0 : index
    %3 = vector.load %arg7[%c0, %c0_1] : memref<8x128xf32, #tpu.memory_space<vmem>>, vector<8x128xf32>
    %c0_2 = arith.constant 0 : index
    %c0_3 = arith.constant 0 : index
    %4 = vector.load %arg3[%c0_2, %c0_3] : memref<8x512xbf16, #tpu.memory_space<vmem>>, vector<8x512xbf16>
    %c0_4 = arith.constant 0 : index
    %c0_5 = arith.constant 0 : index
    %5 = vector.load %arg4[%c0_4, %c0_5] : memref<512x128xbf16, #tpu.memory_space<vmem>>, vector<512x128xbf16>
    %cst = arith.constant dense<0.000000e+00> : vector<8x128xf32>
    %6 = tpu.matmul %4, %5, %cst {dimension_numbers = #tpu.dot_dimension_numbers<[1], [0], [0], [1], [0, 0, 1, 1], [], []>} : vector<8x512xbf16>, vector<512x128xbf16>, vector<8x128xf32> -> vector<8x128xf32>
    %7 = arith.addf %3, %6 : vector<8x128xf32>
    %c0_6 = arith.constant 0 : index
    %c0_7 = arith.constant 0 : index
    %8 = vector.load %arg7[%c0_6, %c0_7] : memref<8x128xf32, #tpu.memory_space<vmem>>, vector<8x128xf32>
    tpu.vector_store %arg7[%c0_6, %c0_7], %7 {strides = array<i32>} : memref<8x128xf32, #tpu.memory_space<vmem>>, vector<8x128xf32>,
    %c2_i32 = arith.constant 2 : i32
    %9 = arith.cmpi eq, %arg2, %c2_i32 : i32
    %10 = arith.extui %9 : i1 to i32
    %c0_i32_8 = arith.constant 0 : i32
    %11 = arith.cmpi ne, %10, %c0_i32_8 : i32
    scf.if %11 {
      %c0_9 = arith.constant 0 : index
      %c0_10 = arith.constant 0 : index
      %12 = vector.load %arg7[%c0_9, %c0_10] : memref<8x128xf32, #tpu.memory_space<vmem>>, vector<8x128xf32>
      %c0_11 = arith.constant 0 : index
      %c0_12 = arith.constant 0 : index
      %13 = vector.load %arg5[%c0_11, %c0_12] : memref<1x128xf32, #tpu.memory_space<vmem>>, vector<1x128xf32>
      %14 = vector.broadcast %13 : vector<1x128xf32> to vector<8x128xf32>
      %15 = arith.addf %12, %14 : vector<8x128xf32>
      %16 = arith.negf %15 : vector<8x128xf32>
      %17 = math.exp %16 : vector<8x128xf32>
      %cst_13 = arith.constant 1.000000e+00 : f32
      %18 = vector.broadcast %cst_13 : f32 to vector<8x128xf32>
      %19 = arith.addf %18, %17 : vector<8x128xf32>
      %20 = arith.divf %18, %19 : vector<8x128xf32>
      %c0_14 = arith.constant 0 : index
      %c0_15 = arith.constant 0 : index
      %21 = vector.load %arg6[%c0_14, %c0_15] : memref<8x128xf32, #tpu.memory_space<vmem>>, vector<8x128xf32>
      tpu.vector_store %arg6[%c0_14, %c0_15], %20 {strides = array<i32>} : memref<8x128xf32, #tpu.memory_space<vmem>>, vector<8x128xf32>,
    } else {
    }
    return
  }
  func.func @transform_0(%arg0: i32, %arg1: i32, %arg2: i32) -> (i32, i32) {
    %c0_i32 = arith.constant 0 : i32
    return %arg0, %arg2 : i32, i32
  }
  func.func @transform_1(%arg0: i32, %arg1: i32, %arg2: i32) -> (i32, i32) {
    %c0_i32 = arith.constant 0 : i32
    return %arg2, %arg1 : i32, i32
  }
  func.func @transform_2(%arg0: i32, %arg1: i32, %arg2: i32) -> (i32, i32) {
    %c0_i32 = arith.constant 0 : i32
    %c0_i32_0 = arith.constant 0 : i32
    return %c0_i32, %arg1 : i32, i32
  }
  func.func @transform_3(%arg0: i32, %arg1: i32, %arg2: i32) -> (i32, i32) {
    %c0_i32 = arith.constant 0 : i32
    return %arg0, %arg1 : i32, i32
  }
}

</mosaic_0001>

<bundles_post_ra>
// kernel: quality_net_forward.24
= control target key start
LH: loop header
LB: loop body
LE: loop exit
PB: predicated region body
PF: predicated region fallthrough
CT: control target
= control target key end

     0   :  { %s1772_s1 = inlined_call_operand.vmem [shape: bf16[128,128], index: 1, kind: input, shape index: {}]   ;;  %s1773_s0 = inlined_call_operand.vmem [shape: bf16[512,128], index: 0, kind: input, shape index: {}]   ;;  %s1774_s2 = inlined_call_operand.vmem [shape: f32[1,128], index: 2, kind: input, shape index: {}]   ;;  %s1775_s3 = inlined_call_operand.vmem [shape: f32[512,128], index: 3, kind: output, shape index: {}]  }
   0x1   :  { %v1331_v0 = vld [vmem:[%s1772_s1] sm:$0xff]   ;;  %v1332_v1 = vld [vmem:[%s1772_s1 + $0x8] sm:$0xff]   ;;  %v1333_v2 = vld [vmem:[%s1772_s1 + $0x10] sm:$0xff]  }
   0x2   :  { %1235 = vmatprep.subr.bf16.mxu0 %v1331_v0  ;;  %1315 = vmatprep.subr.bf16.mxu1 %v1331_v0  ;;  %v1334_v3 = vld [vmem:[%s1772_s1 + $0x18] sm:$0xff]   ;;  %v1339_v4 = vld [vmem:[%s1773_s0] sm:$0xff]   ;;  %v1336_v7 = vld [vmem:[%s1772_s1 + $0x28] sm:$0xff]  }
   0x3   :  { %1236 = vmatpush3.bf16.msra.mxu0 %v1331_v0  ;;  %1323 = vmatpush3.bf16.msra.mxu1 %v1331_v0  ;;  %v1340_v5 = vld [vmem:[%s1773_s0 + $0x80] sm:$0xff]   ;;  %v1337_v8 = vld [vmem:[%s1772_s1 + $0x30] sm:$0xff]   ;;  %v1338_v9 = vld [vmem:[%s1772_s1 + $0x38] sm:$0xff]  }
   0x4   :  { %1237 = vmatprep.subr.bf16.mxu0 %v1332_v1  ;;  %1316 = vmatprep.subr.bf16.mxu1 %v1332_v1  ;;  %v1335_v6 = vld [vmem:[%s1772_s1 + $0x20] sm:$0xff]   ;;  %v1341_v10 = vld [vmem:[%s1773_s0 + $0x8] sm:$0xff]   ;;  %v1343_v12 = vld [vmem:[%s1773_s0 + $0x10] sm:$0xff]  }
   0x5   :  { %1251 = vmatprep.mubr.bf16.mxu0 %v1339_v4  ;;  %1283 = vmatprep.mubr.bf16.mxu1 %v1340_v5  ;;  %v1342_v11 = vld [vmem:[%s1773_s0 + $0x88] sm:$0xff]   ;;  %v1344_v13 = vld [vmem:[%s1773_s0 + $0x90] sm:$0xff]   ;;  %v1345_v14 = vld [vmem:[%s1773_s0 + $0x18] sm:$0xff]  }
   0x6   :  { %v1346_v15 = vld [vmem:[%s1773_s0 + $0x98] sm:$0xff]   ;;  %v1347_v16 = vld [vmem:[%s1773_s0 + $0x20] sm:$0xff]   ;;  %v1349_v18 = vld [vmem:[%s1773_s0 + $0x28] sm:$0xff]  }
   0x7   :  { %1238 = vmatpush3.bf16.msra.mxu0 %v1332_v1  ;;  %1324 = vmatpush3.bf16.msra.mxu1 %v1332_v1  ;;  %v1348_v17 = vld [vmem:[%s1773_s0 + $0xa0] sm:$0xff]   ;;  %v1350_v19 = vld [vmem:[%s1773_s0 + $0xa8] sm:$0xff]   ;;  %v1351_v20 = vld [vmem:[%s1773_s0 + $0x30] sm:$0xff]  }
   0x8   :  { %1239 = vmatprep.subr.bf16.mxu0 %v1333_v2  ;;  %1317 = vmatprep.subr.bf16.mxu1 %v1333_v2  ;;  %v1352_v21 = vld [vmem:[%s1773_s0 + $0xb0] sm:$0xff]   ;;  %v1353_v22 = vld [vmem:[%s1773_s0 + $0x38] sm:$0xff]   ;;  %v1355_v24 = vld [vmem:[%s1773_s0 + $0x40] sm:$0xff]  }
   0x9   :  { %v1354_v23 = vld [vmem:[%s1773_s0 + $0xb8] sm:$0xff]   ;;  %v1356_v25 = vld [vmem:[%s1773_s0 + $0xc0] sm:$0xff]   ;;  %v1357_v26 = vld [vmem:[%s1773_s0 + $0x48] sm:$0xff]  }
   0xa   :  { %v1358_v27 = vld [vmem:[%s1773_s0 + $0xc8] sm:$0xff]   ;;  %v1359_v28 = vld [vmem:[%s1773_s0 + $0x50] sm:$0xff]   ;;  %v1361_v30 = vld [vmem:[%s1773_s0 + $0x58] sm:$0xff]  }
   0xb   :  { %1240 = vmatpush3.bf16.msra.mxu0 %v1333_v2  ;;  %1325 = vmatpush3.bf16.msra.mxu1 %v1333_v2  ;;  %v1360_v29 = vld [vmem:[%s1773_s0 + $0xd0] sm:$0xff]   ;;  %v1362_v31 = vld [vmem:[%s1773_s0 + $0xd8] sm:$0xff]   ;;  %v1363_v32 = vld [vmem:[%s1773_s0 + $0x60] sm:$0xff]  }
   0xc   :  { %1241 = vmatprep.subr.bf16.mxu0 %v1334_v3  ;;  %1318 = vmatprep.subr.bf16.mxu1 %v1334_v3  ;;  %v1364_v33 = vld [vmem:[%s1773_s0 + $0xe0] sm:$0xff]   ;;  %v1365_v34 = vld [vmem:[%s1773_s0 + $0x68] sm:$0xff]   ;;  %v1367_v36 = vld [vmem:[%s1773_s0 + $0x70] sm:$0xff]  }
   0xd   :  { %v1366_v35 = vld [vmem:[%s1773_s0 + $0xe8] sm:$0xff]   ;;  %v1368_v37 = vld [vmem:[%s1773_s0 + $0xf0] sm:$0xff]   ;;  %v1369_v38 = vld [vmem:[%s1773_s0 + $0x78] sm:$0xff]  }
   0xe   :  { %v1370_v39 = vld [vmem:[%s1773_s0 + $0xf8] sm:$0xff]   ;;  %v1514_v40 = vld [vmem:[%s1774_s2] ss:$0 sm:$0xff] }
   0xf   :  { %1242 = vmatpush3.bf16.msra.mxu0 %v1334_v3  ;;  %1326 = vmatpush3.bf16.msra.mxu1 %v1334_v3 }
  0x10   :  { %1243 = vmatprep.subr.bf16.mxu0 %v1335_v6  ;;  %1319 = vmatprep.subr.bf16.mxu1 %v1335_v6 }
  0x13   :  { %1244 = vmatpush3.bf16.msra.mxu0 %v1335_v6  ;;  %1327 = vmatpush3.bf16.msra.mxu1 %v1335_v6 }
  0x14   :  { %1245 = vmatprep.subr.bf16.mxu0 %v1336_v7  ;;  %1320 = vmatprep.subr.bf16.mxu1 %v1336_v7 }
  0x17   :  { %1246 = vmatpush3.bf16.msra.mxu0 %v1336_v7  ;;  %1328 = vmatpush3.bf16.msra.mxu1 %v1336_v7 }
  0x18   :  { %1247 = vmatprep.subr.bf16.mxu0 %v1337_v8  ;;  %1321 = vmatprep.subr.bf16.mxu1 %v1337_v8 }
  0x1b   :  { %1248 = vmatpush3.bf16.msra.mxu0 %v1337_v8  ;;  %1329 = vmatpush3.bf16.msra.mxu1 %v1337_v8 }
  0x1c   :  { %1249 = vmatprep.subr.bf16.mxu0 %v1338_v9  ;;  %1322 = vmatprep.subr.bf16.mxu1 %v1338_v9 }
  0x1f   :  { %1250 = vmatpush3.bf16.msra.mxu0 %v1338_v9  ;;  %1330 = vmatpush3.bf16.msra.mxu1 %v1338_v9 }
  0x22   :  { %1252 = vmatmul.mubr.bf16.vlgmr.msra.gmra.mrb[0].mxu0 %v1341_v10  ;;  %1284 = vmatmul.mubr.bf16.vlgmr.msra.gmra.mrb[0].mxu1 %v1342_v11 }
  0x23   :  { %1255 = vmatprep.mubr.bf16.mxu0 %v1343_v12  ;;  %1287 = vmatprep.mubr.bf16.mxu1 %v1344_v13 }
  0x2a   :  { %1256 = vmatmul.mubr.bf16.gmra.mrb[4].mxu0 %v1345_v14  ;;  %1288 = vmatmul.mubr.bf16.gmra.mrb[4].mxu1 %v1346_v15 }
  0x2b   :  { %1259 = vmatprep.mubr.bf16.mxu0 %v1347_v16  ;;  %1291 = vmatprep.mubr.bf16.mxu1 %v1348_v17 }
  0x32   :  { %1260 = vmatmul.mubr.bf16.gmra.mrb[8].mxu0 %v1349_v18  ;;  %1292 = vmatmul.mubr.bf16.gmra.mrb[8].mxu1 %v1350_v19 }
  0x33   :  { %1263 = vmatprep.mubr.bf16.mxu0 %v1351_v20  ;;  %1295 = vmatprep.mubr.bf16.mxu1 %v1352_v21 }
  0x3a   :  { %1264 = vmatmul.mubr.bf16.gmra.mrb[12].mxu0 %v1353_v22  ;;  %1296 = vmatmul.mubr.bf16.gmra.mrb[12].mxu1 %v1354_v23 }
  0x3b   :  { %1267 = vmatprep.mubr.bf16.mxu0 %v1355_v24  ;;  %1299 = vmatprep.mubr.bf16.mxu1 %v1356_v25 }
  0x42   :  { %1268 = vmatmul.mubr.bf16.gmra.mrb[16].mxu0 %v1357_v26  ;;  %1300 = vmatmul.mubr.bf16.gmra.mrb[16].mxu1 %v1358_v27 }
  0x43   :  { %1271 = vmatprep.mubr.bf16.mxu0 %v1359_v28  ;;  %1303 = vmatprep.mubr.bf16.mxu1 %v1360_v29 }
  0x4a   :  { %1272 = vmatmul.mubr.bf16.gmra.mrb[20].mxu0 %v1361_v30  ;;  %1304 = vmatmul.mubr.bf16.gmra.mrb[20].mxu1 %v1362_v31 }
  0x4b   :  { %1275 = vmatprep.mubr.bf16.mxu0 %v1363_v32  ;;  %1307 = vmatprep.mubr.bf16.mxu1 %v1364_v33 }
  0x52   :  { %1276 = vmatmul.mubr.bf16.gmra.mrb[24].mxu0 %v1365_v34  ;;  %1308 = vmatmul.mubr.bf16.gmra.mrb[24].mxu1 %v1366_v35 }
  0x53   :  { %1279 = vmatprep.mubr.bf16.mxu0 %v1367_v36  ;;  %1311 = vmatprep.mubr.bf16.mxu1 %v1368_v37 }
  0x5a   :  { %1280 = vmatmul.mubr.bf16.gmra.mrb[28].mxu0 %v1369_v38  ;;  %1312 = vmatmul.mubr.bf16.gmra.mrb[28].mxu1 %v1370_v39 }
  0xf5   :  { %v1253_v41 = vpop.f32.mrb[0].mxu0  ;;  %v1285_v42 = vpop.f32.mrb[0].mxu1 }
  0xf6   :  { %v960_v43 = vadd.f32 %v1253_v41, %v1514_v40  ;;  %v992_v44 = vadd.f32 %v1285_v42, %v1514_v40  ;;  %v501_v45 = vpop.f32.mrb[1].mxu0  ;;  %v629_v46 = vpop.f32.mrb[1].mxu1 }
  0xf7   :  { %v958_v47 = vadd.f32 %v1514_v40, %v501_v45  ;;  %v990_v48 = vadd.f32 %v1514_v40, %v629_v46  ;;  %v1254_v49 = vpop.f32.mrb[2].mxu0  ;;  %v1286_v50 = vpop.f32.mrb[2].mxu1 }
  0xf8   :  { %v1024_v51 = vmax.f32 %v960_v43, 0.0  ;;  %v1056_v52 = vmax.f32 %v992_v44, 0.0  ;;  %v961_v53 = vadd.f32 %v1254_v49, %v1514_v40  ;;  %v993_v54 = vadd.f32 %v1286_v50, %v1514_v40  ;;  %v504_v55 = vpop.f32.mrb[3].mxu0  ;;  %v632_v56 = vpop.f32.mrb[3].mxu1 }
  0xf9   :  { %v1022_v57 = vmax.f32 %v958_v47, 0.0  ;;  %v1054_v58 = vmax.f32 %v990_v48, 0.0  ;;  %v959_v59 = vadd.f32 %v1514_v40, %v504_v55  ;;  %v991_v60 = vadd.f32 %v1514_v40, %v632_v56 }
  0xfa   :  { %1088 = vst [vmem:[%s1775_s3 + $0x10] sm:$0xff] %v1024_v51  ;;  %1120 = vst [vmem:[%s1775_s3 + $0x110] sm:$0xff] %v1056_v52  ;;  %v1025_v61 = vmax.f32 %v961_v53, 0.0  ;;  %v1057_v62 = vmax.f32 %v993_v54, 0.0 }
  0xfb   :  { %1086 = vst [vmem:[%s1775_s3] sm:$0xff] %v1022_v57  ;;  %1118 = vst [vmem:[%s1775_s3 + $0x100] sm:$0xff] %v1054_v58  ;;  %v1023_v63 = vmax.f32 %v959_v59, 0.0  ;;  %v1055_v0 = vmax.f32 %v991_v60, 0.0 }
  0xfc   :  { %1089 = vst [vmem:[%s1775_s3 + $0x18] sm:$0xff] %v1025_v61  ;;  %1121 = vst [vmem:[%s1775_s3 + $0x118] sm:$0xff] %v1057_v62 }
  0xfd   :  { %1087 = vst [vmem:[%s1775_s3 + $0x8] sm:$0xff] %v1023_v63  ;;  %1119 = vst [vmem:[%s1775_s3 + $0x108] sm:$0xff] %v1055_v0  ;;  %v1257_v1 = vpop.f32.mrb[4].mxu0  ;;  %v1289_v2 = vpop.f32.mrb[4].mxu1 }
  0xfe   :  { %v964_v3 = vadd.f32 %v1257_v1, %v1514_v40  ;;  %v996_v4 = vadd.f32 %v1289_v2, %v1514_v40  ;;  %v517_v5 = vpop.f32.mrb[5].mxu0  ;;  %v645_v6 = vpop.f32.mrb[5].mxu1 }
  0xff   :  { %v962_v7 = vadd.f32 %v1514_v40, %v517_v5  ;;  %v994_v8 = vadd.f32 %v1514_v40, %v645_v6  ;;  %v1258_v9 = vpop.f32.mrb[6].mxu0  ;;  %v1290_v10 = vpop.f32.mrb[6].mxu1 }
 0x100   :  { %v1028_v11 = vmax.f32 %v964_v3, 0.0  ;;  %v1060_v12 = vmax.f32 %v996_v4, 0.0  ;;  %v965_v13 = vadd.f32 %v1258_v9, %v1514_v40  ;;  %v997_v14 = vadd.f32 %v1290_v10, %v1514_v40  ;;  %v520_v15 = vpop.f32.mrb[7].mxu0  ;;  %v648_v16 = vpop.f32.mrb[7].mxu1 }
 0x101   :  { %v1026_v17 = vmax.f32 %v962_v7, 0.0  ;;  %v1058_v18 = vmax.f32 %v994_v8, 0.0  ;;  %v963_v19 = vadd.f32 %v1514_v40, %v520_v15  ;;  %v995_v20 = vadd.f32 %v1514_v40, %v648_v16 }
 0x102   :  { %1092 = vst [vmem:[%s1775_s3 + $0x30] sm:$0xff] %v1028_v11  ;;  %1124 = vst [vmem:[%s1775_s3 + $0x130] sm:$0xff] %v1060_v12  ;;  %v1029_v21 = vmax.f32 %v965_v13, 0.0  ;;  %v1061_v22 = vmax.f32 %v997_v14, 0.0 }
 0x103   :  { %1090 = vst [vmem:[%s1775_s3 + $0x20] sm:$0xff] %v1026_v17  ;;  %1122 = vst [vmem:[%s1775_s3 + $0x120] sm:$0xff] %v1058_v18  ;;  %v1027_v23 = vmax.f32 %v963_v19, 0.0  ;;  %v1059_v24 = vmax.f32 %v995_v20, 0.0 }
 0x104   :  { %1093 = vst [vmem:[%s1775_s3 + $0x38] sm:$0xff] %v1029_v21  ;;  %1125 = vst [vmem:[%s1775_s3 + $0x138] sm:$0xff] %v1061_v22 }
 0x105   :  { %1091 = vst [vmem:[%s1775_s3 + $0x28] sm:$0xff] %v1027_v23  ;;  %1123 = vst [vmem:[%s1775_s3 + $0x128] sm:$0xff] %v1059_v24  ;;  %v1261_v25 = vpop.f32.mrb[8].mxu0  ;;  %v1293_v26 = vpop.f32.mrb[8].mxu1 }
 0x106   :  { %v968_v27 = vadd.f32 %v1261_v25, %v1514_v40  ;;  %v1000_v28 = vadd.f32 %v1293_v26, %v1514_v40  ;;  %v533_v29 = vpop.f32.mrb[9].mxu0  ;;  %v661_v30 = vpop.f32.mrb[9].mxu1 }
 0x107   :  { %v966_v31 = vadd.f32 %v1514_v40, %v533_v29  ;;  %v998_v32 = vadd.f32 %v1514_v40, %v661_v30  ;;  %v1262_v33 = vpop.f32.mrb[10].mxu0  ;;  %v1294_v34 = vpop.f32.mrb[10].mxu1 }
 0x108   :  { %v1032_v35 = vmax.f32 %v968_v27, 0.0  ;;  %v1064_v36 = vmax.f32 %v1000_v28, 0.0  ;;  %v969_v37 = vadd.f32 %v1262_v33, %v1514_v40  ;;  %v1001_v38 = vadd.f32 %v1294_v34, %v1514_v40  ;;  %v536_v39 = vpop.f32.mrb[11].mxu0  ;;  %v664_v41 = vpop.f32.mrb[11].mxu1 }
 0x109   :  { %v1030_v42 = vmax.f32 %v966_v31, 0.0  ;;  %v1062_v43 = vmax.f32 %v998_v32, 0.0  ;;  %v967_v44 = vadd.f32 %v1514_v40, %v536_v39  ;;  %v999_v45 = vadd.f32 %v1514_v40, %v664_v41 }
 0x10a   :  { %1096 = vst [vmem:[%s1775_s3 + $0x50] sm:$0xff] %v1032_v35  ;;  %1128 = vst [vmem:[%s1775_s3 + $0x150] sm:$0xff] %v1064_v36  ;;  %v1033_v46 = vmax.f32 %v969_v37, 0.0  ;;  %v1065_v47 = vmax.f32 %v1001_v38, 0.0 }
 0x10b   :  { %1094 = vst [vmem:[%s1775_s3 + $0x40] sm:$0xff] %v1030_v42  ;;  %1126 = vst [vmem:[%s1775_s3 + $0x140] sm:$0xff] %v1062_v43  ;;  %v1031_v48 = vmax.f32 %v967_v44, 0.0  ;;  %v1063_v49 = vmax.f32 %v999_v45, 0.0 }
 0x10c   :  { %1097 = vst [vmem:[%s1775_s3 + $0x58] sm:$0xff] %v1033_v46  ;;  %1129 = vst [vmem:[%s1775_s3 + $0x158] sm:$0xff] %v1065_v47 }
 0x10d   :  { %1095 = vst [vmem:[%s1775_s3 + $0x48] sm:$0xff] %v1031_v48  ;;  %1127 = vst [vmem:[%s1775_s3 + $0x148] sm:$0xff] %v1063_v49  ;;  %v1265_v50 = vpop.f32.mrb[12].mxu0  ;;  %v1297_v51 = vpop.f32.mrb[12].mxu1 }
 0x10e   :  { %v972_v52 = vadd.f32 %v1265_v50, %v1514_v40  ;;  %v1004_v53 = vadd.f32 %v1297_v51, %v1514_v40  ;;  %v549_v54 = vpop.f32.mrb[13].mxu0  ;;  %v677_v55 = vpop.f32.mrb[13].mxu1 }
 0x10f   :  { %v970_v56 = vadd.f32 %v1514_v40, %v549_v54  ;;  %v1002_v57 = vadd.f32 %v1514_v40, %v677_v55  ;;  %v1266_v58 = vpop.f32.mrb[14].mxu0  ;;  %v1298_v59 = vpop.f32.mrb[14].mxu1 }
 0x110   :  { %v1036_v60 = vmax.f32 %v972_v52, 0.0  ;;  %v1068_v61 = vmax.f32 %v1004_v53, 0.0  ;;  %v973_v62 = vadd.f32 %v1266_v58, %v1514_v40  ;;  %v1005_v63 = vadd.f32 %v1298_v59, %v1514_v40  ;;  %v552_v0 = vpop.f32.mrb[15].mxu0  ;;  %v680_v1 = vpop.f32.mrb[15].mxu1 }
 0x111   :  { %v1034_v2 = vmax.f32 %v970_v56, 0.0  ;;  %v1066_v3 = vmax.f32 %v1002_v57, 0.0  ;;  %v971_v4 = vadd.f32 %v1514_v40, %v552_v0  ;;  %v1003_v5 = vadd.f32 %v1514_v40, %v680_v1 }
 0x112   :  { %1100 = vst [vmem:[%s1775_s3 + $0x70] sm:$0xff] %v1036_v60  ;;  %1132 = vst [vmem:[%s1775_s3 + $0x170] sm:$0xff] %v1068_v61  ;;  %v1037_v6 = vmax.f32 %v973_v62, 0.0  ;;  %v1069_v7 = vmax.f32 %v1005_v63, 0.0 }
 0x113   :  { %1098 = vst [vmem:[%s1775_s3 + $0x60] sm:$0xff] %v1034_v2  ;;  %1130 = vst [vmem:[%s1775_s3 + $0x160] sm:$0xff] %v1066_v3  ;;  %v1035_v8 = vmax.f32 %v971_v4, 0.0  ;;  %v1067_v9 = vmax.f32 %v1003_v5, 0.0 }
 0x114   :  { %1101 = vst [vmem:[%s1775_s3 + $0x78] sm:$0xff] %v1037_v6  ;;  %1133 = vst [vmem:[%s1775_s3 + $0x178] sm:$0xff] %v1069_v7 }
 0x115   :  { %1099 = vst [vmem:[%s1775_s3 + $0x68] sm:$0xff] %v1035_v8  ;;  %1131 = vst [vmem:[%s1775_s3 + $0x168] sm:$0xff] %v1067_v9  ;;  %v1269_v10 = vpop.f32.mrb[16].mxu0  ;;  %v1301_v11 = vpop.f32.mrb[16].mxu1 }
 0x116   :  { %v976_v12 = vadd.f32 %v1269_v10, %v1514_v40  ;;  %v1008_v13 = vadd.f32 %v1301_v11, %v1514_v40  ;;  %v565_v14 = vpop.f32.mrb[17].mxu0  ;;  %v693_v15 = vpop.f32.mrb[17].mxu1 }
 0x117   :  { %v974_v16 = vadd.f32 %v1514_v40, %v565_v14  ;;  %v1006_v17 = vadd.f32 %v1514_v40, %v693_v15  ;;  %v1270_v18 = vpop.f32.mrb[18].mxu0  ;;  %v1302_v19 = vpop.f32.mrb[18].mxu1 }
 0x118   :  { %v1040_v20 = vmax.f32 %v976_v12, 0.0  ;;  %v1072_v21 = vmax.f32 %v1008_v13, 0.0  ;;  %v977_v22 = vadd.f32 %v1270_v18, %v1514_v40  ;;  %v1009_v23 = vadd.f32 %v1302_v19, %v1514_v40  ;;  %v568_v24 = vpop.f32.mrb[19].mxu0  ;;  %v696_v25 = vpop.f32.mrb[19].mxu1 }
 0x119   :  { %v1038_v26 = vmax.f32 %v974_v16, 0.0  ;;  %v1070_v27 = vmax.f32 %v1006_v17, 0.0  ;;  %v975_v28 = vadd.f32 %v1514_v40, %v568_v24  ;;  %v1007_v29 = vadd.f32 %v1514_v40, %v696_v25 }
 0x11a   :  { %1104 = vst [vmem:[%s1775_s3 + $0x90] sm:$0xff] %v1040_v20  ;;  %1136 = vst [vmem:[%s1775_s3 + $0x190] sm:$0xff] %v1072_v21  ;;  %v1041_v30 = vmax.f32 %v977_v22, 0.0  ;;  %v1073_v31 = vmax.f32 %v1009_v23, 0.0 }
 0x11b   :  { %1102 = vst [vmem:[%s1775_s3 + $0x80] sm:$0xff] %v1038_v26  ;;  %1134 = vst [vmem:[%s1775_s3 + $0x180] sm:$0xff] %v1070_v27  ;;  %v1039_v32 = vmax.f32 %v975_v28, 0.0  ;;  %v1071_v33 = vmax.f32 %v1007_v29, 0.0 }
 0x11c   :  { %1105 = vst [vmem:[%s1775_s3 + $0x98] sm:$0xff] %v1041_v30  ;;  %1137 = vst [vmem:[%s1775_s3 + $0x198] sm:$0xff] %v1073_v31 }
 0x11d   :  { %1103 = vst [vmem:[%s1775_s3 + $0x88] sm:$0xff] %v1039_v32  ;;  %1135 = vst [vmem:[%s1775_s3 + $0x188] sm:$0xff] %v1071_v33  ;;  %v1273_v34 = vpop.f32.mrb[20].mxu0  ;;  %v1305_v35 = vpop.f32.mrb[20].mxu1 }
 0x11e   :  { %v980_v36 = vadd.f32 %v1273_v34, %v1514_v40  ;;  %v1012_v37 = vadd.f32 %v1305_v35, %v1514_v40  ;;  %v581_v38 = vpop.f32.mrb[21].mxu0  ;;  %v709_v39 = vpop.f32.mrb[21].mxu1 }
 0x11f   :  { %v978_v41 = vadd.f32 %v1514_v40, %v581_v38  ;;  %v1010_v42 = vadd.f32 %v1514_v40, %v709_v39  ;;  %v1274_v43 = vpop.f32.mrb[22].mxu0  ;;  %v1306_v44 = vpop.f32.mrb[22].mxu1 }
 0x120   :  { %v1044_v45 = vmax.f32 %v980_v36, 0.0  ;;  %v1076_v46 = vmax.f32 %v1012_v37, 0.0  ;;  %v981_v47 = vadd.f32 %v1274_v43, %v1514_v40  ;;  %v1013_v48 = vadd.f32 %v1306_v44, %v1514_v40  ;;  %v584_v49 = vpop.f32.mrb[23].mxu0  ;;  %v712_v50 = vpop.f32.mrb[23].mxu1 }
 0x121   :  { %v1042_v51 = vmax.f32 %v978_v41, 0.0  ;;  %v1074_v52 = vmax.f32 %v1010_v42, 0.0  ;;  %v979_v53 = vadd.f32 %v1514_v40, %v584_v49  ;;  %v1011_v54 = vadd.f32 %v1514_v40, %v712_v50 }
 0x122   :  { %1108 = vst [vmem:[%s1775_s3 + $0xb0] sm:$0xff] %v1044_v45  ;;  %1140 = vst [vmem:[%s1775_s3 + $0x1b0] sm:$0xff] %v1076_v46  ;;  %v1045_v55 = vmax.f32 %v981_v47, 0.0  ;;  %v1077_v56 = vmax.f32 %v1013_v48, 0.0 }
 0x123   :  { %1106 = vst [vmem:[%s1775_s3 + $0xa0] sm:$0xff] %v1042_v51  ;;  %1138 = vst [vmem:[%s1775_s3 + $0x1a0] sm:$0xff] %v1074_v52  ;;  %v1043_v57 = vmax.f32 %v979_v53, 0.0  ;;  %v1075_v58 = vmax.f32 %v1011_v54, 0.0 }
 0x124   :  { %1109 = vst [vmem:[%s1775_s3 + $0xb8] sm:$0xff] %v1045_v55  ;;  %1141 = vst [vmem:[%s1775_s3 + $0x1b8] sm:$0xff] %v1077_v56 }
 0x125   :  { %1107 = vst [vmem:[%s1775_s3 + $0xa8] sm:$0xff] %v1043_v57  ;;  %1139 = vst [vmem:[%s1775_s3 + $0x1a8] sm:$0xff] %v1075_v58  ;;  %v1277_v59 = vpop.f32.mrb[24].mxu0  ;;  %v1309_v60 = vpop.f32.mrb[24].mxu1 }
 0x126   :  { %v984_v61 = vadd.f32 %v1277_v59, %v1514_v40  ;;  %v1016_v62 = vadd.f32 %v1309_v60, %v1514_v40  ;;  %v597_v63 = vpop.f32.mrb[25].mxu0  ;;  %v725_v0 = vpop.f32.mrb[25].mxu1 }
 0x127   :  { %v982_v1 = vadd.f32 %v1514_v40, %v597_v63  ;;  %v1014_v2 = vadd.f32 %v1514_v40, %v725_v0  ;;  %v1278_v3 = vpop.f32.mrb[26].mxu0  ;;  %v1310_v4 = vpop.f32.mrb[26].mxu1 }
 0x128   :  { %v1048_v5 = vmax.f32 %v984_v61, 0.0  ;;  %v1080_v6 = vmax.f32 %v1016_v62, 0.0  ;;  %v985_v7 = vadd.f32 %v1278_v3, %v1514_v40  ;;  %v1017_v8 = vadd.f32 %v1310_v4, %v1514_v40  ;;  %v600_v9 = vpop.f32.mrb[27].mxu0  ;;  %v728_v10 = vpop.f32.mrb[27].mxu1 }
 0x129   :  { %v1046_v11 = vmax.f32 %v982_v1, 0.0  ;;  %v1078_v12 = vmax.f32 %v1014_v2, 0.0  ;;  %v983_v13 = vadd.f32 %v1514_v40, %v600_v9  ;;  %v1015_v14 = vadd.f32 %v1514_v40, %v728_v10 }
 0x12a   :  { %1112 = vst [vmem:[%s1775_s3 + $0xd0] sm:$0xff] %v1048_v5  ;;  %1144 = vst [vmem:[%s1775_s3 + $0x1d0] sm:$0xff] %v1080_v6  ;;  %v1049_v15 = vmax.f32 %v985_v7, 0.0  ;;  %v1081_v16 = vmax.f32 %v1017_v8, 0.0 }
 0x12b   :  { %1110 = vst [vmem:[%s1775_s3 + $0xc0] sm:$0xff] %v1046_v11  ;;  %1142 = vst [vmem:[%s1775_s3 + $0x1c0] sm:$0xff] %v1078_v12  ;;  %v1047_v17 = vmax.f32 %v983_v13, 0.0  ;;  %v1079_v18 = vmax.f32 %v1015_v14, 0.0 }
 0x12c   :  { %1113 = vst [vmem:[%s1775_s3 + $0xd8] sm:$0xff] %v1049_v15  ;;  %1145 = vst [vmem:[%s1775_s3 + $0x1d8] sm:$0xff] %v1081_v16 }
 0x12d   :  { %1111 = vst [vmem:[%s1775_s3 + $0xc8] sm:$0xff] %v1047_v17  ;;  %1143 = vst [vmem:[%s1775_s3 + $0x1c8] sm:$0xff] %v1079_v18  ;;  %v1281_v19 = vpop.f32.mrb[28].mxu0  ;;  %v1313_v20 = vpop.f32.mrb[28].mxu1 }
 0x12e   :  { %v988_v21 = vadd.f32 %v1281_v19, %v1514_v40  ;;  %v1020_v22 = vadd.f32 %v1313_v20, %v1514_v40  ;;  %v613_v23 = vpop.f32.mrb[29].mxu0  ;;  %v741_v24 = vpop.f32.mrb[29].mxu1 }
 0x12f   :  { %v986_v25 = vadd.f32 %v1514_v40, %v613_v23  ;;  %v1018_v26 = vadd.f32 %v1514_v40, %v741_v24  ;;  %v1282_v27 = vpop.f32.mrb[30].mxu0  ;;  %v1314_v28 = vpop.f32.mrb[30].mxu1 }
 0x130   :  { %v1052_v29 = vmax.f32 %v988_v21, 0.0  ;;  %v1084_v30 = vmax.f32 %v1020_v22, 0.0  ;;  %v989_v31 = vadd.f32 %v1282_v27, %v1514_v40  ;;  %v1021_v32 = vadd.f32 %v1314_v28, %v1514_v40  ;;  %v616_v33 = vpop.f32.mrb[31].mxu0  ;;  %v744_v34 = vpop.f32.mrb[31].mxu1 }
 0x131   :  { %v1050_v35 = vmax.f32 %v986_v25, 0.0  ;;  %v1082_v36 = vmax.f32 %v1018_v26, 0.0  ;;  %v987_v37 = vadd.f32 %v1514_v40, %v616_v33  ;;  %v1019_v38 = vadd.f32 %v1514_v40, %v744_v34 }
 0x132   :  { %1116 = vst [vmem:[%s1775_s3 + $0xf0] sm:$0xff] %v1052_v29  ;;  %1148 = vst [vmem:[%s1775_s3 + $0x1f0] sm:$0xff] %v1084_v30  ;;  %v1053_v39 = vmax.f32 %v989_v31, 0.0  ;;  %v1085_v41 = vmax.f32 %v1021_v32, 0.0 }
 0x133   :  { %1114 = vst [vmem:[%s1775_s3 + $0xe0] sm:$0xff] %v1050_v35  ;;  %1146 = vst [vmem:[%s1775_s3 + $0x1e0] sm:$0xff] %v1082_v36  ;;  %v1051_v42 = vmax.f32 %v987_v37, 0.0  ;;  %v1083_v40 = vmax.f32 %v1019_v38, 0.0 }
 0x134   :  { %1117 = vst [vmem:[%s1775_s3 + $0xf8] sm:$0xff] %v1053_v39  ;;  %1149 = vst [vmem:[%s1775_s3 + $0x1f8] sm:$0xff] %v1085_v41 }
 0x135   :  { %1115 = vst [vmem:[%s1775_s3 + $0xe8] sm:$0xff] %v1051_v42  ;;  %1147 = vst [vmem:[%s1775_s3 + $0x1e8] sm:$0xff] %v1083_v40 }

// kernel: quality_net_forward.26
= control target key start
LH: loop header
LB: loop body
LE: loop exit
PB: predicated region body
PF: predicated region fallthrough
CT: control target
= control target key end

     0   :  { %s659_s12 = smov 0   ;;  %s661_s13 = smov 0   ;;  %s866_s0 = inlined_call_operand.vmem [shape: f32[2,256,32], index: 0, kind: input, shape index: {}]   ;;  %s867_s1 = inlined_call_operand.vmem [shape: f32[2,1,32], index: 1, kind: input, shape index: {}]   ;;  %s868_s2 = inlined_call_operand.vmem [shape: f32[2,256,32], index: 2, kind: input, shape index: {}]   ;;  %s869_s3 = inlined_call_operand.vmem [shape: f32[2,256,32], index: 3, kind: output, shape index: {}]  }
   0x1   :  { %s663_s14 = smov 0  }
   0x2 LB: > { %s25_s15 = sadd.s32 1, %s633_s13  ;;  %p578_p0 = scmp.ge.s32.totalorder %s637_s14, 1  ;;  %s637_s14 = sphi %s663_s14, %s13_s14   ;;  %s633_s13 = sphi %s661_s13, %s871_s13   ;;  %s629_s12 = sphi %s659_s12, %s870_s12  }
   0x3   : > { %p27_p1 = scmp.ge.s32.totalorder %s25_s15, 2  ;;  %p183_p2 = scmp.lt.s32.totalorder %s637_s14, 3 }
   0x5   : > { %s873_s15 = smov (%p27_p1, %s25_s15), 0  ;;  %p184_p3 = pnand %p578_p0, %p183_p2 }
   0x6   : > { %p228_p4 = scmp.lt.s32.totalorder (!%p184_p3), %s629_s12, 1  ;;  %vm427_vm0 = vcmask (!%p184_p3), 261120  }
   0x7   : > { %187 = sbr.rel (%p184_p3) target bundleno = 48 (0x30), region = 32 }
   0xe   : > { %s875_s12 = smov (!%p228_p4, %s629_s12), 1 }
   0xf   : > { %s588_s16 = sshll.u32 %s875_s12, 8  ;;  %s239_s19 = scalar_lea.vmem %s867_s1, %s875_s12 }
  0x10   : > { %s683_s22 = scalar_lea.vmem %s866_s0, %s588_s16  ;;  %s688_s25 = scalar_lea.vmem %s868_s2, %s588_s16  ;;  %v690_v0 = vld [vmem:[%s239_s19] ss:$0 sm:$0xff] }
  0x11   : > { %v260_v1 = vld [vmem:[%s683_s22] sm:$0xff]  ;;  %v261_v3 = vld [vmem:[%s683_s22 + $0x8] sm:$0xff]  ;;  %v262_v7 = vld [vmem:[%s683_s22 + $0x10] sm:$0xff]  ;;  %s712_s28 = scalar_lea.vmem %s869_s3, %s588_s16 }
  0x12   : > { %v331_v2 = vld [vmem:[%s688_s25] sm:$0xff]  ;;  %v299_v4 = vmul.f32 %v690_v0, %v260_v1  ;;  %v300_v5 = vmul.f32 %v690_v0, %v261_v3  ;;  %v332_v6 = vld [vmem:[%s688_s25 + $0x8] sm:$0xff]  ;;  %v333_v8 = vld [vmem:[%s688_s25 + $0x10] sm:$0xff]  ;;  %v301_v9 = vmul.f32 %v690_v0, %v262_v7 }
  0x13   : > { %v263_v10 = vld [vmem:[%s683_s22 + $0x18] sm:$0xff]  ;;  %v264_v12 = vld [vmem:[%s683_s22 + $0x20] sm:$0xff]  ;;  %v265_v18 = vld [vmem:[%s683_s22 + $0x28] sm:$0xff] }
  0x14   : > { %v334_v11 = vld [vmem:[%s688_s25 + $0x18] sm:$0xff]  ;;  %v363_v13 = vadd.f32 %v331_v2, %v299_v4  ;;  %v364_v14 = vadd.f32 %v332_v6, %v300_v5  ;;  %v302_v15 = vmul.f32 %v690_v0, %v263_v10  ;;  %v303_v16 = vmul.f32 %v690_v0, %v264_v12  ;;  %v335_v17 = vld [vmem:[%s688_s25 + $0x20] sm:$0xff]  ;;  %v336_v19 = vld [vmem:[%s688_s25 + $0x28] sm:$0xff] }
  0x15   : > { %v365_v20 = vadd.f32 %v333_v8, %v301_v9  ;;  %v304_v21 = vmul.f32 %v690_v0, %v265_v18  ;;  %v266_v22 = vld [vmem:[%s683_s22 + $0x30] sm:$0xff]  ;;  %v267_v24 = vld [vmem:[%s683_s22 + $0x38] sm:$0xff]  ;;  %v268_v30 = vld [vmem:[%s683_s22 + $0x40] sm:$0xff] }
  0x16   : > { %v337_v23 = vld [vmem:[%s688_s25 + $0x30] sm:$0xff]  ;;  %v395_v25 = vmax.f32 %v363_v13, 0.0  ;;  %v396_v26 = vmax.f32 %v364_v14, 0.0  ;;  %v366_v27 = vadd.f32 %v334_v11, %v302_v15  ;;  %v367_v28 = vadd.f32 %v335_v17, %v303_v16  ;;  %v338_v29 = vld [vmem:[%s688_s25 + $0x38] sm:$0xff]  ;;  %v339_v31 = vld [vmem:[%s688_s25 + $0x40] sm:$0xff] }
  0x17   : > { %v397_v32 = vmax.f32 %v365_v20, 0.0  ;;  %v368_v33 = vadd.f32 %v336_v19, %v304_v21  ;;  %v305_v34 = vmul.f32 %v690_v0, %v266_v22  ;;  %v306_v35 = vmul.f32 %v690_v0, %v267_v24  ;;  %v269_v36 = vld [vmem:[%s683_s22 + $0x48] sm:$0xff]  ;;  %v270_v38 = vld [vmem:[%s683_s22 + $0x50] sm:$0xff]  ;;  %v271_v44 = vld [vmem:[%s683_s22 + $0x58] sm:$0xff] }
  0x18   : > { %v340_v37 = vld [vmem:[%s688_s25 + $0x48] sm:$0xff]  ;;  %428 = vst.msk [vmem:[%s712_s28] sm:$0xff] %vm427_vm0, %v395_v25  ;;  %429 = vst.msk [vmem:[%s712_s28 + $0x8] sm:$0xff] %vm427_vm0, %v396_v26  ;;  %v398_v39 = vmax.f32 %v366_v27, 0.0  ;;  %v399_v40 = vmax.f32 %v367_v28, 0.0  ;;  %v307_v41 = vmul.f32 %v690_v0, %v268_v30  ;;  %v308_v42 = vmul.f32 %v690_v0, %v269_v36  ;;  %v341_v43 = vld [vmem:[%s688_s25 + $0x50] sm:$0xff] }
  0x19   : > { %v342_v45 = vld [vmem:[%s688_s25 + $0x58] sm:$0xff]  ;;  %430 = vst.msk [vmem:[%s712_s28 + $0x10] sm:$0xff] %vm427_vm0, %v397_v32  ;;  %v400_v46 = vmax.f32 %v368_v33, 0.0  ;;  %v369_v47 = vadd.f32 %v337_v23, %v305_v34  ;;  %v370_v48 = vadd.f32 %v338_v29, %v306_v35  ;;  %v309_v49 = vmul.f32 %v690_v0, %v270_v38  ;;  %v272_v50 = vld [vmem:[%s683_s22 + $0x60] sm:$0xff]  ;;  %v273_v52 = vld [vmem:[%s683_s22 + $0x68] sm:$0xff] }
  0x1a   : > { %v343_v51 = vld [vmem:[%s688_s25 + $0x60] sm:$0xff]  ;;  %431 = vst.msk [vmem:[%s712_s28 + $0x18] sm:$0xff] %vm427_vm0, %v398_v39  ;;  %432 = vst.msk [vmem:[%s712_s28 + $0x20] sm:$0xff] %vm427_vm0, %v399_v40  ;;  %v371_v53 = vadd.f32 %v339_v31, %v307_v41  ;;  %v372_v54 = vadd.f32 %v340_v37, %v308_v42  ;;  %v310_v55 = vmul.f32 %v690_v0, %v271_v44  ;;  %v344_v57 = vld [vmem:[%s688_s25 + $0x68] sm:$0xff] }
  0x1b   : > { %v311_v56 = vmul.f32 %v690_v0, %v272_v50  ;;  %v274_v58 = vld [vmem:[%s683_s22 + $0x70] sm:$0xff]  ;;  %433 = vst.msk [vmem:[%s712_s28 + $0x28] sm:$0xff] %vm427_vm0, %v400_v46  ;;  %v401_v59 = vmax.f32 %v369_v47, 0.0  ;;  %v402_v60 = vmax.f32 %v370_v48, 0.0  ;;  %v373_v61 = vadd.f32 %v341_v43, %v309_v49  ;;  %v275_v1 = vld [vmem:[%s683_s22 + $0x78] sm:$0xff]  ;;  %v276_v2 = vld [vmem:[%s683_s22 + $0x80] sm:$0xff] }
  0x1c   : > { %v312_v62 = vmul.f32 %v690_v0, %v273_v52  ;;  %v345_v63 = vld [vmem:[%s688_s25 + $0x70] sm:$0xff]  ;;  %v403_v3 = vmax.f32 %v371_v53, 0.0  ;;  %v404_v4 = vmax.f32 %v372_v54, 0.0  ;;  %v374_v5 = vadd.f32 %v342_v45, %v310_v55  ;;  %v346_v7 = vld [vmem:[%s688_s25 + $0x78] sm:$0xff]  ;;  %v347_v8 = vld [vmem:[%s688_s25 + $0x80] sm:$0xff] }
  0x1d   : > { %v375_v6 = vadd.f32 %v343_v51, %v311_v56  ;;  %v277_v9 = vld [vmem:[%s683_s22 + $0x88] sm:$0xff]  ;;  %434 = vst.msk [vmem:[%s712_s28 + $0x30] sm:$0xff] %vm427_vm0, %v401_v59  ;;  %435 = vst.msk [vmem:[%s712_s28 + $0x38] sm:$0xff] %vm427_vm0, %v402_v60  ;;  %v405_v10 = vmax.f32 %v373_v61, 0.0  ;;  %v313_v12 = vmul.f32 %v690_v0, %v274_v58  ;;  %v314_v13 = vmul.f32 %v690_v0, %v275_v1  ;;  %v278_v15 = vld [vmem:[%s683_s22 + $0x90] sm:$0xff] }
  0x1e   : > { %v376_v11 = vadd.f32 %v344_v57, %v312_v62  ;;  %v348_v14 = vld [vmem:[%s688_s25 + $0x88] sm:$0xff]  ;;  %v279_v16 = vld [vmem:[%s683_s22 + $0x98] sm:$0xff]  ;;  %436 = vst.msk [vmem:[%s712_s28 + $0x40] sm:$0xff] %vm427_vm0, %v403_v3  ;;  %437 = vst.msk [vmem:[%s712_s28 + $0x48] sm:$0xff] %vm427_vm0, %v404_v4  ;;  %v406_v17 = vmax.f32 %v374_v5, 0.0  ;;  %v315_v19 = vmul.f32 %v690_v0, %v276_v2  ;;  %v316_v20 = vmul.f32 %v690_v0, %v277_v9 }
  0x1f   : > { %v407_v18 = vmax.f32 %v375_v6, 0.0  ;;  %v349_v21 = vld [vmem:[%s688_s25 + $0x90] sm:$0xff]  ;;  %v280_v22 = vld [vmem:[%s683_s22 + $0xa0] sm:$0xff]  ;;  %438 = vst.msk [vmem:[%s712_s28 + $0x50] sm:$0xff] %vm427_vm0, %v405_v10  ;;  %v377_v24 = vadd.f32 %v345_v63, %v313_v12  ;;  %v378_v25 = vadd.f32 %v346_v7, %v314_v13  ;;  %v317_v26 = vmul.f32 %v690_v0, %v278_v15  ;;  %v350_v27 = vld [vmem:[%s688_s25 + $0x98] sm:$0xff] }
  0x20   : > { %v408_v23 = vmax.f32 %v376_v11, 0.0  ;;  %v351_v28 = vld [vmem:[%s688_s25 + $0xa0] sm:$0xff]  ;;  %v281_v29 = vld [vmem:[%s683_s22 + $0xa8] sm:$0xff]  ;;  %439 = vst.msk [vmem:[%s712_s28 + $0x58] sm:$0xff] %vm427_vm0, %v406_v17  ;;  %v379_v30 = vadd.f32 %v347_v8, %v315_v19  ;;  %v380_v31 = vadd.f32 %v348_v14, %v316_v20  ;;  %v318_v32 = vmul.f32 %v690_v0, %v279_v16  ;;  %v282_v35 = vld [vmem:[%s683_s22 + $0xb0] sm:$0xff] }
  0x21   : > { %440 = vst.msk [vmem:[%s712_s28 + $0x60] sm:$0xff] %vm427_vm0, %v407_v18  ;;  %v319_v33 = vmul.f32 %v690_v0, %v280_v22  ;;  %v352_v34 = vld [vmem:[%s688_s25 + $0xa8] sm:$0xff]  ;;  %v283_v36 = vld [vmem:[%s683_s22 + $0xb8] sm:$0xff]  ;;  %v409_v37 = vmax.f32 %v377_v24, 0.0  ;;  %v410_v38 = vmax.f32 %v378_v25, 0.0  ;;  %v381_v39 = vadd.f32 %v349_v21, %v317_v26  ;;  %v353_v41 = vld [vmem:[%s688_s25 + $0xb0] sm:$0xff] }
  0x22   : > { %441 = vst.msk [vmem:[%s712_s28 + $0x68] sm:$0xff] %vm427_vm0, %v408_v23  ;;  %v320_v40 = vmul.f32 %v690_v0, %v281_v29  ;;  %v284_v42 = vld [vmem:[%s683_s22 + $0xc0] sm:$0xff]  ;;  %v285_v43 = vld [vmem:[%s683_s22 + $0xc8] sm:$0xff]  ;;  %v411_v44 = vmax.f32 %v379_v30, 0.0  ;;  %v412_v45 = vmax.f32 %v380_v31, 0.0  ;;  %v382_v46 = vadd.f32 %v350_v27, %v318_v32  ;;  %v354_v48 = vld [vmem:[%s688_s25 + $0xb8] sm:$0xff] }
  0x23   : > { %v383_v47 = vadd.f32 %v351_v28, %v319_v33  ;;  %v355_v49 = vld [vmem:[%s688_s25 + $0xc0] sm:$0xff]  ;;  %v286_v50 = vld [vmem:[%s683_s22 + $0xd0] sm:$0xff]  ;;  %442 = vst.msk [vmem:[%s712_s28 + $0x70] sm:$0xff] %vm427_vm0, %v409_v37  ;;  %443 = vst.msk [vmem:[%s712_s28 + $0x78] sm:$0xff] %vm427_vm0, %v410_v38  ;;  %v413_v51 = vmax.f32 %v381_v39, 0.0  ;;  %v321_v53 = vmul.f32 %v690_v0, %v282_v35  ;;  %v322_v54 = vmul.f32 %v690_v0, %v283_v36 }
  0x24   : > { %v384_v52 = vadd.f32 %v352_v34, %v320_v40  ;;  %v356_v55 = vld [vmem:[%s688_s25 + $0xc8] sm:$0xff]  ;;  %v287_v56 = vld [vmem:[%s683_s22 + $0xd8] sm:$0xff]  ;;  %v288_v57 = vld [vmem:[%s683_s22 + $0xe0] sm:$0xff]  ;;  %444 = vst.msk [vmem:[%s712_s28 + $0x80] sm:$0xff] %vm427_vm0, %v411_v44  ;;  %v414_v58 = vmax.f32 %v382_v46, 0.0  ;;  %v323_v60 = vmul.f32 %v690_v0, %v284_v42  ;;  %v324_v61 = vmul.f32 %v690_v0, %v285_v43 }
  0x25   : > { %445 = vst.msk [vmem:[%s712_s28 + $0x88] sm:$0xff] %vm427_vm0, %v412_v45  ;;  %v415_v59 = vmax.f32 %v383_v47, 0.0  ;;  %v357_v62 = vld [vmem:[%s688_s25 + $0xd0] sm:$0xff]  ;;  %v289_v63 = vld [vmem:[%s683_s22 + $0xe8] sm:$0xff]  ;;  %446 = vst.msk [vmem:[%s712_s28 + $0x90] sm:$0xff] %vm427_vm0, %v413_v51  ;;  %v385_v2 = vadd.f32 %v353_v41, %v321_v53  ;;  %v386_v3 = vadd.f32 %v354_v48, %v322_v54  ;;  %v325_v4 = vmul.f32 %v690_v0, %v286_v50 }
  0x26   : > { %v416_v1 = vmax.f32 %v384_v52, 0.0  ;;  %v358_v5 = vld [vmem:[%s688_s25 + $0xd8] sm:$0xff]  ;;  %v359_v6 = vld [vmem:[%s688_s25 + $0xe0] sm:$0xff]  ;;  %447 = vst.msk [vmem:[%s712_s28 + $0x98] sm:$0xff] %vm427_vm0, %v414_v58  ;;  %v387_v7 = vadd.f32 %v355_v49, %v323_v60  ;;  %v388_v8 = vadd.f32 %v356_v55, %v324_v61  ;;  %v326_v9 = vmul.f32 %v690_v0, %v287_v56  ;;  %v360_v11 = vld [vmem:[%s688_s25 + $0xe8] sm:$0xff] }
  0x27   : > { %448 = vst.msk [vmem:[%s712_s28 + $0xa0] sm:$0xff] %vm427_vm0, %v415_v59  ;;  %v327_v10 = vmul.f32 %v690_v0, %v288_v57  ;;  %v290_v12 = vld [vmem:[%s683_s22 + $0xf0] sm:$0xff]  ;;  %v291_v13 = vld [vmem:[%s683_s22 + $0xf8] sm:$0xff]  ;;  %v417_v14 = vmax.f32 %v385_v2, 0.0  ;;  %v418_v15 = vmax.f32 %v386_v3, 0.0  ;;  %v389_v16 = vadd.f32 %v357_v62, %v325_v4 }
  0x28   : > { %449 = vst.msk [vmem:[%s712_s28 + $0xa8] sm:$0xff] %vm427_vm0, %v416_v1  ;;  %v328_v17 = vmul.f32 %v690_v0, %v289_v63  ;;  %v419_v18 = vmax.f32 %v387_v7, 0.0  ;;  %v420_v19 = vmax.f32 %v388_v8, 0.0  ;;  %v390_v20 = vadd.f32 %v358_v5, %v326_v9  ;;  %v361_v22 = vld [vmem:[%s688_s25 + $0xf0] sm:$0xff]  ;;  %v362_v23 = vld [vmem:[%s688_s25 + $0xf8] sm:$0xff] }
  0x29   : > { %v391_v21 = vadd.f32 %v359_v6, %v327_v10  ;;  %450 = vst.msk [vmem:[%s712_s28 + $0xb0] sm:$0xff] %vm427_vm0, %v417_v14  ;;  %451 = vst.msk [vmem:[%s712_s28 + $0xb8] sm:$0xff] %vm427_vm0, %v418_v15  ;;  %v421_v24 = vmax.f32 %v389_v16, 0.0  ;;  %v329_v26 = vmul.f32 %v690_v0, %v290_v12  ;;  %v330_v27 = vmul.f32 %v690_v0, %v291_v13 }
  0x2a   : > { %v392_v25 = vadd.f32 %v360_v11, %v328_v17  ;;  %452 = vst.msk [vmem:[%s712_s28 + $0xc0] sm:$0xff] %vm427_vm0, %v419_v18  ;;  %453 = vst.msk [vmem:[%s712_s28 + $0xc8] sm:$0xff] %vm427_vm0, %v420_v19  ;;  %v422_v28 = vmax.f32 %v390_v20, 0.0 }
  0x2b   : > { %v423_v29 = vmax.f32 %v391_v21, 0.0  ;;  %454 = vst.msk [vmem:[%s712_s28 + $0xd0] sm:$0xff] %vm427_vm0, %v421_v24  ;;  %v393_v31 = vadd.f32 %v361_v22, %v329_v26  ;;  %v394_v32 = vadd.f32 %v362_v23, %v330_v27 }
  0x2c   : > { %v424_v30 = vmax.f32 %v392_v25, 0.0  ;;  %455 = vst.msk [vmem:[%s712_s28 + $0xd8] sm:$0xff] %vm427_vm0, %v422_v28 }
  0x2d   : > { %456 = vst.msk [vmem:[%s712_s28 + $0xe0] sm:$0xff] %vm427_vm0, %v423_v29  ;;  %v425_v33 = vmax.f32 %v393_v31, 0.0  ;;  %v426_v34 = vmax.f32 %v394_v32, 0.0 }
  0x2e   : > { %457 = vst.msk [vmem:[%s712_s28 + $0xe8] sm:$0xff] %vm427_vm0, %v424_v30 }
  0x2f   : > { %458 = vst.msk [vmem:[%s712_s28 + $0xf0] sm:$0xff] %vm427_vm0, %v425_v33  ;;  %459 = vst.msk [vmem:[%s712_s28 + $0xf8] sm:$0xff] %vm427_vm0, %v426_v34 }
  0x30 PF: > { %s13_s14 = sadd.s32 1, %s637_s14   ;;  %s870_s12 = smov %s633_s13 }
  0x31   : > { %p10_p5 = scmp.ge.s32.totalorder %s13_s14, 4   ;;  %s871_s13 = smov %s873_s15 }
  0x33   :  { %12 = sbr.rel (!%p10_p5) target bundleno = 2 (0x2), region = 68 }

// kernel: quality_net_forward.25
= control target key start
LH: loop header
LB: loop body
LE: loop exit
PB: predicated region body
PF: predicated region fallthrough
CT: control target
= control target key end

     0   :  { %v2317_v0 = vmov 0   ;;  %s3111_s1 = inlined_call_operand.vmem [shape: bf16[384,128], index: 1, kind: input, shape index: {}]   ;;  %s3112_s0 = inlined_call_operand.vmem [shape: bf16[512,384], index: 0, kind: input, shape index: {}]   ;;  %s3113_s2 = inlined_call_operand.vmem [shape: f32[1,128], index: 2, kind: input, shape index: {}]   ;;  %s3114_s3 = inlined_call_operand.vmem [shape: f32[512,128], index: 3, kind: output, shape index: {}]  }
   0x1   :  { %979 = vmatprep.subr.bf16.mxu0 %v2317_v0  ;;  %2132 = vmatprep.subr.bf16.mxu1 %v2317_v0  ;;  %v2165_v1 = vld [vmem:[%s3111_s1] sm:$0xff]   ;;  %v2166_v2 = vld [vmem:[%s3111_s1 + $0x8] sm:$0xff]   ;;  %v2167_v3 = vld [vmem:[%s3111_s1 + $0x10] sm:$0xff]  }
   0x2   :  { %980 = vmatpush1.bf16.msra.mxu0 %v2165_v1  ;;  %2148 = vmatpush1.bf16.msra.mxu1 %v2165_v1  ;;  %v2168_v4 = vld [vmem:[%s3111_s1 + $0x18] sm:$0xff]   ;;  %v2169_v5 = vld [vmem:[%s3111_s1 + $0x20] sm:$0xff]   ;;  %v2170_v7 = vld [vmem:[%s3111_s1 + $0x28] sm:$0xff]  }
   0x3   :  { %981 = vmatprep.subr.bf16.mxu0 %v2317_v0  ;;  %2133 = vmatprep.subr.bf16.mxu1 %v2317_v0  ;;  %v2183_v6 = vld [vmem:[%s3112_s0 + $0x4] ss:$12 sps:$4 sm:$0xff]   ;;  %v2172_v10 = vld [vmem:[%s3111_s1 + $0x38] sm:$0xff]   ;;  %v2174_v12 = vld [vmem:[%s3111_s1 + $0x48] sm:$0xff]  }
   0x4   :  { %v2186_v8 = vld [vmem:[%s3112_s0 + $0x244] ss:$12 sps:$4 sm:$0xff]   ;;  %1011 = vmatprep.mubr.bf16.mxu0 %v2183_v6  ;;  %v2176_v14 = vld [vmem:[%s3111_s1 + $0x58] sm:$0xff]   ;;  %v2178_v16 = vld [vmem:[%s3111_s1 + $0x68] sm:$0xff]  }
   0x5   :  { %1203 = vmatprep.mubr.bf16.mxu1 %v2186_v8  ;;  %v2171_v9 = vld [vmem:[%s3111_s1 + $0x30] sm:$0xff]   ;;  %v2173_v11 = vld [vmem:[%s3111_s1 + $0x40] sm:$0xff]   ;;  %v2180_v18 = vld [vmem:[%s3111_s1 + $0x78] sm:$0xff]  }
   0x6   :  { %982 = vmatpush1.bf16.msra.mxu0 %v2166_v2  ;;  %2149 = vmatpush1.bf16.msra.mxu1 %v2166_v2  ;;  %v2175_v13 = vld [vmem:[%s3111_s1 + $0x50] sm:$0xff]   ;;  %v2177_v15 = vld [vmem:[%s3111_s1 + $0x60] sm:$0xff]   ;;  %v2188_v22 = vld [vmem:[%s3112_s0 + $0x1c] ss:$12 sps:$4 sm:$0xff]  }
   0x7   :  { %983 = vmatprep.subr.bf16.mxu0 %v2317_v0  ;;  %2134 = vmatprep.subr.bf16.mxu1 %v2317_v0  ;;  %v2179_v17 = vld [vmem:[%s3111_s1 + $0x70] sm:$0xff]   ;;  %v2187_v19 = vld [vmem:[%s3111_s1 + $0x80] sm:$0xff]   ;;  %v2190_v23 = vld [vmem:[%s3112_s0 + $0x25c] ss:$12 sps:$4 sm:$0xff]  }
   0x8   :  { %v2181_v20 = vld [vmem:[%s3112_s0] ss:$12 sps:$4 sm:$0xff]   ;;  %v2201_v25 = vld [vmem:[%s3111_s1 + $0x90] sm:$0xff]   ;;  %v2192_v26 = vld [vmem:[%s3112_s0 + $0x18] ss:$12 sps:$4 sm:$0xff]  }
   0x9   :  { %v2184_v21 = vld [vmem:[%s3112_s0 + $0x240] ss:$12 sps:$4 sm:$0xff]   ;;  %v2193_v27 = vld [vmem:[%s3112_s0 + $0x258] ss:$12 sps:$4 sm:$0xff]   ;;  %v2199_v31 = vld [vmem:[%s3112_s0 + $0x30] ss:$12 sps:$4 sm:$0xff]  }
   0xa   :  { %984 = vmatpush1.bf16.msra.mxu0 %v2167_v3  ;;  %2150 = vmatpush1.bf16.msra.mxu1 %v2167_v3  ;;  %v2194_v24 = vld [vmem:[%s3111_s1 + $0x88] sm:$0xff]   ;;  %v2195_v28 = vld [vmem:[%s3112_s0 + $0x34] ss:$12 sps:$4 sm:$0xff]   ;;  %v2208_v30 = vld [vmem:[%s3111_s1 + $0x98] sm:$0xff]  }
   0xb   :  { %985 = vmatprep.subr.bf16.mxu0 %v2317_v0  ;;  %2135 = vmatprep.subr.bf16.mxu1 %v2317_v0  ;;  %v2197_v29 = vld [vmem:[%s3112_s0 + $0x274] ss:$12 sps:$4 sm:$0xff]   ;;  %v2200_v33 = vld [vmem:[%s3112_s0 + $0x270] ss:$12 sps:$4 sm:$0xff]   ;;  %v2202_v34 = vld [vmem:[%s3112_s0 + $0x4c] ss:$12 sps:$4 sm:$0xff]  }
   0xc   :  { %v2215_v32 = vld [vmem:[%s3111_s1 + $0xa0] sm:$0xff]   ;;  %v2204_v35 = vld [vmem:[%s3112_s0 + $0x28c] ss:$12 sps:$4 sm:$0xff]   ;;  %v2206_v37 = vld [vmem:[%s3112_s0 + $0x48] ss:$12 sps:$4 sm:$0xff]  }
   0xd   :  { %v2222_v36 = vld [vmem:[%s3111_s1 + $0xa8] sm:$0xff]   ;;  %v2209_v39 = vld [vmem:[%s3112_s0 + $0x64] ss:$12 sps:$4 sm:$0xff]   ;;  %v2236_v42 = vld [vmem:[%s3111_s1 + $0xb8] sm:$0xff]  }
   0xe   :  { %986 = vmatpush1.bf16.msra.mxu0 %v2168_v4  ;;  %2151 = vmatpush1.bf16.msra.mxu1 %v2168_v4  ;;  %v2207_v38 = vld [vmem:[%s3112_s0 + $0x288] ss:$12 sps:$4 sm:$0xff]   ;;  %v2211_v40 = vld [vmem:[%s3112_s0 + $0x2a4] ss:$12 sps:$4 sm:$0xff]   ;;  %v2213_v43 = vld [vmem:[%s3112_s0 + $0x60] ss:$12 sps:$4 sm:$0xff]  }
   0xf   :  { %987 = vmatprep.subr.bf16.mxu0 %v2317_v0  ;;  %2136 = vmatprep.subr.bf16.mxu1 %v2317_v0  ;;  %v2229_v41 = vld [vmem:[%s3111_s1 + $0xb0] sm:$0xff]   ;;  %v2214_v44 = vld [vmem:[%s3112_s0 + $0x2a0] ss:$12 sps:$4 sm:$0xff]   ;;  %v2216_v45 = vld [vmem:[%s3112_s0 + $0x7c] ss:$12 sps:$4 sm:$0xff]  }
  0x10   :  { %v2218_v46 = vld [vmem:[%s3112_s0 + $0x2bc] ss:$12 sps:$4 sm:$0xff]   ;;  %v2220_v47 = vld [vmem:[%s3112_s0 + $0x78] ss:$12 sps:$4 sm:$0xff]   ;;  %v2223_v49 = vld [vmem:[%s3112_s0 + $0x94] ss:$12 sps:$4 sm:$0xff]  }
  0x11   :  { %v2221_v48 = vld [vmem:[%s3112_s0 + $0x2b8] ss:$12 sps:$4 sm:$0xff]   ;;  %v2225_v50 = vld [vmem:[%s3112_s0 + $0x2d4] ss:$12 sps:$4 sm:$0xff]   ;;  %v2227_v51 = vld [vmem:[%s3112_s0 + $0x90] ss:$12 sps:$4 sm:$0xff]  }
  0x12   :  { %988 = vmatpush1.bf16.msra.mxu0 %v2169_v5  ;;  %2152 = vmatpush1.bf16.msra.mxu1 %v2169_v5  ;;  %v2228_v52 = vld [vmem:[%s3112_s0 + $0x2d0] ss:$12 sps:$4 sm:$0xff]   ;;  %v2230_v53 = vld [vmem:[%s3112_s0 + $0xac] ss:$12 sps:$4 sm:$0xff]   ;;  %v2234_v55 = vld [vmem:[%s3112_s0 + $0xa8] ss:$12 sps:$4 sm:$0xff]  }
  0x13   :  { %989 = vmatprep.subr.bf16.mxu0 %v2317_v0  ;;  %2137 = vmatprep.subr.bf16.mxu1 %v2317_v0  ;;  %v2232_v54 = vld [vmem:[%s3112_s0 + $0x2ec] ss:$12 sps:$4 sm:$0xff]   ;;  %v2235_v56 = vld [vmem:[%s3112_s0 + $0x2e8] ss:$12 sps:$4 sm:$0xff]   ;;  %v2237_v57 = vld [vmem:[%s3112_s0 + $0xc4] ss:$12 sps:$4 sm:$0xff]  }
  0x14   :  { %v2239_v58 = vld [vmem:[%s3112_s0 + $0x8] ss:$12 sps:$4 sm:$0xff]   ;;  %v2240_v59 = vld [vmem:[%s3112_s0 + $0xc0] ss:$12 sps:$4 sm:$0xff]   ;;  %v2244_v62 = vld [vmem:[%s3112_s0 + $0x38] ss:$12 sps:$4 sm:$0xff]  }
  0x15   :  { %v2241_v60 = vld [vmem:[%s3112_s0 + $0x20] ss:$12 sps:$4 sm:$0xff]   ;;  %v2242_v61 = vld [vmem:[%s3112_s0 + $0xdc] ss:$12 sps:$4 sm:$0xff]   ;;  %v2245_v63 = vld [vmem:[%s3112_s0 + $0xd8] ss:$12 sps:$4 sm:$0xff]  }
  0x16   :  { %990 = vmatpush1.bf16.msra.mxu0 %v2170_v7  ;;  %2153 = vmatpush1.bf16.msra.mxu1 %v2170_v7  ;;  %v2247_v1 = vld [vmem:[%s3112_s0 + $0xf4] ss:$12 sps:$4 sm:$0xff]   ;;  %v2250_v3 = vld [vmem:[%s3112_s0 + $0xf0] ss:$12 sps:$4 sm:$0xff]   ;;  %v2252_v5 = vld [vmem:[%s3112_s0 + $0x10c] ss:$12 sps:$4 sm:$0xff]  }
  0x17   :  { %991 = vmatprep.subr.bf16.mxu0 %v2317_v0  ;;  %2138 = vmatprep.subr.bf16.mxu1 %v2317_v0  ;;  %v2249_v2 = vld [vmem:[%s3112_s0 + $0x68] ss:$12 sps:$4 sm:$0xff]   ;;  %v2251_v4 = vld [vmem:[%s3112_s0 + $0x80] ss:$12 sps:$4 sm:$0xff]   ;;  %v2254_v6 = vld [vmem:[%s3112_s0 + $0x98] ss:$12 sps:$4 sm:$0xff]  }
  0x18   :  { %v2255_v7 = vld [vmem:[%s3112_s0 + $0x108] ss:$12 sps:$4 sm:$0xff]   ;;  %v2256_v8 = vld [vmem:[%s3112_s0 + $0xb0] ss:$12 sps:$4 sm:$0xff]  }
  0x1a   :  { %992 = vmatpush1.bf16.msra.mxu0 %v2171_v9  ;;  %2154 = vmatpush1.bf16.msra.mxu1 %v2171_v9  ;;  %v2257_v9 = vld [vmem:[%s3112_s0 + $0x124] ss:$12 sps:$4 sm:$0xff]  }
  0x1b   :  { %993 = vmatprep.subr.bf16.mxu0 %v2317_v0  ;;  %2139 = vmatprep.subr.bf16.mxu1 %v2317_v0 }
  0x1e   :  { %994 = vmatpush1.bf16.msra.mxu0 %v2172_v10  ;;  %2155 = vmatpush1.bf16.msra.mxu1 %v2172_v10  ;;  %v2259_v10 = vld [vmem:[%s3112_s0 + $0xc8] ss:$12 sps:$4 sm:$0xff]  }
  0x1f   :  { %995 = vmatprep.subr.bf16.mxu0 %v2317_v0  ;;  %2140 = vmatprep.subr.bf16.mxu1 %v2317_v0 }
  0x22   :  { %996 = vmatpush1.bf16.msra.mxu0 %v2173_v11  ;;  %2156 = vmatpush1.bf16.msra.mxu1 %v2173_v11  ;;  %v2260_v11 = vld [vmem:[%s3112_s0 + $0x120] ss:$12 sps:$4 sm:$0xff]  }
  0x23   :  { %997 = vmatprep.subr.bf16.mxu0 %v2317_v0  ;;  %2141 = vmatprep.subr.bf16.mxu1 %v2317_v0 }
  0x26   :  { %998 = vmatpush1.bf16.msra.mxu0 %v2174_v12  ;;  %2157 = vmatpush1.bf16.msra.mxu1 %v2174_v12  ;;  %v2261_v12 = vld [vmem:[%s3112_s0 + $0xe0] ss:$12 sps:$4 sm:$0xff]  }
  0x27   :  { %999 = vmatprep.subr.bf16.mxu0 %v2317_v0  ;;  %2142 = vmatprep.subr.bf16.mxu1 %v2317_v0 }
  0x2a   :  { %1000 = vmatpush1.bf16.msra.mxu0 %v2175_v13  ;;  %2158 = vmatpush1.bf16.msra.mxu1 %v2175_v13  ;;  %v2262_v13 = vld [vmem:[%s3112_s0 + $0x13c] ss:$12 sps:$4 sm:$0xff]  }
  0x2b   :  { %1001 = vmatprep.subr.bf16.mxu0 %v2317_v0  ;;  %2143 = vmatprep.subr.bf16.mxu1 %v2317_v0 }
  0x2e   :  { %1002 = vmatpush1.bf16.msra.mxu0 %v2176_v14  ;;  %2159 = vmatpush1.bf16.msra.mxu1 %v2176_v14  ;;  %v2264_v14 = vld [vmem:[%s3112_s0 + $0xf8] ss:$12 sps:$4 sm:$0xff]  }
  0x2f   :  { %1003 = vmatprep.subr.bf16.mxu0 %v2317_v0  ;;  %2144 = vmatprep.subr.bf16.mxu1 %v2317_v0 }
  0x32   :  { %1004 = vmatpush1.bf16.msra.mxu0 %v2177_v15  ;;  %2160 = vmatpush1.bf16.msra.mxu1 %v2177_v15  ;;  %v2265_v15 = vld [vmem:[%s3112_s0 + $0x138] ss:$12 sps:$4 sm:$0xff]  }
  0x33   :  { %1005 = vmatprep.subr.bf16.mxu0 %v2317_v0  ;;  %2145 = vmatprep.subr.bf16.mxu1 %v2317_v0 }
  0x36   :  { %1006 = vmatpush1.bf16.msra.mxu0 %v2178_v16  ;;  %2161 = vmatpush1.bf16.msra.mxu1 %v2178_v16  ;;  %v2266_v16 = vld [vmem:[%s3112_s0 + $0x110] ss:$12 sps:$4 sm:$0xff]  }
  0x37   :  { %1007 = vmatprep.subr.bf16.mxu0 %v2317_v0  ;;  %2146 = vmatprep.subr.bf16.mxu1 %v2317_v0 }
  0x3a   :  { %1008 = vmatpush1.bf16.msra.mxu0 %v2179_v17  ;;  %2162 = vmatpush1.bf16.msra.mxu1 %v2179_v17  ;;  %v2267_v17 = vld [vmem:[%s3112_s0 + $0x154] ss:$12 sps:$4 sm:$0xff]  }
  0x3b   :  { %1009 = vmatprep.subr.bf16.mxu0 %v2317_v0  ;;  %2147 = vmatprep.subr.bf16.mxu1 %v2317_v0  ;;  %v2246_v0 = vld [vmem:[%s3112_s0 + $0x50] ss:$12 sps:$4 sm:$0xff]  }
  0x3e   :  { %1010 = vmatpush1.bf16.msra.mxu0 %v2180_v18  ;;  %2163 = vmatpush1.bf16.msra.mxu1 %v2180_v18  ;;  %v2269_v18 = vld [vmem:[%s3112_s0 + $0x128] ss:$12 sps:$4 sm:$0xff]  }
  0x3f   :  { %2052 = vmatprep.subr.bf16.mxu1 %v2187_v19 }
  0x41   :  { %1012 = vmatmul.mubr.bf16.vlgmr.msra.gmra.mrb[0].mxu0 %v2181_v20  ;;  %1204 = vmatmul.mubr.bf16.vlgmr.msra.gmra.mrb[0].mxu1 %v2184_v21  ;;  %v2271_v20 = vld [vmem:[%s3112_s0 + $0x140] ss:$12 sps:$4 sm:$0xff]  }
  0x42   :  { %2053 = vmatpush3.bf16.msra.mxu1 %v2187_v19  ;;  %1019 = vmatprep.mubr.bf16.mxu0 %v2188_v22  ;;  %v2270_v19 = vld [vmem:[%s3112_s0 + $0x150] ss:$12 sps:$4 sm:$0xff]   ;;  %v2272_v21 = vld [vmem:[%s3112_s0 + $0x16c] ss:$12 sps:$4 sm:$0xff]  }
  0x43   :  { %1211 = vmatprep.mubr.bf16.mxu1 %v2190_v23  ;;  %2054 = vmatprep.subr.bf16.mxu1 %v2194_v24  ;;  %v2274_v22 = vld [vmem:[%s3112_s0 + $0x158] ss:$12 sps:$4 sm:$0xff]   ;;  %v2275_v23 = vld [vmem:[%s3112_s0 + $0x168] ss:$12 sps:$4 sm:$0xff]  }
  0x46   :  { %2055 = vmatpush3.bf16.msra.mxu1 %v2194_v24  ;;  %v2276_v24 = vld [vmem:[%s3112_s0 + $0x170] ss:$12 sps:$4 sm:$0xff]  }
  0x47   :  { %2056 = vmatprep.subr.bf16.mxu1 %v2201_v25 }
  0x49   :  { %1020 = vmatmul.mubr.bf16.gmra.mrb[4].mxu0 %v2192_v26  ;;  %1212 = vmatmul.mubr.bf16.gmra.mrb[4].mxu1 %v2193_v27  ;;  %v2279_v26 = vld [vmem:[%s3112_s0 + $0x188] ss:$12 sps:$4 sm:$0xff]   ;;  %v2280_v27 = vld [vmem:[%s3112_s0 + $0x180] ss:$12 sps:$4 sm:$0xff]  }
  0x4a   :  { %1027 = vmatprep.mubr.bf16.mxu0 %v2195_v28  ;;  %1219 = vmatprep.mubr.bf16.mxu1 %v2197_v29  ;;  %v2281_v28 = vld [vmem:[%s3112_s0 + $0x1a0] ss:$12 sps:$4 sm:$0xff]   ;;  %v2282_v29 = vld [vmem:[%s3112_s0 + $0x19c] ss:$12 sps:$4 sm:$0xff]  }
  0x4b   :  { %2057 = vmatpush3.bf16.msra.mxu1 %v2201_v25  ;;  %v2277_v25 = vld [vmem:[%s3112_s0 + $0x184] ss:$12 sps:$4 sm:$0xff]  }
  0x4c   :  { %2058 = vmatprep.subr.bf16.mxu1 %v2208_v30 }
  0x4f   :  { %2059 = vmatpush3.bf16.msra.mxu1 %v2208_v30  ;;  %v2284_v30 = vld [vmem:[%s3112_s0 + $0x1b8] ss:$12 sps:$4 sm:$0xff]  }
  0x50   :  { %2060 = vmatprep.subr.bf16.mxu1 %v2215_v32 }
  0x51   :  { %1028 = vmatmul.mubr.bf16.gmra.mrb[8].mxu0 %v2199_v31  ;;  %1220 = vmatmul.mubr.bf16.gmra.mrb[8].mxu1 %v2200_v33  ;;  %v2285_v31 = vld [vmem:[%s3112_s0 + $0x198] ss:$12 sps:$4 sm:$0xff]   ;;  %v2287_v33 = vld [vmem:[%s3112_s0 + $0x1b4] ss:$12 sps:$4 sm:$0xff]  }
  0x52   :  { %1035 = vmatprep.mubr.bf16.mxu0 %v2202_v34  ;;  %1227 = vmatprep.mubr.bf16.mxu1 %v2204_v35  ;;  %v2289_v34 = vld [vmem:[%s3112_s0 + $0x1e8] ss:$12 sps:$4 sm:$0xff]   ;;  %v2290_v35 = vld [vmem:[%s3112_s0 + $0x1b0] ss:$12 sps:$4 sm:$0xff]  }
  0x53   :  { %2061 = vmatpush3.bf16.msra.mxu1 %v2215_v32  ;;  %v2286_v32 = vld [vmem:[%s3112_s0 + $0x1d0] ss:$12 sps:$4 sm:$0xff]  }
  0x54   :  { %2062 = vmatprep.subr.bf16.mxu1 %v2222_v36 }
  0x57   :  { %2063 = vmatpush3.bf16.msra.mxu1 %v2222_v36  ;;  %v2291_v36 = vld [vmem:[%s3112_s0 + $0x200] ss:$12 sps:$4 sm:$0xff]  }
  0x58   :  { %2064 = vmatprep.subr.bf16.mxu1 %v2229_v41 }
  0x59   :  { %1036 = vmatmul.mubr.bf16.gmra.mrb[12].mxu0 %v2206_v37  ;;  %1228 = vmatmul.mubr.bf16.gmra.mrb[12].mxu1 %v2207_v38  ;;  %v2292_v37 = vld [vmem:[%s3112_s0 + $0x1cc] ss:$12 sps:$4 sm:$0xff]  }
  0x5a   :  { %1043 = vmatprep.mubr.bf16.mxu0 %v2209_v39  ;;  %1235 = vmatprep.mubr.bf16.mxu1 %v2211_v40  ;;  %v2294_v38 = vld [vmem:[%s3112_s0 + $0x218] ss:$12 sps:$4 sm:$0xff]   ;;  %v2295_v39 = vld [vmem:[%s3112_s0 + $0x1c8] ss:$12 sps:$4 sm:$0xff]   ;;  %v2296_v40 = vld [vmem:[%s3112_s0 + $0x230] ss:$12 sps:$4 sm:$0xff]  }
  0x5b   :  { %2065 = vmatpush3.bf16.msra.mxu1 %v2229_v41  ;;  %v2297_v41 = vld [vmem:[%s3112_s0 + $0x1e4] ss:$12 sps:$4 sm:$0xff]  }
  0x5c   :  { %2066 = vmatprep.subr.bf16.mxu1 %v2236_v42 }
  0x5f   :  { %2067 = vmatpush3.bf16.msra.mxu1 %v2236_v42  ;;  %v2299_v42 = vld [vmem:[%s3112_s0 + $0x248] ss:$12 sps:$4 sm:$0xff]  }
  0x61   :  { %1044 = vmatmul.mubr.bf16.gmra.mrb[16].mxu0 %v2213_v43  ;;  %1236 = vmatmul.mubr.bf16.gmra.mrb[16].mxu1 %v2214_v44  ;;  %v2300_v43 = vld [vmem:[%s3112_s0 + $0x1e0] ss:$12 sps:$4 sm:$0xff]  }
  0x62   :  { %1051 = vmatprep.mubr.bf16.mxu0 %v2216_v45  ;;  %1243 = vmatprep.mubr.bf16.mxu1 %v2218_v46  ;;  %v2301_v44 = vld [vmem:[%s3112_s0 + $0x260] ss:$12 sps:$4 sm:$0xff]   ;;  %v2302_v45 = vld [vmem:[%s3112_s0 + $0x1fc] ss:$12 sps:$4 sm:$0xff]   ;;  %v2304_v46 = vld [vmem:[%s3112_s0 + $0x278] ss:$12 sps:$4 sm:$0xff]  }
  0x69   :  { %1052 = vmatmul.mubr.bf16.gmra.mrb[20].mxu0 %v2220_v47  ;;  %1244 = vmatmul.mubr.bf16.gmra.mrb[20].mxu1 %v2221_v48  ;;  %v2305_v47 = vld [vmem:[%s3112_s0 + $0x1f8] ss:$12 sps:$4 sm:$0xff]   ;;  %v2306_v48 = vld [vmem:[%s3112_s0 + $0x290] ss:$12 sps:$4 sm:$0xff]  }
  0x6a   :  { %1059 = vmatprep.mubr.bf16.mxu0 %v2223_v49  ;;  %1251 = vmatprep.mubr.bf16.mxu1 %v2225_v50  ;;  %v2307_v49 = vld [vmem:[%s3112_s0 + $0x214] ss:$12 sps:$4 sm:$0xff]  }
  0x6b   :  { %v2309_v50 = vld [vmem:[%s3112_s0 + $0x2a8] ss:$12 sps:$4 sm:$0xff]  }
  0x71   :  { %1060 = vmatmul.mubr.bf16.gmra.mrb[24].mxu0 %v2227_v51  ;;  %1252 = vmatmul.mubr.bf16.gmra.mrb[24].mxu1 %v2228_v52  ;;  %v2310_v51 = vld [vmem:[%s3112_s0 + $0x210] ss:$12 sps:$4 sm:$0xff]   ;;  %v2311_v52 = vld [vmem:[%s3112_s0 + $0x2c0] ss:$12 sps:$4 sm:$0xff]  }
  0x72   :  { %1067 = vmatprep.mubr.bf16.mxu0 %v2230_v53  ;;  %1259 = vmatprep.mubr.bf16.mxu1 %v2232_v54  ;;  %v2312_v53 = vld [vmem:[%s3112_s0 + $0x22c] ss:$12 sps:$4 sm:$0xff]  }
  0x73   :  { %v2314_v54 = vld [vmem:[%s3112_s0 + $0x2d8] ss:$12 sps:$4 sm:$0xff]  }
  0x79   :  { %1068 = vmatmul.mubr.bf16.gmra.mrb[28].mxu0 %v2234_v55  ;;  %1260 = vmatmul.mubr.bf16.gmra.mrb[28].mxu1 %v2235_v56  ;;  %v2315_v55 = vld [vmem:[%s3112_s0 + $0x228] ss:$12 sps:$4 sm:$0xff]   ;;  %v2316_v56 = vld [vmem:[%s3112_s0 + $0x2f0] ss:$12 sps:$4 sm:$0xff]  }
  0x7a   :  { %1075 = vmatprep.mubr.bf16.mxu0 %v2237_v57  ;;  %2068 = vmatprep.mubr.bf16.mxu1 %v2239_v58 }
  0x81   :  { %1076 = vmatmul.mubr.bf16.gmra.mrb[32].mxu0 %v2240_v59  ;;  %2069 = vmatmul.mubr.bf16.vlgmr.msra.gmra.mrb[32].mxu1 %v2241_v60 }
  0x82   :  { %1083 = vmatprep.mubr.bf16.mxu0 %v2242_v61  ;;  %2072 = vmatprep.mubr.bf16.mxu1 %v2244_v62 }
  0x89   :  { %1084 = vmatmul.mubr.bf16.gmra.mrb[36].mxu0 %v2245_v63  ;;  %2073 = vmatmul.mubr.bf16.gmra.mrb[36].mxu1 %v2246_v0 }
  0x8a   :  { %1091 = vmatprep.mubr.bf16.mxu0 %v2247_v1  ;;  %2076 = vmatprep.mubr.bf16.mxu1 %v2249_v2 }
  0x91   :  { %1092 = vmatmul.mubr.bf16.gmra.mrb[40].mxu0 %v2250_v3  ;;  %2077 = vmatmul.mubr.bf16.gmra.mrb[40].mxu1 %v2251_v4 }
  0x92   :  { %1099 = vmatprep.mubr.bf16.mxu0 %v2252_v5  ;;  %2080 = vmatprep.mubr.bf16.mxu1 %v2254_v6 }
  0x99   :  { %1100 = vmatmul.mubr.bf16.gmra.mrb[44].mxu0 %v2255_v7  ;;  %2081 = vmatmul.mubr.bf16.gmra.mrb[44].mxu1 %v2256_v8 }
  0x9a   :  { %1107 = vmatprep.mubr.bf16.mxu0 %v2257_v9  ;;  %2084 = vmatprep.mubr.bf16.mxu1 %v2259_v10 }
  0xa1   :  { %1108 = vmatmul.mubr.bf16.gmra.mrb[48].mxu0 %v2260_v11  ;;  %2085 = vmatmul.mubr.bf16.gmra.mrb[48].mxu1 %v2261_v12 }
  0xa2   :  { %1115 = vmatprep.mubr.bf16.mxu0 %v2262_v13  ;;  %2088 = vmatprep.mubr.bf16.mxu1 %v2264_v14 }
  0xa9   :  { %1116 = vmatmul.mubr.bf16.gmra.mrb[52].mxu0 %v2265_v15  ;;  %2089 = vmatmul.mubr.bf16.gmra.mrb[52].mxu1 %v2266_v16 }
  0xaa   :  { %1123 = vmatprep.mubr.bf16.mxu0 %v2267_v17  ;;  %2092 = vmatprep.mubr.bf16.mxu1 %v2269_v18 }
  0xb1   :  { %1124 = vmatmul.mubr.bf16.gmra.mrb[56].mxu0 %v2270_v19  ;;  %2093 = vmatmul.mubr.bf16.gmra.mrb[56].mxu1 %v2271_v20 }
  0xb2   :  { %1131 = vmatprep.mubr.bf16.mxu0 %v2272_v21  ;;  %2096 = vmatprep.mubr.bf16.mxu1 %v2274_v22 }
  0xb9   :  { %1132 = vmatmul.mubr.bf16.gmra.mrb[60].mxu0 %v2275_v23  ;;  %2097 = vmatmul.mubr.bf16.gmra.mrb[60].mxu1 %v2276_v24 }
  0xba   :  { %1139 = vmatprep.mubr.bf16.mxu0 %v2277_v25  ;;  %2100 = vmatprep.mubr.bf16.mxu1 %v2279_v26 }
  0xc1   :  { %1140 = vmatmul.mubr.bf16.gmra.mrb[64].mxu0 %v2280_v27  ;;  %2101 = vmatmul.mubr.bf16.gmra.mrb[64].mxu1 %v2281_v28 }
  0xc2   :  { %1147 = vmatprep.mubr.bf16.mxu0 %v2282_v29  ;;  %2104 = vmatprep.mubr.bf16.mxu1 %v2284_v30 }
  0xc9   :  { %1148 = vmatmul.mubr.bf16.gmra.mrb[68].mxu0 %v2285_v31  ;;  %2105 = vmatmul.mubr.bf16.gmra.mrb[68].mxu1 %v2286_v32 }
  0xca   :  { %1155 = vmatprep.mubr.bf16.mxu0 %v2287_v33  ;;  %2108 = vmatprep.mubr.bf16.mxu1 %v2289_v34 }
  0xd1   :  { %1156 = vmatmul.mubr.bf16.gmra.mrb[72].mxu0 %v2290_v35  ;;  %2109 = vmatmul.mubr.bf16.gmra.mrb[72].mxu1 %v2291_v36 }
  0xd2   :  { %1163 = vmatprep.mubr.bf16.mxu0 %v2292_v37  ;;  %2112 = vmatprep.mubr.bf16.mxu1 %v2294_v38 }
  0xd9   :  { %1164 = vmatmul.mubr.bf16.gmra.mrb[76].mxu0 %v2295_v39  ;;  %2113 = vmatmul.mubr.bf16.gmra.mrb[76].mxu1 %v2296_v40 }
  0xda   :  { %1171 = vmatprep.mubr.bf16.mxu0 %v2297_v41  ;;  %2116 = vmatprep.mubr.bf16.mxu1 %v2299_v42 }
  0xe1   :  { %1172 = vmatmul.mubr.bf16.gmra.mrb[80].mxu0 %v2300_v43  ;;  %2117 = vmatmul.mubr.bf16.gmra.mrb[80].mxu1 %v2301_v44 }
  0xe2   :  { %1179 = vmatprep.mubr.bf16.mxu0 %v2302_v45  ;;  %2120 = vmatprep.mubr.bf16.mxu1 %v2304_v46 }
  0xe9   :  { %1180 = vmatmul.mubr.bf16.gmra.mrb[84].mxu0 %v2305_v47  ;;  %2121 = vmatmul.mubr.bf16.gmra.mrb[84].mxu1 %v2306_v48 }
  0xea   :  { %1187 = vmatprep.mubr.bf16.mxu0 %v2307_v49  ;;  %2124 = vmatprep.mubr.bf16.mxu1 %v2309_v50 }
  0xf1   :  { %1188 = vmatmul.mubr.bf16.gmra.mrb[88].mxu0 %v2310_v51  ;;  %2125 = vmatmul.mubr.bf16.gmra.mrb[88].mxu1 %v2311_v52 }
  0xf2   :  { %1195 = vmatprep.mubr.bf16.mxu0 %v2312_v53  ;;  %2128 = vmatprep.mubr.bf16.mxu1 %v2314_v54 }
  0xf9   :  { %1196 = vmatmul.mubr.bf16.gmra.mrb[92].mxu0 %v2315_v55  ;;  %2129 = vmatmul.mubr.bf16.gmra.mrb[92].mxu1 %v2316_v56 }
 0x114   :  { %v2730_v57 = vpop.f32.mrb[0].mxu0  ;;  %v2732_v58 = vpop.f32.mrb[0].mxu1 }
 0x115   :  { %v1015_v59 = vpop.f32.mrb[1].mxu0  ;;  %v1207_v60 = vpop.f32.mrb[1].mxu1 }
 0x116   :  { %v2734_v61 = vpop.f32.mrb[2].mxu0  ;;  %v2736_v62 = vpop.f32.mrb[2].mxu1 }
 0x117   :  { %v1018_v63 = vpop.f32.mrb[3].mxu0  ;;  %v1210_v0 = vpop.f32.mrb[3].mxu1 }
 0x118   :  { %v2797_v63 = vld [vmem:[%s3113_s2] ss:$0 sm:$0xff] }
 0x11c   :  { %v1021_v1 = vpop.f32.mrb[4].mxu0  ;;  %v2738_v2 = vpop.f32.mrb[4].mxu1 }
 0x11d   :  { %v1023_v3 = vpop.f32.mrb[5].mxu0  ;;  %v1215_v4 = vpop.f32.mrb[5].mxu1 }
 0x11e   :  { %v2740_v5 = vpop.f32.mrb[6].mxu0  ;;  %v2742_v6 = vpop.f32.mrb[6].mxu1 }
 0x11f   :  { %v1026_v7 = vpop.f32.mrb[7].mxu0  ;;  %v1218_v8 = vpop.f32.mrb[7].mxu1 }
 0x124   :  { %v2744_v9 = vpop.f32.mrb[8].mxu0  ;;  %v2746_v10 = vpop.f32.mrb[8].mxu1 }
 0x125   :  { %v1031_v11 = vpop.f32.mrb[9].mxu0  ;;  %v1223_v12 = vpop.f32.mrb[9].mxu1 }
 0x126   :  { %v2748_v13 = vpop.f32.mrb[10].mxu0  ;;  %v2750_v14 = vpop.f32.mrb[10].mxu1 }
 0x127   :  { %v1034_v15 = vpop.f32.mrb[11].mxu0  ;;  %v1226_v16 = vpop.f32.mrb[11].mxu1 }
 0x12c   :  { %v2752_v17 = vpop.f32.mrb[12].mxu0  ;;  %v2754_v18 = vpop.f32.mrb[12].mxu1 }
 0x12d   :  { %v1039_v19 = vpop.f32.mrb[13].mxu0  ;;  %v1231_v20 = vpop.f32.mrb[13].mxu1 }
 0x12e   :  { %v2756_v21 = vpop.f32.mrb[14].mxu0  ;;  %v2758_v22 = vpop.f32.mrb[14].mxu1 }
 0x12f   :  { %v1042_v23 = vpop.f32.mrb[15].mxu0  ;;  %v1234_v24 = vpop.f32.mrb[15].mxu1 }
 0x134   :  { %v2760_v25 = vpop.f32.mrb[16].mxu0  ;;  %v2762_v26 = vpop.f32.mrb[16].mxu1 }
 0x135   :  { %v1047_v27 = vpop.f32.mrb[17].mxu0  ;;  %v1239_v28 = vpop.f32.mrb[17].mxu1 }
 0x136   :  { %v2764_v29 = vpop.f32.mrb[18].mxu0  ;;  %v2766_v30 = vpop.f32.mrb[18].mxu1 }
 0x137   :  { %v1050_v31 = vpop.f32.mrb[19].mxu0  ;;  %v1242_v32 = vpop.f32.mrb[19].mxu1 }
 0x13c   :  { %v2768_v33 = vpop.f32.mrb[20].mxu0  ;;  %v2770_v34 = vpop.f32.mrb[20].mxu1 }
 0x13d   :  { %v1055_v35 = vpop.f32.mrb[21].mxu0  ;;  %v1247_v36 = vpop.f32.mrb[21].mxu1 }
 0x13e   :  { %v2772_v37 = vpop.f32.mrb[22].mxu0  ;;  %v2774_v38 = vpop.f32.mrb[22].mxu1 }
 0x13f   :  { %v1058_v39 = vpop.f32.mrb[23].mxu0  ;;  %v1250_v40 = vpop.f32.mrb[23].mxu1 }
 0x144   :  { %v2776_v41 = vpop.f32.mrb[24].mxu0  ;;  %v2778_v42 = vpop.f32.mrb[24].mxu1 }
 0x145   :  { %v1063_v43 = vpop.f32.mrb[25].mxu0  ;;  %v1255_v44 = vpop.f32.mrb[25].mxu1 }
 0x146   :  { %v2780_v45 = vpop.f32.mrb[26].mxu0  ;;  %v2782_v46 = vpop.f32.mrb[26].mxu1 }
 0x147   :  { %v1066_v47 = vpop.f32.mrb[27].mxu0  ;;  %v1258_v48 = vpop.f32.mrb[27].mxu1 }
 0x14c   :  { %v2784_v49 = vpop.f32.mrb[28].mxu0  ;;  %v2786_v50 = vpop.f32.mrb[28].mxu1 }
 0x14d   :  { %v1071_v51 = vpop.f32.mrb[29].mxu0  ;;  %v1263_v52 = vpop.f32.mrb[29].mxu1 }
 0x14e   :  { %v2788_v53 = vpop.f32.mrb[30].mxu0  ;;  %v2790_v54 = vpop.f32.mrb[30].mxu1 }
 0x14f   :  { %v1074_v55 = vpop.f32.mrb[31].mxu0  ;;  %v1266_v56 = vpop.f32.mrb[31].mxu1 }
 0x154   :  { %v2792_v59 = vpop.f32.mrb[32].mxu0  ;;  %v2070_v60 = vpop.f32.mrb[32].mxu1 }
 0x155   :  { %v1311_v0 = vadd.f32 %v2070_v60, %v1021_v1  ;;  %v1079_v3 = vpop.f32.mrb[33].mxu0  ;;  %v1302_v4 = vpop.f32.mrb[33].mxu1 }
 0x156   :  { %v1303_v7 = vadd.f32 %v1302_v4, %v2730_v57  ;;  %v2800_v8 = vpop.f32.mrb[34].mxu0  ;;  %v2071_v11 = vpop.f32.mrb[34].mxu1 }
 0x157   :  { %v1761_v12 = vadd.f32 %v2797_v63, %v1311_v0  ;;  %v1314_v15 = vadd.f32 %v2071_v11, %v2740_v5  ;;  %v1082_v16 = vpop.f32.mrb[35].mxu0  ;;  %v1305_v19 = vpop.f32.mrb[35].mxu1 }
 0x158   :  { %v1759_v20 = vadd.f32 %v2797_v63, %v1303_v7  ;;  %v1306_v23 = vadd.f32 %v1305_v19, %v2734_v61 }
 0x159   :  { %1825 = vst [vmem:[%s3114_s3 + $0x10] sm:$0xff] %v1761_v12  ;;  %v1762_v1 = vadd.f32 %v2797_v63, %v1314_v15 }
 0x15a   :  { %1823 = vst [vmem:[%s3114_s3] sm:$0xff] %v1759_v20  ;;  %v1760_v57 = vadd.f32 %v2797_v63, %v1306_v23 }
 0x15b   :  { %1826 = vst [vmem:[%s3114_s3 + $0x18] sm:$0xff] %v1762_v1 }
 0x15c   :  { %1824 = vst [vmem:[%s3114_s3 + $0x8] sm:$0xff] %v1760_v57  ;;  %v1085_v61 = vpop.f32.mrb[36].mxu0  ;;  %v2074_v5 = vpop.f32.mrb[36].mxu1 }
 0x15d   :  { %v1327_v24 = vadd.f32 %v2074_v5, %v2752_v17  ;;  %v1087_v27 = vpop.f32.mrb[37].mxu0  ;;  %v1318_v28 = vpop.f32.mrb[37].mxu1 }
 0x15e   :  { %v1319_v31 = vadd.f32 %v1318_v28, %v2744_v9  ;;  %v2822_v32 = vpop.f32.mrb[38].mxu0  ;;  %v2075_v35 = vpop.f32.mrb[38].mxu1 }
 0x15f   :  { %v1765_v36 = vadd.f32 %v2797_v63, %v1327_v24  ;;  %v1330_v39 = vadd.f32 %v2075_v35, %v2756_v21  ;;  %v1090_v40 = vpop.f32.mrb[39].mxu0  ;;  %v1321_v43 = vpop.f32.mrb[39].mxu1 }
 0x160   :  { %v1763_v44 = vadd.f32 %v2797_v63, %v1319_v31  ;;  %v1322_v47 = vadd.f32 %v1321_v43, %v2748_v13 }
 0x161   :  { %1829 = vst [vmem:[%s3114_s3 + $0x30] sm:$0xff] %v1765_v36  ;;  %v1766_v17 = vadd.f32 %v2797_v63, %v1330_v39 }
 0x162   :  { %1827 = vst [vmem:[%s3114_s3 + $0x20] sm:$0xff] %v1763_v44  ;;  %v1764_v9 = vadd.f32 %v2797_v63, %v1322_v47 }
 0x163   :  { %1830 = vst [vmem:[%s3114_s3 + $0x38] sm:$0xff] %v1766_v17 }
 0x164   :  { %1828 = vst [vmem:[%s3114_s3 + $0x28] sm:$0xff] %v1764_v9  ;;  %v2842_v13 = vpop.f32.mrb[40].mxu0  ;;  %v2078_v21 = vpop.f32.mrb[40].mxu1 }
 0x165   :  { %v1343_v48 = vadd.f32 %v2078_v21, %v2768_v33  ;;  %v1095_v51 = vpop.f32.mrb[41].mxu0  ;;  %v1334_v52 = vpop.f32.mrb[41].mxu1 }
 0x166   :  { %v1335_v55 = vadd.f32 %v1334_v52, %v2760_v25  ;;  %v2846_v56 = vpop.f32.mrb[42].mxu0  ;;  %v2079_v60 = vpop.f32.mrb[42].mxu1 }
 0x167   :  { %v1769_v0 = vadd.f32 %v2797_v63, %v1343_v48  ;;  %v1346_v3 = vadd.f32 %v2079_v60, %v2772_v37  ;;  %v1098_v4 = vpop.f32.mrb[43].mxu0  ;;  %v1337_v7 = vpop.f32.mrb[43].mxu1 }
 0x168   :  { %v1767_v11 = vadd.f32 %v2797_v63, %v1335_v55  ;;  %v1338_v12 = vadd.f32 %v1337_v7, %v2764_v29 }
 0x169   :  { %1833 = vst [vmem:[%s3114_s3 + $0x50] sm:$0xff] %v1769_v0  ;;  %v1770_v33 = vadd.f32 %v2797_v63, %v1346_v3 }
 0x16a   :  { %1831 = vst [vmem:[%s3114_s3 + $0x40] sm:$0xff] %v1767_v11  ;;  %v1768_v25 = vadd.f32 %v2797_v63, %v1338_v12 }
 0x16b   :  { %1834 = vst [vmem:[%s3114_s3 + $0x58] sm:$0xff] %v1770_v33 }
 0x16c   :  { %1832 = vst [vmem:[%s3114_s3 + $0x48] sm:$0xff] %v1768_v25  ;;  %v1101_v29 = vpop.f32.mrb[44].mxu0  ;;  %v2082_v37 = vpop.f32.mrb[44].mxu1 }
 0x16d   :  { %v1359_v15 = vadd.f32 %v2082_v37, %v2784_v49  ;;  %v1103_v16 = vpop.f32.mrb[45].mxu0  ;;  %v1350_v19 = vpop.f32.mrb[45].mxu1 }
 0x16e   :  { %v1351_v20 = vadd.f32 %v1350_v19, %v2776_v41  ;;  %v1104_v23 = vpop.f32.mrb[46].mxu0  ;;  %v2083_v1 = vpop.f32.mrb[46].mxu1 }
 0x16f   :  { %v1773_v57 = vadd.f32 %v2797_v63, %v1359_v15  ;;  %v1362_v5 = vadd.f32 %v2083_v1, %v2788_v53  ;;  %v1106_v24 = vpop.f32.mrb[47].mxu0  ;;  %v1353_v27 = vpop.f32.mrb[47].mxu1 }
 0x170   :  { %v1771_v28 = vadd.f32 %v2797_v63, %v1351_v20  ;;  %v1354_v31 = vadd.f32 %v1353_v27, %v2780_v45 }
 0x171   :  { %1837 = vst [vmem:[%s3114_s3 + $0x70] sm:$0xff] %v1773_v57  ;;  %v1774_v49 = vadd.f32 %v2797_v63, %v1362_v5 }
 0x172   :  { %1835 = vst [vmem:[%s3114_s3 + $0x60] sm:$0xff] %v1771_v28  ;;  %v1772_v41 = vadd.f32 %v2797_v63, %v1354_v31 }
 0x173   :  { %1838 = vst [vmem:[%s3114_s3 + $0x78] sm:$0xff] %v1774_v49 }
 0x174   :  { %1836 = vst [vmem:[%s3114_s3 + $0x68] sm:$0xff] %v1772_v41  ;;  %v1109_v45 = vpop.f32.mrb[48].mxu0  ;;  %v2086_v53 = vpop.f32.mrb[48].mxu1 }
 0x175   :  { %v1375_v35 = vadd.f32 %v2086_v53, %v1085_v61  ;;  %v1111_v36 = vpop.f32.mrb[49].mxu0  ;;  %v1366_v39 = vpop.f32.mrb[49].mxu1 }
 0x176   :  { %v1367_v40 = vadd.f32 %v1366_v39, %v2792_v59  ;;  %v1112_v43 = vpop.f32.mrb[50].mxu0  ;;  %v2087_v44 = vpop.f32.mrb[50].mxu1 }
 0x177   :  { %v1777_v47 = vadd.f32 %v2797_v63, %v1375_v35  ;;  %v1378_v17 = vadd.f32 %v2087_v44, %v2822_v32  ;;  %v1114_v9 = vpop.f32.mrb[51].mxu0  ;;  %v1369_v21 = vpop.f32.mrb[51].mxu1 }
 0x178   :  { %v1775_v48 = vadd.f32 %v2797_v63, %v1367_v40  ;;  %v1370_v51 = vadd.f32 %v1369_v21, %v2800_v8 }
 0x179   :  { %1841 = vst [vmem:[%s3114_s3 + $0x90] sm:$0xff] %v1777_v47  ;;  %v1778_v61 = vadd.f32 %v2797_v63, %v1378_v17 }
 0x17a   :  { %1839 = vst [vmem:[%s3114_s3 + $0x80] sm:$0xff] %v1775_v48  ;;  %v1776_v59 = vadd.f32 %v2797_v63, %v1370_v51 }
 0x17b   :  { %1842 = vst [vmem:[%s3114_s3 + $0x98] sm:$0xff] %v1778_v61 }
 0x17c   :  { %1840 = vst [vmem:[%s3114_s3 + $0x88] sm:$0xff] %v1776_v59  ;;  %v1117_v8 = vpop.f32.mrb[52].mxu0  ;;  %v2090_v32 = vpop.f32.mrb[52].mxu1 }
 0x17d   :  { %v1391_v52 = vadd.f32 %v2090_v32, %v1101_v29  ;;  %v1119_v55 = vpop.f32.mrb[53].mxu0  ;;  %v1382_v60 = vpop.f32.mrb[53].mxu1 }
 0x17e   :  { %v1383_v0 = vadd.f32 %v1382_v60, %v2842_v13  ;;  %v1120_v3 = vpop.f32.mrb[54].mxu0  ;;  %v2091_v4 = vpop.f32.mrb[54].mxu1 }
 0x17f   :  { %v1781_v7 = vadd.f32 %v2797_v63, %v1391_v52  ;;  %v1394_v11 = vadd.f32 %v2091_v4, %v1104_v23  ;;  %v1122_v12 = vpop.f32.mrb[55].mxu0  ;;  %v1385_v33 = vpop.f32.mrb[55].mxu1 }
 0x180   :  { %v1779_v25 = vadd.f32 %v2797_v63, %v1383_v0  ;;  %v1386_v37 = vadd.f32 %v1385_v33, %v2846_v56 }
 0x181   :  { %1845 = vst [vmem:[%s3114_s3 + $0xb0] sm:$0xff] %v1781_v7  ;;  %v1782_v29 = vadd.f32 %v2797_v63, %v1394_v11 }
 0x182   :  { %1843 = vst [vmem:[%s3114_s3 + $0xa0] sm:$0xff] %v1779_v25  ;;  %v1780_v13 = vadd.f32 %v2797_v63, %v1386_v37 }
 0x183   :  { %1846 = vst [vmem:[%s3114_s3 + $0xb8] sm:$0xff] %v1782_v29 }
 0x184   :  { %1844 = vst [vmem:[%s3114_s3 + $0xa8] sm:$0xff] %v1780_v13  ;;  %v1125_v56 = vpop.f32.mrb[56].mxu0  ;;  %v2094_v15 = vpop.f32.mrb[56].mxu1 }
 0x185   :  { %v1407_v16 = vadd.f32 %v2094_v15, %v1117_v8  ;;  %v1127_v19 = vpop.f32.mrb[57].mxu0  ;;  %v1398_v20 = vpop.f32.mrb[57].mxu1 }
 0x186   :  { %v1399_v23 = vadd.f32 %v1398_v20, %v1109_v45  ;;  %v1128_v1 = vpop.f32.mrb[58].mxu0  ;;  %v2095_v57 = vpop.f32.mrb[58].mxu1 }
 0x187   :  { %v1785_v5 = vadd.f32 %v2797_v63, %v1407_v16  ;;  %v1410_v24 = vadd.f32 %v2095_v57, %v1120_v3  ;;  %v1130_v27 = vpop.f32.mrb[59].mxu0  ;;  %v1401_v28 = vpop.f32.mrb[59].mxu1 }
 0x188   :  { %v1783_v31 = vadd.f32 %v2797_v63, %v1399_v23  ;;  %v1402_v49 = vadd.f32 %v1401_v28, %v1112_v43 }
 0x189   :  { %1849 = vst [vmem:[%s3114_s3 + $0xd0] sm:$0xff] %v1785_v5  ;;  %v1786_v41 = vadd.f32 %v2797_v63, %v1410_v24 }
 0x18a   :  { %1847 = vst [vmem:[%s3114_s3 + $0xc0] sm:$0xff] %v1783_v31  ;;  %v1784_v45 = vadd.f32 %v2797_v63, %v1402_v49 }
 0x18b   :  { %1850 = vst [vmem:[%s3114_s3 + $0xd8] sm:$0xff] %v1786_v41 }
 0x18c   :  { %1848 = vst [vmem:[%s3114_s3 + $0xc8] sm:$0xff] %v1784_v45  ;;  %v1133_v53 = vpop.f32.mrb[60].mxu0  ;;  %v2098_v35 = vpop.f32.mrb[60].mxu1 }
 0x18d   :  { %v1423_v36 = vadd.f32 %v2098_v35, %v1133_v53  ;;  %v1135_v39 = vpop.f32.mrb[61].mxu0  ;;  %v1414_v40 = vpop.f32.mrb[61].mxu1 }
 0x18e   :  { %v1415_v43 = vadd.f32 %v1414_v40, %v1125_v56  ;;  %v1136_v44 = vpop.f32.mrb[62].mxu0  ;;  %v2099_v47 = vpop.f32.mrb[62].mxu1 }
 0x18f   :  { %v1789_v17 = vadd.f32 %v2797_v63, %v1423_v36  ;;  %v1426_v9 = vadd.f32 %v2099_v47, %v1136_v44  ;;  %v1138_v21 = vpop.f32.mrb[63].mxu0  ;;  %v1417_v48 = vpop.f32.mrb[63].mxu1 }
 0x190   :  { %v1787_v51 = vadd.f32 %v2797_v63, %v1415_v43  ;;  %v1418_v61 = vadd.f32 %v1417_v48, %v1128_v1 }
 0x191   :  { %1853 = vst [vmem:[%s3114_s3 + $0xf0] sm:$0xff] %v1789_v17  ;;  %v1790_v59 = vadd.f32 %v2797_v63, %v1426_v9 }
 0x192   :  { %1851 = vst [vmem:[%s3114_s3 + $0xe0] sm:$0xff] %v1787_v51  ;;  %v1788_v8 = vadd.f32 %v2797_v63, %v1418_v61 }
 0x193   :  { %1854 = vst [vmem:[%s3114_s3 + $0xf8] sm:$0xff] %v1790_v59 }
 0x194   :  { %1852 = vst [vmem:[%s3114_s3 + $0xe8] sm:$0xff] %v1788_v8  ;;  %v1141_v32 = vpop.f32.mrb[64].mxu0  ;;  %v2102_v52 = vpop.f32.mrb[64].mxu1 }
 0x195   :  { %v1143_v55 = vpop.f32.mrb[65].mxu0  ;;  %v1430_v60 = vpop.f32.mrb[65].mxu1 }
 0x196   :  { %v1431_v0 = vadd.f32 %v1430_v60, %v1141_v32  ;;  %v1144_v3 = vpop.f32.mrb[66].mxu0  ;;  %v2103_v4 = vpop.f32.mrb[66].mxu1 }
 0x197   :  { %v1146_v7 = vpop.f32.mrb[67].mxu0  ;;  %v1433_v11 = vpop.f32.mrb[67].mxu1 }
 0x198   :  { %v1791_v12 = vadd.f32 %v2797_v63, %v1431_v0  ;;  %v1434_v33 = vadd.f32 %v1433_v11, %v1144_v3 }
 0x19a   :  { %1855 = vst [vmem:[%s3114_s3 + $0x100] sm:$0xff] %v1791_v12  ;;  %v1792_v25 = vadd.f32 %v2797_v63, %v1434_v33 }
 0x19c   :  { %1856 = vst [vmem:[%s3114_s3 + $0x108] sm:$0xff] %v1792_v25  ;;  %v1149_v37 = vpop.f32.mrb[68].mxu0  ;;  %v2106_v29 = vpop.f32.mrb[68].mxu1 }
 0x19d   :  { %v1439_v13 = vadd.f32 %v2102_v52, %v1149_v37  ;;  %v1151_v56 = vpop.f32.mrb[69].mxu0  ;;  %v1446_v15 = vpop.f32.mrb[69].mxu1 }
 0x19e   :  { %v1152_v16 = vpop.f32.mrb[70].mxu0  ;;  %v2107_v19 = vpop.f32.mrb[70].mxu1 }
 0x19f   :  { %v1793_v20 = vadd.f32 %v2797_v63, %v1439_v13  ;;  %v1442_v23 = vadd.f32 %v2103_v4, %v1152_v16  ;;  %v1154_v1 = vpop.f32.mrb[71].mxu0  ;;  %v1449_v57 = vpop.f32.mrb[71].mxu1 }
 0x1a1   :  { %1857 = vst [vmem:[%s3114_s3 + $0x110] sm:$0xff] %v1793_v20  ;;  %v1794_v5 = vadd.f32 %v2797_v63, %v1442_v23 }
 0x1a3   :  { %1858 = vst [vmem:[%s3114_s3 + $0x118] sm:$0xff] %v1794_v5 }
 0x1a4   :  { %v1157_v24 = vpop.f32.mrb[72].mxu0  ;;  %v2110_v27 = vpop.f32.mrb[72].mxu1 }
 0x1a5   :  { %v1447_v28 = vadd.f32 %v1446_v15, %v1157_v24  ;;  %v1159_v31 = vpop.f32.mrb[73].mxu0  ;;  %v1462_v49 = vpop.f32.mrb[73].mxu1 }
 0x1a6   :  { %v1160_v41 = vpop.f32.mrb[74].mxu0  ;;  %v2111_v45 = vpop.f32.mrb[74].mxu1 }
 0x1a7   :  { %v1795_v53 = vadd.f32 %v2797_v63, %v1447_v28  ;;  %v1450_v35 = vadd.f32 %v1449_v57, %v1160_v41  ;;  %v1162_v36 = vpop.f32.mrb[75].mxu0  ;;  %v1465_v39 = vpop.f32.mrb[75].mxu1 }
 0x1a9   :  { %1859 = vst [vmem:[%s3114_s3 + $0x120] sm:$0xff] %v1795_v53  ;;  %v1796_v40 = vadd.f32 %v2797_v63, %v1450_v35 }
 0x1ab   :  { %1860 = vst [vmem:[%s3114_s3 + $0x128] sm:$0xff] %v1796_v40 }
 0x1ac   :  { %v1165_v43 = vpop.f32.mrb[76].mxu0  ;;  %v2979_v44 = vpop.f32.mrb[76].mxu1 }
 0x1ad   :  { %v1455_v47 = vadd.f32 %v2106_v29, %v1165_v43  ;;  %v1167_v17 = vpop.f32.mrb[77].mxu0  ;;  %v2981_v9 = vpop.f32.mrb[77].mxu1 }
 0x1ae   :  { %v1168_v21 = vpop.f32.mrb[78].mxu0  ;;  %v2983_v48 = vpop.f32.mrb[78].mxu1 }
 0x1af   :  { %v1797_v51 = vadd.f32 %v2797_v63, %v1455_v47  ;;  %v1458_v61 = vadd.f32 %v2107_v19, %v1168_v21  ;;  %v1170_v59 = vpop.f32.mrb[79].mxu0  ;;  %v2986_v8 = vpop.f32.mrb[79].mxu1 }
 0x1b1   :  { %1861 = vst [vmem:[%s3114_s3 + $0x130] sm:$0xff] %v1797_v51  ;;  %v1798_v32 = vadd.f32 %v2797_v63, %v1458_v61 }
 0x1b3   :  { %1862 = vst [vmem:[%s3114_s3 + $0x138] sm:$0xff] %v1798_v32 }
 0x1b4   :  { %v1173_v52 = vpop.f32.mrb[80].mxu0  ;;  %v2118_v55 = vpop.f32.mrb[80].mxu1 }
 0x1b5   :  { %v1463_v60 = vadd.f32 %v1462_v49, %v1173_v52  ;;  %v1503_v0 = vadd.f32 %v2118_v55, %v2738_v2  ;;  %v1175_v3 = vpop.f32.mrb[81].mxu0  ;;  %v1494_v4 = vpop.f32.mrb[81].mxu1 }
 0x1b6   :  { %v1495_v7 = vadd.f32 %v1494_v4, %v2732_v58  ;;  %v1176_v11 = vpop.f32.mrb[82].mxu0  ;;  %v2119_v12 = vpop.f32.mrb[82].mxu1 }
 0x1b7   :  { %v1799_v33 = vadd.f32 %v2797_v63, %v1463_v60  ;;  %v1809_v25 = vadd.f32 %v2797_v63, %v1503_v0  ;;  %v1466_v37 = vadd.f32 %v1465_v39, %v1176_v11  ;;  %v1506_v29 = vadd.f32 %v2119_v12, %v2742_v6  ;;  %v1178_v13 = vpop.f32.mrb[83].mxu0  ;;  %v1497_v56 = vpop.f32.mrb[83].mxu1 }
 0x1b8   :  { %v1807_v15 = vadd.f32 %v2797_v63, %v1495_v7  ;;  %v1498_v16 = vadd.f32 %v1497_v56, %v2736_v62 }
 0x1b9   :  { %1863 = vst [vmem:[%s3114_s3 + $0x140] sm:$0xff] %v1799_v33  ;;  %1873 = vst [vmem:[%s3114_s3 + $0x190] sm:$0xff] %v1809_v25  ;;  %v1800_v58 = vadd.f32 %v2797_v63, %v1466_v37  ;;  %v1810_v2 = vadd.f32 %v2797_v63, %v1506_v29 }
 0x1ba   :  { %1871 = vst [vmem:[%s3114_s3 + $0x180] sm:$0xff] %v1807_v15  ;;  %v1808_v6 = vadd.f32 %v2797_v63, %v1498_v16 }
 0x1bb   :  { %1864 = vst [vmem:[%s3114_s3 + $0x148] sm:$0xff] %v1800_v58  ;;  %1874 = vst [vmem:[%s3114_s3 + $0x198] sm:$0xff] %v1810_v2 }
 0x1bc   :  { %1872 = vst [vmem:[%s3114_s3 + $0x188] sm:$0xff] %v1808_v6  ;;  %v1181_v62 = vpop.f32.mrb[84].mxu0  ;;  %v2122_v19 = vpop.f32.mrb[84].mxu1 }
 0x1bd   :  { %v1471_v20 = vadd.f32 %v2110_v27, %v1181_v62  ;;  %v1519_v23 = vadd.f32 %v2122_v19, %v2754_v18  ;;  %v1183_v1 = vpop.f32.mrb[85].mxu0  ;;  %v1510_v57 = vpop.f32.mrb[85].mxu1 }
 0x1be   :  { %v1511_v5 = vadd.f32 %v1510_v57, %v2746_v10  ;;  %v1184_v24 = vpop.f32.mrb[86].mxu0  ;;  %v2123_v28 = vpop.f32.mrb[86].mxu1 }
 0x1bf   :  { %v1801_v31 = vadd.f32 %v2797_v63, %v1471_v20  ;;  %v1813_v49 = vadd.f32 %v2797_v63, %v1519_v23  ;;  %v1474_v41 = vadd.f32 %v2111_v45, %v1184_v24  ;;  %v1522_v53 = vadd.f32 %v2123_v28, %v2758_v22  ;;  %v1186_v35 = vpop.f32.mrb[87].mxu0  ;;  %v1513_v36 = vpop.f32.mrb[87].mxu1 }
 0x1c0   :  { %v1811_v39 = vadd.f32 %v2797_v63, %v1511_v5  ;;  %v1514_v27 = vadd.f32 %v1513_v36, %v2750_v14 }
 0x1c1   :  { %1865 = vst [vmem:[%s3114_s3 + $0x150] sm:$0xff] %v1801_v31  ;;  %1877 = vst [vmem:[%s3114_s3 + $0x1b0] sm:$0xff] %v1813_v49  ;;  %v1802_v10 = vadd.f32 %v2797_v63, %v1474_v41  ;;  %v1814_v18 = vadd.f32 %v2797_v63, %v1522_v53 }
 0x1c2   :  { %1875 = vst [vmem:[%s3114_s3 + $0x1a0] sm:$0xff] %v1811_v39  ;;  %v1812_v22 = vadd.f32 %v2797_v63, %v1514_v27 }
 0x1c3   :  { %1866 = vst [vmem:[%s3114_s3 + $0x158] sm:$0xff] %v1802_v10  ;;  %1878 = vst [vmem:[%s3114_s3 + $0x1b8] sm:$0xff] %v1814_v18 }
 0x1c4   :  { %1876 = vst [vmem:[%s3114_s3 + $0x1a8] sm:$0xff] %v1812_v22  ;;  %v1189_v14 = vpop.f32.mrb[88].mxu0  ;;  %v2126_v45 = vpop.f32.mrb[88].mxu1 }
 0x1c5   :  { %v1479_v40 = vadd.f32 %v2981_v9, %v1189_v14  ;;  %v1535_v43 = vadd.f32 %v2126_v45, %v2770_v34  ;;  %v1191_v47 = vpop.f32.mrb[89].mxu0  ;;  %v1526_v17 = vpop.f32.mrb[89].mxu1 }
 0x1c6   :  { %v1527_v21 = vadd.f32 %v1526_v17, %v2762_v26  ;;  %v1192_v51 = vpop.f32.mrb[90].mxu0  ;;  %v2127_v61 = vpop.f32.mrb[90].mxu1 }
 0x1c7   :  { %v1803_v59 = vadd.f32 %v2797_v63, %v1479_v40  ;;  %v1817_v32 = vadd.f32 %v2797_v63, %v1535_v43  ;;  %v1482_v52 = vadd.f32 %v2986_v8, %v1192_v51  ;;  %v1538_v55 = vadd.f32 %v2127_v61, %v2774_v38  ;;  %v1194_v60 = vpop.f32.mrb[91].mxu0  ;;  %v1529_v0 = vpop.f32.mrb[91].mxu1 }
 0x1c8   :  { %v1815_v9 = vadd.f32 %v2797_v63, %v1527_v21  ;;  %v1530_v34 = vadd.f32 %v1529_v0, %v2766_v30 }
 0x1c9   :  { %1867 = vst [vmem:[%s3114_s3 + $0x160] sm:$0xff] %v1803_v59  ;;  %1881 = vst [vmem:[%s3114_s3 + $0x1d0] sm:$0xff] %v1817_v32  ;;  %v1804_v26 = vadd.f32 %v2797_v63, %v1482_v52  ;;  %v1818_v8 = vadd.f32 %v2797_v63, %v1538_v55 }
 0x1ca   :  { %1879 = vst [vmem:[%s3114_s3 + $0x1c0] sm:$0xff] %v1815_v9  ;;  %v1816_v38 = vadd.f32 %v2797_v63, %v1530_v34 }
 0x1cb   :  { %1868 = vst [vmem:[%s3114_s3 + $0x168] sm:$0xff] %v1804_v26  ;;  %1882 = vst [vmem:[%s3114_s3 + $0x1d8] sm:$0xff] %v1818_v8 }
 0x1cc   :  { %1880 = vst [vmem:[%s3114_s3 + $0x1c8] sm:$0xff] %v1816_v38  ;;  %v1197_v30 = vpop.f32.mrb[92].mxu0  ;;  %v2130_v3 = vpop.f32.mrb[92].mxu1 }
 0x1cd   :  { %v1487_v4 = vadd.f32 %v2979_v44, %v1197_v30  ;;  %v1551_v7 = vadd.f32 %v2130_v3, %v2786_v50  ;;  %v1199_v11 = vpop.f32.mrb[93].mxu0  ;;  %v1542_v12 = vpop.f32.mrb[93].mxu1 }
 0x1ce   :  { %v1543_v33 = vadd.f32 %v1542_v12, %v2778_v42  ;;  %v1200_v25 = vpop.f32.mrb[94].mxu0  ;;  %v2131_v37 = vpop.f32.mrb[94].mxu1 }
 0x1cf   :  { %v1805_v29 = vadd.f32 %v2797_v63, %v1487_v4  ;;  %v1821_v13 = vadd.f32 %v2797_v63, %v1551_v7  ;;  %v1490_v56 = vadd.f32 %v2983_v48, %v1200_v25  ;;  %v1554_v15 = vadd.f32 %v2131_v37, %v2790_v54  ;;  %v1202_v16 = vpop.f32.mrb[95].mxu0  ;;  %v1545_v58 = vpop.f32.mrb[95].mxu1 }
 0x1d0   :  { %v1819_v44 = vadd.f32 %v2797_v63, %v1543_v33  ;;  %v1546_v50 = vadd.f32 %v1545_v58, %v2782_v46 }
 0x1d1   :  { %1869 = vst [vmem:[%s3114_s3 + $0x170] sm:$0xff] %v1805_v29  ;;  %1885 = vst [vmem:[%s3114_s3 + $0x1f0] sm:$0xff] %v1821_v13  ;;  %v1806_v42 = vadd.f32 %v2797_v63, %v1490_v56  ;;  %v1822_v48 = vadd.f32 %v2797_v63, %v1554_v15 }
 0x1d2   :  { %1883 = vst [vmem:[%s3114_s3 + $0x1e0] sm:$0xff] %v1819_v44  ;;  %v1820_v54 = vadd.f32 %v2797_v63, %v1546_v50 }
 0x1d3   :  { %1870 = vst [vmem:[%s3114_s3 + $0x178] sm:$0xff] %v1806_v42  ;;  %1886 = vst [vmem:[%s3114_s3 + $0x1f8] sm:$0xff] %v1822_v48 }
 0x1d4   :  { %1884 = vst [vmem:[%s3114_s3 + $0x1e8] sm:$0xff] %v1820_v54 }

// kernel: quality_net_forward.23
= control target key start
LH: loop header
LB: loop body
LE: loop exit
PB: predicated region body
PF: predicated region fallthrough
CT: control target
= control target key end

     0   :  { %s1708_s1 = inlined_call_operand.vmem [shape: bf16[128,128], index: 1, kind: input, shape index: {}]   ;;  %s1709_s0 = inlined_call_operand.vmem [shape: bf16[512,128], index: 0, kind: input, shape index: {}]   ;;  %s1710_s2 = inlined_call_operand.vmem [shape: f32[1,128], index: 2, kind: input, shape index: {}]   ;;  %s1711_s3 = inlined_call_operand.vmem [shape: f32[512,128], index: 3, kind: output, shape index: {}]  }
   0x1   :  { %v1267_v0 = vld [vmem:[%s1708_s1] sm:$0xff]   ;;  %v1268_v1 = vld [vmem:[%s1708_s1 + $0x8] sm:$0xff]   ;;  %v1269_v2 = vld [vmem:[%s1708_s1 + $0x10] sm:$0xff]  }
   0x2   :  { %1171 = vmatprep.subr.bf16.mxu0 %v1267_v0  ;;  %1251 = vmatprep.subr.bf16.mxu1 %v1267_v0  ;;  %v1270_v3 = vld [vmem:[%s1708_s1 + $0x18] sm:$0xff]   ;;  %v1275_v4 = vld [vmem:[%s1709_s0] sm:$0xff]   ;;  %v1272_v7 = vld [vmem:[%s1708_s1 + $0x28] sm:$0xff]  }
   0x3   :  { %1172 = vmatpush3.bf16.msra.mxu0 %v1267_v0  ;;  %1259 = vmatpush3.bf16.msra.mxu1 %v1267_v0  ;;  %v1276_v5 = vld [vmem:[%s1709_s0 + $0x80] sm:$0xff]   ;;  %v1273_v8 = vld [vmem:[%s1708_s1 + $0x30] sm:$0xff]   ;;  %v1274_v9 = vld [vmem:[%s1708_s1 + $0x38] sm:$0xff]  }
   0x4   :  { %1173 = vmatprep.subr.bf16.mxu0 %v1268_v1  ;;  %1252 = vmatprep.subr.bf16.mxu1 %v1268_v1  ;;  %v1271_v6 = vld [vmem:[%s1708_s1 + $0x20] sm:$0xff]   ;;  %v1277_v10 = vld [vmem:[%s1709_s0 + $0x8] sm:$0xff]   ;;  %v1279_v12 = vld [vmem:[%s1709_s0 + $0x10] sm:$0xff]  }
   0x5   :  { %1187 = vmatprep.mubr.bf16.mxu0 %v1275_v4  ;;  %1219 = vmatprep.mubr.bf16.mxu1 %v1276_v5  ;;  %v1278_v11 = vld [vmem:[%s1709_s0 + $0x88] sm:$0xff]   ;;  %v1280_v13 = vld [vmem:[%s1709_s0 + $0x90] sm:$0xff]   ;;  %v1281_v14 = vld [vmem:[%s1709_s0 + $0x18] sm:$0xff]  }
   0x6   :  { %v1282_v15 = vld [vmem:[%s1709_s0 + $0x98] sm:$0xff]   ;;  %v1283_v16 = vld [vmem:[%s1709_s0 + $0x20] sm:$0xff]   ;;  %v1285_v18 = vld [vmem:[%s1709_s0 + $0x28] sm:$0xff]  }
   0x7   :  { %1174 = vmatpush3.bf16.msra.mxu0 %v1268_v1  ;;  %1260 = vmatpush3.bf16.msra.mxu1 %v1268_v1  ;;  %v1284_v17 = vld [vmem:[%s1709_s0 + $0xa0] sm:$0xff]   ;;  %v1286_v19 = vld [vmem:[%s1709_s0 + $0xa8] sm:$0xff]   ;;  %v1287_v20 = vld [vmem:[%s1709_s0 + $0x30] sm:$0xff]  }
   0x8   :  { %1175 = vmatprep.subr.bf16.mxu0 %v1269_v2  ;;  %1253 = vmatprep.subr.bf16.mxu1 %v1269_v2  ;;  %v1288_v21 = vld [vmem:[%s1709_s0 + $0xb0] sm:$0xff]   ;;  %v1289_v22 = vld [vmem:[%s1709_s0 + $0x38] sm:$0xff]   ;;  %v1291_v24 = vld [vmem:[%s1709_s0 + $0x40] sm:$0xff]  }
   0x9   :  { %v1290_v23 = vld [vmem:[%s1709_s0 + $0xb8] sm:$0xff]   ;;  %v1292_v25 = vld [vmem:[%s1709_s0 + $0xc0] sm:$0xff]   ;;  %v1293_v26 = vld [vmem:[%s1709_s0 + $0x48] sm:$0xff]  }
   0xa   :  { %v1294_v27 = vld [vmem:[%s1709_s0 + $0xc8] sm:$0xff]   ;;  %v1295_v28 = vld [vmem:[%s1709_s0 + $0x50] sm:$0xff]   ;;  %v1297_v30 = vld [vmem:[%s1709_s0 + $0x58] sm:$0xff]  }
   0xb   :  { %1176 = vmatpush3.bf16.msra.mxu0 %v1269_v2  ;;  %1261 = vmatpush3.bf16.msra.mxu1 %v1269_v2  ;;  %v1296_v29 = vld [vmem:[%s1709_s0 + $0xd0] sm:$0xff]   ;;  %v1298_v31 = vld [vmem:[%s1709_s0 + $0xd8] sm:$0xff]   ;;  %v1299_v32 = vld [vmem:[%s1709_s0 + $0x60] sm:$0xff]  }
   0xc   :  { %1177 = vmatprep.subr.bf16.mxu0 %v1270_v3  ;;  %1254 = vmatprep.subr.bf16.mxu1 %v1270_v3  ;;  %v1300_v33 = vld [vmem:[%s1709_s0 + $0xe0] sm:$0xff]   ;;  %v1301_v34 = vld [vmem:[%s1709_s0 + $0x68] sm:$0xff]   ;;  %v1303_v36 = vld [vmem:[%s1709_s0 + $0x70] sm:$0xff]  }
   0xd   :  { %v1302_v35 = vld [vmem:[%s1709_s0 + $0xe8] sm:$0xff]   ;;  %v1304_v37 = vld [vmem:[%s1709_s0 + $0xf0] sm:$0xff]   ;;  %v1305_v38 = vld [vmem:[%s1709_s0 + $0x78] sm:$0xff]  }
   0xe   :  { %v1306_v39 = vld [vmem:[%s1709_s0 + $0xf8] sm:$0xff]   ;;  %v1450_v40 = vld [vmem:[%s1710_s2] ss:$0 sm:$0xff] }
   0xf   :  { %1178 = vmatpush3.bf16.msra.mxu0 %v1270_v3  ;;  %1262 = vmatpush3.bf16.msra.mxu1 %v1270_v3 }
  0x10   :  { %1179 = vmatprep.subr.bf16.mxu0 %v1271_v6  ;;  %1255 = vmatprep.subr.bf16.mxu1 %v1271_v6 }
  0x13   :  { %1180 = vmatpush3.bf16.msra.mxu0 %v1271_v6  ;;  %1263 = vmatpush3.bf16.msra.mxu1 %v1271_v6 }
  0x14   :  { %1181 = vmatprep.subr.bf16.mxu0 %v1272_v7  ;;  %1256 = vmatprep.subr.bf16.mxu1 %v1272_v7 }
  0x17   :  { %1182 = vmatpush3.bf16.msra.mxu0 %v1272_v7  ;;  %1264 = vmatpush3.bf16.msra.mxu1 %v1272_v7 }
  0x18   :  { %1183 = vmatprep.subr.bf16.mxu0 %v1273_v8  ;;  %1257 = vmatprep.subr.bf16.mxu1 %v1273_v8 }
  0x1b   :  { %1184 = vmatpush3.bf16.msra.mxu0 %v1273_v8  ;;  %1265 = vmatpush3.bf16.msra.mxu1 %v1273_v8 }
  0x1c   :  { %1185 = vmatprep.subr.bf16.mxu0 %v1274_v9  ;;  %1258 = vmatprep.subr.bf16.mxu1 %v1274_v9 }
  0x1f   :  { %1186 = vmatpush3.bf16.msra.mxu0 %v1274_v9  ;;  %1266 = vmatpush3.bf16.msra.mxu1 %v1274_v9 }
  0x22   :  { %1188 = vmatmul.mubr.bf16.vlgmr.msra.gmra.mrb[0].mxu0 %v1277_v10  ;;  %1220 = vmatmul.mubr.bf16.vlgmr.msra.gmra.mrb[0].mxu1 %v1278_v11 }
  0x23   :  { %1191 = vmatprep.mubr.bf16.mxu0 %v1279_v12  ;;  %1223 = vmatprep.mubr.bf16.mxu1 %v1280_v13 }
  0x2a   :  { %1192 = vmatmul.mubr.bf16.gmra.mrb[4].mxu0 %v1281_v14  ;;  %1224 = vmatmul.mubr.bf16.gmra.mrb[4].mxu1 %v1282_v15 }
  0x2b   :  { %1195 = vmatprep.mubr.bf16.mxu0 %v1283_v16  ;;  %1227 = vmatprep.mubr.bf16.mxu1 %v1284_v17 }
  0x32   :  { %1196 = vmatmul.mubr.bf16.gmra.mrb[8].mxu0 %v1285_v18  ;;  %1228 = vmatmul.mubr.bf16.gmra.mrb[8].mxu1 %v1286_v19 }
  0x33   :  { %1199 = vmatprep.mubr.bf16.mxu0 %v1287_v20  ;;  %1231 = vmatprep.mubr.bf16.mxu1 %v1288_v21 }
  0x3a   :  { %1200 = vmatmul.mubr.bf16.gmra.mrb[12].mxu0 %v1289_v22  ;;  %1232 = vmatmul.mubr.bf16.gmra.mrb[12].mxu1 %v1290_v23 }
  0x3b   :  { %1203 = vmatprep.mubr.bf16.mxu0 %v1291_v24  ;;  %1235 = vmatprep.mubr.bf16.mxu1 %v1292_v25 }
  0x42   :  { %1204 = vmatmul.mubr.bf16.gmra.mrb[16].mxu0 %v1293_v26  ;;  %1236 = vmatmul.mubr.bf16.gmra.mrb[16].mxu1 %v1294_v27 }
  0x43   :  { %1207 = vmatprep.mubr.bf16.mxu0 %v1295_v28  ;;  %1239 = vmatprep.mubr.bf16.mxu1 %v1296_v29 }
  0x4a   :  { %1208 = vmatmul.mubr.bf16.gmra.mrb[20].mxu0 %v1297_v30  ;;  %1240 = vmatmul.mubr.bf16.gmra.mrb[20].mxu1 %v1298_v31 }
  0x4b   :  { %1211 = vmatprep.mubr.bf16.mxu0 %v1299_v32  ;;  %1243 = vmatprep.mubr.bf16.mxu1 %v1300_v33 }
  0x52   :  { %1212 = vmatmul.mubr.bf16.gmra.mrb[24].mxu0 %v1301_v34  ;;  %1244 = vmatmul.mubr.bf16.gmra.mrb[24].mxu1 %v1302_v35 }
  0x53   :  { %1215 = vmatprep.mubr.bf16.mxu0 %v1303_v36  ;;  %1247 = vmatprep.mubr.bf16.mxu1 %v1304_v37 }
  0x5a   :  { %1216 = vmatmul.mubr.bf16.gmra.mrb[28].mxu0 %v1305_v38  ;;  %1248 = vmatmul.mubr.bf16.gmra.mrb[28].mxu1 %v1306_v39 }
  0xf5   :  { %v1189_v41 = vpop.f32.mrb[0].mxu0  ;;  %v1221_v42 = vpop.f32.mrb[0].mxu1 }
  0xf6   :  { %v960_v43 = vadd.f32 %v1189_v41, %v1450_v40  ;;  %v992_v44 = vadd.f32 %v1221_v42, %v1450_v40  ;;  %v501_v45 = vpop.f32.mrb[1].mxu0  ;;  %v629_v46 = vpop.f32.mrb[1].mxu1 }
  0xf7   :  { %v958_v47 = vadd.f32 %v1450_v40, %v501_v45  ;;  %v990_v48 = vadd.f32 %v1450_v40, %v629_v46  ;;  %v1190_v49 = vpop.f32.mrb[2].mxu0  ;;  %v1222_v50 = vpop.f32.mrb[2].mxu1 }
  0xf8   :  { %1024 = vst [vmem:[%s1711_s3 + $0x10] sm:$0xff] %v960_v43  ;;  %1056 = vst [vmem:[%s1711_s3 + $0x110] sm:$0xff] %v992_v44  ;;  %v961_v51 = vadd.f32 %v1190_v49, %v1450_v40  ;;  %v993_v52 = vadd.f32 %v1222_v50, %v1450_v40  ;;  %v504_v53 = vpop.f32.mrb[3].mxu0  ;;  %v632_v54 = vpop.f32.mrb[3].mxu1 }
  0xf9   :  { %1022 = vst [vmem:[%s1711_s3] sm:$0xff] %v958_v47  ;;  %1054 = vst [vmem:[%s1711_s3 + $0x100] sm:$0xff] %v990_v48  ;;  %v959_v55 = vadd.f32 %v1450_v40, %v504_v53  ;;  %v991_v56 = vadd.f32 %v1450_v40, %v632_v54 }
  0xfa   :  { %1025 = vst [vmem:[%s1711_s3 + $0x18] sm:$0xff] %v961_v51  ;;  %1057 = vst [vmem:[%s1711_s3 + $0x118] sm:$0xff] %v993_v52 }
  0xfb   :  { %1023 = vst [vmem:[%s1711_s3 + $0x8] sm:$0xff] %v959_v55  ;;  %1055 = vst [vmem:[%s1711_s3 + $0x108] sm:$0xff] %v991_v56 }
  0xfd   :  { %v1193_v57 = vpop.f32.mrb[4].mxu0  ;;  %v1225_v58 = vpop.f32.mrb[4].mxu1 }
  0xfe   :  { %v964_v59 = vadd.f32 %v1193_v57, %v1450_v40  ;;  %v996_v60 = vadd.f32 %v1225_v58, %v1450_v40  ;;  %v517_v61 = vpop.f32.mrb[5].mxu0  ;;  %v645_v62 = vpop.f32.mrb[5].mxu1 }
  0xff   :  { %v962_v63 = vadd.f32 %v1450_v40, %v517_v61  ;;  %v994_v0 = vadd.f32 %v1450_v40, %v645_v62  ;;  %v1194_v1 = vpop.f32.mrb[6].mxu0  ;;  %v1226_v2 = vpop.f32.mrb[6].mxu1 }
 0x100   :  { %1028 = vst [vmem:[%s1711_s3 + $0x30] sm:$0xff] %v964_v59  ;;  %1060 = vst [vmem:[%s1711_s3 + $0x130] sm:$0xff] %v996_v60  ;;  %v965_v3 = vadd.f32 %v1194_v1, %v1450_v40  ;;  %v997_v4 = vadd.f32 %v1226_v2, %v1450_v40  ;;  %v520_v5 = vpop.f32.mrb[7].mxu0  ;;  %v648_v6 = vpop.f32.mrb[7].mxu1 }
 0x101   :  { %1026 = vst [vmem:[%s1711_s3 + $0x20] sm:$0xff] %v962_v63  ;;  %1058 = vst [vmem:[%s1711_s3 + $0x120] sm:$0xff] %v994_v0  ;;  %v963_v7 = vadd.f32 %v1450_v40, %v520_v5  ;;  %v995_v8 = vadd.f32 %v1450_v40, %v648_v6 }
 0x102   :  { %1029 = vst [vmem:[%s1711_s3 + $0x38] sm:$0xff] %v965_v3  ;;  %1061 = vst [vmem:[%s1711_s3 + $0x138] sm:$0xff] %v997_v4 }
 0x103   :  { %1027 = vst [vmem:[%s1711_s3 + $0x28] sm:$0xff] %v963_v7  ;;  %1059 = vst [vmem:[%s1711_s3 + $0x128] sm:$0xff] %v995_v8 }
 0x105   :  { %v1197_v9 = vpop.f32.mrb[8].mxu0  ;;  %v1229_v10 = vpop.f32.mrb[8].mxu1 }
 0x106   :  { %v968_v11 = vadd.f32 %v1197_v9, %v1450_v40  ;;  %v1000_v12 = vadd.f32 %v1229_v10, %v1450_v40  ;;  %v533_v13 = vpop.f32.mrb[9].mxu0  ;;  %v661_v14 = vpop.f32.mrb[9].mxu1 }
 0x107   :  { %v966_v15 = vadd.f32 %v1450_v40, %v533_v13  ;;  %v998_v16 = vadd.f32 %v1450_v40, %v661_v14  ;;  %v1198_v17 = vpop.f32.mrb[10].mxu0  ;;  %v1230_v18 = vpop.f32.mrb[10].mxu1 }
 0x108   :  { %1032 = vst [vmem:[%s1711_s3 + $0x50] sm:$0xff] %v968_v11  ;;  %1064 = vst [vmem:[%s1711_s3 + $0x150] sm:$0xff] %v1000_v12  ;;  %v969_v19 = vadd.f32 %v1198_v17, %v1450_v40  ;;  %v1001_v20 = vadd.f32 %v1230_v18, %v1450_v40  ;;  %v536_v21 = vpop.f32.mrb[11].mxu0  ;;  %v664_v22 = vpop.f32.mrb[11].mxu1 }
 0x109   :  { %1030 = vst [vmem:[%s1711_s3 + $0x40] sm:$0xff] %v966_v15  ;;  %1062 = vst [vmem:[%s1711_s3 + $0x140] sm:$0xff] %v998_v16  ;;  %v967_v23 = vadd.f32 %v1450_v40, %v536_v21  ;;  %v999_v24 = vadd.f32 %v1450_v40, %v664_v22 }
 0x10a   :  { %1033 = vst [vmem:[%s1711_s3 + $0x58] sm:$0xff] %v969_v19  ;;  %1065 = vst [vmem:[%s1711_s3 + $0x158] sm:$0xff] %v1001_v20 }
 0x10b   :  { %1031 = vst [vmem:[%s1711_s3 + $0x48] sm:$0xff] %v967_v23  ;;  %1063 = vst [vmem:[%s1711_s3 + $0x148] sm:$0xff] %v999_v24 }
 0x10d   :  { %v1201_v25 = vpop.f32.mrb[12].mxu0  ;;  %v1233_v26 = vpop.f32.mrb[12].mxu1 }
 0x10e   :  { %v972_v27 = vadd.f32 %v1201_v25, %v1450_v40  ;;  %v1004_v28 = vadd.f32 %v1233_v26, %v1450_v40  ;;  %v549_v29 = vpop.f32.mrb[13].mxu0  ;;  %v677_v30 = vpop.f32.mrb[13].mxu1 }
 0x10f   :  { %v970_v31 = vadd.f32 %v1450_v40, %v549_v29  ;;  %v1002_v32 = vadd.f32 %v1450_v40, %v677_v30  ;;  %v1202_v33 = vpop.f32.mrb[14].mxu0  ;;  %v1234_v34 = vpop.f32.mrb[14].mxu1 }
 0x110   :  { %1036 = vst [vmem:[%s1711_s3 + $0x70] sm:$0xff] %v972_v27  ;;  %1068 = vst [vmem:[%s1711_s3 + $0x170] sm:$0xff] %v1004_v28  ;;  %v973_v35 = vadd.f32 %v1202_v33, %v1450_v40  ;;  %v1005_v36 = vadd.f32 %v1234_v34, %v1450_v40  ;;  %v552_v37 = vpop.f32.mrb[15].mxu0  ;;  %v680_v38 = vpop.f32.mrb[15].mxu1 }
 0x111   :  { %1034 = vst [vmem:[%s1711_s3 + $0x60] sm:$0xff] %v970_v31  ;;  %1066 = vst [vmem:[%s1711_s3 + $0x160] sm:$0xff] %v1002_v32  ;;  %v971_v39 = vadd.f32 %v1450_v40, %v552_v37  ;;  %v1003_v41 = vadd.f32 %v1450_v40, %v680_v38 }
 0x112   :  { %1037 = vst [vmem:[%s1711_s3 + $0x78] sm:$0xff] %v973_v35  ;;  %1069 = vst [vmem:[%s1711_s3 + $0x178] sm:$0xff] %v1005_v36 }
 0x113   :  { %1035 = vst [vmem:[%s1711_s3 + $0x68] sm:$0xff] %v971_v39  ;;  %1067 = vst [vmem:[%s1711_s3 + $0x168] sm:$0xff] %v1003_v41 }
 0x115   :  { %v1205_v42 = vpop.f32.mrb[16].mxu0  ;;  %v1237_v43 = vpop.f32.mrb[16].mxu1 }
 0x116   :  { %v976_v44 = vadd.f32 %v1205_v42, %v1450_v40  ;;  %v1008_v45 = vadd.f32 %v1237_v43, %v1450_v40  ;;  %v565_v46 = vpop.f32.mrb[17].mxu0  ;;  %v693_v47 = vpop.f32.mrb[17].mxu1 }
 0x117   :  { %v974_v48 = vadd.f32 %v1450_v40, %v565_v46  ;;  %v1006_v49 = vadd.f32 %v1450_v40, %v693_v47  ;;  %v1206_v50 = vpop.f32.mrb[18].mxu0  ;;  %v1238_v51 = vpop.f32.mrb[18].mxu1 }
 0x118   :  { %1040 = vst [vmem:[%s1711_s3 + $0x90] sm:$0xff] %v976_v44  ;;  %1072 = vst [vmem:[%s1711_s3 + $0x190] sm:$0xff] %v1008_v45  ;;  %v977_v52 = vadd.f32 %v1206_v50, %v1450_v40  ;;  %v1009_v53 = vadd.f32 %v1238_v51, %v1450_v40  ;;  %v568_v54 = vpop.f32.mrb[19].mxu0  ;;  %v696_v55 = vpop.f32.mrb[19].mxu1 }
 0x119   :  { %1038 = vst [vmem:[%s1711_s3 + $0x80] sm:$0xff] %v974_v48  ;;  %1070 = vst [vmem:[%s1711_s3 + $0x180] sm:$0xff] %v1006_v49  ;;  %v975_v56 = vadd.f32 %v1450_v40, %v568_v54  ;;  %v1007_v57 = vadd.f32 %v1450_v40, %v696_v55 }
 0x11a   :  { %1041 = vst [vmem:[%s1711_s3 + $0x98] sm:$0xff] %v977_v52  ;;  %1073 = vst [vmem:[%s1711_s3 + $0x198] sm:$0xff] %v1009_v53 }
 0x11b   :  { %1039 = vst [vmem:[%s1711_s3 + $0x88] sm:$0xff] %v975_v56  ;;  %1071 = vst [vmem:[%s1711_s3 + $0x188] sm:$0xff] %v1007_v57 }
 0x11d   :  { %v1209_v58 = vpop.f32.mrb[20].mxu0  ;;  %v1241_v59 = vpop.f32.mrb[20].mxu1 }
 0x11e   :  { %v980_v60 = vadd.f32 %v1209_v58, %v1450_v40  ;;  %v1012_v61 = vadd.f32 %v1241_v59, %v1450_v40  ;;  %v581_v62 = vpop.f32.mrb[21].mxu0  ;;  %v709_v63 = vpop.f32.mrb[21].mxu1 }
 0x11f   :  { %v978_v0 = vadd.f32 %v1450_v40, %v581_v62  ;;  %v1010_v1 = vadd.f32 %v1450_v40, %v709_v63  ;;  %v1210_v2 = vpop.f32.mrb[22].mxu0  ;;  %v1242_v3 = vpop.f32.mrb[22].mxu1 }
 0x120   :  { %1044 = vst [vmem:[%s1711_s3 + $0xb0] sm:$0xff] %v980_v60  ;;  %1076 = vst [vmem:[%s1711_s3 + $0x1b0] sm:$0xff] %v1012_v61  ;;  %v981_v4 = vadd.f32 %v1210_v2, %v1450_v40  ;;  %v1013_v5 = vadd.f32 %v1242_v3, %v1450_v40  ;;  %v584_v6 = vpop.f32.mrb[23].mxu0  ;;  %v712_v7 = vpop.f32.mrb[23].mxu1 }
 0x121   :  { %1042 = vst [vmem:[%s1711_s3 + $0xa0] sm:$0xff] %v978_v0  ;;  %1074 = vst [vmem:[%s1711_s3 + $0x1a0] sm:$0xff] %v1010_v1  ;;  %v979_v8 = vadd.f32 %v1450_v40, %v584_v6  ;;  %v1011_v9 = vadd.f32 %v1450_v40, %v712_v7 }
 0x122   :  { %1045 = vst [vmem:[%s1711_s3 + $0xb8] sm:$0xff] %v981_v4  ;;  %1077 = vst [vmem:[%s1711_s3 + $0x1b8] sm:$0xff] %v1013_v5 }
 0x123   :  { %1043 = vst [vmem:[%s1711_s3 + $0xa8] sm:$0xff] %v979_v8  ;;  %1075 = vst [vmem:[%s1711_s3 + $0x1a8] sm:$0xff] %v1011_v9 }
 0x125   :  { %v1213_v10 = vpop.f32.mrb[24].mxu0  ;;  %v1245_v11 = vpop.f32.mrb[24].mxu1 }
 0x126   :  { %v984_v12 = vadd.f32 %v1213_v10, %v1450_v40  ;;  %v1016_v13 = vadd.f32 %v1245_v11, %v1450_v40  ;;  %v597_v14 = vpop.f32.mrb[25].mxu0  ;;  %v725_v15 = vpop.f32.mrb[25].mxu1 }
 0x127   :  { %v982_v16 = vadd.f32 %v1450_v40, %v597_v14  ;;  %v1014_v17 = vadd.f32 %v1450_v40, %v725_v15  ;;  %v1214_v18 = vpop.f32.mrb[26].mxu0  ;;  %v1246_v19 = vpop.f32.mrb[26].mxu1 }
 0x128   :  { %1048 = vst [vmem:[%s1711_s3 + $0xd0] sm:$0xff] %v984_v12  ;;  %1080 = vst [vmem:[%s1711_s3 + $0x1d0] sm:$0xff] %v1016_v13  ;;  %v985_v20 = vadd.f32 %v1214_v18, %v1450_v40  ;;  %v1017_v21 = vadd.f32 %v1246_v19, %v1450_v40  ;;  %v600_v22 = vpop.f32.mrb[27].mxu0  ;;  %v728_v23 = vpop.f32.mrb[27].mxu1 }
 0x129   :  { %1046 = vst [vmem:[%s1711_s3 + $0xc0] sm:$0xff] %v982_v16  ;;  %1078 = vst [vmem:[%s1711_s3 + $0x1c0] sm:$0xff] %v1014_v17  ;;  %v983_v24 = vadd.f32 %v1450_v40, %v600_v22  ;;  %v1015_v25 = vadd.f32 %v1450_v40, %v728_v23 }
 0x12a   :  { %1049 = vst [vmem:[%s1711_s3 + $0xd8] sm:$0xff] %v985_v20  ;;  %1081 = vst [vmem:[%s1711_s3 + $0x1d8] sm:$0xff] %v1017_v21 }
 0x12b   :  { %1047 = vst [vmem:[%s1711_s3 + $0xc8] sm:$0xff] %v983_v24  ;;  %1079 = vst [vmem:[%s1711_s3 + $0x1c8] sm:$0xff] %v1015_v25 }
 0x12d   :  { %v1217_v26 = vpop.f32.mrb[28].mxu0  ;;  %v1249_v27 = vpop.f32.mrb[28].mxu1 }
 0x12e   :  { %v988_v28 = vadd.f32 %v1217_v26, %v1450_v40  ;;  %v1020_v29 = vadd.f32 %v1249_v27, %v1450_v40  ;;  %v613_v30 = vpop.f32.mrb[29].mxu0  ;;  %v741_v31 = vpop.f32.mrb[29].mxu1 }
 0x12f   :  { %v986_v32 = vadd.f32 %v1450_v40, %v613_v30  ;;  %v1018_v33 = vadd.f32 %v1450_v40, %v741_v31  ;;  %v1218_v34 = vpop.f32.mrb[30].mxu0  ;;  %v1250_v35 = vpop.f32.mrb[30].mxu1 }
 0x130   :  { %1052 = vst [vmem:[%s1711_s3 + $0xf0] sm:$0xff] %v988_v28  ;;  %1084 = vst [vmem:[%s1711_s3 + $0x1f0] sm:$0xff] %v1020_v29  ;;  %v989_v36 = vadd.f32 %v1218_v34, %v1450_v40  ;;  %v1021_v37 = vadd.f32 %v1250_v35, %v1450_v40  ;;  %v616_v38 = vpop.f32.mrb[31].mxu0  ;;  %v744_v39 = vpop.f32.mrb[31].mxu1 }
 0x131   :  { %1050 = vst [vmem:[%s1711_s3 + $0xe0] sm:$0xff] %v986_v32  ;;  %1082 = vst [vmem:[%s1711_s3 + $0x1e0] sm:$0xff] %v1018_v33  ;;  %v987_v41 = vadd.f32 %v1450_v40, %v616_v38  ;;  %v1019_v42 = vadd.f32 %v1450_v40, %v744_v39 }
 0x132   :  { %1053 = vst [vmem:[%s1711_s3 + $0xf8] sm:$0xff] %v989_v36  ;;  %1085 = vst [vmem:[%s1711_s3 + $0x1f8] sm:$0xff] %v1021_v37 }
 0x133   :  { %1051 = vst [vmem:[%s1711_s3 + $0xe8] sm:$0xff] %v987_v41  ;;  %1083 = vst [vmem:[%s1711_s3 + $0x1e8] sm:$0xff] %v1019_v42 }

// kernel: quality_net_forward.28
= control target key start
LH: loop header
LB: loop body
LE: loop exit
PB: predicated region body
PF: predicated region fallthrough
CT: control target
= control target key end

     0   :  { %s1157_s1 = inlined_call_operand.vmem [shape: bf16[384,128], index: 1, kind: input, shape index: {}]   ;;  %s1158_s0 = inlined_call_operand.vmem [shape: bf16[128,384], index: 0, kind: input, shape index: {}]   ;;  %s1159_s2 = inlined_call_operand.vmem [shape: f32[1,128], index: 2, kind: input, shape index: {}]   ;;  %s1160_s3 = inlined_call_operand.vmem [shape: f32[128,128], index: 3, kind: output, shape index: {}]  }
   0x1   :  { %v868_v0 = vld [vmem:[%s1157_s1 + $0x40] sm:$0xff]   ;;  %v871_v3 = vld [vmem:[%s1157_s1 + $0x48] sm:$0xff]   ;;  %v874_v6 = vld [vmem:[%s1157_s1 + $0x50] sm:$0xff]  }
   0x2   :  { %v869_v1 = vld [vmem:[%s1157_s1] sm:$0xff]   ;;  %756 = vmatprep.subr.bf16.mxu0 %v868_v0  ;;  %v872_v4 = vld [vmem:[%s1157_s1 + $0x8] sm:$0xff]   ;;  %v875_v7 = vld [vmem:[%s1157_s1 + $0x10] sm:$0xff]  }
   0x3   :  { %v870_v2 = vld [vmem:[%s1157_s1 + $0x80] sm:$0xff]   ;;  %757 = vmatpush3.bf16.msra.mxu0 %v869_v1  ;;  %v873_v5 = vld [vmem:[%s1157_s1 + $0x88] sm:$0xff]   ;;  %v876_v8 = vld [vmem:[%s1157_s1 + $0x90] sm:$0xff]  }
   0x4   :  { %836 = vmatprep.subr.bf16.mxu1 %v870_v2  ;;  %758 = vmatprep.subr.bf16.mxu0 %v871_v3  ;;  %v877_v9 = vld [vmem:[%s1157_s1 + $0x58] sm:$0xff]   ;;  %v880_v12 = vld [vmem:[%s1157_s1 + $0x60] sm:$0xff]   ;;  %v883_v15 = vld [vmem:[%s1157_s1 + $0x68] sm:$0xff]  }
   0x5   :  { %837 = vmatpush3.bf16.msra.mxu1 %v870_v2  ;;  %v878_v10 = vld [vmem:[%s1157_s1 + $0x18] sm:$0xff]   ;;  %v882_v13 = vld [vmem:[%s1157_s1 + $0xa0] sm:$0xff]   ;;  %v885_v16 = vld [vmem:[%s1157_s1 + $0xa8] sm:$0xff]  }
   0x6   :  { %838 = vmatprep.subr.bf16.mxu1 %v873_v5  ;;  %v879_v11 = vld [vmem:[%s1157_s1 + $0x98] sm:$0xff]   ;;  %v881_v14 = vld [vmem:[%s1157_s1 + $0x20] sm:$0xff]   ;;  %v884_v17 = vld [vmem:[%s1157_s1 + $0x28] sm:$0xff]  }
   0x7   :  { %759 = vmatpush3.bf16.msra.mxu0 %v872_v4  ;;  %v886_v18 = vld [vmem:[%s1157_s1 + $0x70] sm:$0xff]   ;;  %v889_v21 = vld [vmem:[%s1157_s1 + $0x78] sm:$0xff]   ;;  %v892_v26 = vld [vmem:[%s1158_s0] ss:$12 sps:$4 sm:$0xff]  }
   0x8   :  { %760 = vmatprep.subr.bf16.mxu0 %v874_v6  ;;  %v887_v19 = vld [vmem:[%s1157_s1 + $0x30] sm:$0xff]   ;;  %v891_v22 = vld [vmem:[%s1157_s1 + $0xb8] sm:$0xff]   ;;  %v896_v28 = vld [vmem:[%s1158_s0 + $0x20] ss:$12 sps:$4 sm:$0xff]  }
   0x9   :  { %839 = vmatpush3.bf16.msra.mxu1 %v873_v5  ;;  %v888_v20 = vld [vmem:[%s1157_s1 + $0xb0] sm:$0xff]   ;;  %v890_v25 = vld [vmem:[%s1157_s1 + $0x38] sm:$0xff]   ;;  %v912_v36 = vld [vmem:[%s1158_s0 + $0x80] ss:$12 sps:$4 sm:$0xff]  }
   0xa   :  { %840 = vmatprep.subr.bf16.mxu1 %v876_v8  ;;  %v894_v23 = vld [vmem:[%s1158_s0 + $0x4] ss:$12 sps:$4 sm:$0xff]   ;;  %v895_v24 = vld [vmem:[%s1158_s0 + $0x8] ss:$12 sps:$4 sm:$0xff]   ;;  %v905_v35 = vld [vmem:[%s1158_s0 + $0x4c] ss:$12 sps:$4 sm:$0xff]  }
   0xb   :  { %761 = vmatpush3.bf16.msra.mxu0 %v875_v7  ;;  %435 = vmatprep.mubr.bf16.mxu0 %v894_v23  ;;  %v897_v27 = vld [vmem:[%s1158_s0 + $0x1c] ss:$12 sps:$4 sm:$0xff]   ;;  %v903_v29 = vld [vmem:[%s1158_s0 + $0x38] ss:$12 sps:$4 sm:$0xff]   ;;  %v900_v31 = vld [vmem:[%s1158_s0 + $0x34] ss:$12 sps:$4 sm:$0xff]  }
   0xc   :  { %762 = vmatprep.subr.bf16.mxu0 %v877_v9  ;;  %852 = vmatprep.mubr.bf16.mxu1 %v895_v24  ;;  %v899_v30 = vld [vmem:[%s1158_s0 + $0x18] ss:$12 sps:$4 sm:$0xff]   ;;  %v904_v32 = vld [vmem:[%s1158_s0 + $0x50] ss:$12 sps:$4 sm:$0xff]   ;;  %v911_v33 = vld [vmem:[%s1158_s0 + $0x68] ss:$12 sps:$4 sm:$0xff]  }
   0xd   :  { %841 = vmatpush3.bf16.msra.mxu1 %v876_v8  ;;  %v902_v34 = vld [vmem:[%s1158_s0 + $0x30] ss:$12 sps:$4 sm:$0xff]   ;;  %v919_v37 = vld [vmem:[%s1158_s0 + $0x98] ss:$12 sps:$4 sm:$0xff]   ;;  %v907_v38 = vld [vmem:[%s1158_s0 + $0x48] ss:$12 sps:$4 sm:$0xff]  }
   0xe   :  { %842 = vmatprep.subr.bf16.mxu1 %v879_v11  ;;  %v908_v39 = vld [vmem:[%s1158_s0 + $0x64] ss:$12 sps:$4 sm:$0xff]   ;;  %v910_v41 = vld [vmem:[%s1158_s0 + $0x60] ss:$12 sps:$4 sm:$0xff]   ;;  %v913_v42 = vld [vmem:[%s1158_s0 + $0x7c] ss:$12 sps:$4 sm:$0xff]  }
   0xf   :  { %763 = vmatpush3.bf16.msra.mxu0 %v878_v10  ;;  %v920_v40 = vld [vmem:[%s1158_s0 + $0xb0] ss:$12 sps:$4 sm:$0xff]   ;;  %v915_v43 = vld [vmem:[%s1158_s0 + $0x78] ss:$12 sps:$4 sm:$0xff]   ;;  %v916_v44 = vld [vmem:[%s1158_s0 + $0x94] ss:$12 sps:$4 sm:$0xff]  }
  0x10   :  { %764 = vmatprep.subr.bf16.mxu0 %v880_v12  ;;  %v918_v45 = vld [vmem:[%s1158_s0 + $0x90] ss:$12 sps:$4 sm:$0xff]   ;;  %v921_v46 = vld [vmem:[%s1158_s0 + $0xac] ss:$12 sps:$4 sm:$0xff]   ;;  %v923_v47 = vld [vmem:[%s1158_s0 + $0xa8] ss:$12 sps:$4 sm:$0xff]  }
  0x11   :  { %843 = vmatpush3.bf16.msra.mxu1 %v879_v11  ;;  %v1091_v55 = vld [vmem:[%s1159_s2] ss:$0 sm:$0xff] }
  0x12   :  { %844 = vmatprep.subr.bf16.mxu1 %v882_v13 }
  0x13   :  { %765 = vmatpush3.bf16.msra.mxu0 %v881_v14 }
  0x14   :  { %766 = vmatprep.subr.bf16.mxu0 %v883_v15 }
  0x15   :  { %845 = vmatpush3.bf16.msra.mxu1 %v882_v13 }
  0x16   :  { %846 = vmatprep.subr.bf16.mxu1 %v885_v16 }
  0x17   :  { %767 = vmatpush3.bf16.msra.mxu0 %v884_v17 }
  0x18   :  { %768 = vmatprep.subr.bf16.mxu0 %v886_v18 }
  0x19   :  { %847 = vmatpush3.bf16.msra.mxu1 %v885_v16 }
  0x1a   :  { %848 = vmatprep.subr.bf16.mxu1 %v888_v20 }
  0x1b   :  { %769 = vmatpush3.bf16.msra.mxu0 %v887_v19 }
  0x1c   :  { %770 = vmatprep.subr.bf16.mxu0 %v889_v21 }
  0x1d   :  { %849 = vmatpush3.bf16.msra.mxu1 %v888_v20 }
  0x1e   :  { %850 = vmatprep.subr.bf16.mxu1 %v891_v22 }
  0x1f   :  { %771 = vmatpush3.bf16.msra.mxu0 %v890_v25 }
  0x21   :  { %851 = vmatpush3.bf16.msra.mxu1 %v891_v22 }
  0x22   :  { %436 = vmatmul.mubr.bf16.vlgmr.msra.gmra.mrb[0].mxu0 %v892_v26 }
  0x23   :  { %443 = vmatprep.mubr.bf16.mxu0 %v897_v27 }
  0x24   :  { %853 = vmatmul.mubr.bf16.vlgmr.msra.gmra.mrb[0].mxu1 %v896_v28 }
  0x25   :  { %856 = vmatprep.mubr.bf16.mxu1 %v903_v29 }
  0x2a   :  { %444 = vmatmul.mubr.bf16.gmra.mrb[4].mxu0 %v899_v30 }
  0x2b   :  { %451 = vmatprep.mubr.bf16.mxu0 %v900_v31 }
  0x2c   :  { %857 = vmatmul.mubr.bf16.gmra.mrb[4].mxu1 %v904_v32 }
  0x2d   :  { %860 = vmatprep.mubr.bf16.mxu1 %v911_v33 }
  0x32   :  { %452 = vmatmul.mubr.bf16.gmra.mrb[8].mxu0 %v902_v34 }
  0x33   :  { %459 = vmatprep.mubr.bf16.mxu0 %v905_v35 }
  0x34   :  { %861 = vmatmul.mubr.bf16.gmra.mrb[8].mxu1 %v912_v36 }
  0x35   :  { %864 = vmatprep.mubr.bf16.mxu1 %v919_v37 }
  0x3a   :  { %460 = vmatmul.mubr.bf16.gmra.mrb[12].mxu0 %v907_v38 }
  0x3b   :  { %467 = vmatprep.mubr.bf16.mxu0 %v908_v39 }
  0x3c   :  { %865 = vmatmul.mubr.bf16.gmra.mrb[12].mxu1 %v920_v40 }
  0x42   :  { %468 = vmatmul.mubr.bf16.gmra.mrb[16].mxu0 %v910_v41 }
  0x43   :  { %475 = vmatprep.mubr.bf16.mxu0 %v913_v42 }
  0x4a   :  { %476 = vmatmul.mubr.bf16.gmra.mrb[20].mxu0 %v915_v43 }
  0x4b   :  { %483 = vmatprep.mubr.bf16.mxu0 %v916_v44 }
  0x52   :  { %484 = vmatmul.mubr.bf16.gmra.mrb[24].mxu0 %v918_v45 }
  0x53   :  { %491 = vmatprep.mubr.bf16.mxu0 %v921_v46 }
  0x5a   :  { %492 = vmatmul.mubr.bf16.gmra.mrb[28].mxu0 %v923_v47 }
  0xf5   :  { %v772_v48 = vpop.f32.mrb[0].mxu0 }
  0xf6   :  { %v773_v49 = vpop.f32.mrb[1].mxu0 }
  0xf7   :  { %v774_v50 = vadd.f32 %v773_v49, %v772_v48  ;;  %v775_v51 = vpop.f32.mrb[2].mxu0  ;;  %v854_v52 = vpop.f32.mrb[0].mxu1 }
  0xf8   :  { %v776_v53 = vpop.f32.mrb[3].mxu0  ;;  %v534_v54 = vpop.f32.mrb[1].mxu1 }
  0xf9   :  { %v777_v56 = vadd.f32 %v776_v53, %v775_v51  ;;  %v535_v57 = vadd.f32 %v774_v50, %v534_v54  ;;  %v855_v58 = vpop.f32.mrb[2].mxu1 }
  0xfa   :  { %v537_v59 = vpop.f32.mrb[3].mxu1 }
  0xfb   :  { %v655_v60 = vadd.f32 %v1091_v55, %v535_v57  ;;  %v538_v61 = vadd.f32 %v777_v56, %v537_v59 }
  0xfd   :  { %v671_v62 = vmax.f32 %v655_v60, 0.0  ;;  %v656_v63 = vadd.f32 %v1091_v55, %v538_v61  ;;  %v778_v0 = vpop.f32.mrb[4].mxu0 }
  0xfe   :  { %v779_v1 = vpop.f32.mrb[5].mxu0 }
  0xff   :  { %687 = vst [vmem:[%s1160_s3] sm:$0xff] %v671_v62  ;;  %v672_v2 = vmax.f32 %v656_v63, 0.0  ;;  %v780_v3 = vadd.f32 %v779_v1, %v778_v0  ;;  %v781_v4 = vpop.f32.mrb[6].mxu0  ;;  %v858_v5 = vpop.f32.mrb[4].mxu1 }
 0x100   :  { %v782_v6 = vpop.f32.mrb[7].mxu0  ;;  %v550_v7 = vpop.f32.mrb[5].mxu1 }
 0x101   :  { %688 = vst [vmem:[%s1160_s3 + $0x8] sm:$0xff] %v672_v2  ;;  %v543_v8 = vadd.f32 %v854_v52, %v780_v3  ;;  %v783_v9 = vadd.f32 %v782_v6, %v781_v4  ;;  %v859_v10 = vpop.f32.mrb[6].mxu1 }
 0x102   :  { %v553_v11 = vpop.f32.mrb[7].mxu1 }
 0x103   :  { %v657_v12 = vadd.f32 %v1091_v55, %v543_v8  ;;  %v546_v13 = vadd.f32 %v855_v58, %v783_v9 }
 0x105   :  { %v673_v14 = vmax.f32 %v657_v12, 0.0  ;;  %v658_v15 = vadd.f32 %v1091_v55, %v546_v13  ;;  %v784_v16 = vpop.f32.mrb[8].mxu0 }
 0x106   :  { %v785_v17 = vpop.f32.mrb[9].mxu0 }
 0x107   :  { %689 = vst [vmem:[%s1160_s3 + $0x10] sm:$0xff] %v673_v14  ;;  %v674_v18 = vmax.f32 %v658_v15, 0.0  ;;  %v786_v19 = vadd.f32 %v785_v17, %v784_v16  ;;  %v787_v20 = vpop.f32.mrb[10].mxu0  ;;  %v862_v21 = vpop.f32.mrb[8].mxu1 }
 0x108   :  { %v788_v22 = vpop.f32.mrb[11].mxu0  ;;  %v566_v23 = vpop.f32.mrb[9].mxu1 }
 0x109   :  { %690 = vst [vmem:[%s1160_s3 + $0x18] sm:$0xff] %v674_v18  ;;  %v789_v24 = vadd.f32 %v788_v22, %v787_v20  ;;  %v551_v25 = vadd.f32 %v786_v19, %v550_v7  ;;  %v863_v26 = vpop.f32.mrb[10].mxu1 }
 0x10a   :  { %v569_v27 = vpop.f32.mrb[11].mxu1 }
 0x10b   :  { %v659_v28 = vadd.f32 %v1091_v55, %v551_v25  ;;  %v554_v29 = vadd.f32 %v789_v24, %v553_v11 }
 0x10d   :  { %v675_v30 = vmax.f32 %v659_v28, 0.0  ;;  %v660_v31 = vadd.f32 %v1091_v55, %v554_v29  ;;  %v790_v32 = vpop.f32.mrb[12].mxu0 }
 0x10e   :  { %v791_v33 = vpop.f32.mrb[13].mxu0 }
 0x10f   :  { %691 = vst [vmem:[%s1160_s3 + $0x20] sm:$0xff] %v675_v30  ;;  %v676_v34 = vmax.f32 %v660_v31, 0.0  ;;  %v792_v35 = vadd.f32 %v791_v33, %v790_v32  ;;  %v793_v36 = vpop.f32.mrb[14].mxu0  ;;  %v866_v37 = vpop.f32.mrb[12].mxu1 }
 0x110   :  { %v794_v38 = vpop.f32.mrb[15].mxu0  ;;  %v582_v39 = vpop.f32.mrb[13].mxu1 }
 0x111   :  { %692 = vst [vmem:[%s1160_s3 + $0x28] sm:$0xff] %v676_v34  ;;  %v559_v40 = vadd.f32 %v858_v5, %v792_v35  ;;  %v795_v41 = vadd.f32 %v794_v38, %v793_v36  ;;  %v867_v42 = vpop.f32.mrb[14].mxu1 }
 0x112   :  { %v585_v43 = vpop.f32.mrb[15].mxu1 }
 0x113   :  { %v661_v44 = vadd.f32 %v1091_v55, %v559_v40  ;;  %v562_v45 = vadd.f32 %v859_v10, %v795_v41 }
 0x115   :  { %v677_v46 = vmax.f32 %v661_v44, 0.0  ;;  %v662_v47 = vadd.f32 %v1091_v55, %v562_v45  ;;  %v796_v48 = vpop.f32.mrb[16].mxu0 }
 0x116   :  { %v797_v49 = vpop.f32.mrb[17].mxu0 }
 0x117   :  { %693 = vst [vmem:[%s1160_s3 + $0x30] sm:$0xff] %v677_v46  ;;  %v678_v50 = vmax.f32 %v662_v47, 0.0  ;;  %v798_v51 = vadd.f32 %v797_v49, %v796_v48  ;;  %v799_v52 = vpop.f32.mrb[18].mxu0 }
 0x118   :  { %v800_v53 = vpop.f32.mrb[19].mxu0 }
 0x119   :  { %694 = vst [vmem:[%s1160_s3 + $0x38] sm:$0xff] %v678_v50  ;;  %v801_v54 = vadd.f32 %v800_v53, %v799_v52  ;;  %v567_v56 = vadd.f32 %v798_v51, %v566_v23 }
 0x11b   :  { %v663_v57 = vadd.f32 %v1091_v55, %v567_v56  ;;  %v570_v58 = vadd.f32 %v801_v54, %v569_v27 }
 0x11d   :  { %v679_v59 = vmax.f32 %v663_v57, 0.0  ;;  %v664_v60 = vadd.f32 %v1091_v55, %v570_v58  ;;  %v802_v61 = vpop.f32.mrb[20].mxu0 }
 0x11e   :  { %v803_v62 = vpop.f32.mrb[21].mxu0 }
 0x11f   :  { %695 = vst [vmem:[%s1160_s3 + $0x40] sm:$0xff] %v679_v59  ;;  %v680_v63 = vmax.f32 %v664_v60, 0.0  ;;  %v804_v0 = vadd.f32 %v803_v62, %v802_v61  ;;  %v805_v1 = vpop.f32.mrb[22].mxu0 }
 0x120   :  { %v806_v2 = vpop.f32.mrb[23].mxu0 }
 0x121   :  { %696 = vst [vmem:[%s1160_s3 + $0x48] sm:$0xff] %v680_v63  ;;  %v575_v3 = vadd.f32 %v862_v21, %v804_v0  ;;  %v807_v4 = vadd.f32 %v806_v2, %v805_v1 }
 0x123   :  { %v665_v5 = vadd.f32 %v1091_v55, %v575_v3  ;;  %v578_v6 = vadd.f32 %v863_v26, %v807_v4 }
 0x125   :  { %v681_v7 = vmax.f32 %v665_v5, 0.0  ;;  %v666_v8 = vadd.f32 %v1091_v55, %v578_v6  ;;  %v808_v9 = vpop.f32.mrb[24].mxu0 }
 0x126   :  { %v809_v10 = vpop.f32.mrb[25].mxu0 }
 0x127   :  { %697 = vst [vmem:[%s1160_s3 + $0x50] sm:$0xff] %v681_v7  ;;  %v682_v11 = vmax.f32 %v666_v8, 0.0  ;;  %v810_v12 = vadd.f32 %v809_v10, %v808_v9  ;;  %v811_v13 = vpop.f32.mrb[26].mxu0 }
 0x128   :  { %v812_v14 = vpop.f32.mrb[27].mxu0 }
 0x129   :  { %698 = vst [vmem:[%s1160_s3 + $0x58] sm:$0xff] %v682_v11  ;;  %v813_v15 = vadd.f32 %v812_v14, %v811_v13  ;;  %v583_v16 = vadd.f32 %v810_v12, %v582_v39 }
 0x12b   :  { %v667_v17 = vadd.f32 %v1091_v55, %v583_v16  ;;  %v586_v18 = vadd.f32 %v813_v15, %v585_v43 }
 0x12d   :  { %v683_v19 = vmax.f32 %v667_v17, 0.0  ;;  %v668_v20 = vadd.f32 %v1091_v55, %v586_v18  ;;  %v814_v21 = vpop.f32.mrb[28].mxu0 }
 0x12e   :  { %v815_v22 = vpop.f32.mrb[29].mxu0 }
 0x12f   :  { %699 = vst [vmem:[%s1160_s3 + $0x60] sm:$0xff] %v683_v19  ;;  %v684_v23 = vmax.f32 %v668_v20, 0.0  ;;  %v816_v24 = vadd.f32 %v815_v22, %v814_v21  ;;  %v817_v25 = vpop.f32.mrb[30].mxu0 }
 0x130   :  { %v818_v26 = vpop.f32.mrb[31].mxu0 }
 0x131   :  { %700 = vst [vmem:[%s1160_s3 + $0x68] sm:$0xff] %v684_v23  ;;  %v591_v27 = vadd.f32 %v866_v37, %v816_v24  ;;  %v819_v28 = vadd.f32 %v818_v26, %v817_v25 }
 0x133   :  { %v669_v29 = vadd.f32 %v1091_v55, %v591_v27  ;;  %v594_v30 = vadd.f32 %v867_v42, %v819_v28 }
 0x135   :  { %v685_v31 = vmax.f32 %v669_v29, 0.0  ;;  %v670_v32 = vadd.f32 %v1091_v55, %v594_v30 }
 0x137   :  { %701 = vst [vmem:[%s1160_s3 + $0x70] sm:$0xff] %v685_v31  ;;  %v686_v33 = vmax.f32 %v670_v32, 0.0 }
 0x139   :  { %702 = vst [vmem:[%s1160_s3 + $0x78] sm:$0xff] %v686_v33 }

// kernel: quality_net_forward.30
= control target key start
LH: loop header
LB: loop body
LE: loop exit
PB: predicated region body
PF: predicated region fallthrough
CT: control target
= control target key end

     0   :  { %s515_s12 = smov 0   ;;  %s517_s13 = smov 0   ;;  %s572_s0 = inlined_call_operand.vmem [shape: f32[2,64,64], index: 0, kind: input, shape index: {}]   ;;  %s573_s1 = inlined_call_operand.vmem [shape: f32[2,1,64], index: 1, kind: input, shape index: {}]   ;;  %s574_s2 = inlined_call_operand.vmem [shape: f32[2,64,64], index: 2, kind: input, shape index: {}]   ;;  %s575_s3 = inlined_call_operand.vmem [shape: f32[2,64,64], index: 3, kind: output, shape index: {}]  }
   0x1   :  { %s519_s14 = smov 0  }
   0x2 LB: > { %s25_s15 = sadd.s32 1, %s489_s13  ;;  %p434_p0 = scmp.ge.s32.totalorder %s493_s14, 1  ;;  %s493_s14 = sphi %s519_s14, %s13_s14   ;;  %s489_s13 = sphi %s517_s13, %s577_s13   ;;  %s485_s12 = sphi %s515_s12, %s576_s12  }
   0x3   : > { %p27_p1 = scmp.ge.s32.totalorder %s25_s15, 2  ;;  %p183_p2 = scmp.lt.s32.totalorder %s493_s14, 3 }
   0x5   : > { %s579_s15 = smov (%p27_p1, %s25_s15), 0  ;;  %p184_p3 = pnand %p434_p0, %p183_p2 }
   0x6   : > { %p228_p4 = scmp.lt.s32.totalorder (!%p184_p3), %s485_s12, 1  ;;  %vm307_vm0 = vcmask (!%p184_p3), 523264  }
   0x7   : > { %187 = sbr.rel (%p184_p3) target bundleno = 30 (0x1e), region = 32 }
   0xe   : > { %s581_s12 = smov (!%p228_p4, %s485_s12), 1 }
   0xf   : > { %s444_s16 = sshll.u32 %s581_s12, 6  ;;  %s239_s19 = scalar_lea.vmem %s573_s1, %s581_s12 }
  0x10   : > { %s235_s22 = scalar_lea.vmem %s572_s0, %s444_s16  ;;  %s542_s25 = scalar_lea.vmem %s574_s2, %s444_s16  ;;  %v441_v0 = vld [vmem:[%s239_s19] ss:$0 sm:$0xff] }
  0x11   : > { %v260_v1 = vld [vmem:[%s235_s22] sm:$0xff]  ;;  %v261_v3 = vld [vmem:[%s235_s22 + $0x8] sm:$0xff]  ;;  %v262_v7 = vld [vmem:[%s235_s22 + $0x10] sm:$0xff]  ;;  %s258_s28 = scalar_lea.vmem %s575_s3, %s444_s16 }
  0x12   : > { %v283_v2 = vld [vmem:[%s542_s25] sm:$0xff]  ;;  %v275_v4 = vmul.f32 %v441_v0, %v260_v1  ;;  %v276_v5 = vmul.f32 %v441_v0, %v261_v3  ;;  %v284_v6 = vld [vmem:[%s542_s25 + $0x8] sm:$0xff]  ;;  %v285_v8 = vld [vmem:[%s542_s25 + $0x10] sm:$0xff]  ;;  %v277_v9 = vmul.f32 %v441_v0, %v262_v7 }
  0x13   : > { %v263_v10 = vld [vmem:[%s235_s22 + $0x18] sm:$0xff]  ;;  %v264_v12 = vld [vmem:[%s235_s22 + $0x20] sm:$0xff]  ;;  %v265_v18 = vld [vmem:[%s235_s22 + $0x28] sm:$0xff] }
  0x14   : > { %v286_v11 = vld [vmem:[%s542_s25 + $0x18] sm:$0xff]  ;;  %v291_v13 = vadd.f32 %v283_v2, %v275_v4  ;;  %v292_v14 = vadd.f32 %v284_v6, %v276_v5  ;;  %v278_v15 = vmul.f32 %v441_v0, %v263_v10  ;;  %v279_v16 = vmul.f32 %v441_v0, %v264_v12  ;;  %v287_v17 = vld [vmem:[%s542_s25 + $0x20] sm:$0xff]  ;;  %v288_v19 = vld [vmem:[%s542_s25 + $0x28] sm:$0xff] }
  0x15   : > { %v293_v20 = vadd.f32 %v285_v8, %v277_v9  ;;  %v280_v21 = vmul.f32 %v441_v0, %v265_v18  ;;  %v266_v22 = vld [vmem:[%s235_s22 + $0x30] sm:$0xff]  ;;  %v267_v23 = vld [vmem:[%s235_s22 + $0x38] sm:$0xff] }
  0x16   : > { %v299_v24 = vmax.f32 %v291_v13, 0.0  ;;  %v300_v25 = vmax.f32 %v292_v14, 0.0  ;;  %v294_v26 = vadd.f32 %v286_v11, %v278_v15  ;;  %v295_v27 = vadd.f32 %v287_v17, %v279_v16  ;;  %v289_v28 = vld [vmem:[%s542_s25 + $0x30] sm:$0xff]  ;;  %v290_v29 = vld [vmem:[%s542_s25 + $0x38] sm:$0xff] }
  0x17   : > { %v301_v30 = vmax.f32 %v293_v20, 0.0  ;;  %v296_v31 = vadd.f32 %v288_v19, %v280_v21  ;;  %v281_v32 = vmul.f32 %v441_v0, %v266_v22  ;;  %v282_v33 = vmul.f32 %v441_v0, %v267_v23 }
  0x18   : > { %308 = vst.msk [vmem:[%s258_s28] sm:$0xff] %vm307_vm0, %v299_v24  ;;  %309 = vst.msk [vmem:[%s258_s28 + $0x8] sm:$0xff] %vm307_vm0, %v300_v25  ;;  %v302_v34 = vmax.f32 %v294_v26, 0.0  ;;  %v303_v35 = vmax.f32 %v295_v27, 0.0 }
  0x19   : > { %310 = vst.msk [vmem:[%s258_s28 + $0x10] sm:$0xff] %vm307_vm0, %v301_v30  ;;  %v304_v36 = vmax.f32 %v296_v31, 0.0  ;;  %v297_v37 = vadd.f32 %v289_v28, %v281_v32  ;;  %v298_v38 = vadd.f32 %v290_v29, %v282_v33 }
  0x1a   : > { %311 = vst.msk [vmem:[%s258_s28 + $0x18] sm:$0xff] %vm307_vm0, %v302_v34  ;;  %312 = vst.msk [vmem:[%s258_s28 + $0x20] sm:$0xff] %vm307_vm0, %v303_v35 }
  0x1b   : > { %313 = vst.msk [vmem:[%s258_s28 + $0x28] sm:$0xff] %vm307_vm0, %v304_v36  ;;  %v305_v39 = vmax.f32 %v297_v37, 0.0  ;;  %v306_v40 = vmax.f32 %v298_v38, 0.0 }
  0x1d   : > { %314 = vst.msk [vmem:[%s258_s28 + $0x30] sm:$0xff] %vm307_vm0, %v305_v39  ;;  %315 = vst.msk [vmem:[%s258_s28 + $0x38] sm:$0xff] %vm307_vm0, %v306_v40 }
  0x1e PF: > { %s13_s14 = sadd.s32 1, %s493_s14   ;;  %s576_s12 = smov %s489_s13 }
  0x1f   : > { %p10_p5 = scmp.ge.s32.totalorder %s13_s14, 4   ;;  %s577_s13 = smov %s579_s15 }
  0x21   :  { %12 = sbr.rel (!%p10_p5) target bundleno = 2 (0x2), region = 68 }

// kernel: quality_net_forward.27
= control target key start
LH: loop header
LB: loop body
LE: loop exit
PB: predicated region body
PF: predicated region fallthrough
CT: control target
= control target key end

     0   :  { %s586_s1 = inlined_call_operand.vmem [shape: bf16[128,128], index: 1, kind: input, shape index: {}]   ;;  %s587_s0 = inlined_call_operand.vmem [shape: bf16[128,128], index: 0, kind: input, shape index: {}]   ;;  %s588_s2 = inlined_call_operand.vmem [shape: f32[1,128], index: 2, kind: input, shape index: {}]   ;;  %s589_s3 = inlined_call_operand.vmem [shape: f32[128,128], index: 3, kind: output, shape index: {}]  }
   0x1   :  { %v451_v0 = vld [vmem:[%s586_s1] sm:$0xff]   ;;  %v452_v1 = vld [vmem:[%s586_s1 + $0x8] sm:$0xff]   ;;  %v453_v2 = vld [vmem:[%s586_s1 + $0x10] sm:$0xff]  }
   0x2   :  { %403 = vmatprep.subr.bf16.mxu0 %v451_v0  ;;  %435 = vmatprep.subr.bf16.mxu1 %v451_v0  ;;  %v454_v3 = vld [vmem:[%s586_s1 + $0x18] sm:$0xff]   ;;  %v459_v4 = vld [vmem:[%s587_s0] sm:$0xff]   ;;  %v456_v7 = vld [vmem:[%s586_s1 + $0x28] sm:$0xff]  }
   0x3   :  { %404 = vmatpush3.bf16.msra.mxu0 %v451_v0  ;;  %443 = vmatpush3.bf16.msra.mxu1 %v451_v0  ;;  %v460_v5 = vld [vmem:[%s587_s0 + $0x20] sm:$0xff]   ;;  %v457_v8 = vld [vmem:[%s586_s1 + $0x30] sm:$0xff]   ;;  %v458_v9 = vld [vmem:[%s586_s1 + $0x38] sm:$0xff]  }
   0x4   :  { %405 = vmatprep.subr.bf16.mxu0 %v452_v1  ;;  %436 = vmatprep.subr.bf16.mxu1 %v452_v1  ;;  %v455_v6 = vld [vmem:[%s586_s1 + $0x20] sm:$0xff]   ;;  %v461_v10 = vld [vmem:[%s587_s0 + $0x8] sm:$0xff]   ;;  %v463_v12 = vld [vmem:[%s587_s0 + $0x10] sm:$0xff]  }
   0x5   :  { %419 = vmatprep.mubr.bf16.mxu0 %v459_v4  ;;  %427 = vmatprep.mubr.bf16.mxu1 %v460_v5  ;;  %v462_v11 = vld [vmem:[%s587_s0 + $0x28] sm:$0xff]   ;;  %v464_v13 = vld [vmem:[%s587_s0 + $0x30] sm:$0xff]   ;;  %v465_v14 = vld [vmem:[%s587_s0 + $0x18] sm:$0xff]  }
   0x6   :  { %v466_v15 = vld [vmem:[%s587_s0 + $0x38] sm:$0xff]   ;;  %v386_v16 = vld [vmem:[%s588_s2] ss:$0 sm:$0xff] }
   0x7   :  { %406 = vmatpush3.bf16.msra.mxu0 %v452_v1  ;;  %444 = vmatpush3.bf16.msra.mxu1 %v452_v1 }
   0x8   :  { %407 = vmatprep.subr.bf16.mxu0 %v453_v2  ;;  %437 = vmatprep.subr.bf16.mxu1 %v453_v2 }
   0xb   :  { %408 = vmatpush3.bf16.msra.mxu0 %v453_v2  ;;  %445 = vmatpush3.bf16.msra.mxu1 %v453_v2 }
   0xc   :  { %409 = vmatprep.subr.bf16.mxu0 %v454_v3  ;;  %438 = vmatprep.subr.bf16.mxu1 %v454_v3 }
   0xf   :  { %410 = vmatpush3.bf16.msra.mxu0 %v454_v3  ;;  %446 = vmatpush3.bf16.msra.mxu1 %v454_v3 }
  0x10   :  { %411 = vmatprep.subr.bf16.mxu0 %v455_v6  ;;  %439 = vmatprep.subr.bf16.mxu1 %v455_v6 }
  0x13   :  { %412 = vmatpush3.bf16.msra.mxu0 %v455_v6  ;;  %447 = vmatpush3.bf16.msra.mxu1 %v455_v6 }
  0x14   :  { %413 = vmatprep.subr.bf16.mxu0 %v456_v7  ;;  %440 = vmatprep.subr.bf16.mxu1 %v456_v7 }
  0x17   :  { %414 = vmatpush3.bf16.msra.mxu0 %v456_v7  ;;  %448 = vmatpush3.bf16.msra.mxu1 %v456_v7 }
  0x18   :  { %415 = vmatprep.subr.bf16.mxu0 %v457_v8  ;;  %441 = vmatprep.subr.bf16.mxu1 %v457_v8 }
  0x1b   :  { %416 = vmatpush3.bf16.msra.mxu0 %v457_v8  ;;  %449 = vmatpush3.bf16.msra.mxu1 %v457_v8 }
  0x1c   :  { %417 = vmatprep.subr.bf16.mxu0 %v458_v9  ;;  %442 = vmatprep.subr.bf16.mxu1 %v458_v9 }
  0x1f   :  { %418 = vmatpush3.bf16.msra.mxu0 %v458_v9  ;;  %450 = vmatpush3.bf16.msra.mxu1 %v458_v9 }
  0x22   :  { %420 = vmatmul.mubr.bf16.vlgmr.msra.gmra.mrb[0].mxu0 %v461_v10  ;;  %428 = vmatmul.mubr.bf16.vlgmr.msra.gmra.mrb[0].mxu1 %v462_v11 }
  0x23   :  { %423 = vmatprep.mubr.bf16.mxu0 %v463_v12  ;;  %431 = vmatprep.mubr.bf16.mxu1 %v464_v13 }
  0x2a   :  { %424 = vmatmul.mubr.bf16.gmra.mrb[4].mxu0 %v465_v14  ;;  %432 = vmatmul.mubr.bf16.gmra.mrb[4].mxu1 %v466_v15 }
  0xf5   :  { %v421_v17 = vpop.f32.mrb[0].mxu0  ;;  %v429_v18 = vpop.f32.mrb[0].mxu1 }
  0xf6   :  { %v336_v19 = vadd.f32 %v421_v17, %v386_v16  ;;  %v344_v20 = vadd.f32 %v429_v18, %v386_v16  ;;  %v213_v21 = vpop.f32.mrb[1].mxu0  ;;  %v245_v22 = vpop.f32.mrb[1].mxu1 }
  0xf7   :  { %v334_v23 = vadd.f32 %v386_v16, %v213_v21  ;;  %v342_v24 = vadd.f32 %v386_v16, %v245_v22  ;;  %v422_v25 = vpop.f32.mrb[2].mxu0  ;;  %v430_v26 = vpop.f32.mrb[2].mxu1 }
  0xf8   :  { %352 = vst [vmem:[%s589_s3 + $0x10] sm:$0xff] %v336_v19  ;;  %360 = vst [vmem:[%s589_s3 + $0x50] sm:$0xff] %v344_v20  ;;  %v337_v27 = vadd.f32 %v422_v25, %v386_v16  ;;  %v345_v28 = vadd.f32 %v430_v26, %v386_v16  ;;  %v216_v29 = vpop.f32.mrb[3].mxu0  ;;  %v248_v30 = vpop.f32.mrb[3].mxu1 }
  0xf9   :  { %350 = vst [vmem:[%s589_s3] sm:$0xff] %v334_v23  ;;  %358 = vst [vmem:[%s589_s3 + $0x40] sm:$0xff] %v342_v24  ;;  %v335_v31 = vadd.f32 %v386_v16, %v216_v29  ;;  %v343_v32 = vadd.f32 %v386_v16, %v248_v30 }
  0xfa   :  { %353 = vst [vmem:[%s589_s3 + $0x18] sm:$0xff] %v337_v27  ;;  %361 = vst [vmem:[%s589_s3 + $0x58] sm:$0xff] %v345_v28 }
  0xfb   :  { %351 = vst [vmem:[%s589_s3 + $0x8] sm:$0xff] %v335_v31  ;;  %359 = vst [vmem:[%s589_s3 + $0x48] sm:$0xff] %v343_v32 }
  0xfd   :  { %v425_v33 = vpop.f32.mrb[4].mxu0  ;;  %v433_v34 = vpop.f32.mrb[4].mxu1 }
  0xfe   :  { %v340_v35 = vadd.f32 %v425_v33, %v386_v16  ;;  %v348_v36 = vadd.f32 %v433_v34, %v386_v16  ;;  %v229_v37 = vpop.f32.mrb[5].mxu0  ;;  %v261_v38 = vpop.f32.mrb[5].mxu1 }
  0xff   :  { %v338_v39 = vadd.f32 %v386_v16, %v229_v37  ;;  %v346_v40 = vadd.f32 %v386_v16, %v261_v38  ;;  %v426_v41 = vpop.f32.mrb[6].mxu0  ;;  %v434_v42 = vpop.f32.mrb[6].mxu1 }
 0x100   :  { %356 = vst [vmem:[%s589_s3 + $0x30] sm:$0xff] %v340_v35  ;;  %364 = vst [vmem:[%s589_s3 + $0x70] sm:$0xff] %v348_v36  ;;  %v341_v43 = vadd.f32 %v426_v41, %v386_v16  ;;  %v349_v44 = vadd.f32 %v434_v42, %v386_v16  ;;  %v232_v45 = vpop.f32.mrb[7].mxu0  ;;  %v264_v46 = vpop.f32.mrb[7].mxu1 }
 0x101   :  { %354 = vst [vmem:[%s589_s3 + $0x20] sm:$0xff] %v338_v39  ;;  %362 = vst [vmem:[%s589_s3 + $0x60] sm:$0xff] %v346_v40  ;;  %v339_v47 = vadd.f32 %v386_v16, %v232_v45  ;;  %v347_v48 = vadd.f32 %v386_v16, %v264_v46 }
 0x102   :  { %357 = vst [vmem:[%s589_s3 + $0x38] sm:$0xff] %v341_v43  ;;  %365 = vst [vmem:[%s589_s3 + $0x78] sm:$0xff] %v349_v44 }
 0x103   :  { %355 = vst [vmem:[%s589_s3 + $0x28] sm:$0xff] %v339_v47  ;;  %363 = vst [vmem:[%s589_s3 + $0x68] sm:$0xff] %v347_v48 }

// kernel: quality_net_forward.29
= control target key start
LH: loop header
LB: loop body
LE: loop exit
PB: predicated region body
PF: predicated region fallthrough
CT: control target
= control target key end

     0   :  { %s1609_s12 = smov 0   ;;  %s1611_s13 = smov 0   ;;  %s1863_s0 = inlined_call_operand.vmem [shape: bf16[128,1024], index: 0, kind: input, shape index: {}]   ;;  %s1864_s1 = inlined_call_operand.vmem [shape: bf16[1024,128], index: 1, kind: input, shape index: {}]   ;;  %s1865_s2 = inlined_call_operand.vmem [shape: f32[1,128], index: 2, kind: input, shape index: {}]   ;;  %s1866_s3 = inlined_call_operand.vmem [shape: f32[128,128], index: 3, kind: output, shape index: {}]  }
   0x1   :  { %s1613_s14 = smov 0   ;;  %s1615_s15 = smov 0  }
   0x2   :  { %s1617_s16 = smov 0  }
   0x3 LB: > { %s25_s17 = sadd.s32 1, %s1582_s15  ;;  %p48_p1 = scmp.ne.s32.totalorder %s1574_s13, %s1570_s12  ;;  %s1586_s16 = sphi %s1617_s16, %s13_s16   ;;  %s1582_s15 = sphi %s1615_s15, %s1870_s15   ;;  %s1578_s14 = sphi %s1613_s14, %s1869_s14   ;;  %s1574_s13 = sphi %s1611_s13, %s1868_s13   ;;  %s1570_s12 = sphi %s1609_s12, %s1867_s12  }
   0x4   : > { %p26_p0 = scmp.ge.s32.totalorder %s25_s17, 2  ;;  %p49_p2 = scmp.eq.s32.totalorder %s1586_s16, 0 }
   0x5   : > { %s41_s19 = sadd.s32 1, %s1574_s13  ;;  %p1219_p5 = scmp.ge.s32.totalorder %s1586_s16, 2 }
   0x6   : > { %s1872_s17 = smov (%p26_p0, %s25_s17), 0  ;;  %p50_p3 = por %p49_p2, %p48_p1 }
   0x7   : > { %s37_s18 = ssub.s32 %s1582_s15, %s1872_s17  ;;  %162 = sbr.rel (%p1219_p5) target bundleno = 34 (0x22), region = 20 }
   0x8   : > { %p39_p4 = scmp.eq.s32.totalorder %s37_s18, 0 }
   0xa   : > { %s1644_s20 = scalar_select %p39_p4, %s1574_s13, %s41_s19  }
   0xe   : > { %165 = sbr.rel (!%p50_p3) target bundleno = 34 (0x22), region = 24  ;;  %s167_s21 = sand.u32 (%p50_p3), 1, %s1574_s13  }
   0xf   : > { %s1298_s22 = sshll.u32 (%p50_p3), %s1582_s15, 4  ;;  %s1220_s23 = sshll.u32 (%p50_p3), %s167_s21, 8 }
  0x10   : > { %s1652_s26 = scalar_lea.vmem (%p50_p3), %s1863_s0, %s1298_s22  ;;  %s1657_s27 = scalar_lea.vmem (%p50_p3), [#allocation3], %s1220_s23 }
  0x11   : > { %v188_v0 = vld [vmem:[%s1652_s26] sm:$0xff] (%p50_p3)  ;;  %v190_v1 = vld [vmem:[%s1652_s26 + $0x8] sm:$0xff] (%p50_p3) }
  0x12   : > { %v192_v2 = vld [vmem:[%s1652_s26 + $0x20] sm:$0xff] (%p50_p3)  ;;  %189 = vst [vmem:[%s1657_s27] sm:$0xff] (%p50_p3), %v188_v0  ;;  %191 = vst [vmem:[%s1657_s27 + $0x8] sm:$0xff] (%p50_p3), %v190_v1  ;;  %v194_v3 = vld [vmem:[%s1652_s26 + $0x28] sm:$0xff] (%p50_p3) }
  0x13   : > { %193 = vst [vmem:[%s1657_s27 + $0x10] sm:$0xff] (%p50_p3), %v192_v2  ;;  %v196_v4 = vld [vmem:[%s1652_s26 + $0x40] sm:$0xff] (%p50_p3)  ;;  %v198_v5 = vld [vmem:[%s1652_s26 + $0x48] sm:$0xff] (%p50_p3)  ;;  %195 = vst [vmem:[%s1657_s27 + $0x18] sm:$0xff] (%p50_p3), %v194_v3 }
  0x14   : > { %197 = vst [vmem:[%s1657_s27 + $0x20] sm:$0xff] (%p50_p3), %v196_v4  ;;  %199 = vst [vmem:[%s1657_s27 + $0x28] sm:$0xff] (%p50_p3), %v198_v5  ;;  %v200_v6 = vld [vmem:[%s1652_s26 + $0x60] sm:$0xff] (%p50_p3)  ;;  %v202_v7 = vld [vmem:[%s1652_s26 + $0x68] sm:$0xff] (%p50_p3) }
  0x15   : > { %v204_v8 = vld [vmem:[%s1652_s26 + $0x80] sm:$0xff]  ;;  %201 = vst [vmem:[%s1657_s27 + $0x30] sm:$0xff] %v200_v6  ;;  %203 = vst [vmem:[%s1657_s27 + $0x38] sm:$0xff] %v202_v7  ;;  %v206_v9 = vld [vmem:[%s1652_s26 + $0x88] sm:$0xff] }
  0x16   : > { %205 = vst [vmem:[%s1657_s27 + $0x40] sm:$0xff] %v204_v8  ;;  %v208_v10 = vld [vmem:[%s1652_s26 + $0xa0] sm:$0xff]  ;;  %v210_v11 = vld [vmem:[%s1652_s26 + $0xa8] sm:$0xff]  ;;  %207 = vst [vmem:[%s1657_s27 + $0x48] sm:$0xff] %v206_v9 }
  0x17   : > { %209 = vst [vmem:[%s1657_s27 + $0x50] sm:$0xff] %v208_v10  ;;  %211 = vst [vmem:[%s1657_s27 + $0x58] sm:$0xff] %v210_v11  ;;  %v212_v12 = vld [vmem:[%s1652_s26 + $0xc0] sm:$0xff]  ;;  %v214_v13 = vld [vmem:[%s1652_s26 + $0xc8] sm:$0xff] }
  0x18   : > { %v216_v14 = vld [vmem:[%s1652_s26 + $0xe0] sm:$0xff]  ;;  %213 = vst [vmem:[%s1657_s27 + $0x60] sm:$0xff] %v212_v12  ;;  %215 = vst [vmem:[%s1657_s27 + $0x68] sm:$0xff] %v214_v13  ;;  %v218_v15 = vld [vmem:[%s1652_s26 + $0xe8] sm:$0xff] }
  0x19   : > { %217 = vst [vmem:[%s1657_s27 + $0x70] sm:$0xff] %v216_v14  ;;  %v220_v16 = vld [vmem:[%s1652_s26 + $0x100] sm:$0xff]  ;;  %v222_v17 = vld [vmem:[%s1652_s26 + $0x108] sm:$0xff]  ;;  %219 = vst [vmem:[%s1657_s27 + $0x78] sm:$0xff] %v218_v15 }
  0x1a   : > { %221 = vst [vmem:[%s1657_s27 + $0x80] sm:$0xff] %v220_v16  ;;  %223 = vst [vmem:[%s1657_s27 + $0x88] sm:$0xff] %v222_v17  ;;  %v224_v18 = vld [vmem:[%s1652_s26 + $0x120] sm:$0xff]  ;;  %v226_v19 = vld [vmem:[%s1652_s26 + $0x128] sm:$0xff] }
  0x1b   : > { %v228_v20 = vld [vmem:[%s1652_s26 + $0x140] sm:$0xff]  ;;  %225 = vst [vmem:[%s1657_s27 + $0x90] sm:$0xff] %v224_v18  ;;  %227 = vst [vmem:[%s1657_s27 + $0x98] sm:$0xff] %v226_v19  ;;  %v230_v21 = vld [vmem:[%s1652_s26 + $0x148] sm:$0xff] }
  0x1c   : > { %229 = vst [vmem:[%s1657_s27 + $0xa0] sm:$0xff] %v228_v20  ;;  %v232_v22 = vld [vmem:[%s1652_s26 + $0x160] sm:$0xff]  ;;  %v234_v23 = vld [vmem:[%s1652_s26 + $0x168] sm:$0xff]  ;;  %231 = vst [vmem:[%s1657_s27 + $0xa8] sm:$0xff] %v230_v21 }
  0x1d   : > { %233 = vst [vmem:[%s1657_s27 + $0xb0] sm:$0xff] %v232_v22  ;;  %235 = vst [vmem:[%s1657_s27 + $0xb8] sm:$0xff] %v234_v23  ;;  %v236_v24 = vld [vmem:[%s1652_s26 + $0x180] sm:$0xff]  ;;  %v238_v25 = vld [vmem:[%s1652_s26 + $0x188] sm:$0xff] }
  0x1e   : > { %v240_v26 = vld [vmem:[%s1652_s26 + $0x1a0] sm:$0xff]  ;;  %237 = vst [vmem:[%s1657_s27 + $0xc0] sm:$0xff] %v236_v24  ;;  %239 = vst [vmem:[%s1657_s27 + $0xc8] sm:$0xff] %v238_v25  ;;  %v242_v27 = vld [vmem:[%s1652_s26 + $0x1a8] sm:$0xff] }
  0x1f   : > { %241 = vst [vmem:[%s1657_s27 + $0xd0] sm:$0xff] %v240_v26  ;;  %v244_v28 = vld [vmem:[%s1652_s26 + $0x1c0] sm:$0xff]  ;;  %v246_v29 = vld [vmem:[%s1652_s26 + $0x1c8] sm:$0xff]  ;;  %243 = vst [vmem:[%s1657_s27 + $0xd8] sm:$0xff] %v242_v27 }
  0x20   : > { %245 = vst [vmem:[%s1657_s27 + $0xe0] sm:$0xff] %v244_v28  ;;  %247 = vst [vmem:[%s1657_s27 + $0xe8] sm:$0xff] %v246_v29  ;;  %v248_v30 = vld [vmem:[%s1652_s26 + $0x1e0] sm:$0xff]  ;;  %v250_v31 = vld [vmem:[%s1652_s26 + $0x1e8] sm:$0xff] }
  0x21   : > { %249 = vst [vmem:[%s1657_s27 + $0xf0] sm:$0xff] %v248_v30  ;;  %251 = vst [vmem:[%s1657_s27 + $0xf8] sm:$0xff] %v250_v31 }
  0x22 PF: > { %p1223_p6 = scmp.ge.s32.totalorder %s1586_s16, 1  ;;  %p268_p7 = scmp.lt.s32.totalorder %s1586_s16, 3 }
  0x24   : > { %p269_p8 = pnand %p1223_p6, %p268_p7 }
  0x25   : > { %s275_s28 = sand.u32 (!%p269_p8), 1, %s1570_s12   ;;  %s1225_s29 = sshll.u32 (!%p269_p8), %s1578_s14, 6 }
  0x26   : > { %272 = sbr.rel (%p269_p8) target bundleno = 378 (0x17a), region = 51  ;;  %s1224_s30 = sshll.u32 (!%p269_p8), %s275_s28, 8 }
  0x27   : > { %p315_p9 = scmp.lt.s32.totalorder (!%p269_p8), %s1225_s29, 127  ;;  %s1729_s8 = scalar_lea.vmem (!%p269_p8), [#allocation3], %s1224_s30 }
  0x28   : > { %p1227_p10 = scmp.ne.s32.totalorder (!%p269_p8), %s1578_s14, 0 }
  0x2d   : > { %s1874_s29 = smov (!%p315_p9, %s1225_s29), 127  ;;  %339 = sbr.rel (%p1227_p10) target bundleno = 55 (0x37), region = 59 }
  0x2e   : > { %s1226_s4 = sshll.u32 %s1874_s29, 2  ;;  %v1588_v32 = vmov (!%p1227_p10), 0.0  }
  0x2f   : > { %s1727_s7 = scalar_lea.vmem %s1864_s1, %s1226_s4  ;;  %340 = vst [vmem:[#allocation2] sm:$0xff] (!%p1227_p10), %v1588_v32  ;;  %341 = vst [vmem:[#allocation2 + $0x8] sm:$0xff] (!%p1227_p10), %v1588_v32 }
  0x30   : > { %342 = vst [vmem:[#allocation2 + $0x10] sm:$0xff] (!%p1227_p10), %v1588_v32  ;;  %343 = vst [vmem:[#allocation2 + $0x18] sm:$0xff] (!%p1227_p10), %v1588_v32 }
  0x31   : > { %344 = vst [vmem:[#allocation2 + $0x20] sm:$0xff] (!%p1227_p10), %v1588_v32  ;;  %345 = vst [vmem:[#allocation2 + $0x28] sm:$0xff] (!%p1227_p10), %v1588_v32 }
  0x32   : > { %346 = vst [vmem:[#allocation2 + $0x30] sm:$0xff] (!%p1227_p10), %v1588_v32  ;;  %347 = vst [vmem:[#allocation2 + $0x38] sm:$0xff] (!%p1227_p10), %v1588_v32 }
  0x33   : > { %348 = vst [vmem:[#allocation2 + $0x40] sm:$0xff] (!%p1227_p10), %v1588_v32  ;;  %349 = vst [vmem:[#allocation2 + $0x48] sm:$0xff] (!%p1227_p10), %v1588_v32 }
  0x34   : > { %350 = vst [vmem:[#allocation2 + $0x50] sm:$0xff] %v1588_v32  ;;  %351 = vst [vmem:[#allocation2 + $0x58] sm:$0xff] %v1588_v32 }
  0x35   : > { %352 = vst [vmem:[#allocation2 + $0x60] sm:$0xff] %v1588_v32  ;;  %353 = vst [vmem:[#allocation2 + $0x68] sm:$0xff] %v1588_v32 }
  0x36   : > { %354 = vst [vmem:[#allocation2 + $0x70] sm:$0xff] %v1588_v32  ;;  %355 = vst [vmem:[#allocation2 + $0x78] sm:$0xff] %v1588_v32 }
  0x37 PF: > { %v1468_v33 = vld [vmem:[%s1727_s7 + $0x40] sm:$0xff]   ;;  %v1472_v37 = vld [vmem:[%s1727_s7 + $0x48] sm:$0xff]   ;;  %v1476_v41 = vld [vmem:[%s1727_s7 + $0x50] sm:$0xff]   ;;  %p1292_p11 = scmp.ne.s32.totalorder %s1578_s14, 1 }
  0x38   : > { %v1469_v34 = vld [vmem:[%s1727_s7 + $0xc0] sm:$0xff]   ;;  %1299 = vmatprep.subr.bf16.mxu0 %v1468_v33  ;;  %v1473_v38 = vld [vmem:[%s1727_s7 + $0xc8] sm:$0xff]   ;;  %v1477_v42 = vld [vmem:[%s1727_s7 + $0xd0] sm:$0xff]  }
  0x39   : > { %v1470_v35 = vld [vmem:[%s1727_s7] sm:$0xff]   ;;  %1363 = vmatprep.subr.bf16.mxu1 %v1469_v34  ;;  %v1474_v39 = vld [vmem:[%s1727_s7 + $0x8] sm:$0xff]   ;;  %v1478_v43 = vld [vmem:[%s1727_s7 + $0x10] sm:$0xff]  }
  0x3a   : > { %v1471_v36 = vld [vmem:[%s1727_s7 + $0x80] sm:$0xff]   ;;  %1300 = vmatpush3.bf16.msra.mxu0 %v1470_v35  ;;  %v1475_v40 = vld [vmem:[%s1727_s7 + $0x88] sm:$0xff]   ;;  %v1479_v44 = vld [vmem:[%s1727_s7 + $0x90] sm:$0xff]  }
  0x3b   : > { %1364 = vmatpush3.bf16.msra.mxu1 %v1471_v36  ;;  %1301 = vmatprep.subr.bf16.mxu0 %v1472_v37  ;;  %v1480_v45 = vld [vmem:[%s1727_s7 + $0x58] sm:$0xff]   ;;  %v1484_v49 = vld [vmem:[%s1727_s7 + $0x60] sm:$0xff]   ;;  %v1488_v53 = vld [vmem:[%s1727_s7 + $0x68] sm:$0xff]  }
  0x3c   : > { %1365 = vmatprep.subr.bf16.mxu1 %v1473_v38  ;;  %v1481_v46 = vld [vmem:[%s1727_s7 + $0xd8] sm:$0xff]   ;;  %v1485_v50 = vld [vmem:[%s1727_s7 + $0xe0] sm:$0xff]   ;;  %v1489_v54 = vld [vmem:[%s1727_s7 + $0xe8] sm:$0xff]  }
  0x3d   : > { %v1482_v47 = vld [vmem:[%s1727_s7 + $0x18] sm:$0xff]   ;;  %v1486_v51 = vld [vmem:[%s1727_s7 + $0x20] sm:$0xff]   ;;  %v1490_v55 = vld [vmem:[%s1727_s7 + $0x28] sm:$0xff]  }
  0x3e   : > { %1302 = vmatpush3.bf16.msra.mxu0 %v1474_v39  ;;  %v1483_v48 = vld [vmem:[%s1727_s7 + $0x98] sm:$0xff]   ;;  %v1487_v52 = vld [vmem:[%s1727_s7 + $0xa0] sm:$0xff]   ;;  %v1491_v56 = vld [vmem:[%s1727_s7 + $0xa8] sm:$0xff]  }
  0x3f   : > { %1366 = vmatpush3.bf16.msra.mxu1 %v1475_v40  ;;  %1303 = vmatprep.subr.bf16.mxu0 %v1476_v41  ;;  %v1492_v57 = vld [vmem:[%s1727_s7 + $0x70] sm:$0xff]   ;;  %v1496_v61 = vld [vmem:[%s1727_s7 + $0x78] sm:$0xff]  }
  0x40   : > { %1367 = vmatprep.subr.bf16.mxu1 %v1477_v42  ;;  %v1493_v58 = vld [vmem:[%s1727_s7 + $0xf0] sm:$0xff]   ;;  %v1497_v62 = vld [vmem:[%s1727_s7 + $0xf8] sm:$0xff]   ;;  %v356_v42 = vld [vmem:[#allocation2] sm:$0xff] }
  0x41   : > { %v1494_v59 = vld [vmem:[%s1727_s7 + $0x30] sm:$0xff]   ;;  %v1498_v63 = vld [vmem:[%s1727_s7 + $0x38] sm:$0xff]  }
  0x42   : > { %1304 = vmatpush3.bf16.msra.mxu0 %v1478_v43  ;;  %v1495_v60 = vld [vmem:[%s1727_s7 + $0xb0] sm:$0xff]   ;;  %v1499_v0 = vld [vmem:[%s1727_s7 + $0xb8] sm:$0xff]  }
  0x43   : > { %1368 = vmatpush3.bf16.msra.mxu1 %v1479_v44  ;;  %1305 = vmatprep.subr.bf16.mxu0 %v1480_v45  ;;  %v1500_v1 = vld [vmem:[%s1729_s8] ss:$16 sps:$4 sm:$0xff]   ;;  %v1502_v2 = vld [vmem:[%s1729_s8 + $0x4] ss:$16 sps:$4 sm:$0xff]   ;;  %v1503_v3 = vld [vmem:[%s1729_s8 + $0x8] ss:$16 sps:$4 sm:$0xff]  }
  0x44   : > { %1369 = vmatprep.subr.bf16.mxu1 %v1481_v46  ;;  %v1505_v4 = vld [vmem:[%s1729_s8 + $0xc] ss:$16 sps:$4 sm:$0xff]   ;;  %852 = vmatprep.mubr.bf16.mxu0 %v1502_v2  ;;  %v1506_v5 = vld [vmem:[%s1729_s8 + $0x24] ss:$16 sps:$4 sm:$0xff]   ;;  %v1510_v7 = vld [vmem:[%s1729_s8 + $0x20] ss:$16 sps:$4 sm:$0xff]  }
  0x45   : > { %949 = vmatprep.mubr.bf16.mxu1 %v1505_v4  ;;  %v1508_v6 = vld [vmem:[%s1729_s8 + $0x2c] ss:$16 sps:$4 sm:$0xff]   ;;  %v1511_v8 = vld [vmem:[%s1729_s8 + $0x28] ss:$16 sps:$4 sm:$0xff]   ;;  %v1512_v9 = vld [vmem:[%s1729_s8 + $0x44] ss:$16 sps:$4 sm:$0xff]  }
  0x46   : > { %1306 = vmatpush3.bf16.msra.mxu0 %v1482_v47  ;;  %v1514_v10 = vld [vmem:[%s1729_s8 + $0x4c] ss:$16 sps:$4 sm:$0xff]   ;;  %v1516_v11 = vld [vmem:[%s1729_s8 + $0x40] ss:$16 sps:$4 sm:$0xff]   ;;  %v1517_v12 = vld [vmem:[%s1729_s8 + $0x48] ss:$16 sps:$4 sm:$0xff]  }
  0x47   : > { %1370 = vmatpush3.bf16.msra.mxu1 %v1483_v48  ;;  %1307 = vmatprep.subr.bf16.mxu0 %v1484_v49  ;;  %v1518_v13 = vld [vmem:[%s1729_s8 + $0x64] ss:$16 sps:$4 sm:$0xff]   ;;  %v1520_v14 = vld [vmem:[%s1729_s8 + $0x6c] ss:$16 sps:$4 sm:$0xff]   ;;  %v1522_v15 = vld [vmem:[%s1729_s8 + $0x60] ss:$16 sps:$4 sm:$0xff]  }
  0x48   : > { %1371 = vmatprep.subr.bf16.mxu1 %v1485_v50  ;;  %v1523_v16 = vld [vmem:[%s1729_s8 + $0x68] ss:$16 sps:$4 sm:$0xff]   ;;  %v1524_v17 = vld [vmem:[%s1729_s8 + $0x84] ss:$16 sps:$4 sm:$0xff]   ;;  %v1526_v18 = vld [vmem:[%s1729_s8 + $0x8c] ss:$16 sps:$4 sm:$0xff]  }
  0x49   : > { %v1528_v19 = vld [vmem:[%s1729_s8 + $0x80] ss:$16 sps:$4 sm:$0xff]   ;;  %v1529_v20 = vld [vmem:[%s1729_s8 + $0x88] ss:$16 sps:$4 sm:$0xff]   ;;  %v1530_v21 = vld [vmem:[%s1729_s8 + $0xa4] ss:$16 sps:$4 sm:$0xff]  }
  0x4a   : > { %1308 = vmatpush3.bf16.msra.mxu0 %v1486_v51  ;;  %v1532_v22 = vld [vmem:[%s1729_s8 + $0xac] ss:$16 sps:$4 sm:$0xff]   ;;  %v1534_v23 = vld [vmem:[%s1729_s8 + $0xa0] ss:$16 sps:$4 sm:$0xff]   ;;  %v1535_v24 = vld [vmem:[%s1729_s8 + $0xa8] ss:$16 sps:$4 sm:$0xff]  }
  0x4b   : > { %1372 = vmatpush3.bf16.msra.mxu1 %v1487_v52  ;;  %1309 = vmatprep.subr.bf16.mxu0 %v1488_v53  ;;  %v1536_v25 = vld [vmem:[%s1729_s8 + $0xc4] ss:$16 sps:$4 sm:$0xff]   ;;  %v1538_v26 = vld [vmem:[%s1729_s8 + $0xcc] ss:$16 sps:$4 sm:$0xff]   ;;  %v1540_v27 = vld [vmem:[%s1729_s8 + $0xc0] ss:$16 sps:$4 sm:$0xff]  }
  0x4c   : > { %1373 = vmatprep.subr.bf16.mxu1 %v1489_v54  ;;  %v1541_v28 = vld [vmem:[%s1729_s8 + $0xc8] ss:$16 sps:$4 sm:$0xff]   ;;  %v1542_v29 = vld [vmem:[%s1729_s8 + $0xe4] ss:$16 sps:$4 sm:$0xff]   ;;  %v1544_v30 = vld [vmem:[%s1729_s8 + $0xec] ss:$16 sps:$4 sm:$0xff]  }
  0x4d   : > { %v1546_v31 = vld [vmem:[%s1729_s8 + $0xe0] ss:$16 sps:$4 sm:$0xff]   ;;  %v1547_v32 = vld [vmem:[%s1729_s8 + $0xe8] ss:$16 sps:$4 sm:$0xff]  }
  0x4e   : > { %1310 = vmatpush3.bf16.msra.mxu0 %v1490_v55  ;;  %v357_v47 = vld [vmem:[#allocation2 + $0x8] sm:$0xff] }
  0x4f   : > { %1374 = vmatpush3.bf16.msra.mxu1 %v1491_v56  ;;  %1311 = vmatprep.subr.bf16.mxu0 %v1492_v57 }
  0x50   : > { %1375 = vmatprep.subr.bf16.mxu1 %v1493_v58 }
  0x52   : > { %1312 = vmatpush3.bf16.msra.mxu0 %v1494_v59 }
  0x53   : > { %1376 = vmatpush3.bf16.msra.mxu1 %v1495_v60  ;;  %1313 = vmatprep.subr.bf16.mxu0 %v1496_v61  ;;  %v358_v60 = vld [vmem:[#allocation2 + $0x10] sm:$0xff] }
  0x54   : > { %1377 = vmatprep.subr.bf16.mxu1 %v1497_v62 }
  0x56   : > { %1314 = vmatpush3.bf16.msra.mxu0 %v1498_v63 }
  0x57   : > { %1378 = vmatpush3.bf16.msra.mxu1 %v1499_v0 }
  0x59   : > { %853 = vmatmul.mubr.bf16.vlgmr.msra.gmra.mrb[0].mxu0 %v1500_v1  ;;  %v359_v1 = vld [vmem:[#allocation2 + $0x18] sm:$0xff] }
  0x5a   : > { %950 = vmatmul.mubr.bf16.vlgmr.msra.gmra.mrb[0].mxu1 %v1503_v3  ;;  %860 = vmatprep.mubr.bf16.mxu0 %v1506_v5 }
  0x5b   : > { %957 = vmatprep.mubr.bf16.mxu1 %v1508_v6 }
  0x61   : > { %861 = vmatmul.mubr.bf16.gmra.mrb[4].mxu0 %v1510_v7 }
  0x62   : > { %958 = vmatmul.mubr.bf16.gmra.mrb[4].mxu1 %v1511_v8  ;;  %868 = vmatprep.mubr.bf16.mxu0 %v1512_v9 }
  0x63   : > { %965 = vmatprep.mubr.bf16.mxu1 %v1514_v10 }
  0x69   : > { %869 = vmatmul.mubr.bf16.gmra.mrb[8].mxu0 %v1516_v11 }
  0x6a   : > { %966 = vmatmul.mubr.bf16.gmra.mrb[8].mxu1 %v1517_v12  ;;  %876 = vmatprep.mubr.bf16.mxu0 %v1518_v13 }
  0x6b   : > { %973 = vmatprep.mubr.bf16.mxu1 %v1520_v14  ;;  %v360_v14 = vld [vmem:[#allocation2 + $0x20] sm:$0xff] }
  0x71   : > { %877 = vmatmul.mubr.bf16.gmra.mrb[12].mxu0 %v1522_v15 }
  0x72   : > { %974 = vmatmul.mubr.bf16.gmra.mrb[12].mxu1 %v1523_v16  ;;  %884 = vmatprep.mubr.bf16.mxu0 %v1524_v17 }
  0x73   : > { %981 = vmatprep.mubr.bf16.mxu1 %v1526_v18 }
  0x79   : > { %885 = vmatmul.mubr.bf16.gmra.mrb[16].mxu0 %v1528_v19  ;;  %v361_v19 = vld [vmem:[#allocation2 + $0x28] sm:$0xff] }
  0x7a   : > { %982 = vmatmul.mubr.bf16.gmra.mrb[16].mxu1 %v1529_v20  ;;  %892 = vmatprep.mubr.bf16.mxu0 %v1530_v21 }
  0x7b   : > { %989 = vmatprep.mubr.bf16.mxu1 %v1532_v22 }
  0x81   : > { %893 = vmatmul.mubr.bf16.gmra.mrb[20].mxu0 %v1534_v23 }
  0x82   : > { %990 = vmatmul.mubr.bf16.gmra.mrb[20].mxu1 %v1535_v24  ;;  %900 = vmatprep.mubr.bf16.mxu0 %v1536_v25 }
  0x83   : > { %997 = vmatprep.mubr.bf16.mxu1 %v1538_v26 }
  0x89   : > { %901 = vmatmul.mubr.bf16.gmra.mrb[24].mxu0 %v1540_v27 }
  0x8a   : > { %998 = vmatmul.mubr.bf16.gmra.mrb[24].mxu1 %v1541_v28  ;;  %908 = vmatprep.mubr.bf16.mxu0 %v1542_v29 }
  0x8b   : > { %1005 = vmatprep.mubr.bf16.mxu1 %v1544_v30 }
  0x91   : > { %909 = vmatmul.mubr.bf16.gmra.mrb[28].mxu0 %v1546_v31 }
  0x92   : > { %1006 = vmatmul.mubr.bf16.gmra.mrb[28].mxu1 %v1547_v32  ;;  %v362_v32 = vld [vmem:[#allocation2 + $0x30] sm:$0xff] }
 0x12c   : > { %v1315_v33 = vpop.f32.mrb[0].mxu0 }
 0x12d   : > { %v1379_v34 = vpop.f32.mrb[0].mxu1  ;;  %v1316_v35 = vpop.f32.mrb[1].mxu0 }
 0x12e   : > { %v1317_v36 = vadd.f32 %v1316_v35, %v1315_v33  ;;  %v1380_v37 = vpop.f32.mrb[1].mxu1  ;;  %v1318_v38 = vpop.f32.mrb[2].mxu0 }
 0x12f   : > { %v1381_v39 = vadd.f32 %v1380_v37, %v1379_v34  ;;  %v1382_v40 = vpop.f32.mrb[2].mxu1  ;;  %v1319_v41 = vpop.f32.mrb[3].mxu0  ;;  %v363_v37 = vld [vmem:[#allocation2 + $0x38] sm:$0xff] }
 0x130   : > { %v1320_v43 = vadd.f32 %v1319_v41, %v1318_v38  ;;  %v1383_v44 = vpop.f32.mrb[3].mxu1 }
 0x131   : > { %v952_v45 = vadd.f32 %v1381_v39, %v1317_v36  ;;  %v1384_v46 = vadd.f32 %v1383_v44, %v1382_v40 }
 0x133   : > { %v1014_v48 = vadd.f32 %v952_v45, %v356_v42  ;;  %v955_v49 = vadd.f32 %v1384_v46, %v1320_v43 }
 0x134   : > { %v1321_v50 = vpop.f32.mrb[4].mxu0 }
 0x135   : > { %1030 = vst [vmem:[#allocation2] sm:$0xff] %v1014_v48  ;;  %v1015_v51 = vadd.f32 %v955_v49, %v357_v47  ;;  %v1385_v52 = vpop.f32.mrb[4].mxu1  ;;  %v1322_v53 = vpop.f32.mrb[5].mxu0 }
 0x136   : > { %v1323_v54 = vadd.f32 %v1322_v53, %v1321_v50  ;;  %v1386_v55 = vpop.f32.mrb[5].mxu1  ;;  %v1324_v56 = vpop.f32.mrb[6].mxu0  ;;  %v364_v50 = vld [vmem:[#allocation2 + $0x40] sm:$0xff] }
 0x137   : > { %1031 = vst [vmem:[#allocation2 + $0x8] sm:$0xff] %v1015_v51  ;;  %v1387_v57 = vadd.f32 %v1386_v55, %v1385_v52  ;;  %v1388_v58 = vpop.f32.mrb[6].mxu1  ;;  %v1325_v59 = vpop.f32.mrb[7].mxu0  ;;  %v365_v55 = vld [vmem:[#allocation2 + $0x48] sm:$0xff] }
 0x138   : > { %v1326_v61 = vadd.f32 %v1325_v59, %v1324_v56  ;;  %v1389_v62 = vpop.f32.mrb[7].mxu1 }
 0x139   : > { %v960_v63 = vadd.f32 %v1387_v57, %v1323_v54  ;;  %v1390_v0 = vadd.f32 %v1389_v62, %v1388_v58 }
 0x13b   : > { %v1016_v2 = vadd.f32 %v960_v63, %v358_v60  ;;  %v963_v3 = vadd.f32 %v1390_v0, %v1326_v61 }
 0x13c   : > { %v1327_v4 = vpop.f32.mrb[8].mxu0 }
 0x13d   : > { %1032 = vst [vmem:[#allocation2 + $0x10] sm:$0xff] %v1016_v2  ;;  %v1017_v5 = vadd.f32 %v963_v3, %v359_v1  ;;  %v1391_v6 = vpop.f32.mrb[8].mxu1  ;;  %v1328_v7 = vpop.f32.mrb[9].mxu0 }
 0x13e   : > { %v1329_v8 = vadd.f32 %v1328_v7, %v1327_v4  ;;  %v1392_v9 = vpop.f32.mrb[9].mxu1  ;;  %v1330_v10 = vpop.f32.mrb[10].mxu0  ;;  %v366_v4 = vld [vmem:[#allocation2 + $0x50] sm:$0xff] }
 0x13f   : > { %1033 = vst [vmem:[#allocation2 + $0x18] sm:$0xff] %v1017_v5  ;;  %v1393_v11 = vadd.f32 %v1392_v9, %v1391_v6  ;;  %v1394_v12 = vpop.f32.mrb[10].mxu1  ;;  %v1331_v13 = vpop.f32.mrb[11].mxu0  ;;  %v367_v9 = vld [vmem:[#allocation2 + $0x58] sm:$0xff] }
 0x140   : > { %v1332_v15 = vadd.f32 %v1331_v13, %v1330_v10  ;;  %v1395_v16 = vpop.f32.mrb[11].mxu1 }
 0x141   : > { %v968_v17 = vadd.f32 %v1393_v11, %v1329_v8  ;;  %v1396_v18 = vadd.f32 %v1395_v16, %v1394_v12 }
 0x143   : > { %v1018_v20 = vadd.f32 %v968_v17, %v360_v14  ;;  %v971_v21 = vadd.f32 %v1396_v18, %v1332_v15 }
 0x144   : > { %v1333_v22 = vpop.f32.mrb[12].mxu0 }
 0x145   : > { %1034 = vst [vmem:[#allocation2 + $0x20] sm:$0xff] %v1018_v20  ;;  %v1019_v23 = vadd.f32 %v971_v21, %v361_v19  ;;  %v1397_v24 = vpop.f32.mrb[12].mxu1  ;;  %v1334_v25 = vpop.f32.mrb[13].mxu0 }
 0x146   : > { %v1335_v26 = vadd.f32 %v1334_v25, %v1333_v22  ;;  %v1398_v27 = vpop.f32.mrb[13].mxu1  ;;  %v1336_v28 = vpop.f32.mrb[14].mxu0  ;;  %v368_v22 = vld [vmem:[#allocation2 + $0x60] sm:$0xff] }
 0x147   : > { %1035 = vst [vmem:[#allocation2 + $0x28] sm:$0xff] %v1019_v23  ;;  %v1399_v29 = vadd.f32 %v1398_v27, %v1397_v24  ;;  %v1400_v30 = vpop.f32.mrb[14].mxu1  ;;  %v1337_v31 = vpop.f32.mrb[15].mxu0  ;;  %v369_v27 = vld [vmem:[#allocation2 + $0x68] sm:$0xff] }
 0x148   : > { %v1338_v33 = vadd.f32 %v1337_v31, %v1336_v28  ;;  %v1401_v34 = vpop.f32.mrb[15].mxu1 }
 0x149   : > { %v976_v35 = vadd.f32 %v1399_v29, %v1335_v26  ;;  %v1402_v36 = vadd.f32 %v1401_v34, %v1400_v30 }
 0x14b   : > { %v1020_v38 = vadd.f32 %v976_v35, %v362_v32  ;;  %v979_v39 = vadd.f32 %v1402_v36, %v1338_v33 }
 0x14c   : > { %v1339_v40 = vpop.f32.mrb[16].mxu0 }
 0x14d   : > { %1036 = vst [vmem:[#allocation2 + $0x30] sm:$0xff] %v1020_v38  ;;  %v1021_v41 = vadd.f32 %v979_v39, %v363_v37  ;;  %v1403_v42 = vpop.f32.mrb[16].mxu1  ;;  %v1340_v43 = vpop.f32.mrb[17].mxu0 }
 0x14e   : > { %v1341_v44 = vadd.f32 %v1340_v43, %v1339_v40  ;;  %v1404_v45 = vpop.f32.mrb[17].mxu1  ;;  %v1342_v46 = vpop.f32.mrb[18].mxu0  ;;  %v370_v40 = vld [vmem:[#allocation2 + $0x70] sm:$0xff] }
 0x14f   : > { %1037 = vst [vmem:[#allocation2 + $0x38] sm:$0xff] %v1021_v41  ;;  %v1405_v47 = vadd.f32 %v1404_v45, %v1403_v42  ;;  %v1406_v48 = vpop.f32.mrb[18].mxu1  ;;  %v1343_v49 = vpop.f32.mrb[19].mxu0  ;;  %v371_v45 = vld [vmem:[#allocation2 + $0x78] sm:$0xff] }
 0x150   : > { %v1344_v51 = vadd.f32 %v1343_v49, %v1342_v46  ;;  %v1407_v52 = vpop.f32.mrb[19].mxu1  ;;  %v1050_v49 = vld [vmem:[#allocation2] sm:$0xff] (!%p1292_p11) }
 0x151   : > { %v984_v53 = vadd.f32 %v1405_v47, %v1341_v44  ;;  %v1408_v54 = vadd.f32 %v1407_v52, %v1406_v48 }
 0x153   : > { %v1022_v56 = vadd.f32 %v984_v53, %v364_v50  ;;  %v987_v57 = vadd.f32 %v1408_v54, %v1344_v51  ;;  %v1293_v50 = vld [vmem:[%s1865_s2] ss:$0 sm:$0xff] (!%p1292_p11)  ;;  %v1051_v51 = vld [vmem:[#allocation2 + $0x8] sm:$0xff] (!%p1292_p11)  ;;  %v1052_v54 = vld [vmem:[#allocation2 + $0x10] sm:$0xff] (!%p1292_p11) }
 0x154   : > { %v1345_v58 = vpop.f32.mrb[20].mxu0  ;;  %v1073_v52 = vadd.f32 (!%p1292_p11), %v1293_v50, %v1050_v49  ;;  %v1074_v53 = vadd.f32 (!%p1292_p11), %v1293_v50, %v1051_v51 }
 0x155   : > { %1038 = vst [vmem:[#allocation2 + $0x40] sm:$0xff] %v1022_v56  ;;  %v1023_v59 = vadd.f32 %v987_v57, %v365_v55  ;;  %v1409_v60 = vpop.f32.mrb[20].mxu1  ;;  %v1346_v61 = vpop.f32.mrb[21].mxu0  ;;  %v1053_v55 = vld [vmem:[#allocation2 + $0x18] sm:$0xff] (!%p1292_p11)  ;;  %v1054_v56 = vld [vmem:[#allocation2 + $0x20] sm:$0xff] (!%p1292_p11)  ;;  %v1075_v57 = vadd.f32 (!%p1292_p11), %v1293_v50, %v1052_v54 }
 0x156   : > { %v1347_v62 = vadd.f32 %v1346_v61, %v1345_v58  ;;  %v1410_v63 = vpop.f32.mrb[21].mxu1  ;;  %v1348_v0 = vpop.f32.mrb[22].mxu0  ;;  %v1076_v58 = vadd.f32 (!%p1292_p11), %v1293_v50, %v1053_v55  ;;  %v1056_v61 = vld [vmem:[#allocation2 + $0x30] sm:$0xff] (!%p1292_p11)  ;;  %1089 = vst [vmem:[%s1866_s3] sm:$0xff] (!%p1292_p11), %v1073_v52  ;;  %1090 = vst [vmem:[%s1866_s3 + $0x8] sm:$0xff] (!%p1292_p11), %v1074_v53 }
 0x157   : > { %1039 = vst [vmem:[#allocation2 + $0x48] sm:$0xff] %v1023_v59  ;;  %v1411_v1 = vadd.f32 %v1410_v63, %v1409_v60  ;;  %v1412_v2 = vpop.f32.mrb[22].mxu1  ;;  %v1349_v3 = vpop.f32.mrb[23].mxu0  ;;  %v1077_v59 = vadd.f32 (!%p1292_p11), %v1293_v50, %v1054_v56  ;;  %v1055_v60 = vld [vmem:[#allocation2 + $0x28] sm:$0xff] (!%p1292_p11)  ;;  %1091 = vst [vmem:[%s1866_s3 + $0x10] sm:$0xff] (!%p1292_p11), %v1075_v57 }
 0x158   : > { %v1350_v5 = vadd.f32 %v1349_v3, %v1348_v0  ;;  %v1413_v6 = vpop.f32.mrb[23].mxu1  ;;  %v1078_v63 = vadd.f32 (!%p1292_p11), %v1293_v50, %v1055_v60  ;;  %v1079_v0 = vadd.f32 (!%p1292_p11), %v1293_v50, %v1056_v61  ;;  %1092 = vst [vmem:[%s1866_s3 + $0x18] sm:$0xff] (!%p1292_p11), %v1076_v58 }
 0x159   : > { %v992_v7 = vadd.f32 %v1411_v1, %v1347_v62  ;;  %v1414_v8 = vadd.f32 %v1413_v6, %v1412_v2  ;;  %v1057_v62 = vld [vmem:[#allocation2 + $0x38] sm:$0xff] (!%p1292_p11)  ;;  %1093 = vst [vmem:[%s1866_s3 + $0x20] sm:$0xff] (!%p1292_p11), %v1077_v59 }
 0x15a   : > { %v1080_v1 = vadd.f32 (!%p1292_p11), %v1293_v50, %v1057_v62  ;;  %1094 = vst [vmem:[%s1866_s3 + $0x28] sm:$0xff] (!%p1292_p11), %v1078_v63  ;;  %1095 = vst [vmem:[%s1866_s3 + $0x30] sm:$0xff] (!%p1292_p11), %v1079_v0 }
 0x15b   : > { %v1024_v10 = vadd.f32 %v992_v7, %v366_v4  ;;  %v995_v11 = vadd.f32 %v1414_v8, %v1350_v5 }
 0x15c   : > { %v1351_v12 = vpop.f32.mrb[24].mxu0  ;;  %v1058_v2 = vld [vmem:[#allocation2 + $0x40] sm:$0xff] (!%p1292_p11)  ;;  %1096 = vst [vmem:[%s1866_s3 + $0x38] sm:$0xff] (!%p1292_p11), %v1080_v1 }
 0x15d   : > { %1040 = vst [vmem:[#allocation2 + $0x50] sm:$0xff] %v1024_v10  ;;  %v1025_v13 = vadd.f32 %v995_v11, %v367_v9  ;;  %v1415_v14 = vpop.f32.mrb[24].mxu1  ;;  %v1352_v15 = vpop.f32.mrb[25].mxu0  ;;  %v1081_v5 = vadd.f32 (!%p1292_p11), %v1293_v50, %v1058_v2 }
 0x15e   : > { %v1353_v16 = vadd.f32 %v1352_v15, %v1351_v12  ;;  %v1416_v17 = vpop.f32.mrb[25].mxu1  ;;  %v1354_v18 = vpop.f32.mrb[26].mxu0  ;;  %v1059_v3 = vld [vmem:[#allocation2 + $0x48] sm:$0xff] (!%p1292_p11) }
 0x15f   : > { %1041 = vst [vmem:[#allocation2 + $0x58] sm:$0xff] %v1025_v13  ;;  %v1417_v19 = vadd.f32 %v1416_v17, %v1415_v14  ;;  %v1418_v20 = vpop.f32.mrb[26].mxu1  ;;  %v1355_v21 = vpop.f32.mrb[27].mxu0  ;;  %v1082_v6 = vadd.f32 (!%p1292_p11), %v1293_v50, %v1059_v3  ;;  %1097 = vst [vmem:[%s1866_s3 + $0x40] sm:$0xff] (!%p1292_p11), %v1081_v5 }
 0x160   : > { %v1356_v23 = vadd.f32 %v1355_v21, %v1354_v18  ;;  %v1419_v24 = vpop.f32.mrb[27].mxu1 }
 0x161   : > { %v1000_v25 = vadd.f32 %v1417_v19, %v1353_v16  ;;  %v1420_v26 = vadd.f32 %v1419_v24, %v1418_v20  ;;  %1098 = vst [vmem:[%s1866_s3 + $0x48] sm:$0xff] (!%p1292_p11), %v1082_v6 }
 0x163   : > { %v1026_v28 = vadd.f32 %v1000_v25, %v368_v22  ;;  %v1003_v29 = vadd.f32 %v1420_v26, %v1356_v23 }
 0x164   : > { %v1357_v30 = vpop.f32.mrb[28].mxu0  ;;  %v1060_v4 = vld [vmem:[#allocation2 + $0x50] sm:$0xff] (!%p1292_p11) }
 0x165   : > { %1042 = vst [vmem:[#allocation2 + $0x60] sm:$0xff] %v1026_v28  ;;  %v1027_v31 = vadd.f32 %v1003_v29, %v369_v27  ;;  %v1421_v32 = vpop.f32.mrb[28].mxu1  ;;  %v1358_v33 = vpop.f32.mrb[29].mxu0  ;;  %v1083_v7 = vadd.f32 (!%p1292_p11), %v1293_v50, %v1060_v4 }
 0x166   : > { %v1359_v34 = vadd.f32 %v1358_v33, %v1357_v30  ;;  %v1422_v35 = vpop.f32.mrb[29].mxu1  ;;  %v1360_v36 = vpop.f32.mrb[30].mxu0  ;;  %v1061_v8 = vld [vmem:[#allocation2 + $0x58] sm:$0xff] (!%p1292_p11) }
 0x167   : > { %1043 = vst [vmem:[#allocation2 + $0x68] sm:$0xff] %v1027_v31  ;;  %v1423_v37 = vadd.f32 %v1422_v35, %v1421_v32  ;;  %v1424_v38 = vpop.f32.mrb[30].mxu1  ;;  %v1361_v39 = vpop.f32.mrb[31].mxu0  ;;  %v1084_v11 = vadd.f32 (!%p1292_p11), %v1293_v50, %v1061_v8  ;;  %1099 = vst [vmem:[%s1866_s3 + $0x50] sm:$0xff] (!%p1292_p11), %v1083_v7 }
 0x168   : > { %v1362_v41 = vadd.f32 %v1361_v39, %v1360_v36  ;;  %v1425_v42 = vpop.f32.mrb[31].mxu1 }
 0x169   : > { %v1008_v43 = vadd.f32 %v1423_v37, %v1359_v34  ;;  %v1426_v44 = vadd.f32 %v1425_v42, %v1424_v38  ;;  %1049 = sbr.rel (%p1292_p11) target bundleno = 378 (0x17a), region = 63  ;;  %1100 = vst [vmem:[%s1866_s3 + $0x58] sm:$0xff] (!%p1292_p11), %v1084_v11 }
 0x16b   : > { %v1028_v46 = vadd.f32 %v1008_v43, %v370_v40  ;;  %v1011_v47 = vadd.f32 %v1426_v44, %v1362_v41 }
 0x16c   : > { %v1062_v9 = vld [vmem:[#allocation2 + $0x60] sm:$0xff] (!%p1292_p11) }
 0x16d   : > { %1044 = vst [vmem:[#allocation2 + $0x70] sm:$0xff] %v1028_v46  ;;  %v1029_v48 = vadd.f32 %v1011_v47, %v371_v45  ;;  %v1085_v12 = vadd.f32 (!%p1292_p11), %v1293_v50, %v1062_v9 }
 0x16e   : > { %v1063_v10 = vld [vmem:[#allocation2 + $0x68] sm:$0xff] (!%p1292_p11) }
 0x16f   : > { %1045 = vst [vmem:[#allocation2 + $0x78] sm:$0xff] %v1029_v48  ;;  %v1086_v13 = vadd.f32 (!%p1292_p11), %v1293_v50, %v1063_v10  ;;  %1101 = vst [vmem:[%s1866_s3 + $0x60] sm:$0xff] (!%p1292_p11), %v1085_v12 }
 0x171   : > { %1102 = vst [vmem:[%s1866_s3 + $0x68] sm:$0xff] %v1086_v13 }
 0x174   : > { %v1064_v14 = vld [vmem:[#allocation2 + $0x70] sm:$0xff] }
 0x175   : > { %v1087_v16 = vadd.f32 %v1293_v50, %v1064_v14 }
 0x176   : > { %v1065_v15 = vld [vmem:[#allocation2 + $0x78] sm:$0xff] }
 0x177   : > { %v1088_v17 = vadd.f32 %v1293_v50, %v1065_v15  ;;  %1103 = vst [vmem:[%s1866_s3 + $0x70] sm:$0xff] %v1087_v16 }
 0x179   : > { %1104 = vst [vmem:[%s1866_s3 + $0x78] sm:$0xff] %v1088_v17 }
 0x17a PF: > { %s13_s16 = sadd.s32 1, %s1586_s16   ;;  %s1867_s12 = smov %s1574_s13 }
 0x17b   : > { %p10_p12 = scmp.ge.s32.totalorder %s13_s16, 4   ;;  %s1868_s13 = smov %s1644_s20 }
 0x17c   : > { %s1869_s14 = smov %s1582_s15  ;;  %s1870_s15 = smov %s1872_s17 }
 0x17d   :  { %12 = sbr.rel (!%p10_p12) target bundleno = 3 (0x3), region = 104 }

// kernel: quality_net_forward.32
= control target key start
LH: loop header
LB: loop body
LE: loop exit
PB: predicated region body
PF: predicated region fallthrough
CT: control target
= control target key end

     0   :  { %s1109_s12 = smov 0   ;;  %s1111_s13 = smov 0   ;;  %s1235_s0 = inlined_call_operand.vmem [shape: bf16[32,1024], index: 0, kind: input, shape index: {}]   ;;  %s1236_s1 = inlined_call_operand.vmem [shape: bf16[1024,128], index: 1, kind: input, shape index: {}]   ;;  %s1237_s2 = inlined_call_operand.vmem [shape: f32[1,128], index: 2, kind: input, shape index: {}]   ;;  %s1238_s3 = inlined_call_operand.vmem [shape: f32[32,128], index: 3, kind: output, shape index: {}]  }
   0x1   :  { %s1113_s14 = smov 0   ;;  %s1115_s15 = smov 0  }
   0x2   :  { %s1117_s16 = smov 0  }
   0x3 LB: > { %s25_s17 = sadd.s32 1, %s1082_s15  ;;  %p48_p1 = scmp.ne.s32.totalorder %s1074_s13, %s1070_s12  ;;  %s1086_s16 = sphi %s1117_s16, %s13_s16   ;;  %s1082_s15 = sphi %s1115_s15, %s1242_s15   ;;  %s1078_s14 = sphi %s1113_s14, %s1241_s14   ;;  %s1074_s13 = sphi %s1111_s13, %s1240_s13   ;;  %s1070_s12 = sphi %s1109_s12, %s1239_s12  }
   0x4   : > { %p26_p0 = scmp.ge.s32.totalorder %s25_s17, 2  ;;  %p49_p2 = scmp.eq.s32.totalorder %s1086_s16, 0 }
   0x5   : > { %s41_s19 = sadd.s32 1, %s1074_s13  ;;  %p851_p5 = scmp.ge.s32.totalorder %s1086_s16, 2 }
   0x6   : > { %s1244_s17 = smov (%p26_p0, %s25_s17), 0  ;;  %p50_p3 = por %p49_p2, %p48_p1 }
   0x7   : > { %s37_s18 = ssub.s32 %s1082_s15, %s1244_s17  ;;  %162 = sbr.rel (%p851_p5) target bundleno = 22 (0x16), region = 20 }
   0x8   : > { %p39_p4 = scmp.eq.s32.totalorder %s37_s18, 0 }
   0xa   : > { %s1144_s20 = scalar_select %p39_p4, %s1074_s13, %s41_s19  }
   0xe   : > { %165 = sbr.rel (!%p50_p3) target bundleno = 22 (0x16), region = 24  ;;  %s167_s21 = sand.u32 (%p50_p3), 1, %s1074_s13  }
   0xf   : > { %s906_s22 = sshll.u32 (%p50_p3), %s1082_s15, 4  ;;  %s852_s23 = sshll.u32 (%p50_p3), %s167_s21, 6 }
  0x10   : > { %s175_s26 = scalar_lea.vmem (%p50_p3), %s1235_s0, %s906_s22  ;;  %s169_s27 = scalar_lea.vmem (%p50_p3), [#allocation3], %s852_s23 }
  0x11   : > { %v188_v0 = vld [vmem:[%s175_s26] sm:$0xff] (%p50_p3)  ;;  %v190_v1 = vld [vmem:[%s175_s26 + $0x8] sm:$0xff] (%p50_p3) }
  0x12   : > { %v192_v2 = vld [vmem:[%s175_s26 + $0x20] sm:$0xff] (%p50_p3)  ;;  %189 = vst [vmem:[%s169_s27] sm:$0xff] (%p50_p3), %v188_v0  ;;  %191 = vst [vmem:[%s169_s27 + $0x8] sm:$0xff] (%p50_p3), %v190_v1  ;;  %v194_v3 = vld [vmem:[%s175_s26 + $0x28] sm:$0xff] (%p50_p3) }
  0x13   : > { %193 = vst [vmem:[%s169_s27 + $0x10] sm:$0xff] (%p50_p3), %v192_v2  ;;  %v196_v4 = vld [vmem:[%s175_s26 + $0x40] sm:$0xff] (%p50_p3)  ;;  %v198_v5 = vld [vmem:[%s175_s26 + $0x48] sm:$0xff] (%p50_p3)  ;;  %195 = vst [vmem:[%s169_s27 + $0x18] sm:$0xff] (%p50_p3), %v194_v3 }
  0x14   : > { %197 = vst [vmem:[%s169_s27 + $0x20] sm:$0xff] (%p50_p3), %v196_v4  ;;  %199 = vst [vmem:[%s169_s27 + $0x28] sm:$0xff] (%p50_p3), %v198_v5  ;;  %v200_v6 = vld [vmem:[%s175_s26 + $0x60] sm:$0xff] (%p50_p3)  ;;  %v202_v7 = vld [vmem:[%s175_s26 + $0x68] sm:$0xff] (%p50_p3) }
  0x15   : > { %201 = vst [vmem:[%s169_s27 + $0x30] sm:$0xff] %v200_v6  ;;  %203 = vst [vmem:[%s169_s27 + $0x38] sm:$0xff] %v202_v7 }
  0x16 PF: > { %p855_p6 = scmp.ge.s32.totalorder %s1086_s16, 1  ;;  %p220_p7 = scmp.lt.s32.totalorder %s1086_s16, 3 }
  0x18   : > { %p221_p8 = pnand %p855_p6, %p220_p7 }
  0x19   : > { %s227_s28 = sand.u32 (!%p221_p8), 1, %s1070_s12   ;;  %s857_s29 = sshll.u32 (!%p221_p8), %s1078_s14, 6 }
  0x1a   : > { %224 = sbr.rel (%p221_p8) target bundleno = 317 (0x13d), region = 51  ;;  %s856_s30 = sshll.u32 (!%p221_p8), %s227_s28, 6 }
  0x1b   : > { %p267_p9 = scmp.lt.s32.totalorder (!%p221_p8), %s857_s29, 127  ;;  %s1161_s8 = scalar_lea.vmem (!%p221_p8), [#allocation3], %s856_s30 }
  0x1c   : > { %p859_p10 = scmp.ne.s32.totalorder (!%p221_p8), %s1078_s14, 0 }
  0x21   : > { %s1246_s29 = smov (!%p267_p9, %s857_s29), 127  ;;  %291 = sbr.rel (%p859_p10) target bundleno = 40 (0x28), region = 59 }
  0x22   : > { %s858_s4 = sshll.u32 %s1246_s29, 2  ;;  %v1088_v8 = vmov (!%p859_p10), 0.0  }
  0x23   : > { %s1159_s7 = scalar_lea.vmem %s1236_s1, %s858_s4  ;;  %292 = vst [vmem:[#allocation2] sm:$0xff] (!%p859_p10), %v1088_v8  ;;  %293 = vst [vmem:[#allocation2 + $0x8] sm:$0xff] (!%p859_p10), %v1088_v8 }
  0x24   : > { %294 = vst [vmem:[#allocation2 + $0x10] sm:$0xff] (!%p859_p10), %v1088_v8  ;;  %295 = vst [vmem:[#allocation2 + $0x18] sm:$0xff] (!%p859_p10), %v1088_v8 }
  0x28 PF: > { %v1004_v9 = vld [vmem:[%s1159_s7 + $0x40] sm:$0xff]   ;;  %v1008_v13 = vld [vmem:[%s1159_s7 + $0x48] sm:$0xff]   ;;  %v1012_v17 = vld [vmem:[%s1159_s7 + $0x50] sm:$0xff]   ;;  %p900_p11 = scmp.ne.s32.totalorder %s1078_s14, 1 }
  0x29   : > { %v1005_v10 = vld [vmem:[%s1159_s7 + $0xc0] sm:$0xff]   ;;  %907 = vmatprep.subr.bf16.mxu0 %v1004_v9  ;;  %v1009_v14 = vld [vmem:[%s1159_s7 + $0xc8] sm:$0xff]   ;;  %v1013_v18 = vld [vmem:[%s1159_s7 + $0xd0] sm:$0xff]  }
  0x2a   : > { %v1006_v11 = vld [vmem:[%s1159_s7] sm:$0xff]   ;;  %935 = vmatprep.subr.bf16.mxu1 %v1005_v10  ;;  %v1010_v15 = vld [vmem:[%s1159_s7 + $0x8] sm:$0xff]   ;;  %v1014_v19 = vld [vmem:[%s1159_s7 + $0x10] sm:$0xff]  }
  0x2b   : > { %v1007_v12 = vld [vmem:[%s1159_s7 + $0x80] sm:$0xff]   ;;  %908 = vmatpush3.bf16.msra.mxu0 %v1006_v11  ;;  %v1011_v16 = vld [vmem:[%s1159_s7 + $0x88] sm:$0xff]   ;;  %v1015_v20 = vld [vmem:[%s1159_s7 + $0x90] sm:$0xff]  }
  0x2c   : > { %936 = vmatpush3.bf16.msra.mxu1 %v1007_v12  ;;  %909 = vmatprep.subr.bf16.mxu0 %v1008_v13  ;;  %v1016_v21 = vld [vmem:[%s1159_s7 + $0x58] sm:$0xff]   ;;  %v1020_v25 = vld [vmem:[%s1159_s7 + $0x60] sm:$0xff]   ;;  %v1024_v29 = vld [vmem:[%s1159_s7 + $0x68] sm:$0xff]  }
  0x2d   : > { %937 = vmatprep.subr.bf16.mxu1 %v1009_v14  ;;  %v1017_v22 = vld [vmem:[%s1159_s7 + $0xd8] sm:$0xff]   ;;  %v1021_v26 = vld [vmem:[%s1159_s7 + $0xe0] sm:$0xff]   ;;  %v1025_v30 = vld [vmem:[%s1159_s7 + $0xe8] sm:$0xff]  }
  0x2e   : > { %v1018_v23 = vld [vmem:[%s1159_s7 + $0x18] sm:$0xff]   ;;  %v1022_v27 = vld [vmem:[%s1159_s7 + $0x20] sm:$0xff]   ;;  %v1026_v31 = vld [vmem:[%s1159_s7 + $0x28] sm:$0xff]  }
  0x2f   : > { %910 = vmatpush3.bf16.msra.mxu0 %v1010_v15  ;;  %v1019_v24 = vld [vmem:[%s1159_s7 + $0x98] sm:$0xff]   ;;  %v1023_v28 = vld [vmem:[%s1159_s7 + $0xa0] sm:$0xff]   ;;  %v1027_v32 = vld [vmem:[%s1159_s7 + $0xa8] sm:$0xff]  }
  0x30   : > { %938 = vmatpush3.bf16.msra.mxu1 %v1011_v16  ;;  %911 = vmatprep.subr.bf16.mxu0 %v1012_v17  ;;  %v1028_v33 = vld [vmem:[%s1159_s7 + $0x70] sm:$0xff]   ;;  %v1032_v37 = vld [vmem:[%s1159_s7 + $0x78] sm:$0xff]   ;;  %v296_v58 = vld [vmem:[#allocation2] sm:$0xff] }
  0x31   : > { %939 = vmatprep.subr.bf16.mxu1 %v1013_v18  ;;  %v1029_v34 = vld [vmem:[%s1159_s7 + $0xf0] sm:$0xff]   ;;  %v1033_v38 = vld [vmem:[%s1159_s7 + $0xf8] sm:$0xff]   ;;  %v297_v63 = vld [vmem:[#allocation2 + $0x8] sm:$0xff] }
  0x32   : > { %v1030_v35 = vld [vmem:[%s1159_s7 + $0x30] sm:$0xff]   ;;  %v1034_v39 = vld [vmem:[%s1159_s7 + $0x38] sm:$0xff]  }
  0x33   : > { %912 = vmatpush3.bf16.msra.mxu0 %v1014_v19  ;;  %v1031_v36 = vld [vmem:[%s1159_s7 + $0xb0] sm:$0xff]   ;;  %v1035_v40 = vld [vmem:[%s1159_s7 + $0xb8] sm:$0xff]  }
  0x34   : > { %940 = vmatpush3.bf16.msra.mxu1 %v1015_v20  ;;  %913 = vmatprep.subr.bf16.mxu0 %v1016_v21  ;;  %v1036_v41 = vld [vmem:[%s1161_s8] ss:$16 sps:$4 sm:$0xff]   ;;  %v1038_v42 = vld [vmem:[%s1161_s8 + $0x4] ss:$16 sps:$4 sm:$0xff]   ;;  %v1039_v43 = vld [vmem:[%s1161_s8 + $0x8] ss:$16 sps:$4 sm:$0xff]  }
  0x35   : > { %941 = vmatprep.subr.bf16.mxu1 %v1017_v22  ;;  %v1041_v44 = vld [vmem:[%s1161_s8 + $0xc] ss:$16 sps:$4 sm:$0xff]   ;;  %636 = vmatprep.mubr.bf16.mxu0 %v1038_v42  ;;  %v1042_v45 = vld [vmem:[%s1161_s8 + $0x24] ss:$16 sps:$4 sm:$0xff]   ;;  %v1046_v47 = vld [vmem:[%s1161_s8 + $0x20] ss:$16 sps:$4 sm:$0xff]  }
  0x36   : > { %685 = vmatprep.mubr.bf16.mxu1 %v1041_v44  ;;  %v1044_v46 = vld [vmem:[%s1161_s8 + $0x2c] ss:$16 sps:$4 sm:$0xff]   ;;  %v1047_v48 = vld [vmem:[%s1161_s8 + $0x28] ss:$16 sps:$4 sm:$0xff]   ;;  %v298_v12 = vld [vmem:[#allocation2 + $0x10] sm:$0xff] }
  0x37   : > { %914 = vmatpush3.bf16.msra.mxu0 %v1018_v23  ;;  %v299_v17 = vld [vmem:[#allocation2 + $0x18] sm:$0xff]  ;;  %v901_v22 = vld [vmem:[%s1237_s2] ss:$0 sm:$0xff] (!%p900_p11) }
  0x38   : > { %942 = vmatpush3.bf16.msra.mxu1 %v1019_v24  ;;  %915 = vmatprep.subr.bf16.mxu0 %v1020_v25 }
  0x39   : > { %943 = vmatprep.subr.bf16.mxu1 %v1021_v26 }
  0x3b   : > { %916 = vmatpush3.bf16.msra.mxu0 %v1022_v27 }
  0x3c   : > { %944 = vmatpush3.bf16.msra.mxu1 %v1023_v28  ;;  %917 = vmatprep.subr.bf16.mxu0 %v1024_v29 }
  0x3d   : > { %945 = vmatprep.subr.bf16.mxu1 %v1025_v30 }
  0x3f   : > { %918 = vmatpush3.bf16.msra.mxu0 %v1026_v31 }
  0x40   : > { %946 = vmatpush3.bf16.msra.mxu1 %v1027_v32  ;;  %919 = vmatprep.subr.bf16.mxu0 %v1028_v33 }
  0x41   : > { %947 = vmatprep.subr.bf16.mxu1 %v1029_v34 }
  0x43   : > { %920 = vmatpush3.bf16.msra.mxu0 %v1030_v35 }
  0x44   : > { %948 = vmatpush3.bf16.msra.mxu1 %v1031_v36  ;;  %921 = vmatprep.subr.bf16.mxu0 %v1032_v37 }
  0x45   : > { %949 = vmatprep.subr.bf16.mxu1 %v1033_v38 }
  0x47   : > { %922 = vmatpush3.bf16.msra.mxu0 %v1034_v39 }
  0x48   : > { %950 = vmatpush3.bf16.msra.mxu1 %v1035_v40 }
  0x4a   : > { %637 = vmatmul.mubr.bf16.vlgmr.msra.gmra.mrb[0].mxu0 %v1036_v41 }
  0x4b   : > { %686 = vmatmul.mubr.bf16.vlgmr.msra.gmra.mrb[0].mxu1 %v1039_v43  ;;  %644 = vmatprep.mubr.bf16.mxu0 %v1042_v45 }
  0x4c   : > { %693 = vmatprep.mubr.bf16.mxu1 %v1044_v46 }
  0x52   : > { %645 = vmatmul.mubr.bf16.gmra.mrb[4].mxu0 %v1046_v47 }
  0x53   : > { %694 = vmatmul.mubr.bf16.gmra.mrb[4].mxu1 %v1047_v48 }
 0x11d   : > { %v923_v49 = vpop.f32.mrb[0].mxu0 }
 0x11e   : > { %v951_v50 = vpop.f32.mrb[0].mxu1  ;;  %v924_v51 = vpop.f32.mrb[1].mxu0 }
 0x11f   : > { %v925_v52 = vadd.f32 %v924_v51, %v923_v49  ;;  %v952_v53 = vpop.f32.mrb[1].mxu1  ;;  %v926_v54 = vpop.f32.mrb[2].mxu0 }
 0x120   : > { %v953_v55 = vadd.f32 %v952_v53, %v951_v50  ;;  %v954_v56 = vpop.f32.mrb[2].mxu1  ;;  %v927_v57 = vpop.f32.mrb[3].mxu0 }
 0x121   : > { %v928_v59 = vadd.f32 %v927_v57, %v926_v54  ;;  %v955_v60 = vpop.f32.mrb[3].mxu1 }
 0x122   : > { %v688_v61 = vadd.f32 %v953_v55, %v925_v52  ;;  %v956_v62 = vadd.f32 %v955_v60, %v954_v56 }
 0x124   : > { %v702_v0 = vadd.f32 %v688_v61, %v296_v58  ;;  %v691_v1 = vadd.f32 %v956_v62, %v928_v59 }
 0x125   : > { %v929_v2 = vpop.f32.mrb[4].mxu0 }
 0x126   : > { %706 = vst [vmem:[#allocation2] sm:$0xff] %v702_v0  ;;  %v703_v3 = vadd.f32 %v691_v1, %v297_v63  ;;  %v957_v4 = vpop.f32.mrb[4].mxu1  ;;  %v930_v5 = vpop.f32.mrb[5].mxu0 }
 0x127   : > { %v931_v6 = vadd.f32 %v930_v5, %v929_v2  ;;  %v958_v7 = vpop.f32.mrb[5].mxu1  ;;  %v932_v8 = vpop.f32.mrb[6].mxu0 }
 0x128   : > { %707 = vst [vmem:[#allocation2 + $0x8] sm:$0xff] %v703_v3  ;;  %v959_v9 = vadd.f32 %v958_v7, %v957_v4  ;;  %v960_v10 = vpop.f32.mrb[6].mxu1  ;;  %v933_v11 = vpop.f32.mrb[7].mxu0 }
 0x129   : > { %v934_v13 = vadd.f32 %v933_v11, %v932_v8  ;;  %v961_v14 = vpop.f32.mrb[7].mxu1 }
 0x12a   : > { %v696_v15 = vadd.f32 %v959_v9, %v931_v6  ;;  %v962_v16 = vadd.f32 %v961_v14, %v960_v10  ;;  %713 = sbr.rel (%p900_p11) target bundleno = 317 (0x13d), region = 63 }
 0x12c   : > { %v704_v18 = vadd.f32 %v696_v15, %v298_v12  ;;  %v699_v19 = vadd.f32 %v962_v16, %v934_v13 }
 0x12d   : > { %v714_v21 = vld [vmem:[#allocation2] sm:$0xff] (!%p900_p11) }
 0x12e   : > { %708 = vst [vmem:[#allocation2 + $0x10] sm:$0xff] %v704_v18  ;;  %v705_v20 = vadd.f32 %v699_v19, %v299_v17  ;;  %v725_v24 = vadd.f32 (!%p900_p11), %v901_v22, %v714_v21 }
 0x12f   : > { %v715_v23 = vld [vmem:[#allocation2 + $0x8] sm:$0xff] (!%p900_p11) }
 0x130   : > { %709 = vst [vmem:[#allocation2 + $0x18] sm:$0xff] %v705_v20  ;;  %v726_v25 = vadd.f32 (!%p900_p11), %v901_v22, %v715_v23  ;;  %v729_v30 = vmax.f32 (!%p900_p11), %v725_v24, 0.0 }
 0x132   : > { %v730_v31 = vmax.f32 %v726_v25, 0.0  ;;  %733 = vst [vmem:[%s1238_s3] sm:$0xff] %v729_v30 }
 0x134   : > { %734 = vst [vmem:[%s1238_s3 + $0x8] sm:$0xff] %v730_v31 }
 0x135   : > { %v716_v26 = vld [vmem:[#allocation2 + $0x10] sm:$0xff] }
 0x136   : > { %v727_v28 = vadd.f32 %v901_v22, %v716_v26 }
 0x137   : > { %v717_v27 = vld [vmem:[#allocation2 + $0x18] sm:$0xff] }
 0x138   : > { %v728_v29 = vadd.f32 %v901_v22, %v717_v27  ;;  %v731_v32 = vmax.f32 %v727_v28, 0.0 }
 0x13a   : > { %v732_v33 = vmax.f32 %v728_v29, 0.0  ;;  %735 = vst [vmem:[%s1238_s3 + $0x10] sm:$0xff] %v731_v32 }
 0x13c   : > { %736 = vst [vmem:[%s1238_s3 + $0x18] sm:$0xff] %v732_v33 }
 0x13d PF: > { %s13_s16 = sadd.s32 1, %s1086_s16   ;;  %s1239_s12 = smov %s1074_s13 }
 0x13e   : > { %p10_p12 = scmp.ge.s32.totalorder %s13_s16, 4   ;;  %s1240_s13 = smov %s1144_s20 }
 0x13f   : > { %s1241_s14 = smov %s1082_s15  ;;  %s1242_s15 = smov %s1244_s17 }
 0x140   :  { %12 = sbr.rel (!%p10_p12) target bundleno = 3 (0x3), region = 104 }

// kernel: quality_net_forward.34
= control target key start
LH: loop header
LB: loop body
LE: loop exit
PB: predicated region body
PF: predicated region fallthrough
CT: control target
= control target key end

     0   :  { %s478_s12 = smov 0   ;;  %s480_s13 = smov 0   ;;  %s514_s0 = inlined_call_operand.vmem [shape: f32[2,16,128], index: 0, kind: input, shape index: {}]   ;;  %s515_s1 = inlined_call_operand.vmem [shape: f32[2,1,128], index: 1, kind: input, shape index: {}]   ;;  %s516_s2 = inlined_call_operand.vmem [shape: f32[2,16,128], index: 2, kind: input, shape index: {}]   ;;  %s517_s3 = inlined_call_operand.vmem [shape: f32[2,16,128], index: 3, kind: output, shape index: {}]  }
   0x1   :  { %s482_s14 = smov 0  }
   0x2 LB: > { %s25_s15 = sadd.s32 1, %s452_s13  ;;  %p397_p0 = scmp.ge.s32.totalorder %s456_s14, 1  ;;  %s456_s14 = sphi %s482_s14, %s13_s14   ;;  %s452_s13 = sphi %s480_s13, %s519_s13   ;;  %s448_s12 = sphi %s478_s12, %s518_s12  }
   0x3   : > { %p27_p1 = scmp.ge.s32.totalorder %s25_s15, 2  ;;  %p183_p2 = scmp.lt.s32.totalorder %s456_s14, 3 }
   0x5   : > { %s521_s15 = smov (%p27_p1, %s25_s15), 0  ;;  %p184_p3 = pnand %p397_p0, %p183_p2 }
   0x6   : > { %p228_p4 = scmp.lt.s32.totalorder (!%p184_p3), %s448_s12, 1 }
   0x7   : > { %187 = sbr.rel (%p184_p3) target bundleno = 25 (0x19), region = 32 }
   0xe   : > { %s523_s12 = smov (!%p228_p4, %s448_s12), 1 }
   0xf   : > { %s407_s16 = sshll.u32 %s523_s12, 4  ;;  %s239_s19 = scalar_lea.vmem %s515_s1, %s523_s12 }
  0x10   : > { %s235_s22 = scalar_lea.vmem %s514_s0, %s407_s16  ;;  %s248_s25 = scalar_lea.vmem %s516_s2, %s407_s16  ;;  %v404_v0 = vld [vmem:[%s239_s19] ss:$0 sm:$0xff] }
  0x11   : > { %v260_v1 = vld [vmem:[%s235_s22] sm:$0xff]  ;;  %v261_v3 = vld [vmem:[%s235_s22 + $0x8] sm:$0xff]  ;;  %s258_s28 = scalar_lea.vmem %s517_s3, %s407_s16 }
  0x12   : > { %v271_v2 = vld [vmem:[%s248_s25] sm:$0xff]  ;;  %v269_v4 = vmul.f32 %v404_v0, %v260_v1  ;;  %v270_v5 = vmul.f32 %v404_v0, %v261_v3  ;;  %v272_v6 = vld [vmem:[%s248_s25 + $0x8] sm:$0xff] }
  0x14   : > { %v273_v7 = vadd.f32 %v271_v2, %v269_v4  ;;  %v274_v8 = vadd.f32 %v272_v6, %v270_v5 }
  0x16   : > { %v275_v9 = vmax.f32 %v273_v7, 0.0  ;;  %v276_v10 = vmax.f32 %v274_v8, 0.0 }
  0x18   : > { %277 = vst [vmem:[%s258_s28] sm:$0xff] %v275_v9  ;;  %278 = vst [vmem:[%s258_s28 + $0x8] sm:$0xff] %v276_v10 }
  0x19 PF: > { %s13_s14 = sadd.s32 1, %s456_s14   ;;  %s518_s12 = smov %s452_s13 }
  0x1a   : > { %p10_p5 = scmp.ge.s32.totalorder %s13_s14, 4   ;;  %s519_s13 = smov %s521_s15 }
  0x1c   :  { %12 = sbr.rel (!%p10_p5) target bundleno = 2 (0x2), region = 68 }

// kernel: quality_net_forward.31
= control target key start
LH: loop header
LB: loop body
LE: loop exit
PB: predicated region body
PF: predicated region fallthrough
CT: control target
= control target key end

     0   :  { %s306_s1 = inlined_call_operand.vmem [shape: bf16[128,128], index: 1, kind: input, shape index: {}]   ;;  %s307_s0 = inlined_call_operand.vmem [shape: bf16[32,128], index: 0, kind: input, shape index: {}]   ;;  %s308_s2 = inlined_call_operand.vmem [shape: f32[1,128], index: 2, kind: input, shape index: {}]   ;;  %s309_s3 = inlined_call_operand.vmem [shape: f32[32,128], index: 3, kind: output, shape index: {}]  }
   0x1   :  { %v231_v0 = vld [vmem:[%s306_s1] sm:$0xff]   ;;  %v232_v1 = vld [vmem:[%s306_s1 + $0x8] sm:$0xff]   ;;  %v233_v2 = vld [vmem:[%s306_s1 + $0x10] sm:$0xff]  }
   0x2   :  { %211 = vmatprep.subr.bf16.mxu0 %v231_v0  ;;  %v234_v3 = vld [vmem:[%s306_s1 + $0x18] sm:$0xff]   ;;  %v239_v4 = vld [vmem:[%s307_s0] sm:$0xff]   ;;  %v236_v6 = vld [vmem:[%s306_s1 + $0x28] sm:$0xff]  }
   0x3   :  { %212 = vmatpush3.bf16.msra.mxu0 %v231_v0  ;;  %227 = vmatprep.mubr.bf16.mxu0 %v239_v4  ;;  %v235_v5 = vld [vmem:[%s306_s1 + $0x20] sm:$0xff]   ;;  %v237_v7 = vld [vmem:[%s306_s1 + $0x30] sm:$0xff]   ;;  %v238_v8 = vld [vmem:[%s306_s1 + $0x38] sm:$0xff]  }
   0x4   :  { %213 = vmatprep.subr.bf16.mxu0 %v232_v1  ;;  %v240_v9 = vld [vmem:[%s307_s0 + $0x8] sm:$0xff]   ;;  %v200_v10 = vld [vmem:[%s308_s2] ss:$0 sm:$0xff] }
   0x7   :  { %214 = vmatpush3.bf16.msra.mxu0 %v232_v1 }
   0x8   :  { %215 = vmatprep.subr.bf16.mxu0 %v233_v2 }
   0xb   :  { %216 = vmatpush3.bf16.msra.mxu0 %v233_v2 }
   0xc   :  { %217 = vmatprep.subr.bf16.mxu0 %v234_v3 }
   0xf   :  { %218 = vmatpush3.bf16.msra.mxu0 %v234_v3 }
  0x10   :  { %219 = vmatprep.subr.bf16.mxu0 %v235_v5 }
  0x13   :  { %220 = vmatpush3.bf16.msra.mxu0 %v235_v5 }
  0x14   :  { %221 = vmatprep.subr.bf16.mxu0 %v236_v6 }
  0x17   :  { %222 = vmatpush3.bf16.msra.mxu0 %v236_v6 }
  0x18   :  { %223 = vmatprep.subr.bf16.mxu0 %v237_v7 }
  0x1b   :  { %224 = vmatpush3.bf16.msra.mxu0 %v237_v7 }
  0x1c   :  { %225 = vmatprep.subr.bf16.mxu0 %v238_v8 }
  0x1f   :  { %226 = vmatpush3.bf16.msra.mxu0 %v238_v8 }
  0x22   :  { %228 = vmatmul.mubr.bf16.vlgmr.msra.gmra.mrb[0].mxu0 %v240_v9 }
  0xf5   :  { %v229_v11 = vpop.f32.mrb[0].mxu0 }
  0xf6   :  { %v180_v12 = vadd.f32 %v229_v11, %v200_v10  ;;  %v141_v13 = vpop.f32.mrb[1].mxu0 }
  0xf7   :  { %v178_v14 = vadd.f32 %v200_v10, %v141_v13  ;;  %v230_v15 = vpop.f32.mrb[2].mxu0 }
  0xf8   :  { %184 = vst [vmem:[%s309_s3 + $0x10] sm:$0xff] %v180_v12  ;;  %v181_v16 = vadd.f32 %v230_v15, %v200_v10  ;;  %v144_v17 = vpop.f32.mrb[3].mxu0 }
  0xf9   :  { %182 = vst [vmem:[%s309_s3] sm:$0xff] %v178_v14  ;;  %v179_v18 = vadd.f32 %v200_v10, %v144_v17 }
  0xfa   :  { %185 = vst [vmem:[%s309_s3 + $0x18] sm:$0xff] %v181_v16 }
  0xfb   :  { %183 = vst [vmem:[%s309_s3 + $0x8] sm:$0xff] %v179_v18 }

// kernel: quality_net_forward.33
= control target key start
LH: loop header
LB: loop body
LE: loop exit
PB: predicated region body
PF: predicated region fallthrough
CT: control target
= control target key end

     0   :  { %s1105_s12 = smov 0   ;;  %s1107_s13 = smov 0   ;;  %s1231_s0 = inlined_call_operand.vmem [shape: bf16[32,1536], index: 0, kind: input, shape index: {}]   ;;  %s1232_s1 = inlined_call_operand.vmem [shape: bf16[1536,128], index: 1, kind: input, shape index: {}]   ;;  %s1233_s2 = inlined_call_operand.vmem [shape: f32[1,128], index: 2, kind: input, shape index: {}]   ;;  %s1234_s3 = inlined_call_operand.vmem [shape: f32[32,128], index: 3, kind: output, shape index: {}]  }
   0x1   :  { %s1109_s14 = smov 0   ;;  %s1111_s15 = smov 0  }
   0x2   :  { %s1113_s16 = smov 0  }
   0x3 LB: > { %s25_s17 = sadd.s32 1, %s1078_s15  ;;  %p48_p1 = scmp.ne.s32.totalorder %s1070_s13, %s1066_s12  ;;  %s1082_s16 = sphi %s1113_s16, %s13_s16   ;;  %s1078_s15 = sphi %s1111_s15, %s1238_s15   ;;  %s1074_s14 = sphi %s1109_s14, %s1237_s14   ;;  %s1070_s13 = sphi %s1107_s13, %s1236_s13   ;;  %s1066_s12 = sphi %s1105_s12, %s1235_s12  }
   0x4   : > { %p26_p0 = scmp.ge.s32.totalorder %s25_s17, 3  ;;  %p49_p2 = scmp.eq.s32.totalorder %s1082_s16, 0 }
   0x5   : > { %s41_s19 = sadd.s32 1, %s1070_s13  ;;  %p847_p5 = scmp.ge.s32.totalorder %s1082_s16, 3 }
   0x6   : > { %s1240_s17 = smov (%p26_p0, %s25_s17), 0  ;;  %p50_p3 = por %p49_p2, %p48_p1 }
   0x7   : > { %s37_s18 = ssub.s32 %s1078_s15, %s1240_s17  ;;  %162 = sbr.rel (%p847_p5) target bundleno = 22 (0x16), region = 20 }
   0x8   : > { %p39_p4 = scmp.eq.s32.totalorder %s37_s18, 0 }
   0xa   : > { %s1140_s20 = scalar_select %p39_p4, %s1070_s13, %s41_s19  }
   0xe   : > { %165 = sbr.rel (!%p50_p3) target bundleno = 22 (0x16), region = 24  ;;  %s167_s21 = sand.u32 (%p50_p3), 1, %s1070_s13  }
   0xf   : > { %s902_s22 = sshll.u32 (%p50_p3), %s1078_s15, 4  ;;  %s848_s23 = sshll.u32 (%p50_p3), %s167_s21, 6 }
  0x10   : > { %s175_s26 = scalar_lea.vmem (%p50_p3), %s1231_s0, %s902_s22  ;;  %s169_s27 = scalar_lea.vmem (%p50_p3), [#allocation3], %s848_s23 }
  0x11   : > { %v188_v0 = vld [vmem:[%s175_s26] sm:$0xff] (%p50_p3)  ;;  %v190_v1 = vld [vmem:[%s175_s26 + $0x8] sm:$0xff] (%p50_p3)  ;;  %v192_v2 = vld [vmem:[%s175_s26 + $0x30] sm:$0xff] (%p50_p3) }
  0x12   : > { %189 = vst [vmem:[%s169_s27] sm:$0xff] (%p50_p3), %v188_v0  ;;  %191 = vst [vmem:[%s169_s27 + $0x8] sm:$0xff] (%p50_p3), %v190_v1  ;;  %v194_v3 = vld [vmem:[%s175_s26 + $0x38] sm:$0xff] (%p50_p3)  ;;  %v196_v4 = vld [vmem:[%s175_s26 + $0x60] sm:$0xff] (%p50_p3) }
  0x13   : > { %193 = vst [vmem:[%s169_s27 + $0x10] sm:$0xff] (%p50_p3), %v192_v2  ;;  %v198_v5 = vld [vmem:[%s175_s26 + $0x68] sm:$0xff] (%p50_p3)  ;;  %195 = vst [vmem:[%s169_s27 + $0x18] sm:$0xff] (%p50_p3), %v194_v3  ;;  %v200_v6 = vld [vmem:[%s175_s26 + $0x90] sm:$0xff] (%p50_p3) }
  0x14   : > { %197 = vst [vmem:[%s169_s27 + $0x20] sm:$0xff] (%p50_p3), %v196_v4  ;;  %199 = vst [vmem:[%s169_s27 + $0x28] sm:$0xff] (%p50_p3), %v198_v5  ;;  %v202_v7 = vld [vmem:[%s175_s26 + $0x98] sm:$0xff] (%p50_p3) }
  0x15   : > { %201 = vst [vmem:[%s169_s27 + $0x30] sm:$0xff] %v200_v6  ;;  %203 = vst [vmem:[%s169_s27 + $0x38] sm:$0xff] %v202_v7 }
  0x16 PF: > { %p851_p6 = scmp.ge.s32.totalorder %s1082_s16, 1  ;;  %p220_p7 = scmp.lt.s32.totalorder %s1082_s16, 4 }
  0x18   : > { %p221_p8 = pnand %p851_p6, %p220_p7 }
  0x19   : > { %s227_s28 = sand.u32 (!%p221_p8), 1, %s1066_s12   ;;  %s853_s29 = sshll.u32 (!%p221_p8), %s1074_s14, 6 }
  0x1a   : > { %224 = sbr.rel (%p221_p8) target bundleno = 315 (0x13b), region = 51  ;;  %s852_s30 = sshll.u32 (!%p221_p8), %s227_s28, 6 }
  0x1b   : > { %p267_p9 = scmp.lt.s32.totalorder (!%p221_p8), %s853_s29, 191  ;;  %s1157_s8 = scalar_lea.vmem (!%p221_p8), [#allocation3], %s852_s30 }
  0x1c   : > { %p855_p10 = scmp.ne.s32.totalorder (!%p221_p8), %s1074_s14, 0 }
  0x21   : > { %s1242_s29 = smov (!%p267_p9, %s853_s29), 191  ;;  %291 = sbr.rel (%p855_p10) target bundleno = 40 (0x28), region = 59 }
  0x22   : > { %s854_s4 = sshll.u32 %s1242_s29, 2  ;;  %v1084_v8 = vmov (!%p855_p10), 0.0  }
  0x23   : > { %s1155_s7 = scalar_lea.vmem %s1232_s1, %s854_s4  ;;  %292 = vst [vmem:[#allocation2] sm:$0xff] (!%p855_p10), %v1084_v8  ;;  %293 = vst [vmem:[#allocation2 + $0x8] sm:$0xff] (!%p855_p10), %v1084_v8 }
  0x24   : > { %294 = vst [vmem:[#allocation2 + $0x10] sm:$0xff] (!%p855_p10), %v1084_v8  ;;  %295 = vst [vmem:[#allocation2 + $0x18] sm:$0xff] (!%p855_p10), %v1084_v8 }
  0x28 PF: > { %v1000_v9 = vld [vmem:[%s1155_s7 + $0x40] sm:$0xff]   ;;  %v1004_v13 = vld [vmem:[%s1155_s7 + $0x48] sm:$0xff]   ;;  %v1008_v17 = vld [vmem:[%s1155_s7 + $0x50] sm:$0xff]   ;;  %p896_p11 = scmp.ne.s32.totalorder %s1074_s14, 2 }
  0x29   : > { %v1001_v10 = vld [vmem:[%s1155_s7 + $0xc0] sm:$0xff]   ;;  %903 = vmatprep.subr.bf16.mxu0 %v1000_v9  ;;  %v1005_v14 = vld [vmem:[%s1155_s7 + $0xc8] sm:$0xff]   ;;  %v1009_v18 = vld [vmem:[%s1155_s7 + $0xd0] sm:$0xff]  }
  0x2a   : > { %v1002_v11 = vld [vmem:[%s1155_s7] sm:$0xff]   ;;  %931 = vmatprep.subr.bf16.mxu1 %v1001_v10  ;;  %v1006_v15 = vld [vmem:[%s1155_s7 + $0x8] sm:$0xff]   ;;  %v1010_v19 = vld [vmem:[%s1155_s7 + $0x10] sm:$0xff]  }
  0x2b   : > { %v1003_v12 = vld [vmem:[%s1155_s7 + $0x80] sm:$0xff]   ;;  %904 = vmatpush3.bf16.msra.mxu0 %v1002_v11  ;;  %v1007_v16 = vld [vmem:[%s1155_s7 + $0x88] sm:$0xff]   ;;  %v1011_v20 = vld [vmem:[%s1155_s7 + $0x90] sm:$0xff]  }
  0x2c   : > { %932 = vmatpush3.bf16.msra.mxu1 %v1003_v12  ;;  %905 = vmatprep.subr.bf16.mxu0 %v1004_v13  ;;  %v1012_v21 = vld [vmem:[%s1155_s7 + $0x58] sm:$0xff]   ;;  %v1016_v25 = vld [vmem:[%s1155_s7 + $0x60] sm:$0xff]   ;;  %v1020_v29 = vld [vmem:[%s1155_s7 + $0x68] sm:$0xff]  }
  0x2d   : > { %933 = vmatprep.subr.bf16.mxu1 %v1005_v14  ;;  %v1013_v22 = vld [vmem:[%s1155_s7 + $0xd8] sm:$0xff]   ;;  %v1017_v26 = vld [vmem:[%s1155_s7 + $0xe0] sm:$0xff]   ;;  %v1021_v30 = vld [vmem:[%s1155_s7 + $0xe8] sm:$0xff]  }
  0x2e   : > { %v1014_v23 = vld [vmem:[%s1155_s7 + $0x18] sm:$0xff]   ;;  %v1018_v27 = vld [vmem:[%s1155_s7 + $0x20] sm:$0xff]   ;;  %v1022_v31 = vld [vmem:[%s1155_s7 + $0x28] sm:$0xff]  }
  0x2f   : > { %906 = vmatpush3.bf16.msra.mxu0 %v1006_v15  ;;  %v1015_v24 = vld [vmem:[%s1155_s7 + $0x98] sm:$0xff]   ;;  %v1019_v28 = vld [vmem:[%s1155_s7 + $0xa0] sm:$0xff]   ;;  %v1023_v32 = vld [vmem:[%s1155_s7 + $0xa8] sm:$0xff]  }
  0x30   : > { %934 = vmatpush3.bf16.msra.mxu1 %v1007_v16  ;;  %907 = vmatprep.subr.bf16.mxu0 %v1008_v17  ;;  %v1024_v33 = vld [vmem:[%s1155_s7 + $0x70] sm:$0xff]   ;;  %v1028_v37 = vld [vmem:[%s1155_s7 + $0x78] sm:$0xff]   ;;  %v296_v58 = vld [vmem:[#allocation2] sm:$0xff] }
  0x31   : > { %935 = vmatprep.subr.bf16.mxu1 %v1009_v18  ;;  %v1025_v34 = vld [vmem:[%s1155_s7 + $0xf0] sm:$0xff]   ;;  %v1029_v38 = vld [vmem:[%s1155_s7 + $0xf8] sm:$0xff]   ;;  %v297_v63 = vld [vmem:[#allocation2 + $0x8] sm:$0xff] }
  0x32   : > { %v1026_v35 = vld [vmem:[%s1155_s7 + $0x30] sm:$0xff]   ;;  %v1030_v39 = vld [vmem:[%s1155_s7 + $0x38] sm:$0xff]  }
  0x33   : > { %908 = vmatpush3.bf16.msra.mxu0 %v1010_v19  ;;  %v1027_v36 = vld [vmem:[%s1155_s7 + $0xb0] sm:$0xff]   ;;  %v1031_v40 = vld [vmem:[%s1155_s7 + $0xb8] sm:$0xff]  }
  0x34   : > { %936 = vmatpush3.bf16.msra.mxu1 %v1011_v20  ;;  %909 = vmatprep.subr.bf16.mxu0 %v1012_v21  ;;  %v1032_v41 = vld [vmem:[%s1157_s8] ss:$16 sps:$4 sm:$0xff]   ;;  %v1034_v42 = vld [vmem:[%s1157_s8 + $0x4] ss:$16 sps:$4 sm:$0xff]   ;;  %v1035_v43 = vld [vmem:[%s1157_s8 + $0x8] ss:$16 sps:$4 sm:$0xff]  }
  0x35   : > { %937 = vmatprep.subr.bf16.mxu1 %v1013_v22  ;;  %v1037_v44 = vld [vmem:[%s1157_s8 + $0xc] ss:$16 sps:$4 sm:$0xff]   ;;  %636 = vmatprep.mubr.bf16.mxu0 %v1034_v42  ;;  %v1038_v45 = vld [vmem:[%s1157_s8 + $0x24] ss:$16 sps:$4 sm:$0xff]   ;;  %v1042_v47 = vld [vmem:[%s1157_s8 + $0x20] ss:$16 sps:$4 sm:$0xff]  }
  0x36   : > { %685 = vmatprep.mubr.bf16.mxu1 %v1037_v44  ;;  %v1040_v46 = vld [vmem:[%s1157_s8 + $0x2c] ss:$16 sps:$4 sm:$0xff]   ;;  %v1043_v48 = vld [vmem:[%s1157_s8 + $0x28] ss:$16 sps:$4 sm:$0xff]   ;;  %v298_v12 = vld [vmem:[#allocation2 + $0x10] sm:$0xff] }
  0x37   : > { %910 = vmatpush3.bf16.msra.mxu0 %v1014_v23  ;;  %v299_v17 = vld [vmem:[#allocation2 + $0x18] sm:$0xff]  ;;  %v897_v22 = vld [vmem:[%s1233_s2] ss:$0 sm:$0xff] (!%p896_p11) }
  0x38   : > { %938 = vmatpush3.bf16.msra.mxu1 %v1015_v24  ;;  %911 = vmatprep.subr.bf16.mxu0 %v1016_v25 }
  0x39   : > { %939 = vmatprep.subr.bf16.mxu1 %v1017_v26 }
  0x3b   : > { %912 = vmatpush3.bf16.msra.mxu0 %v1018_v27 }
  0x3c   : > { %940 = vmatpush3.bf16.msra.mxu1 %v1019_v28  ;;  %913 = vmatprep.subr.bf16.mxu0 %v1020_v29 }
  0x3d   : > { %941 = vmatprep.subr.bf16.mxu1 %v1021_v30 }
  0x3f   : > { %914 = vmatpush3.bf16.msra.mxu0 %v1022_v31 }
  0x40   : > { %942 = vmatpush3.bf16.msra.mxu1 %v1023_v32  ;;  %915 = vmatprep.subr.bf16.mxu0 %v1024_v33 }
  0x41   : > { %943 = vmatprep.subr.bf16.mxu1 %v1025_v34 }
  0x43   : > { %916 = vmatpush3.bf16.msra.mxu0 %v1026_v35 }
  0x44   : > { %944 = vmatpush3.bf16.msra.mxu1 %v1027_v36  ;;  %917 = vmatprep.subr.bf16.mxu0 %v1028_v37 }
  0x45   : > { %945 = vmatprep.subr.bf16.mxu1 %v1029_v38 }
  0x47   : > { %918 = vmatpush3.bf16.msra.mxu0 %v1030_v39 }
  0x48   : > { %946 = vmatpush3.bf16.msra.mxu1 %v1031_v40 }
  0x4a   : > { %637 = vmatmul.mubr.bf16.vlgmr.msra.gmra.mrb[0].mxu0 %v1032_v41 }
  0x4b   : > { %686 = vmatmul.mubr.bf16.vlgmr.msra.gmra.mrb[0].mxu1 %v1035_v43  ;;  %644 = vmatprep.mubr.bf16.mxu0 %v1038_v45 }
  0x4c   : > { %693 = vmatprep.mubr.bf16.mxu1 %v1040_v46 }
  0x52   : > { %645 = vmatmul.mubr.bf16.gmra.mrb[4].mxu0 %v1042_v47 }
  0x53   : > { %694 = vmatmul.mubr.bf16.gmra.mrb[4].mxu1 %v1043_v48 }
 0x11d   : > { %v919_v49 = vpop.f32.mrb[0].mxu0 }
 0x11e   : > { %v947_v50 = vpop.f32.mrb[0].mxu1  ;;  %v920_v51 = vpop.f32.mrb[1].mxu0 }
 0x11f   : > { %v921_v52 = vadd.f32 %v920_v51, %v919_v49  ;;  %v948_v53 = vpop.f32.mrb[1].mxu1  ;;  %v922_v54 = vpop.f32.mrb[2].mxu0 }
 0x120   : > { %v949_v55 = vadd.f32 %v948_v53, %v947_v50  ;;  %v950_v56 = vpop.f32.mrb[2].mxu1  ;;  %v923_v57 = vpop.f32.mrb[3].mxu0 }
 0x121   : > { %v924_v59 = vadd.f32 %v923_v57, %v922_v54  ;;  %v951_v60 = vpop.f32.mrb[3].mxu1 }
 0x122   : > { %v688_v61 = vadd.f32 %v949_v55, %v921_v52  ;;  %v952_v62 = vadd.f32 %v951_v60, %v950_v56 }
 0x124   : > { %v702_v0 = vadd.f32 %v688_v61, %v296_v58  ;;  %v691_v1 = vadd.f32 %v952_v62, %v924_v59 }
 0x125   : > { %v925_v2 = vpop.f32.mrb[4].mxu0 }
 0x126   : > { %706 = vst [vmem:[#allocation2] sm:$0xff] %v702_v0  ;;  %v703_v3 = vadd.f32 %v691_v1, %v297_v63  ;;  %v953_v4 = vpop.f32.mrb[4].mxu1  ;;  %v926_v5 = vpop.f32.mrb[5].mxu0 }
 0x127   : > { %v927_v6 = vadd.f32 %v926_v5, %v925_v2  ;;  %v954_v7 = vpop.f32.mrb[5].mxu1  ;;  %v928_v8 = vpop.f32.mrb[6].mxu0 }
 0x128   : > { %707 = vst [vmem:[#allocation2 + $0x8] sm:$0xff] %v703_v3  ;;  %v955_v9 = vadd.f32 %v954_v7, %v953_v4  ;;  %v956_v10 = vpop.f32.mrb[6].mxu1  ;;  %v929_v11 = vpop.f32.mrb[7].mxu0 }
 0x129   : > { %v930_v13 = vadd.f32 %v929_v11, %v928_v8  ;;  %v957_v14 = vpop.f32.mrb[7].mxu1 }
 0x12a   : > { %v696_v15 = vadd.f32 %v955_v9, %v927_v6  ;;  %v958_v16 = vadd.f32 %v957_v14, %v956_v10  ;;  %713 = sbr.rel (%p896_p11) target bundleno = 315 (0x13b), region = 63 }
 0x12c   : > { %v704_v18 = vadd.f32 %v696_v15, %v298_v12  ;;  %v699_v19 = vadd.f32 %v958_v16, %v930_v13 }
 0x12d   : > { %v714_v21 = vld [vmem:[#allocation2] sm:$0xff] (!%p896_p11) }
 0x12e   : > { %708 = vst [vmem:[#allocation2 + $0x10] sm:$0xff] %v704_v18  ;;  %v705_v20 = vadd.f32 %v699_v19, %v299_v17  ;;  %v725_v24 = vadd.f32 (!%p896_p11), %v897_v22, %v714_v21 }
 0x12f   : > { %v715_v23 = vld [vmem:[#allocation2 + $0x8] sm:$0xff] (!%p896_p11) }
 0x130   : > { %709 = vst [vmem:[#allocation2 + $0x18] sm:$0xff] %v705_v20  ;;  %v726_v25 = vadd.f32 (!%p896_p11), %v897_v22, %v715_v23  ;;  %729 = vst [vmem:[%s1234_s3] sm:$0xff] (!%p896_p11), %v725_v24 }
 0x132   : > { %730 = vst [vmem:[%s1234_s3 + $0x8] sm:$0xff] %v726_v25 }
 0x135   : > { %v716_v26 = vld [vmem:[#allocation2 + $0x10] sm:$0xff] }
 0x136   : > { %v727_v28 = vadd.f32 %v897_v22, %v716_v26 }
 0x137   : > { %v717_v27 = vld [vmem:[#allocation2 + $0x18] sm:$0xff] }
 0x138   : > { %v728_v29 = vadd.f32 %v897_v22, %v717_v27  ;;  %731 = vst [vmem:[%s1234_s3 + $0x10] sm:$0xff] %v727_v28 }
 0x13a   : > { %732 = vst [vmem:[%s1234_s3 + $0x18] sm:$0xff] %v728_v29 }
 0x13b PF: > { %s13_s16 = sadd.s32 1, %s1082_s16   ;;  %s1235_s12 = smov %s1070_s13 }
 0x13c   : > { %p10_p12 = scmp.ge.s32.totalorder %s13_s16, 5   ;;  %s1236_s13 = smov %s1140_s20 }
 0x13d   : > { %s1237_s14 = smov %s1078_s15  ;;  %s1238_s15 = smov %s1240_s17 }
 0x13e   :  { %12 = sbr.rel (!%p10_p12) target bundleno = 3 (0x3), region = 104 }

// kernel: quality_net_forward.36
= control target key start
LH: loop header
LB: loop body
LE: loop exit
PB: predicated region body
PF: predicated region fallthrough
CT: control target
= control target key end

     0   :  { %s1167_s12 = smov 0   ;;  %s1169_s13 = smov 0   ;;  %s1285_s0 = inlined_call_operand.vmem [shape: bf16[8,1536], index: 0, kind: input, shape index: {}]   ;;  %s1286_s1 = inlined_call_operand.vmem [shape: bf16[1536,256], index: 1, kind: input, shape index: {}]   ;;  %s1287_s2 = inlined_call_operand.vmem [shape: f32[1,256], index: 2, kind: input, shape index: {}]   ;;  %s1288_s3 = inlined_call_operand.vmem [shape: f32[8,256], index: 3, kind: output, shape index: {}]  }
   0x1   :  { %s1171_s14 = smov 0  }
   0x2 LB: > { %s25_s15 = sadd.s32 1, %s1140_s13  ;;  %p916_p0 = scmp.ge.s32.totalorder %s1144_s14, 1  ;;  %s1144_s14 = sphi %s1171_s14, %s13_s14   ;;  %s1140_s13 = sphi %s1169_s13, %s1290_s13   ;;  %s1136_s12 = sphi %s1167_s12, %s1289_s12  }
   0x3   : > { %p26_p1 = scmp.ge.s32.totalorder %s25_s15, 3  ;;  %p194_p2 = scmp.lt.s32.totalorder %s1144_s14, 4 }
   0x5   : > { %s1292_s15 = smov (%p26_p1, %s25_s15), 0  ;;  %p195_p3 = pnand %p916_p0, %p194_p2 }
   0x6   : > { %s917_s16 = sshll.u32 (!%p195_p3), %s1136_s12, 2  ;;  %s919_s17 = sshll.u32 (!%p195_p3), %s1136_s12, 6 }
   0x7   : > { %198 = sbr.rel (%p195_p3) target bundleno = 320 (0x140), region = 32  ;;  %p243_p4 = scmp.lt.s32.totalorder (!%p195_p3), %s917_s16, 11 }
   0x8   : > { %p252_p5 = scmp.lt.s32.totalorder (!%p195_p3), %s919_s17, 191  ;;  %p922_p6 = scmp.ne.s32.totalorder (!%p195_p3), %s1136_s12, 0 }
   0xe   : > { %s1294_s16 = smov (!%p243_p4, %s917_s16), 11  ;;  %s1296_s17 = smov (!%p252_p5, %s919_s17), 191 }
   0xf   : > { %s918_s18 = sshll.u32 %s1294_s16, 2  ;;  %s996_s22 = sshll.u32 %s1296_s17, 3  ;;  %v1146_v0 = vmov (!%p922_p6), 0.0  }
  0x10   : > { %s1192_s21 = scalar_lea.vmem %s1285_s0, %s918_s18  ;;  %s1197_s25 = scalar_lea.vmem %s1286_s1, %s996_s22  ;;  %281 = vst [vmem:[#allocation2] sm:$0xff] (!%p922_p6), %v1146_v0  ;;  %282 = vst [vmem:[#allocation2 + $0x8] sm:$0xff] (!%p922_p6), %v1146_v0 }
  0x11   : > { %280 = sbr.rel (%p922_p6) target bundleno = 24 (0x18), region = 36 }
  0x18 PF: > { %v1022_v1 = vld [vmem:[%s1197_s25 + $0x4] ss:$8 sps:$4 sm:$0xff]   ;;  %v1026_v3 = vld [vmem:[%s1197_s25] ss:$8 sps:$4 sm:$0xff]   ;;  %v1028_v5 = vld [vmem:[%s1197_s25 + $0x14] ss:$8 sps:$4 sm:$0xff]  }
  0x19   : > { %v1024_v2 = vld [vmem:[%s1197_s25 + $0x104] ss:$8 sps:$4 sm:$0xff]   ;;  %685 = vmatprep.subr.bf16.mxu0 %v1022_v1  ;;  %v1027_v4 = vld [vmem:[%s1197_s25 + $0x100] ss:$8 sps:$4 sm:$0xff]   ;;  %v1030_v6 = vld [vmem:[%s1197_s25 + $0x114] ss:$8 sps:$4 sm:$0xff]  }
  0x1a   : > { %726 = vmatprep.subr.bf16.mxu1 %v1024_v2  ;;  %686 = vmatpush1.bf16.msra.mxu0 %v1026_v3  ;;  %v1032_v7 = vld [vmem:[%s1197_s25 + $0x10] ss:$8 sps:$4 sm:$0xff]   ;;  %v1034_v9 = vld [vmem:[%s1197_s25 + $0x24] ss:$8 sps:$4 sm:$0xff]   ;;  %v1038_v11 = vld [vmem:[%s1197_s25 + $0x20] ss:$8 sps:$4 sm:$0xff]  }
  0x1b   : > { %727 = vmatpush1.bf16.msra.mxu1 %v1027_v4  ;;  %687 = vmatprep.subr.bf16.mxu0 %v1028_v5  ;;  %v1033_v8 = vld [vmem:[%s1197_s25 + $0x110] ss:$8 sps:$4 sm:$0xff]   ;;  %v1036_v10 = vld [vmem:[%s1197_s25 + $0x124] ss:$8 sps:$4 sm:$0xff]   ;;  %v1039_v12 = vld [vmem:[%s1197_s25 + $0x120] ss:$8 sps:$4 sm:$0xff]  }
  0x1c   : > { %728 = vmatprep.subr.bf16.mxu1 %v1030_v6  ;;  %v1040_v13 = vld [vmem:[%s1197_s25 + $0x34] ss:$8 sps:$4 sm:$0xff]   ;;  %v1044_v15 = vld [vmem:[%s1197_s25 + $0x30] ss:$8 sps:$4 sm:$0xff]   ;;  %v1046_v17 = vld [vmem:[%s1197_s25 + $0x44] ss:$8 sps:$4 sm:$0xff]  }
  0x1d   : > { %v1042_v14 = vld [vmem:[%s1197_s25 + $0x134] ss:$8 sps:$4 sm:$0xff]   ;;  %v1045_v16 = vld [vmem:[%s1197_s25 + $0x130] ss:$8 sps:$4 sm:$0xff]   ;;  %v1048_v18 = vld [vmem:[%s1197_s25 + $0x144] ss:$8 sps:$4 sm:$0xff]  }
  0x1e   : > { %688 = vmatpush1.bf16.msra.mxu0 %v1032_v7  ;;  %v1050_v19 = vld [vmem:[%s1197_s25 + $0x40] ss:$8 sps:$4 sm:$0xff]   ;;  %v1052_v21 = vld [vmem:[%s1197_s25 + $0x54] ss:$8 sps:$4 sm:$0xff]   ;;  %v1056_v23 = vld [vmem:[%s1197_s25 + $0x50] ss:$8 sps:$4 sm:$0xff]  }
  0x1f   : > { %729 = vmatpush1.bf16.msra.mxu1 %v1033_v8  ;;  %689 = vmatprep.subr.bf16.mxu0 %v1034_v9  ;;  %v1051_v20 = vld [vmem:[%s1197_s25 + $0x140] ss:$8 sps:$4 sm:$0xff]   ;;  %v1054_v22 = vld [vmem:[%s1197_s25 + $0x154] ss:$8 sps:$4 sm:$0xff]   ;;  %v1057_v24 = vld [vmem:[%s1197_s25 + $0x150] ss:$8 sps:$4 sm:$0xff]  }
  0x20   : > { %730 = vmatprep.subr.bf16.mxu1 %v1036_v10  ;;  %v1058_v25 = vld [vmem:[%s1197_s25 + $0x64] ss:$8 sps:$4 sm:$0xff]   ;;  %v1062_v27 = vld [vmem:[%s1197_s25 + $0x60] ss:$8 sps:$4 sm:$0xff]   ;;  %v1064_v29 = vld [vmem:[%s1197_s25 + $0x74] ss:$8 sps:$4 sm:$0xff]  }
  0x21   : > { %v1060_v26 = vld [vmem:[%s1197_s25 + $0x164] ss:$8 sps:$4 sm:$0xff]   ;;  %v1063_v28 = vld [vmem:[%s1197_s25 + $0x160] ss:$8 sps:$4 sm:$0xff]   ;;  %v1066_v30 = vld [vmem:[%s1197_s25 + $0x174] ss:$8 sps:$4 sm:$0xff]  }
  0x22   : > { %690 = vmatpush1.bf16.msra.mxu0 %v1038_v11  ;;  %v1068_v31 = vld [vmem:[%s1197_s25 + $0x70] ss:$8 sps:$4 sm:$0xff]   ;;  %v1070_v33 = vld [vmem:[%s1197_s25 + $0x84] ss:$8 sps:$4 sm:$0xff]   ;;  %v1074_v35 = vld [vmem:[%s1197_s25 + $0x80] ss:$8 sps:$4 sm:$0xff]  }
  0x23   : > { %731 = vmatpush1.bf16.msra.mxu1 %v1039_v12  ;;  %691 = vmatprep.subr.bf16.mxu0 %v1040_v13  ;;  %v1069_v32 = vld [vmem:[%s1197_s25 + $0x170] ss:$8 sps:$4 sm:$0xff]   ;;  %v1072_v34 = vld [vmem:[%s1197_s25 + $0x184] ss:$8 sps:$4 sm:$0xff]   ;;  %v1075_v36 = vld [vmem:[%s1197_s25 + $0x180] ss:$8 sps:$4 sm:$0xff]  }
  0x24   : > { %732 = vmatprep.subr.bf16.mxu1 %v1042_v14  ;;  %v1076_v37 = vld [vmem:[%s1197_s25 + $0x94] ss:$8 sps:$4 sm:$0xff]   ;;  %v1080_v39 = vld [vmem:[%s1197_s25 + $0x90] ss:$8 sps:$4 sm:$0xff]   ;;  %v1082_v41 = vld [vmem:[%s1197_s25 + $0xa4] ss:$8 sps:$4 sm:$0xff]  }
  0x25   : > { %v1078_v38 = vld [vmem:[%s1197_s25 + $0x194] ss:$8 sps:$4 sm:$0xff]   ;;  %v1081_v40 = vld [vmem:[%s1197_s25 + $0x190] ss:$8 sps:$4 sm:$0xff]   ;;  %v1084_v42 = vld [vmem:[%s1197_s25 + $0x1a4] ss:$8 sps:$4 sm:$0xff]  }
  0x26   : > { %692 = vmatpush1.bf16.msra.mxu0 %v1044_v15  ;;  %v1086_v43 = vld [vmem:[%s1197_s25 + $0xa0] ss:$8 sps:$4 sm:$0xff]   ;;  %v1088_v45 = vld [vmem:[%s1197_s25 + $0xb4] ss:$8 sps:$4 sm:$0xff]   ;;  %v1092_v50 = vld [vmem:[%s1197_s25 + $0xb0] ss:$8 sps:$4 sm:$0xff]  }
  0x27   : > { %733 = vmatpush1.bf16.msra.mxu1 %v1045_v16  ;;  %693 = vmatprep.subr.bf16.mxu0 %v1046_v17  ;;  %v1087_v44 = vld [vmem:[%s1197_s25 + $0x1a0] ss:$8 sps:$4 sm:$0xff]   ;;  %v1090_v46 = vld [vmem:[%s1197_s25 + $0x1b4] ss:$8 sps:$4 sm:$0xff]   ;;  %v1093_v51 = vld [vmem:[%s1197_s25 + $0x1b0] ss:$8 sps:$4 sm:$0xff]  }
  0x28   : > { %734 = vmatprep.subr.bf16.mxu1 %v1048_v18  ;;  %v285_v47 = vld [vmem:[%s1192_s21] sm:$0xff]  ;;  %v286_v49 = vld [vmem:[%s1192_s21 + $0x8] sm:$0xff]  ;;  %v1100_v57 = vld [vmem:[%s1197_s25 + $0xd4] ss:$8 sps:$4 sm:$0xff]   ;;  %p991_p7 = scmp.ne.s32.totalorder %s1136_s12, 2 }
  0x29   : > { %v924_v48 = vcombine.high %v285_v47, %v285_v47  ;;  %v926_v52 = vcombine.high %v286_v49, %v286_v49  ;;  %v1094_v53 = vld [vmem:[%s1197_s25 + $0xc4] ss:$8 sps:$4 sm:$0xff]   ;;  %v1098_v55 = vld [vmem:[%s1197_s25 + $0xc0] ss:$8 sps:$4 sm:$0xff]   ;;  %v1102_v58 = vld [vmem:[%s1197_s25 + $0x1d4] ss:$8 sps:$4 sm:$0xff]   ;;  %v923_v5 = vcombine.low %v285_v47, %v285_v47  ;;  %v925_v6 = vcombine.low %v286_v49, %v286_v49 }
  0x2a   : > { %694 = vmatpush1.bf16.msra.mxu0 %v1050_v19  ;;  %v1096_v54 = vld [vmem:[%s1197_s25 + $0x1c4] ss:$8 sps:$4 sm:$0xff]   ;;  %v1099_v56 = vld [vmem:[%s1197_s25 + $0x1c0] ss:$8 sps:$4 sm:$0xff]   ;;  %v1104_v59 = vld [vmem:[%s1197_s25 + $0xd0] ss:$8 sps:$4 sm:$0xff]  }
  0x2b   : > { %735 = vmatpush1.bf16.msra.mxu1 %v1051_v20  ;;  %695 = vmatprep.subr.bf16.mxu0 %v1052_v21  ;;  %v1105_v60 = vld [vmem:[%s1197_s25 + $0x1d0] ss:$8 sps:$4 sm:$0xff]   ;;  %v1106_v61 = vld [vmem:[%s1197_s25 + $0xe4] ss:$8 sps:$4 sm:$0xff]   ;;  %v1110_v63 = vld [vmem:[%s1197_s25 + $0xe0] ss:$8 sps:$4 sm:$0xff]   ;;  %v779_v21 = vlaneseq (!%p991_p7) }
  0x2c   : > { %736 = vmatprep.subr.bf16.mxu1 %v1054_v22  ;;  %717 = vmatprep.mubr.bf16.mxu0 %v924_v48  ;;  %v1108_v62 = vld [vmem:[%s1197_s25 + $0x1e4] ss:$8 sps:$4 sm:$0xff]   ;;  %v1111_v0 = vld [vmem:[%s1197_s25 + $0x1e0] ss:$8 sps:$4 sm:$0xff]   ;;  %v1112_v1 = vld [vmem:[%s1197_s25 + $0xf4] ss:$8 sps:$4 sm:$0xff]  }
  0x2d   : > { %758 = vmatprep.mubr.bf16.mxu1 %v926_v52  ;;  %v1114_v2 = vld [vmem:[%s1197_s25 + $0x1f4] ss:$8 sps:$4 sm:$0xff]   ;;  %v1116_v3 = vld [vmem:[%s1197_s25 + $0xf0] ss:$8 sps:$4 sm:$0xff]   ;;  %v283_v8 = vld [vmem:[#allocation2] sm:$0xff]  ;;  %v780_v22 = vshrl.u32 (!%p991_p7), %v779_v21, 7 }
  0x2e   : > { %696 = vmatpush1.bf16.msra.mxu0 %v1056_v23  ;;  %v1117_v4 = vld [vmem:[%s1197_s25 + $0x1f0] ss:$8 sps:$4 sm:$0xff]   ;;  %v284_v12 = vld [vmem:[#allocation2 + $0x8] sm:$0xff]  ;;  %v777_v23 = vld [vmem:[%s1287_s2] sm:$0x3] (!%p991_p7) }
  0x2f   : > { %737 = vmatpush1.bf16.msra.mxu1 %v1057_v24  ;;  %697 = vmatprep.subr.bf16.mxu0 %v1058_v25  ;;  %v781_v24 = vsub.s32 (!%p991_p7), 0, %v780_v22  ;;  %v785_v25 = vsub.s32 (!%p991_p7), 1, %v780_v22 }
  0x30   : > { %738 = vmatprep.subr.bf16.mxu1 %v1060_v26 }
  0x32   : > { %698 = vmatpush1.bf16.msra.mxu0 %v1062_v27 }
  0x33   : > { %739 = vmatpush1.bf16.msra.mxu1 %v1063_v28  ;;  %699 = vmatprep.subr.bf16.mxu0 %v1064_v29  ;;  %v782_v28 = vrot.slane (!%p991_p7), %v777_v23, %v781_v24  ;;  %v786_v29 = vrot.slane (!%p991_p7), %v777_v23, %v785_v25 }
  0x34   : > { %740 = vmatprep.subr.bf16.mxu1 %v1066_v30 }
  0x36   : > { %700 = vmatpush1.bf16.msra.mxu0 %v1068_v31 }
  0x37   : > { %741 = vmatpush1.bf16.msra.mxu1 %v1069_v32  ;;  %701 = vmatprep.subr.bf16.mxu0 %v1070_v33 }
  0x38   : > { %742 = vmatprep.subr.bf16.mxu1 %v1072_v34 }
  0x3a   : > { %702 = vmatpush1.bf16.msra.mxu0 %v1074_v35 }
  0x3b   : > { %743 = vmatpush1.bf16.msra.mxu1 %v1075_v36  ;;  %703 = vmatprep.subr.bf16.mxu0 %v1076_v37 }
  0x3c   : > { %744 = vmatprep.subr.bf16.mxu1 %v1078_v38 }
  0x3e   : > { %704 = vmatpush1.bf16.msra.mxu0 %v1080_v39 }
  0x3f   : > { %745 = vmatpush1.bf16.msra.mxu1 %v1081_v40  ;;  %705 = vmatprep.subr.bf16.mxu0 %v1082_v41 }
  0x40   : > { %746 = vmatprep.subr.bf16.mxu1 %v1084_v42 }
  0x42   : > { %706 = vmatpush1.bf16.msra.mxu0 %v1086_v43 }
  0x43   : > { %747 = vmatpush1.bf16.msra.mxu1 %v1087_v44  ;;  %707 = vmatprep.subr.bf16.mxu0 %v1088_v45 }
  0x44   : > { %748 = vmatprep.subr.bf16.mxu1 %v1090_v46 }
  0x46   : > { %708 = vmatpush1.bf16.msra.mxu0 %v1092_v50 }
  0x47   : > { %749 = vmatpush1.bf16.msra.mxu1 %v1093_v51  ;;  %709 = vmatprep.subr.bf16.mxu0 %v1094_v53 }
  0x48   : > { %750 = vmatprep.subr.bf16.mxu1 %v1096_v54 }
  0x4a   : > { %710 = vmatpush1.bf16.msra.mxu0 %v1098_v55 }
  0x4b   : > { %751 = vmatpush1.bf16.msra.mxu1 %v1099_v56  ;;  %711 = vmatprep.subr.bf16.mxu0 %v1100_v57 }
  0x4c   : > { %752 = vmatprep.subr.bf16.mxu1 %v1102_v58 }
  0x4e   : > { %712 = vmatpush1.bf16.msra.mxu0 %v1104_v59 }
  0x4f   : > { %753 = vmatpush1.bf16.msra.mxu1 %v1105_v60  ;;  %713 = vmatprep.subr.bf16.mxu0 %v1106_v61 }
  0x50   : > { %754 = vmatprep.subr.bf16.mxu1 %v1108_v62 }
  0x52   : > { %714 = vmatpush1.bf16.msra.mxu0 %v1110_v63 }
  0x53   : > { %755 = vmatpush1.bf16.msra.mxu1 %v1111_v0  ;;  %715 = vmatprep.subr.bf16.mxu0 %v1112_v1 }
  0x54   : > { %756 = vmatprep.subr.bf16.mxu1 %v1114_v2 }
  0x56   : > { %716 = vmatpush1.bf16.msra.mxu0 %v1116_v3 }
  0x57   : > { %757 = vmatpush1.bf16.msra.mxu1 %v1117_v4 }
  0x59   : > { %718 = vmatmul.mubr.bf16.vlgmr.msra.gmra.mrb[0].mxu0 %v923_v5 }
  0x5a   : > { %759 = vmatmul.mubr.bf16.vlgmr.msra.gmra.mrb[0].mxu1 %v925_v6 }
 0x12c   : > { %v719_v7 = vpop.f32.mrb[0].mxu0 }
 0x12d   : > { %v760_v9 = vpop.f32.mrb[0].mxu1  ;;  %v721_v11 = vpop.f32.mrb[1].mxu0  ;;  %774 = sbr.rel (%p991_p7) target bundleno = 320 (0x140), region = 40 }
 0x12e   : > { %v761_v10 = vadd.f32 %v760_v9, %v719_v7  ;;  %v762_v13 = vpop.f32.mrb[1].mxu1  ;;  %v723_v15 = vpop.f32.mrb[2].mxu0 }
 0x12f   : > { %v763_v14 = vadd.f32 %v762_v13, %v721_v11  ;;  %v764_v16 = vpop.f32.mrb[2].mxu1  ;;  %v724_v18 = vpop.f32.mrb[3].mxu0 }
 0x130   : > { %v767_v17 = vadd.f32 %v761_v10, %v283_v8  ;;  %v765_v19 = vpop.f32.mrb[3].mxu1 }
 0x131   : > { %v768_v20 = vadd.f32 %v763_v14, %v284_v12 }
 0x132   : > { %769 = vst [vmem:[#allocation2] sm:$0xff] %v767_v17 }
 0x133   : > { %770 = vst [vmem:[#allocation2 + $0x8] sm:$0xff] %v768_v20 }
 0x139   : > { %v775_v26 = vld [vmem:[#allocation2] sm:$0xff] }
 0x13a   : > { %v776_v27 = vld [vmem:[#allocation2 + $0x8] sm:$0xff]  ;;  %v789_v30 = vadd.f32 %v782_v28, %v775_v26 }
 0x13b   : > { %v790_v31 = vadd.f32 %v786_v29, %v776_v27 }
 0x13c   : > { %v791_v32 = vmax.f32 %v789_v30, 0.0 }
 0x13d   : > { %v792_v33 = vmax.f32 %v790_v31, 0.0 }
 0x13e   : > { %793 = vst [vmem:[%s1288_s3] sm:$0xff] %v791_v32 }
 0x13f   : > { %794 = vst [vmem:[%s1288_s3 + $0x8] sm:$0xff] %v792_v33 }
 0x140 PF: > { %s13_s14 = sadd.s32 1, %s1144_s14   ;;  %s1289_s12 = smov %s1140_s13 }
 0x141   : > { %p10_p8 = scmp.ge.s32.totalorder %s13_s14, 5   ;;  %s1290_s13 = smov %s1292_s15 }
 0x143   :  { %12 = sbr.rel (!%p10_p8) target bundleno = 2 (0x2), region = 76 }

// kernel: quality_net_forward.37
= control target key start
LH: loop header
LB: loop body
LE: loop exit
PB: predicated region body
PF: predicated region fallthrough
CT: control target
= control target key end

     0   :  { %s1165_s12 = smov 0   ;;  %s1167_s13 = smov 0   ;;  %s1283_s0 = inlined_call_operand.vmem [shape: bf16[8,2560], index: 0, kind: input, shape index: {}]   ;;  %s1284_s1 = inlined_call_operand.vmem [shape: bf16[2560,256], index: 1, kind: input, shape index: {}]   ;;  %s1285_s2 = inlined_call_operand.vmem [shape: f32[1,256], index: 2, kind: input, shape index: {}]   ;;  %s1286_s3 = inlined_call_operand.vmem [shape: f32[8,256], index: 3, kind: output, shape index: {}]  }
   0x1   :  { %s1169_s14 = smov 0  }
   0x2 LB: > { %s25_s15 = sadd.s32 1, %s1138_s13  ;;  %p914_p0 = scmp.ge.s32.totalorder %s1142_s14, 1  ;;  %s1142_s14 = sphi %s1169_s14, %s13_s14   ;;  %s1138_s13 = sphi %s1167_s13, %s1288_s13   ;;  %s1134_s12 = sphi %s1165_s12, %s1287_s12  }
   0x3   : > { %p26_p1 = scmp.ge.s32.totalorder %s25_s15, 5  ;;  %p194_p2 = scmp.lt.s32.totalorder %s1142_s14, 6 }
   0x5   : > { %s1290_s15 = smov (%p26_p1, %s25_s15), 0  ;;  %p195_p3 = pnand %p914_p0, %p194_p2 }
   0x6   : > { %s915_s16 = sshll.u32 (!%p195_p3), %s1134_s12, 2  ;;  %s917_s17 = sshll.u32 (!%p195_p3), %s1134_s12, 6 }
   0x7   : > { %198 = sbr.rel (%p195_p3) target bundleno = 318 (0x13e), region = 32  ;;  %p243_p4 = scmp.lt.s32.totalorder (!%p195_p3), %s915_s16, 19 }
   0x8   : > { %p252_p5 = scmp.lt.s32.totalorder (!%p195_p3), %s917_s17, 319  ;;  %p920_p6 = scmp.ne.s32.totalorder (!%p195_p3), %s1134_s12, 0 }
   0xe   : > { %s1292_s16 = smov (!%p243_p4, %s915_s16), 19  ;;  %s1294_s17 = smov (!%p252_p5, %s917_s17), 319 }
   0xf   : > { %s916_s18 = sshll.u32 %s1292_s16, 2  ;;  %s994_s22 = sshll.u32 %s1294_s17, 3  ;;  %v1144_v0 = vmov (!%p920_p6), 0.0  }
  0x10   : > { %s1190_s21 = scalar_lea.vmem %s1283_s0, %s916_s18  ;;  %s1195_s25 = scalar_lea.vmem %s1284_s1, %s994_s22  ;;  %281 = vst [vmem:[#allocation2] sm:$0xff] (!%p920_p6), %v1144_v0  ;;  %282 = vst [vmem:[#allocation2 + $0x8] sm:$0xff] (!%p920_p6), %v1144_v0 }
  0x11   : > { %280 = sbr.rel (%p920_p6) target bundleno = 24 (0x18), region = 36 }
  0x18 PF: > { %v1020_v1 = vld [vmem:[%s1195_s25 + $0x4] ss:$8 sps:$4 sm:$0xff]   ;;  %v1024_v3 = vld [vmem:[%s1195_s25] ss:$8 sps:$4 sm:$0xff]   ;;  %v1026_v5 = vld [vmem:[%s1195_s25 + $0x14] ss:$8 sps:$4 sm:$0xff]  }
  0x19   : > { %v1022_v2 = vld [vmem:[%s1195_s25 + $0x104] ss:$8 sps:$4 sm:$0xff]   ;;  %685 = vmatprep.subr.bf16.mxu0 %v1020_v1  ;;  %v1025_v4 = vld [vmem:[%s1195_s25 + $0x100] ss:$8 sps:$4 sm:$0xff]   ;;  %v1028_v6 = vld [vmem:[%s1195_s25 + $0x114] ss:$8 sps:$4 sm:$0xff]  }
  0x1a   : > { %726 = vmatprep.subr.bf16.mxu1 %v1022_v2  ;;  %686 = vmatpush1.bf16.msra.mxu0 %v1024_v3  ;;  %v1030_v7 = vld [vmem:[%s1195_s25 + $0x10] ss:$8 sps:$4 sm:$0xff]   ;;  %v1032_v9 = vld [vmem:[%s1195_s25 + $0x24] ss:$8 sps:$4 sm:$0xff]   ;;  %v1036_v11 = vld [vmem:[%s1195_s25 + $0x20] ss:$8 sps:$4 sm:$0xff]  }
  0x1b   : > { %727 = vmatpush1.bf16.msra.mxu1 %v1025_v4  ;;  %687 = vmatprep.subr.bf16.mxu0 %v1026_v5  ;;  %v1031_v8 = vld [vmem:[%s1195_s25 + $0x110] ss:$8 sps:$4 sm:$0xff]   ;;  %v1034_v10 = vld [vmem:[%s1195_s25 + $0x124] ss:$8 sps:$4 sm:$0xff]   ;;  %v1037_v12 = vld [vmem:[%s1195_s25 + $0x120] ss:$8 sps:$4 sm:$0xff]  }
  0x1c   : > { %728 = vmatprep.subr.bf16.mxu1 %v1028_v6  ;;  %v1038_v13 = vld [vmem:[%s1195_s25 + $0x34] ss:$8 sps:$4 sm:$0xff]   ;;  %v1042_v15 = vld [vmem:[%s1195_s25 + $0x30] ss:$8 sps:$4 sm:$0xff]   ;;  %v1044_v17 = vld [vmem:[%s1195_s25 + $0x44] ss:$8 sps:$4 sm:$0xff]  }
  0x1d   : > { %v1040_v14 = vld [vmem:[%s1195_s25 + $0x134] ss:$8 sps:$4 sm:$0xff]   ;;  %v1043_v16 = vld [vmem:[%s1195_s25 + $0x130] ss:$8 sps:$4 sm:$0xff]   ;;  %v1046_v18 = vld [vmem:[%s1195_s25 + $0x144] ss:$8 sps:$4 sm:$0xff]  }
  0x1e   : > { %688 = vmatpush1.bf16.msra.mxu0 %v1030_v7  ;;  %v1048_v19 = vld [vmem:[%s1195_s25 + $0x40] ss:$8 sps:$4 sm:$0xff]   ;;  %v1050_v21 = vld [vmem:[%s1195_s25 + $0x54] ss:$8 sps:$4 sm:$0xff]   ;;  %v1054_v23 = vld [vmem:[%s1195_s25 + $0x50] ss:$8 sps:$4 sm:$0xff]  }
  0x1f   : > { %729 = vmatpush1.bf16.msra.mxu1 %v1031_v8  ;;  %689 = vmatprep.subr.bf16.mxu0 %v1032_v9  ;;  %v1049_v20 = vld [vmem:[%s1195_s25 + $0x140] ss:$8 sps:$4 sm:$0xff]   ;;  %v1052_v22 = vld [vmem:[%s1195_s25 + $0x154] ss:$8 sps:$4 sm:$0xff]   ;;  %v1055_v24 = vld [vmem:[%s1195_s25 + $0x150] ss:$8 sps:$4 sm:$0xff]  }
  0x20   : > { %730 = vmatprep.subr.bf16.mxu1 %v1034_v10  ;;  %v1056_v25 = vld [vmem:[%s1195_s25 + $0x64] ss:$8 sps:$4 sm:$0xff]   ;;  %v1060_v27 = vld [vmem:[%s1195_s25 + $0x60] ss:$8 sps:$4 sm:$0xff]   ;;  %v1062_v29 = vld [vmem:[%s1195_s25 + $0x74] ss:$8 sps:$4 sm:$0xff]  }
  0x21   : > { %v1058_v26 = vld [vmem:[%s1195_s25 + $0x164] ss:$8 sps:$4 sm:$0xff]   ;;  %v1061_v28 = vld [vmem:[%s1195_s25 + $0x160] ss:$8 sps:$4 sm:$0xff]   ;;  %v1064_v30 = vld [vmem:[%s1195_s25 + $0x174] ss:$8 sps:$4 sm:$0xff]  }
  0x22   : > { %690 = vmatpush1.bf16.msra.mxu0 %v1036_v11  ;;  %v1066_v31 = vld [vmem:[%s1195_s25 + $0x70] ss:$8 sps:$4 sm:$0xff]   ;;  %v1068_v33 = vld [vmem:[%s1195_s25 + $0x84] ss:$8 sps:$4 sm:$0xff]   ;;  %v1072_v35 = vld [vmem:[%s1195_s25 + $0x80] ss:$8 sps:$4 sm:$0xff]  }
  0x23   : > { %731 = vmatpush1.bf16.msra.mxu1 %v1037_v12  ;;  %691 = vmatprep.subr.bf16.mxu0 %v1038_v13  ;;  %v1067_v32 = vld [vmem:[%s1195_s25 + $0x170] ss:$8 sps:$4 sm:$0xff]   ;;  %v1070_v34 = vld [vmem:[%s1195_s25 + $0x184] ss:$8 sps:$4 sm:$0xff]   ;;  %v1073_v36 = vld [vmem:[%s1195_s25 + $0x180] ss:$8 sps:$4 sm:$0xff]  }
  0x24   : > { %732 = vmatprep.subr.bf16.mxu1 %v1040_v14  ;;  %v1074_v37 = vld [vmem:[%s1195_s25 + $0x94] ss:$8 sps:$4 sm:$0xff]   ;;  %v1078_v39 = vld [vmem:[%s1195_s25 + $0x90] ss:$8 sps:$4 sm:$0xff]   ;;  %v1080_v41 = vld [vmem:[%s1195_s25 + $0xa4] ss:$8 sps:$4 sm:$0xff]  }
  0x25   : > { %v1076_v38 = vld [vmem:[%s1195_s25 + $0x194] ss:$8 sps:$4 sm:$0xff]   ;;  %v1079_v40 = vld [vmem:[%s1195_s25 + $0x190] ss:$8 sps:$4 sm:$0xff]   ;;  %v1082_v42 = vld [vmem:[%s1195_s25 + $0x1a4] ss:$8 sps:$4 sm:$0xff]  }
  0x26   : > { %692 = vmatpush1.bf16.msra.mxu0 %v1042_v15  ;;  %v1084_v43 = vld [vmem:[%s1195_s25 + $0xa0] ss:$8 sps:$4 sm:$0xff]   ;;  %v1086_v45 = vld [vmem:[%s1195_s25 + $0xb4] ss:$8 sps:$4 sm:$0xff]   ;;  %v1090_v50 = vld [vmem:[%s1195_s25 + $0xb0] ss:$8 sps:$4 sm:$0xff]  }
  0x27   : > { %733 = vmatpush1.bf16.msra.mxu1 %v1043_v16  ;;  %693 = vmatprep.subr.bf16.mxu0 %v1044_v17  ;;  %v1085_v44 = vld [vmem:[%s1195_s25 + $0x1a0] ss:$8 sps:$4 sm:$0xff]   ;;  %v1088_v46 = vld [vmem:[%s1195_s25 + $0x1b4] ss:$8 sps:$4 sm:$0xff]   ;;  %v1091_v51 = vld [vmem:[%s1195_s25 + $0x1b0] ss:$8 sps:$4 sm:$0xff]  }
  0x28   : > { %734 = vmatprep.subr.bf16.mxu1 %v1046_v18  ;;  %v285_v47 = vld [vmem:[%s1190_s21] sm:$0xff]  ;;  %v286_v49 = vld [vmem:[%s1190_s21 + $0x8] sm:$0xff]  ;;  %v1098_v57 = vld [vmem:[%s1195_s25 + $0xd4] ss:$8 sps:$4 sm:$0xff]   ;;  %p989_p7 = scmp.ne.s32.totalorder %s1134_s12, 4 }
  0x29   : > { %v922_v48 = vcombine.high %v285_v47, %v285_v47  ;;  %v924_v52 = vcombine.high %v286_v49, %v286_v49  ;;  %v1092_v53 = vld [vmem:[%s1195_s25 + $0xc4] ss:$8 sps:$4 sm:$0xff]   ;;  %v1096_v55 = vld [vmem:[%s1195_s25 + $0xc0] ss:$8 sps:$4 sm:$0xff]   ;;  %v1100_v58 = vld [vmem:[%s1195_s25 + $0x1d4] ss:$8 sps:$4 sm:$0xff]   ;;  %v921_v5 = vcombine.low %v285_v47, %v285_v47  ;;  %v923_v6 = vcombine.low %v286_v49, %v286_v49 }
  0x2a   : > { %694 = vmatpush1.bf16.msra.mxu0 %v1048_v19  ;;  %v1094_v54 = vld [vmem:[%s1195_s25 + $0x1c4] ss:$8 sps:$4 sm:$0xff]   ;;  %v1097_v56 = vld [vmem:[%s1195_s25 + $0x1c0] ss:$8 sps:$4 sm:$0xff]   ;;  %v1102_v59 = vld [vmem:[%s1195_s25 + $0xd0] ss:$8 sps:$4 sm:$0xff]  }
  0x2b   : > { %735 = vmatpush1.bf16.msra.mxu1 %v1049_v20  ;;  %695 = vmatprep.subr.bf16.mxu0 %v1050_v21  ;;  %v1103_v60 = vld [vmem:[%s1195_s25 + $0x1d0] ss:$8 sps:$4 sm:$0xff]   ;;  %v1104_v61 = vld [vmem:[%s1195_s25 + $0xe4] ss:$8 sps:$4 sm:$0xff]   ;;  %v1108_v63 = vld [vmem:[%s1195_s25 + $0xe0] ss:$8 sps:$4 sm:$0xff]   ;;  %v779_v21 = vlaneseq (!%p989_p7) }
  0x2c   : > { %736 = vmatprep.subr.bf16.mxu1 %v1052_v22  ;;  %717 = vmatprep.mubr.bf16.mxu0 %v922_v48  ;;  %v1106_v62 = vld [vmem:[%s1195_s25 + $0x1e4] ss:$8 sps:$4 sm:$0xff]   ;;  %v1109_v0 = vld [vmem:[%s1195_s25 + $0x1e0] ss:$8 sps:$4 sm:$0xff]   ;;  %v1110_v1 = vld [vmem:[%s1195_s25 + $0xf4] ss:$8 sps:$4 sm:$0xff]  }
  0x2d   : > { %758 = vmatprep.mubr.bf16.mxu1 %v924_v52  ;;  %v1112_v2 = vld [vmem:[%s1195_s25 + $0x1f4] ss:$8 sps:$4 sm:$0xff]   ;;  %v1114_v3 = vld [vmem:[%s1195_s25 + $0xf0] ss:$8 sps:$4 sm:$0xff]   ;;  %v283_v8 = vld [vmem:[#allocation2] sm:$0xff]  ;;  %v780_v22 = vshrl.u32 (!%p989_p7), %v779_v21, 7 }
  0x2e   : > { %696 = vmatpush1.bf16.msra.mxu0 %v1054_v23  ;;  %v1115_v4 = vld [vmem:[%s1195_s25 + $0x1f0] ss:$8 sps:$4 sm:$0xff]   ;;  %v284_v12 = vld [vmem:[#allocation2 + $0x8] sm:$0xff]  ;;  %v777_v23 = vld [vmem:[%s1285_s2] sm:$0x3] (!%p989_p7) }
  0x2f   : > { %737 = vmatpush1.bf16.msra.mxu1 %v1055_v24  ;;  %697 = vmatprep.subr.bf16.mxu0 %v1056_v25  ;;  %v781_v24 = vsub.s32 (!%p989_p7), 0, %v780_v22  ;;  %v785_v25 = vsub.s32 (!%p989_p7), 1, %v780_v22 }
  0x30   : > { %738 = vmatprep.subr.bf16.mxu1 %v1058_v26 }
  0x32   : > { %698 = vmatpush1.bf16.msra.mxu0 %v1060_v27 }
  0x33   : > { %739 = vmatpush1.bf16.msra.mxu1 %v1061_v28  ;;  %699 = vmatprep.subr.bf16.mxu0 %v1062_v29  ;;  %v782_v28 = vrot.slane (!%p989_p7), %v777_v23, %v781_v24  ;;  %v786_v29 = vrot.slane (!%p989_p7), %v777_v23, %v785_v25 }
  0x34   : > { %740 = vmatprep.subr.bf16.mxu1 %v1064_v30 }
  0x36   : > { %700 = vmatpush1.bf16.msra.mxu0 %v1066_v31 }
  0x37   : > { %741 = vmatpush1.bf16.msra.mxu1 %v1067_v32  ;;  %701 = vmatprep.subr.bf16.mxu0 %v1068_v33 }
  0x38   : > { %742 = vmatprep.subr.bf16.mxu1 %v1070_v34 }
  0x3a   : > { %702 = vmatpush1.bf16.msra.mxu0 %v1072_v35 }
  0x3b   : > { %743 = vmatpush1.bf16.msra.mxu1 %v1073_v36  ;;  %703 = vmatprep.subr.bf16.mxu0 %v1074_v37 }
  0x3c   : > { %744 = vmatprep.subr.bf16.mxu1 %v1076_v38 }
  0x3e   : > { %704 = vmatpush1.bf16.msra.mxu0 %v1078_v39 }
  0x3f   : > { %745 = vmatpush1.bf16.msra.mxu1 %v1079_v40  ;;  %705 = vmatprep.subr.bf16.mxu0 %v1080_v41 }
  0x40   : > { %746 = vmatprep.subr.bf16.mxu1 %v1082_v42 }
  0x42   : > { %706 = vmatpush1.bf16.msra.mxu0 %v1084_v43 }
  0x43   : > { %747 = vmatpush1.bf16.msra.mxu1 %v1085_v44  ;;  %707 = vmatprep.subr.bf16.mxu0 %v1086_v45 }
  0x44   : > { %748 = vmatprep.subr.bf16.mxu1 %v1088_v46 }
  0x46   : > { %708 = vmatpush1.bf16.msra.mxu0 %v1090_v50 }
  0x47   : > { %749 = vmatpush1.bf16.msra.mxu1 %v1091_v51  ;;  %709 = vmatprep.subr.bf16.mxu0 %v1092_v53 }
  0x48   : > { %750 = vmatprep.subr.bf16.mxu1 %v1094_v54 }
  0x4a   : > { %710 = vmatpush1.bf16.msra.mxu0 %v1096_v55 }
  0x4b   : > { %751 = vmatpush1.bf16.msra.mxu1 %v1097_v56  ;;  %711 = vmatprep.subr.bf16.mxu0 %v1098_v57 }
  0x4c   : > { %752 = vmatprep.subr.bf16.mxu1 %v1100_v58 }
  0x4e   : > { %712 = vmatpush1.bf16.msra.mxu0 %v1102_v59 }
  0x4f   : > { %753 = vmatpush1.bf16.msra.mxu1 %v1103_v60  ;;  %713 = vmatprep.subr.bf16.mxu0 %v1104_v61 }
  0x50   : > { %754 = vmatprep.subr.bf16.mxu1 %v1106_v62 }
  0x52   : > { %714 = vmatpush1.bf16.msra.mxu0 %v1108_v63 }
  0x53   : > { %755 = vmatpush1.bf16.msra.mxu1 %v1109_v0  ;;  %715 = vmatprep.subr.bf16.mxu0 %v1110_v1 }
  0x54   : > { %756 = vmatprep.subr.bf16.mxu1 %v1112_v2 }
  0x56   : > { %716 = vmatpush1.bf16.msra.mxu0 %v1114_v3 }
  0x57   : > { %757 = vmatpush1.bf16.msra.mxu1 %v1115_v4 }
  0x59   : > { %718 = vmatmul.mubr.bf16.vlgmr.msra.gmra.mrb[0].mxu0 %v921_v5 }
  0x5a   : > { %759 = vmatmul.mubr.bf16.vlgmr.msra.gmra.mrb[0].mxu1 %v923_v6 }
 0x12c   : > { %v719_v7 = vpop.f32.mrb[0].mxu0 }
 0x12d   : > { %v760_v9 = vpop.f32.mrb[0].mxu1  ;;  %v721_v11 = vpop.f32.mrb[1].mxu0  ;;  %774 = sbr.rel (%p989_p7) target bundleno = 318 (0x13e), region = 40 }
 0x12e   : > { %v761_v10 = vadd.f32 %v760_v9, %v719_v7  ;;  %v762_v13 = vpop.f32.mrb[1].mxu1  ;;  %v723_v15 = vpop.f32.mrb[2].mxu0 }
 0x12f   : > { %v763_v14 = vadd.f32 %v762_v13, %v721_v11  ;;  %v764_v16 = vpop.f32.mrb[2].mxu1  ;;  %v724_v18 = vpop.f32.mrb[3].mxu0 }
 0x130   : > { %v767_v17 = vadd.f32 %v761_v10, %v283_v8  ;;  %v765_v19 = vpop.f32.mrb[3].mxu1 }
 0x131   : > { %v768_v20 = vadd.f32 %v763_v14, %v284_v12 }
 0x132   : > { %769 = vst [vmem:[#allocation2] sm:$0xff] %v767_v17 }
 0x133   : > { %770 = vst [vmem:[#allocation2 + $0x8] sm:$0xff] %v768_v20 }
 0x139   : > { %v775_v26 = vld [vmem:[#allocation2] sm:$0xff] }
 0x13a   : > { %v776_v27 = vld [vmem:[#allocation2 + $0x8] sm:$0xff]  ;;  %v789_v30 = vadd.f32 %v782_v28, %v775_v26 }
 0x13b   : > { %v790_v31 = vadd.f32 %v786_v29, %v776_v27 }
 0x13c   : > { %791 = vst [vmem:[%s1286_s3] sm:$0xff] %v789_v30 }
 0x13d   : > { %792 = vst [vmem:[%s1286_s3 + $0x8] sm:$0xff] %v790_v31 }
 0x13e PF: > { %s13_s14 = sadd.s32 1, %s1142_s14   ;;  %s1287_s12 = smov %s1138_s13 }
 0x13f   : > { %p10_p8 = scmp.ge.s32.totalorder %s13_s14, 7   ;;  %s1288_s13 = smov %s1290_s15 }
 0x141   :  { %12 = sbr.rel (!%p10_p8) target bundleno = 2 (0x2), region = 76 }

// kernel: quality_net_forward.38
= control target key start
LH: loop header
LB: loop body
LE: loop exit
PB: predicated region body
PF: predicated region fallthrough
CT: control target
= control target key end

     0   :  { %s486_s12 = smov 0   ;;  %s488_s13 = smov 0   ;;  %s522_s0 = inlined_call_operand.vmem [shape: f32[2,4,256], index: 0, kind: input, shape index: {}]   ;;  %s523_s1 = inlined_call_operand.vmem [shape: f32[2,1,256], index: 1, kind: input, shape index: {}]   ;;  %s524_s2 = inlined_call_operand.vmem [shape: f32[2,4,256], index: 2, kind: input, shape index: {}]   ;;  %s525_s3 = inlined_call_operand.vmem [shape: f32[2,4,256], index: 3, kind: output, shape index: {}]  }
   0x1   :  { %s490_s14 = smov 0  }
   0x2 LB: > { %s25_s15 = sadd.s32 1, %s460_s13  ;;  %p405_p0 = scmp.ge.s32.totalorder %s464_s14, 1  ;;  %s464_s14 = sphi %s490_s14, %s13_s14   ;;  %s460_s13 = sphi %s488_s13, %s527_s13   ;;  %s456_s12 = sphi %s486_s12, %s526_s12  }
   0x3   : > { %p27_p1 = scmp.ge.s32.totalorder %s25_s15, 2  ;;  %p182_p2 = scmp.lt.s32.totalorder %s464_s14, 3 }
   0x5   : > { %s529_s15 = smov (%p27_p1, %s25_s15), 0  ;;  %p183_p3 = pnand %p405_p0, %p182_p2 }
   0x6   : > { %p227_p4 = scmp.lt.s32.totalorder (!%p183_p3), %s456_s12, 1  ;;  %v261_v0 = vlaneseq (!%p183_p3) }
   0x7   : > { %186 = sbr.rel (%p183_p3) target bundleno = 29 (0x1d), region = 32 }
   0x8   : > { %v262_v1 = vshrl.u32 (!%p183_p3), %v261_v0, 7 }
   0xa   : > { %v263_v2 = vsub.s32 (!%p183_p3), 0, %v262_v1  ;;  %v267_v3 = vsub.s32 (!%p183_p3), 1, %v262_v1 }
   0xe   : > { %s531_s12 = smov (!%p227_p4, %s456_s12), 1 }
   0xf   : > { %s415_s16 = sshll.u32 %s531_s12, 3  ;;  %s408_s17 = sshll.u32 %s531_s12, 1 }
  0x10   : > { %s235_s20 = scalar_lea.vmem %s522_s0, %s415_s16  ;;  %s239_s23 = scalar_lea.vmem %s523_s1, %s408_s17 }
  0x11   : > { %v259_v4 = vld [vmem:[%s239_s23] sm:$0x3]  ;;  %s248_s26 = scalar_lea.vmem %s524_s2, %s415_s16  ;;  %s257_s29 = scalar_lea.vmem %s525_s3, %s415_s16 }
  0x12   : > { %v264_v5 = vrot.slane %v259_v4, %v263_v2  ;;  %v268_v6 = vrot.slane %v259_v4, %v267_v3  ;;  %v258_v7 = vld [vmem:[%s235_s20] sm:$0xff] }
  0x13   : > { %v272_v9 = vld [vmem:[%s248_s26] sm:$0xff] }
  0x14   : > { %v269_v8 = vcombine.low %v264_v5, %v268_v6 }
  0x16   : > { %v271_v10 = vmul.f32 %v269_v8, %v258_v7 }
  0x18   : > { %v273_v11 = vadd.f32 %v272_v9, %v271_v10 }
  0x1a   : > { %v274_v12 = vmax.f32 %v273_v11, 0.0 }
  0x1c   : > { %275 = vst [vmem:[%s257_s29] sm:$0xff] %v274_v12 }
  0x1d PF: > { %s13_s14 = sadd.s32 1, %s464_s14   ;;  %s526_s12 = smov %s460_s13 }
  0x1e   : > { %p10_p5 = scmp.ge.s32.totalorder %s13_s14, 4   ;;  %s527_s13 = smov %s529_s15 }
  0x20   :  { %12 = sbr.rel (!%p10_p5) target bundleno = 2 (0x2), region = 68 }

// kernel: quality_net_forward.35
= control target key start
LH: loop header
LB: loop body
LE: loop exit
PB: predicated region body
PF: predicated region fallthrough
CT: control target
= control target key end

     0   :  { %v231_v1 = vmov 0   ;;  %v172_v18 = vlaneseq  ;;  %s312_s1 = inlined_call_operand.vmem [shape: bf16[128,256], index: 1, kind: input, shape index: {}]   ;;  %s313_s0 = inlined_call_operand.vmem [shape: bf16[8,128], index: 0, kind: input, shape index: {}]   ;;  %s314_s2 = inlined_call_operand.vmem [shape: f32[1,256], index: 2, kind: input, shape index: {}]   ;;  %s315_s3 = inlined_call_operand.vmem [shape: f32[8,256], index: 3, kind: output, shape index: {}]  }
   0x1   :  { %v207_v0 = vld [vmem:[%s312_s1 + $0x4] ss:$8 sps:$4 sm:$0xff]   ;;  %152 = vmatprep.mubr.bf16.mxu0 %v231_v1  ;;  %v209_v2 = vld [vmem:[%s312_s1] ss:$8 sps:$4 sm:$0xff]   ;;  %v210_v3 = vld [vmem:[%s312_s1 + $0x14] ss:$8 sps:$4 sm:$0xff]  }
   0x2   :  { %120 = vmatprep.subr.bf16.mxu0 %v207_v0  ;;  %v212_v4 = vld [vmem:[%s312_s1 + $0x10] ss:$8 sps:$4 sm:$0xff]   ;;  %v213_v5 = vld [vmem:[%s312_s1 + $0x24] ss:$8 sps:$4 sm:$0xff]   ;;  %v215_v6 = vld [vmem:[%s312_s1 + $0x20] ss:$8 sps:$4 sm:$0xff]  }
   0x3   :  { %121 = vmatpush1.bf16.msra.mxu0 %v209_v2  ;;  %v216_v7 = vld [vmem:[%s312_s1 + $0x34] ss:$8 sps:$4 sm:$0xff]   ;;  %v218_v8 = vld [vmem:[%s312_s1 + $0x30] ss:$8 sps:$4 sm:$0xff]   ;;  %v219_v9 = vld [vmem:[%s312_s1 + $0x44] ss:$8 sps:$4 sm:$0xff]  }
   0x4   :  { %122 = vmatprep.subr.bf16.mxu0 %v210_v3  ;;  %v221_v10 = vld [vmem:[%s312_s1 + $0x40] ss:$8 sps:$4 sm:$0xff]   ;;  %v222_v11 = vld [vmem:[%s312_s1 + $0x54] ss:$8 sps:$4 sm:$0xff]   ;;  %v224_v12 = vld [vmem:[%s312_s1 + $0x50] ss:$8 sps:$4 sm:$0xff]  }
   0x5   :  { %v225_v13 = vld [vmem:[%s312_s1 + $0x64] ss:$8 sps:$4 sm:$0xff]   ;;  %v227_v14 = vld [vmem:[%s312_s1 + $0x60] ss:$8 sps:$4 sm:$0xff]   ;;  %v228_v15 = vld [vmem:[%s312_s1 + $0x74] ss:$8 sps:$4 sm:$0xff]  }
   0x6   :  { %v230_v16 = vld [vmem:[%s312_s1 + $0x70] ss:$8 sps:$4 sm:$0xff]   ;;  %v23_v17 = vld [vmem:[%s313_s0] sm:$0xf]  ;;  %v173_v19 = vshrl.u32 %v172_v18, 7 }
   0x7   :  { %123 = vmatpush1.bf16.msra.mxu0 %v212_v4  ;;  %v170_v21 = vld [vmem:[%s314_s2] sm:$0x3] }
   0x8   :  { %124 = vmatprep.subr.bf16.mxu0 %v213_v5  ;;  %v174_v20 = vsub.s32 0, %v173_v19  ;;  %v178_v22 = vsub.s32 1, %v173_v19 }
   0xa   :  { %v175_v23 = vrot.slane %v170_v21, %v174_v20  ;;  %v179_v24 = vrot.slane %v170_v21, %v178_v22 }
   0xb   :  { %125 = vmatpush1.bf16.msra.mxu0 %v215_v6 }
   0xc   :  { %126 = vmatprep.subr.bf16.mxu0 %v216_v7 }
   0xf   :  { %127 = vmatpush1.bf16.msra.mxu0 %v218_v8 }
  0x10   :  { %128 = vmatprep.subr.bf16.mxu0 %v219_v9 }
  0x13   :  { %129 = vmatpush1.bf16.msra.mxu0 %v221_v10 }
  0x14   :  { %130 = vmatprep.subr.bf16.mxu0 %v222_v11 }
  0x17   :  { %131 = vmatpush1.bf16.msra.mxu0 %v224_v12 }
  0x18   :  { %132 = vmatprep.subr.bf16.mxu0 %v225_v13 }
  0x1b   :  { %133 = vmatpush1.bf16.msra.mxu0 %v227_v14 }
  0x1c   :  { %134 = vmatprep.subr.bf16.mxu0 %v228_v15 }
  0x1f   :  { %135 = vmatpush1.bf16.msra.mxu0 %v230_v16 }
  0x22   :  { %153 = vmatmul.mubr.bf16.vlgmr.msra.gmra.mrb[0].mxu0 %v23_v17 }
  0xf5   :  { %v154_v25 = vpop.f32.mrb[0].mxu0 }
  0xf6   :  { %v182_v26 = vadd.f32 %v175_v23, %v154_v25  ;;  %v156_v27 = vpop.f32.mrb[1].mxu0 }
  0xf7   :  { %v183_v28 = vadd.f32 %v179_v24, %v156_v27  ;;  %v158_v29 = vpop.f32.mrb[2].mxu0 }
  0xf8   :  { %184 = vst [vmem:[%s315_s3] sm:$0xff] %v182_v26  ;;  %v159_v30 = vpop.f32.mrb[3].mxu0 }
  0xf9   :  { %185 = vst [vmem:[%s315_s3 + $0x8] sm:$0xff] %v183_v28 }

// kernel: quality_net_forward.40
= control target key start
LH: loop header
LB: loop body
LE: loop exit
PB: predicated region body
PF: predicated region fallthrough
CT: control target
= control target key end

     0   :  { %s1819_s12 = smov 0   ;;  %s1821_s13 = smov 0   ;;  %s2019_s0 = inlined_call_operand.vmem [shape: bf16[8,2560], index: 0, kind: input, shape index: {}]   ;;  %s2020_s1 = inlined_call_operand.vmem [shape: bf16[2560,512], index: 1, kind: input, shape index: {}]   ;;  %s2021_s2 = inlined_call_operand.vmem [shape: f32[1,512], index: 2, kind: input, shape index: {}]   ;;  %s2022_s3 = inlined_call_operand.vmem [shape: f32[8,512], index: 3, kind: output, shape index: {}]  }
   0x1   :  { %s1823_s14 = smov 0  }
   0x2 LB: > { %s25_s15 = sadd.s32 1, %s1792_s13  ;;  %p1408_p0 = scmp.ge.s32.totalorder %s1796_s14, 1  ;;  %s1796_s14 = sphi %s1823_s14, %s13_s14   ;;  %s1792_s13 = sphi %s1821_s13, %s2024_s13   ;;  %s1788_s12 = sphi %s1819_s12, %s2023_s12  }
   0x3   : > { %p26_p1 = scmp.ge.s32.totalorder %s25_s15, 5  ;;  %p194_p2 = scmp.lt.s32.totalorder %s1796_s14, 6 }
   0x5   : > { %s2026_s15 = smov (%p26_p1, %s25_s15), 0  ;;  %p195_p3 = pnand %p1408_p0, %p194_p2 }
   0x6   : > { %s1409_s16 = sshll.u32 (!%p195_p3), %s1788_s12, 2  ;;  %s1411_s17 = sshll.u32 (!%p195_p3), %s1788_s12, 6 }
   0x7   : > { %198 = sbr.rel (%p195_p3) target bundleno = 384 (0x180), region = 32  ;;  %p243_p4 = scmp.lt.s32.totalorder (!%p195_p3), %s1409_s16, 19 }
   0x8   : > { %p252_p5 = scmp.lt.s32.totalorder (!%p195_p3), %s1411_s17, 319  ;;  %p1414_p6 = scmp.ne.s32.totalorder (!%p195_p3), %s1788_s12, 0 }
   0xe   : > { %s2028_s16 = smov (!%p243_p4, %s1409_s16), 19  ;;  %s2030_s17 = smov (!%p252_p5, %s1411_s17), 319 }
   0xf   : > { %s1410_s18 = sshll.u32 %s2028_s16, 2  ;;  %s1552_s22 = sshll.u32 %s2030_s17, 4  ;;  %v1798_v0 = vmov (!%p1414_p6), 0.0  }
  0x10   : > { %s1844_s21 = scalar_lea.vmem %s2019_s0, %s1410_s18  ;;  %s1849_s25 = scalar_lea.vmem %s2020_s1, %s1552_s22  ;;  %281 = vst [vmem:[#allocation2] sm:$0xff] (!%p1414_p6), %v1798_v0  ;;  %282 = vst [vmem:[#allocation2 + $0x8] sm:$0xff] (!%p1414_p6), %v1798_v0 }
  0x11   : > { %280 = sbr.rel (%p1414_p6) target bundleno = 24 (0x18), region = 36  ;;  %283 = vst [vmem:[#allocation2 + $0x10] sm:$0xff] (!%p1414_p6), %v1798_v0  ;;  %284 = vst [vmem:[#allocation2 + $0x18] sm:$0xff] (!%p1414_p6), %v1798_v0 }
  0x18 PF: > { %v1578_v1 = vld [vmem:[%s1849_s25 + $0x4] ss:$16 sps:$4 sm:$0xff]   ;;  %v1582_v3 = vld [vmem:[%s1849_s25] ss:$16 sps:$4 sm:$0xff]   ;;  %v290_v49 = vld [vmem:[%s1844_s21 + $0x8] sm:$0xff]  ;;  %p1547_p7 = scmp.ne.s32.totalorder %s1788_s12, 4 }
  0x19   : > { %v1580_v2 = vld [vmem:[%s1849_s25 + $0x204] ss:$16 sps:$4 sm:$0xff]   ;;  %1073 = vmatprep.subr.bf16.mxu0 %v1578_v1  ;;  %v1583_v4 = vld [vmem:[%s1849_s25 + $0x200] ss:$16 sps:$4 sm:$0xff]   ;;  %v1418_v52 = vcombine.high %v290_v49, %v290_v49 }
  0x1a   : > { %1114 = vmatprep.subr.bf16.mxu1 %v1580_v2  ;;  %v1584_v5 = vld [vmem:[%s1849_s25 + $0x24] ss:$16 sps:$4 sm:$0xff]   ;;  %1074 = vmatpush1.bf16.msra.mxu0 %v1582_v3  ;;  %v1588_v7 = vld [vmem:[%s1849_s25 + $0x20] ss:$16 sps:$4 sm:$0xff]  }
  0x1b   : > { %1115 = vmatpush1.bf16.msra.mxu1 %v1583_v4  ;;  %v1586_v6 = vld [vmem:[%s1849_s25 + $0x224] ss:$16 sps:$4 sm:$0xff]   ;;  %1075 = vmatprep.subr.bf16.mxu0 %v1584_v5  ;;  %v1589_v8 = vld [vmem:[%s1849_s25 + $0x220] ss:$16 sps:$4 sm:$0xff]   ;;  %v1680_v5 = vld [vmem:[%s1849_s25 + $0xc] ss:$16 sps:$4 sm:$0xff]  }
  0x1c   : > { %1116 = vmatprep.subr.bf16.mxu1 %v1586_v6  ;;  %v1590_v9 = vld [vmem:[%s1849_s25 + $0x44] ss:$16 sps:$4 sm:$0xff]   ;;  %v1594_v11 = vld [vmem:[%s1849_s25 + $0x40] ss:$16 sps:$4 sm:$0xff]   ;;  %1146 = vmatprep.mubr.bf16.mxu1 %v1418_v52  ;;  %v1683_v6 = vld [vmem:[%s1849_s25 + $0x20c] ss:$16 sps:$4 sm:$0xff]  }
  0x1d   : > { %v1592_v10 = vld [vmem:[%s1849_s25 + $0x244] ss:$16 sps:$4 sm:$0xff]   ;;  %v1595_v12 = vld [vmem:[%s1849_s25 + $0x240] ss:$16 sps:$4 sm:$0xff]  }
  0x1e   : > { %1076 = vmatpush1.bf16.msra.mxu0 %v1588_v7  ;;  %v1596_v13 = vld [vmem:[%s1849_s25 + $0x64] ss:$16 sps:$4 sm:$0xff]   ;;  %v1600_v15 = vld [vmem:[%s1849_s25 + $0x60] ss:$16 sps:$4 sm:$0xff]  }
  0x1f   : > { %1117 = vmatpush1.bf16.msra.mxu1 %v1589_v8  ;;  %1077 = vmatprep.subr.bf16.mxu0 %v1590_v9  ;;  %v1598_v14 = vld [vmem:[%s1849_s25 + $0x264] ss:$16 sps:$4 sm:$0xff]   ;;  %v1601_v16 = vld [vmem:[%s1849_s25 + $0x260] ss:$16 sps:$4 sm:$0xff]   ;;  %v1925_v8 = vcombine.low %v290_v49, %v290_v49  ;;  %v1678_v9 = vld [vmem:[%s1849_s25 + $0x8] ss:$16 sps:$4 sm:$0xff]  }
  0x20   : > { %1118 = vmatprep.subr.bf16.mxu1 %v1592_v10  ;;  %v1602_v17 = vld [vmem:[%s1849_s25 + $0x84] ss:$16 sps:$4 sm:$0xff]   ;;  %v1606_v19 = vld [vmem:[%s1849_s25 + $0x80] ss:$16 sps:$4 sm:$0xff]   ;;  %v1681_v10 = vld [vmem:[%s1849_s25 + $0x208] ss:$16 sps:$4 sm:$0xff]  }
  0x21   : > { %v1604_v18 = vld [vmem:[%s1849_s25 + $0x284] ss:$16 sps:$4 sm:$0xff]   ;;  %v1607_v20 = vld [vmem:[%s1849_s25 + $0x280] ss:$16 sps:$4 sm:$0xff]   ;;  %v1738_v49 = vld [vmem:[%s1849_s25 + $0x148] ss:$16 sps:$4 sm:$0xff]  }
  0x22   : > { %1078 = vmatpush1.bf16.msra.mxu0 %v1594_v11  ;;  %v1608_v21 = vld [vmem:[%s1849_s25 + $0xa4] ss:$16 sps:$4 sm:$0xff]   ;;  %v1612_v23 = vld [vmem:[%s1849_s25 + $0xa0] ss:$16 sps:$4 sm:$0xff]   ;;  %v1686_v11 = vld [vmem:[%s1849_s25 + $0x2c] ss:$16 sps:$4 sm:$0xff]  }
  0x23   : > { %1119 = vmatpush1.bf16.msra.mxu1 %v1595_v12  ;;  %1079 = vmatprep.subr.bf16.mxu0 %v1596_v13  ;;  %v1610_v22 = vld [vmem:[%s1849_s25 + $0x2a4] ss:$16 sps:$4 sm:$0xff]   ;;  %v1613_v24 = vld [vmem:[%s1849_s25 + $0x2a0] ss:$16 sps:$4 sm:$0xff]   ;;  %v1689_v12 = vld [vmem:[%s1849_s25 + $0x22c] ss:$16 sps:$4 sm:$0xff]  }
  0x24   : > { %1120 = vmatprep.subr.bf16.mxu1 %v1598_v14  ;;  %v1614_v25 = vld [vmem:[%s1849_s25 + $0xc4] ss:$16 sps:$4 sm:$0xff]   ;;  %v1618_v27 = vld [vmem:[%s1849_s25 + $0xc0] ss:$16 sps:$4 sm:$0xff]   ;;  %v1684_v13 = vld [vmem:[%s1849_s25 + $0x28] ss:$16 sps:$4 sm:$0xff]  }
  0x25   : > { %v1616_v26 = vld [vmem:[%s1849_s25 + $0x2c4] ss:$16 sps:$4 sm:$0xff]   ;;  %v1619_v28 = vld [vmem:[%s1849_s25 + $0x2c0] ss:$16 sps:$4 sm:$0xff]   ;;  %v1687_v14 = vld [vmem:[%s1849_s25 + $0x228] ss:$16 sps:$4 sm:$0xff]  }
  0x26   : > { %1080 = vmatpush1.bf16.msra.mxu0 %v1600_v15  ;;  %v1620_v29 = vld [vmem:[%s1849_s25 + $0xe4] ss:$16 sps:$4 sm:$0xff]   ;;  %v1624_v31 = vld [vmem:[%s1849_s25 + $0xe0] ss:$16 sps:$4 sm:$0xff]   ;;  %v1692_v15 = vld [vmem:[%s1849_s25 + $0x4c] ss:$16 sps:$4 sm:$0xff]  }
  0x27   : > { %1121 = vmatpush1.bf16.msra.mxu1 %v1601_v16  ;;  %1081 = vmatprep.subr.bf16.mxu0 %v1602_v17  ;;  %v1622_v30 = vld [vmem:[%s1849_s25 + $0x2e4] ss:$16 sps:$4 sm:$0xff]   ;;  %v1625_v32 = vld [vmem:[%s1849_s25 + $0x2e0] ss:$16 sps:$4 sm:$0xff]   ;;  %v1695_v16 = vld [vmem:[%s1849_s25 + $0x24c] ss:$16 sps:$4 sm:$0xff]  }
  0x28   : > { %1122 = vmatprep.subr.bf16.mxu1 %v1604_v18  ;;  %v1626_v33 = vld [vmem:[%s1849_s25 + $0x104] ss:$16 sps:$4 sm:$0xff]   ;;  %v1630_v35 = vld [vmem:[%s1849_s25 + $0x100] ss:$16 sps:$4 sm:$0xff]   ;;  %v1690_v17 = vld [vmem:[%s1849_s25 + $0x48] ss:$16 sps:$4 sm:$0xff]  }
  0x29   : > { %v1628_v34 = vld [vmem:[%s1849_s25 + $0x304] ss:$16 sps:$4 sm:$0xff]   ;;  %v1631_v36 = vld [vmem:[%s1849_s25 + $0x300] ss:$16 sps:$4 sm:$0xff]   ;;  %v1693_v18 = vld [vmem:[%s1849_s25 + $0x248] ss:$16 sps:$4 sm:$0xff]  }
  0x2a   : > { %1082 = vmatpush1.bf16.msra.mxu0 %v1606_v19  ;;  %v1632_v37 = vld [vmem:[%s1849_s25 + $0x124] ss:$16 sps:$4 sm:$0xff]   ;;  %v1636_v39 = vld [vmem:[%s1849_s25 + $0x120] ss:$16 sps:$4 sm:$0xff]   ;;  %v1698_v19 = vld [vmem:[%s1849_s25 + $0x6c] ss:$16 sps:$4 sm:$0xff]  }
  0x2b   : > { %1123 = vmatpush1.bf16.msra.mxu1 %v1607_v20  ;;  %1083 = vmatprep.subr.bf16.mxu0 %v1608_v21  ;;  %v1634_v38 = vld [vmem:[%s1849_s25 + $0x324] ss:$16 sps:$4 sm:$0xff]   ;;  %v1637_v40 = vld [vmem:[%s1849_s25 + $0x320] ss:$16 sps:$4 sm:$0xff]   ;;  %v1701_v20 = vld [vmem:[%s1849_s25 + $0x26c] ss:$16 sps:$4 sm:$0xff]  }
  0x2c   : > { %1124 = vmatprep.subr.bf16.mxu1 %v1610_v22  ;;  %v1638_v41 = vld [vmem:[%s1849_s25 + $0x144] ss:$16 sps:$4 sm:$0xff]   ;;  %v1642_v43 = vld [vmem:[%s1849_s25 + $0x140] ss:$16 sps:$4 sm:$0xff]   ;;  %v1696_v21 = vld [vmem:[%s1849_s25 + $0x68] ss:$16 sps:$4 sm:$0xff]  }
  0x2d   : > { %v1640_v42 = vld [vmem:[%s1849_s25 + $0x344] ss:$16 sps:$4 sm:$0xff]   ;;  %v1643_v44 = vld [vmem:[%s1849_s25 + $0x340] ss:$16 sps:$4 sm:$0xff]   ;;  %v1699_v22 = vld [vmem:[%s1849_s25 + $0x268] ss:$16 sps:$4 sm:$0xff]  }
  0x2e   : > { %1084 = vmatpush1.bf16.msra.mxu0 %v1612_v23  ;;  %v1644_v45 = vld [vmem:[%s1849_s25 + $0x164] ss:$16 sps:$4 sm:$0xff]   ;;  %v1648_v50 = vld [vmem:[%s1849_s25 + $0x160] ss:$16 sps:$4 sm:$0xff]   ;;  %v1704_v23 = vld [vmem:[%s1849_s25 + $0x8c] ss:$16 sps:$4 sm:$0xff]  }
  0x2f   : > { %1125 = vmatpush1.bf16.msra.mxu1 %v1613_v24  ;;  %1085 = vmatprep.subr.bf16.mxu0 %v1614_v25  ;;  %v1646_v46 = vld [vmem:[%s1849_s25 + $0x364] ss:$16 sps:$4 sm:$0xff]   ;;  %v1649_v51 = vld [vmem:[%s1849_s25 + $0x360] ss:$16 sps:$4 sm:$0xff]   ;;  %v1707_v24 = vld [vmem:[%s1849_s25 + $0x28c] ss:$16 sps:$4 sm:$0xff]  }
  0x30   : > { %1126 = vmatprep.subr.bf16.mxu1 %v1616_v26  ;;  %v289_v47 = vld [vmem:[%s1844_s21] sm:$0xff]  ;;  %v1702_v25 = vld [vmem:[%s1849_s25 + $0x88] ss:$16 sps:$4 sm:$0xff]  }
  0x31   : > { %v1899_v48 = vcombine.high %v289_v47, %v289_v47  ;;  %v1650_v53 = vld [vmem:[%s1849_s25 + $0x184] ss:$16 sps:$4 sm:$0xff]   ;;  %v1654_v55 = vld [vmem:[%s1849_s25 + $0x180] ss:$16 sps:$4 sm:$0xff]   ;;  %v1923_v7 = vcombine.low %v289_v47, %v289_v47  ;;  %v1705_v26 = vld [vmem:[%s1849_s25 + $0x288] ss:$16 sps:$4 sm:$0xff]  }
  0x32   : > { %1086 = vmatpush1.bf16.msra.mxu0 %v1618_v27  ;;  %v1652_v54 = vld [vmem:[%s1849_s25 + $0x384] ss:$16 sps:$4 sm:$0xff]   ;;  %v1655_v56 = vld [vmem:[%s1849_s25 + $0x380] ss:$16 sps:$4 sm:$0xff]   ;;  %v1710_v27 = vld [vmem:[%s1849_s25 + $0xac] ss:$16 sps:$4 sm:$0xff]  }
  0x33   : > { %1127 = vmatpush1.bf16.msra.mxu1 %v1619_v28  ;;  %1087 = vmatprep.subr.bf16.mxu0 %v1620_v29  ;;  %v1656_v57 = vld [vmem:[%s1849_s25 + $0x1a4] ss:$16 sps:$4 sm:$0xff]   ;;  %v1660_v59 = vld [vmem:[%s1849_s25 + $0x1a0] ss:$16 sps:$4 sm:$0xff]   ;;  %v1713_v28 = vld [vmem:[%s1849_s25 + $0x2ac] ss:$16 sps:$4 sm:$0xff]  }
  0x34   : > { %1128 = vmatprep.subr.bf16.mxu1 %v1622_v30  ;;  %1105 = vmatprep.mubr.bf16.mxu0 %v1899_v48  ;;  %v1658_v58 = vld [vmem:[%s1849_s25 + $0x3a4] ss:$16 sps:$4 sm:$0xff]   ;;  %v1661_v60 = vld [vmem:[%s1849_s25 + $0x3a0] ss:$16 sps:$4 sm:$0xff]   ;;  %v1708_v29 = vld [vmem:[%s1849_s25 + $0xa8] ss:$16 sps:$4 sm:$0xff]  }
  0x35   : > { %v1662_v61 = vld [vmem:[%s1849_s25 + $0x1c4] ss:$16 sps:$4 sm:$0xff]   ;;  %v1666_v63 = vld [vmem:[%s1849_s25 + $0x1c0] ss:$16 sps:$4 sm:$0xff]   ;;  %v1711_v30 = vld [vmem:[%s1849_s25 + $0x2a8] ss:$16 sps:$4 sm:$0xff]  }
  0x36   : > { %1088 = vmatpush1.bf16.msra.mxu0 %v1624_v31  ;;  %v1664_v62 = vld [vmem:[%s1849_s25 + $0x3c4] ss:$16 sps:$4 sm:$0xff]   ;;  %v1667_v0 = vld [vmem:[%s1849_s25 + $0x3c0] ss:$16 sps:$4 sm:$0xff]   ;;  %v1716_v31 = vld [vmem:[%s1849_s25 + $0xcc] ss:$16 sps:$4 sm:$0xff]  }
  0x37   : > { %1129 = vmatpush1.bf16.msra.mxu1 %v1625_v32  ;;  %1089 = vmatprep.subr.bf16.mxu0 %v1626_v33  ;;  %v1668_v1 = vld [vmem:[%s1849_s25 + $0x1e4] ss:$16 sps:$4 sm:$0xff]   ;;  %v1672_v3 = vld [vmem:[%s1849_s25 + $0x1e0] ss:$16 sps:$4 sm:$0xff]   ;;  %v1719_v32 = vld [vmem:[%s1849_s25 + $0x2cc] ss:$16 sps:$4 sm:$0xff]  }
  0x38   : > { %1130 = vmatprep.subr.bf16.mxu1 %v1628_v34  ;;  %v1670_v2 = vld [vmem:[%s1849_s25 + $0x3e4] ss:$16 sps:$4 sm:$0xff]   ;;  %v1673_v4 = vld [vmem:[%s1849_s25 + $0x3e0] ss:$16 sps:$4 sm:$0xff]   ;;  %v1714_v33 = vld [vmem:[%s1849_s25 + $0xc8] ss:$16 sps:$4 sm:$0xff]  }
  0x39   : > { %v1717_v34 = vld [vmem:[%s1849_s25 + $0x2c8] ss:$16 sps:$4 sm:$0xff]   ;;  %v1740_v47 = vld [vmem:[%s1849_s25 + $0x14c] ss:$16 sps:$4 sm:$0xff]  }
  0x3a   : > { %1090 = vmatpush1.bf16.msra.mxu0 %v1630_v35  ;;  %v1722_v35 = vld [vmem:[%s1849_s25 + $0xec] ss:$16 sps:$4 sm:$0xff]  }
  0x3b   : > { %1131 = vmatpush1.bf16.msra.mxu1 %v1631_v36  ;;  %1091 = vmatprep.subr.bf16.mxu0 %v1632_v37  ;;  %v1725_v36 = vld [vmem:[%s1849_s25 + $0x2ec] ss:$16 sps:$4 sm:$0xff]   ;;  %v1720_v37 = vld [vmem:[%s1849_s25 + $0xe8] ss:$16 sps:$4 sm:$0xff]  }
  0x3c   : > { %1132 = vmatprep.subr.bf16.mxu1 %v1634_v38  ;;  %v1723_v38 = vld [vmem:[%s1849_s25 + $0x2e8] ss:$16 sps:$4 sm:$0xff]  }
  0x3e   : > { %1092 = vmatpush1.bf16.msra.mxu0 %v1636_v39  ;;  %v1728_v39 = vld [vmem:[%s1849_s25 + $0x10c] ss:$16 sps:$4 sm:$0xff]  }
  0x3f   : > { %1133 = vmatpush1.bf16.msra.mxu1 %v1637_v40  ;;  %1093 = vmatprep.subr.bf16.mxu0 %v1638_v41  ;;  %v1731_v40 = vld [vmem:[%s1849_s25 + $0x30c] ss:$16 sps:$4 sm:$0xff]   ;;  %v1726_v41 = vld [vmem:[%s1849_s25 + $0x108] ss:$16 sps:$4 sm:$0xff]  }
  0x40   : > { %1134 = vmatprep.subr.bf16.mxu1 %v1640_v42  ;;  %v1729_v42 = vld [vmem:[%s1849_s25 + $0x308] ss:$16 sps:$4 sm:$0xff]  }
  0x42   : > { %1094 = vmatpush1.bf16.msra.mxu0 %v1642_v43  ;;  %v1734_v43 = vld [vmem:[%s1849_s25 + $0x12c] ss:$16 sps:$4 sm:$0xff]  }
  0x43   : > { %1135 = vmatpush1.bf16.msra.mxu1 %v1643_v44  ;;  %1095 = vmatprep.subr.bf16.mxu0 %v1644_v45  ;;  %v1737_v44 = vld [vmem:[%s1849_s25 + $0x32c] ss:$16 sps:$4 sm:$0xff]   ;;  %v1732_v45 = vld [vmem:[%s1849_s25 + $0x128] ss:$16 sps:$4 sm:$0xff]  }
  0x44   : > { %1136 = vmatprep.subr.bf16.mxu1 %v1646_v46  ;;  %v1735_v46 = vld [vmem:[%s1849_s25 + $0x328] ss:$16 sps:$4 sm:$0xff]  }
  0x46   : > { %1096 = vmatpush1.bf16.msra.mxu0 %v1648_v50  ;;  %v1741_v50 = vld [vmem:[%s1849_s25 + $0x348] ss:$16 sps:$4 sm:$0xff]  }
  0x47   : > { %1137 = vmatpush1.bf16.msra.mxu1 %v1649_v51  ;;  %1097 = vmatprep.subr.bf16.mxu0 %v1650_v53  ;;  %v1746_v51 = vld [vmem:[%s1849_s25 + $0x16c] ss:$16 sps:$4 sm:$0xff]   ;;  %v1744_v53 = vld [vmem:[%s1849_s25 + $0x168] ss:$16 sps:$4 sm:$0xff]  }
  0x48   : > { %1138 = vmatprep.subr.bf16.mxu1 %v1652_v54  ;;  %v1747_v54 = vld [vmem:[%s1849_s25 + $0x368] ss:$16 sps:$4 sm:$0xff]  }
  0x4a   : > { %1098 = vmatpush1.bf16.msra.mxu0 %v1654_v55  ;;  %v1752_v55 = vld [vmem:[%s1849_s25 + $0x18c] ss:$16 sps:$4 sm:$0xff]  }
  0x4b   : > { %1139 = vmatpush1.bf16.msra.mxu1 %v1655_v56  ;;  %1099 = vmatprep.subr.bf16.mxu0 %v1656_v57  ;;  %v1755_v56 = vld [vmem:[%s1849_s25 + $0x38c] ss:$16 sps:$4 sm:$0xff]   ;;  %v1750_v57 = vld [vmem:[%s1849_s25 + $0x188] ss:$16 sps:$4 sm:$0xff]  }
  0x4c   : > { %1140 = vmatprep.subr.bf16.mxu1 %v1658_v58  ;;  %v1753_v58 = vld [vmem:[%s1849_s25 + $0x388] ss:$16 sps:$4 sm:$0xff]  }
  0x4e   : > { %1100 = vmatpush1.bf16.msra.mxu0 %v1660_v59  ;;  %v1758_v59 = vld [vmem:[%s1849_s25 + $0x1ac] ss:$16 sps:$4 sm:$0xff]  }
  0x4f   : > { %1141 = vmatpush1.bf16.msra.mxu1 %v1661_v60  ;;  %1101 = vmatprep.subr.bf16.mxu0 %v1662_v61  ;;  %v1761_v60 = vld [vmem:[%s1849_s25 + $0x3ac] ss:$16 sps:$4 sm:$0xff]   ;;  %v1756_v61 = vld [vmem:[%s1849_s25 + $0x1a8] ss:$16 sps:$4 sm:$0xff]  }
  0x50   : > { %1142 = vmatprep.subr.bf16.mxu1 %v1664_v62  ;;  %v1759_v62 = vld [vmem:[%s1849_s25 + $0x3a8] ss:$16 sps:$4 sm:$0xff]  }
  0x52   : > { %1102 = vmatpush1.bf16.msra.mxu0 %v1666_v63  ;;  %v1764_v63 = vld [vmem:[%s1849_s25 + $0x1cc] ss:$16 sps:$4 sm:$0xff]  }
  0x53   : > { %1143 = vmatpush1.bf16.msra.mxu1 %v1667_v0  ;;  %1103 = vmatprep.subr.bf16.mxu0 %v1668_v1  ;;  %v1767_v0 = vld [vmem:[%s1849_s25 + $0x3cc] ss:$16 sps:$4 sm:$0xff]   ;;  %v1762_v1 = vld [vmem:[%s1849_s25 + $0x1c8] ss:$16 sps:$4 sm:$0xff]  }
  0x54   : > { %1144 = vmatprep.subr.bf16.mxu1 %v1670_v2  ;;  %v1765_v2 = vld [vmem:[%s1849_s25 + $0x3c8] ss:$16 sps:$4 sm:$0xff]  }
  0x56   : > { %1104 = vmatpush1.bf16.msra.mxu0 %v1672_v3  ;;  %v1770_v3 = vld [vmem:[%s1849_s25 + $0x1ec] ss:$16 sps:$4 sm:$0xff]  }
  0x57   : > { %1145 = vmatpush1.bf16.msra.mxu1 %v1673_v4  ;;  %1155 = vmatprep.subr.bf16.mxu0 %v1680_v5  ;;  %v1773_v4 = vld [vmem:[%s1849_s25 + $0x3ec] ss:$16 sps:$4 sm:$0xff]   ;;  %v1768_v5 = vld [vmem:[%s1849_s25 + $0x1e8] ss:$16 sps:$4 sm:$0xff]  }
  0x58   : > { %1196 = vmatprep.subr.bf16.mxu1 %v1683_v6  ;;  %v1771_v6 = vld [vmem:[%s1849_s25 + $0x3e8] ss:$16 sps:$4 sm:$0xff]  }
  0x59   : > { %1106 = vmatmul.mubr.bf16.vlgmr.msra.gmra.mrb[0].mxu0 %v1923_v7 }
  0x5a   : > { %1147 = vmatmul.mubr.bf16.vlgmr.msra.gmra.mrb[0].mxu1 %v1925_v8  ;;  %1156 = vmatpush1.bf16.msra.mxu0 %v1678_v9 }
  0x5b   : > { %1197 = vmatpush1.bf16.msra.mxu1 %v1681_v10  ;;  %1157 = vmatprep.subr.bf16.mxu0 %v1686_v11  ;;  %v285_v10 = vld [vmem:[#allocation2] sm:$0xff] }
  0x5c   : > { %1198 = vmatprep.subr.bf16.mxu1 %v1689_v12  ;;  %1187 = vmatprep.mubr.bf16.mxu0 %v1899_v48  ;;  %v1743_v48 = vld [vmem:[%s1849_s25 + $0x34c] ss:$16 sps:$4 sm:$0xff]  }
  0x5d   : > { %1228 = vmatprep.mubr.bf16.mxu1 %v1418_v52  ;;  %v1749_v52 = vld [vmem:[%s1849_s25 + $0x36c] ss:$16 sps:$4 sm:$0xff]  }
  0x5e   : > { %1158 = vmatpush1.bf16.msra.mxu0 %v1684_v13 }
  0x5f   : > { %1199 = vmatpush1.bf16.msra.mxu1 %v1687_v14  ;;  %1159 = vmatprep.subr.bf16.mxu0 %v1692_v15  ;;  %v286_v14 = vld [vmem:[#allocation2 + $0x8] sm:$0xff] }
  0x60   : > { %1200 = vmatprep.subr.bf16.mxu1 %v1695_v16 }
  0x62   : > { %1160 = vmatpush1.bf16.msra.mxu0 %v1690_v17 }
  0x63   : > { %1201 = vmatpush1.bf16.msra.mxu1 %v1693_v18  ;;  %1161 = vmatprep.subr.bf16.mxu0 %v1698_v19 }
  0x64   : > { %1202 = vmatprep.subr.bf16.mxu1 %v1701_v20 }
  0x66   : > { %1162 = vmatpush1.bf16.msra.mxu0 %v1696_v21 }
  0x67   : > { %1203 = vmatpush1.bf16.msra.mxu1 %v1699_v22  ;;  %1163 = vmatprep.subr.bf16.mxu0 %v1704_v23 }
  0x68   : > { %1204 = vmatprep.subr.bf16.mxu1 %v1707_v24 }
  0x6a   : > { %1164 = vmatpush1.bf16.msra.mxu0 %v1702_v25 }
  0x6b   : > { %1205 = vmatpush1.bf16.msra.mxu1 %v1705_v26  ;;  %1165 = vmatprep.subr.bf16.mxu0 %v1710_v27  ;;  %v288_v26 = vld [vmem:[#allocation2 + $0x18] sm:$0xff] }
  0x6c   : > { %1206 = vmatprep.subr.bf16.mxu1 %v1713_v28 }
  0x6e   : > { %1166 = vmatpush1.bf16.msra.mxu0 %v1708_v29 }
  0x6f   : > { %1207 = vmatpush1.bf16.msra.mxu1 %v1711_v30  ;;  %1167 = vmatprep.subr.bf16.mxu0 %v1716_v31 }
  0x70   : > { %1208 = vmatprep.subr.bf16.mxu1 %v1719_v32 }
  0x72   : > { %1168 = vmatpush1.bf16.msra.mxu0 %v1714_v33 }
  0x73   : > { %1209 = vmatpush1.bf16.msra.mxu1 %v1717_v34  ;;  %1169 = vmatprep.subr.bf16.mxu0 %v1722_v35  ;;  %v1255_v35 = vlaneseq (!%p1547_p7) }
  0x74   : > { %1210 = vmatprep.subr.bf16.mxu1 %v1725_v36 }
  0x75   : > { %v1256_v36 = vshrl.u32 (!%p1547_p7), %v1255_v35, 7 }
  0x76   : > { %1170 = vmatpush1.bf16.msra.mxu0 %v1720_v37  ;;  %v1253_v37 = vld [vmem:[%s2021_s2] sm:$0xf] (!%p1547_p7) }
  0x77   : > { %1211 = vmatpush1.bf16.msra.mxu1 %v1723_v38  ;;  %1171 = vmatprep.subr.bf16.mxu0 %v1728_v39  ;;  %v1257_v39 = vsub.s32 (!%p1547_p7), 0, %v1256_v36 }
  0x78   : > { %1212 = vmatprep.subr.bf16.mxu1 %v1731_v40  ;;  %v1261_v40 = vsub.s32 (!%p1547_p7), 1, %v1256_v36 }
  0x7a   : > { %1172 = vmatpush1.bf16.msra.mxu0 %v1726_v41  ;;  %v1265_v41 = vsub.s32 (!%p1547_p7), 2, %v1256_v36 }
  0x7b   : > { %1213 = vmatpush1.bf16.msra.mxu1 %v1729_v42  ;;  %1173 = vmatprep.subr.bf16.mxu0 %v1734_v43  ;;  %v1269_v42 = vsub.s32 (!%p1547_p7), 3, %v1256_v36 }
  0x7c   : > { %1214 = vmatprep.subr.bf16.mxu1 %v1737_v44 }
  0x7e   : > { %1174 = vmatpush1.bf16.msra.mxu0 %v1732_v45 }
  0x7f   : > { %1215 = vmatpush1.bf16.msra.mxu1 %v1735_v46  ;;  %1175 = vmatprep.subr.bf16.mxu0 %v1740_v47  ;;  %v1258_v46 = vrot.slane (!%p1547_p7), %v1253_v37, %v1257_v39  ;;  %v1262_v47 = vrot.slane (!%p1547_p7), %v1253_v37, %v1261_v40 }
  0x80   : > { %1216 = vmatprep.subr.bf16.mxu1 %v1743_v48  ;;  %v1266_v48 = vrot.slane (!%p1547_p7), %v1253_v37, %v1265_v41 }
  0x82   : > { %1176 = vmatpush1.bf16.msra.mxu0 %v1738_v49  ;;  %v1270_v49 = vrot.slane (!%p1547_p7), %v1253_v37, %v1269_v42 }
  0x83   : > { %1217 = vmatpush1.bf16.msra.mxu1 %v1741_v50  ;;  %1177 = vmatprep.subr.bf16.mxu0 %v1746_v51 }
  0x84   : > { %1218 = vmatprep.subr.bf16.mxu1 %v1749_v52 }
  0x86   : > { %1178 = vmatpush1.bf16.msra.mxu0 %v1744_v53 }
  0x87   : > { %1219 = vmatpush1.bf16.msra.mxu1 %v1747_v54  ;;  %1179 = vmatprep.subr.bf16.mxu0 %v1752_v55 }
  0x88   : > { %1220 = vmatprep.subr.bf16.mxu1 %v1755_v56 }
  0x8a   : > { %1180 = vmatpush1.bf16.msra.mxu0 %v1750_v57 }
  0x8b   : > { %1221 = vmatpush1.bf16.msra.mxu1 %v1753_v58  ;;  %1181 = vmatprep.subr.bf16.mxu0 %v1758_v59 }
  0x8c   : > { %1222 = vmatprep.subr.bf16.mxu1 %v1761_v60 }
  0x8e   : > { %1182 = vmatpush1.bf16.msra.mxu0 %v1756_v61 }
  0x8f   : > { %1223 = vmatpush1.bf16.msra.mxu1 %v1759_v62  ;;  %1183 = vmatprep.subr.bf16.mxu0 %v1764_v63 }
  0x90   : > { %1224 = vmatprep.subr.bf16.mxu1 %v1767_v0 }
  0x92   : > { %1184 = vmatpush1.bf16.msra.mxu0 %v1762_v1 }
  0x93   : > { %1225 = vmatpush1.bf16.msra.mxu1 %v1765_v2  ;;  %1185 = vmatprep.subr.bf16.mxu0 %v1770_v3 }
  0x94   : > { %1226 = vmatprep.subr.bf16.mxu1 %v1773_v4 }
  0x96   : > { %1186 = vmatpush1.bf16.msra.mxu0 %v1768_v5 }
  0x97   : > { %1227 = vmatpush1.bf16.msra.mxu1 %v1771_v6 }
  0x99   : > { %1188 = vmatmul.mubr.bf16.vlgmr.msra.gmra.mrb[4].mxu0 %v1923_v7  ;;  %v287_v7 = vld [vmem:[#allocation2 + $0x10] sm:$0xff] }
  0x9a   : > { %1229 = vmatmul.mubr.bf16.vlgmr.msra.gmra.mrb[4].mxu1 %v1925_v8 }
 0x12c   : > { %v1107_v9 = vpop.f32.mrb[0].mxu0 }
 0x12d   : > { %v1148_v11 = vpop.f32.mrb[0].mxu1  ;;  %v1109_v13 = vpop.f32.mrb[1].mxu0 }
 0x12e   : > { %v1149_v12 = vadd.f32 %v1148_v11, %v1107_v9  ;;  %v1150_v15 = vpop.f32.mrb[1].mxu1  ;;  %v1111_v17 = vpop.f32.mrb[2].mxu0 }
 0x12f   : > { %v1151_v16 = vadd.f32 %v1150_v15, %v1109_v13  ;;  %v1152_v18 = vpop.f32.mrb[2].mxu1  ;;  %v1112_v20 = vpop.f32.mrb[3].mxu0 }
 0x130   : > { %v1237_v19 = vadd.f32 %v1149_v12, %v285_v10  ;;  %v1153_v21 = vpop.f32.mrb[3].mxu1 }
 0x131   : > { %v1238_v22 = vadd.f32 %v1151_v16, %v286_v14 }
 0x132   : > { %1241 = vst [vmem:[#allocation2] sm:$0xff] %v1237_v19 }
 0x133   : > { %1242 = vst [vmem:[#allocation2 + $0x8] sm:$0xff] %v1238_v22 }
 0x139   : > { %v1249_v38 = vld [vmem:[#allocation2] sm:$0xff] (!%p1547_p7) }
 0x13a   : > { %v1250_v43 = vld [vmem:[#allocation2 + $0x8] sm:$0xff] (!%p1547_p7)  ;;  %v1275_v50 = vadd.f32 (!%p1547_p7), %v1258_v46, %v1249_v38 }
 0x13b   : > { %v1276_v51 = vadd.f32 (!%p1547_p7), %v1262_v47, %v1250_v43 }
 0x13c   : > { %v1279_v54 = vmax.f32 (!%p1547_p7), %v1275_v50, 0.0 }
 0x13d   : > { %v1280_v55 = vmax.f32 (!%p1547_p7), %v1276_v51, 0.0 }
 0x13e   : > { %1283 = vst [vmem:[%s2022_s3] sm:$0xff] (!%p1547_p7), %v1279_v54 }
 0x13f   : > { %1284 = vst [vmem:[%s2022_s3 + $0x8] sm:$0xff] (!%p1547_p7), %v1280_v55 }
 0x16c   : > { %v1189_v23 = vpop.f32.mrb[4].mxu0 }
 0x16d   : > { %v1230_v24 = vpop.f32.mrb[4].mxu1  ;;  %v1191_v25 = vpop.f32.mrb[5].mxu0  ;;  %1248 = sbr.rel (%p1547_p7) target bundleno = 384 (0x180), region = 40 }
 0x16e   : > { %v1231_v8 = vadd.f32 %v1230_v24, %v1189_v23  ;;  %v1232_v27 = vpop.f32.mrb[5].mxu1  ;;  %v1193_v29 = vpop.f32.mrb[6].mxu0 }
 0x16f   : > { %v1233_v28 = vadd.f32 %v1232_v27, %v1191_v25  ;;  %v1234_v30 = vpop.f32.mrb[6].mxu1  ;;  %v1194_v32 = vpop.f32.mrb[7].mxu0 }
 0x170   : > { %v1239_v31 = vadd.f32 %v1231_v8, %v287_v7  ;;  %v1235_v33 = vpop.f32.mrb[7].mxu1 }
 0x171   : > { %v1240_v34 = vadd.f32 %v1233_v28, %v288_v26 }
 0x172   : > { %1243 = vst [vmem:[#allocation2 + $0x10] sm:$0xff] %v1239_v31 }
 0x173   : > { %1244 = vst [vmem:[#allocation2 + $0x18] sm:$0xff] %v1240_v34 }
 0x179   : > { %v1251_v44 = vld [vmem:[#allocation2 + $0x10] sm:$0xff] }
 0x17a   : > { %v1252_v45 = vld [vmem:[#allocation2 + $0x18] sm:$0xff]  ;;  %v1277_v52 = vadd.f32 %v1266_v48, %v1251_v44 }
 0x17b   : > { %v1278_v53 = vadd.f32 %v1270_v49, %v1252_v45 }
 0x17c   : > { %v1281_v56 = vmax.f32 %v1277_v52, 0.0 }
 0x17d   : > { %v1282_v57 = vmax.f32 %v1278_v53, 0.0 }
 0x17e   : > { %1285 = vst [vmem:[%s2022_s3 + $0x10] sm:$0xff] %v1281_v56 }
 0x17f   : > { %1286 = vst [vmem:[%s2022_s3 + $0x18] sm:$0xff] %v1282_v57 }
 0x180 PF: > { %s13_s14 = sadd.s32 1, %s1796_s14   ;;  %s2023_s12 = smov %s1792_s13 }
 0x181   : > { %p10_p8 = scmp.ge.s32.totalorder %s13_s14, 7   ;;  %s2024_s13 = smov %s2026_s15 }
 0x183   :  { %12 = sbr.rel (!%p10_p8) target bundleno = 2 (0x2), region = 76 }

// kernel: quality_net_forward.41
= control target key start
LH: loop header
LB: loop body
LE: loop exit
PB: predicated region body
PF: predicated region fallthrough
CT: control target
= control target key end

     0   :  { %s1815_s12 = smov 0   ;;  %s1817_s13 = smov 0   ;;  %s2015_s0 = inlined_call_operand.vmem [shape: bf16[8,4608], index: 0, kind: input, shape index: {}]   ;;  %s2016_s1 = inlined_call_operand.vmem [shape: bf16[4608,512], index: 1, kind: input, shape index: {}]   ;;  %s2017_s2 = inlined_call_operand.vmem [shape: f32[1,512], index: 2, kind: input, shape index: {}]   ;;  %s2018_s3 = inlined_call_operand.vmem [shape: f32[8,512], index: 3, kind: output, shape index: {}]  }
   0x1   :  { %s1819_s14 = smov 0  }
   0x2 LB: > { %s25_s15 = sadd.s32 1, %s1788_s13  ;;  %p1404_p0 = scmp.ge.s32.totalorder %s1792_s14, 1  ;;  %s1792_s14 = sphi %s1819_s14, %s13_s14   ;;  %s1788_s13 = sphi %s1817_s13, %s2020_s13   ;;  %s1784_s12 = sphi %s1815_s12, %s2019_s12  }
   0x3   : > { %p26_p1 = scmp.ge.s32.totalorder %s25_s15, 9  ;;  %p194_p2 = scmp.lt.s32.totalorder %s1792_s14, 10 }
   0x5   : > { %s2022_s15 = smov (%p26_p1, %s25_s15), 0  ;;  %p195_p3 = pnand %p1404_p0, %p194_p2 }
   0x6   : > { %s1405_s16 = sshll.u32 (!%p195_p3), %s1784_s12, 2  ;;  %s1407_s17 = sshll.u32 (!%p195_p3), %s1784_s12, 6 }
   0x7   : > { %198 = sbr.rel (%p195_p3) target bundleno = 382 (0x17e), region = 32  ;;  %p243_p4 = scmp.lt.s32.totalorder (!%p195_p3), %s1405_s16, 35 }
   0x8   : > { %p252_p5 = scmp.lt.s32.totalorder (!%p195_p3), %s1407_s17, 575  ;;  %p1410_p6 = scmp.ne.s32.totalorder (!%p195_p3), %s1784_s12, 0 }
   0xe   : > { %s2024_s16 = smov (!%p243_p4, %s1405_s16), 35  ;;  %s2026_s17 = smov (!%p252_p5, %s1407_s17), 575 }
   0xf   : > { %s1406_s18 = sshll.u32 %s2024_s16, 2  ;;  %s1548_s22 = sshll.u32 %s2026_s17, 4  ;;  %v1794_v0 = vmov (!%p1410_p6), 0.0  }
  0x10   : > { %s1840_s21 = scalar_lea.vmem %s2015_s0, %s1406_s18  ;;  %s1845_s25 = scalar_lea.vmem %s2016_s1, %s1548_s22  ;;  %281 = vst [vmem:[#allocation2] sm:$0xff] (!%p1410_p6), %v1794_v0  ;;  %282 = vst [vmem:[#allocation2 + $0x8] sm:$0xff] (!%p1410_p6), %v1794_v0 }
  0x11   : > { %280 = sbr.rel (%p1410_p6) target bundleno = 24 (0x18), region = 36  ;;  %283 = vst [vmem:[#allocation2 + $0x10] sm:$0xff] (!%p1410_p6), %v1794_v0  ;;  %284 = vst [vmem:[#allocation2 + $0x18] sm:$0xff] (!%p1410_p6), %v1794_v0 }
  0x18 PF: > { %v1574_v1 = vld [vmem:[%s1845_s25 + $0x4] ss:$16 sps:$4 sm:$0xff]   ;;  %v1578_v3 = vld [vmem:[%s1845_s25] ss:$16 sps:$4 sm:$0xff]   ;;  %v290_v49 = vld [vmem:[%s1840_s21 + $0x8] sm:$0xff]  ;;  %p1543_p7 = scmp.ne.s32.totalorder %s1784_s12, 8 }
  0x19   : > { %v1576_v2 = vld [vmem:[%s1845_s25 + $0x204] ss:$16 sps:$4 sm:$0xff]   ;;  %1073 = vmatprep.subr.bf16.mxu0 %v1574_v1  ;;  %v1579_v4 = vld [vmem:[%s1845_s25 + $0x200] ss:$16 sps:$4 sm:$0xff]   ;;  %v1414_v52 = vcombine.high %v290_v49, %v290_v49 }
  0x1a   : > { %1114 = vmatprep.subr.bf16.mxu1 %v1576_v2  ;;  %v1580_v5 = vld [vmem:[%s1845_s25 + $0x24] ss:$16 sps:$4 sm:$0xff]   ;;  %1074 = vmatpush1.bf16.msra.mxu0 %v1578_v3  ;;  %v1584_v7 = vld [vmem:[%s1845_s25 + $0x20] ss:$16 sps:$4 sm:$0xff]  }
  0x1b   : > { %1115 = vmatpush1.bf16.msra.mxu1 %v1579_v4  ;;  %v1582_v6 = vld [vmem:[%s1845_s25 + $0x224] ss:$16 sps:$4 sm:$0xff]   ;;  %1075 = vmatprep.subr.bf16.mxu0 %v1580_v5  ;;  %v1585_v8 = vld [vmem:[%s1845_s25 + $0x220] ss:$16 sps:$4 sm:$0xff]   ;;  %v1676_v5 = vld [vmem:[%s1845_s25 + $0xc] ss:$16 sps:$4 sm:$0xff]  }
  0x1c   : > { %1116 = vmatprep.subr.bf16.mxu1 %v1582_v6  ;;  %v1586_v9 = vld [vmem:[%s1845_s25 + $0x44] ss:$16 sps:$4 sm:$0xff]   ;;  %v1590_v11 = vld [vmem:[%s1845_s25 + $0x40] ss:$16 sps:$4 sm:$0xff]   ;;  %1146 = vmatprep.mubr.bf16.mxu1 %v1414_v52  ;;  %v1679_v6 = vld [vmem:[%s1845_s25 + $0x20c] ss:$16 sps:$4 sm:$0xff]  }
  0x1d   : > { %v1588_v10 = vld [vmem:[%s1845_s25 + $0x244] ss:$16 sps:$4 sm:$0xff]   ;;  %v1591_v12 = vld [vmem:[%s1845_s25 + $0x240] ss:$16 sps:$4 sm:$0xff]  }
  0x1e   : > { %1076 = vmatpush1.bf16.msra.mxu0 %v1584_v7  ;;  %v1592_v13 = vld [vmem:[%s1845_s25 + $0x64] ss:$16 sps:$4 sm:$0xff]   ;;  %v1596_v15 = vld [vmem:[%s1845_s25 + $0x60] ss:$16 sps:$4 sm:$0xff]  }
  0x1f   : > { %1117 = vmatpush1.bf16.msra.mxu1 %v1585_v8  ;;  %1077 = vmatprep.subr.bf16.mxu0 %v1586_v9  ;;  %v1594_v14 = vld [vmem:[%s1845_s25 + $0x264] ss:$16 sps:$4 sm:$0xff]   ;;  %v1597_v16 = vld [vmem:[%s1845_s25 + $0x260] ss:$16 sps:$4 sm:$0xff]   ;;  %v1921_v8 = vcombine.low %v290_v49, %v290_v49  ;;  %v1674_v9 = vld [vmem:[%s1845_s25 + $0x8] ss:$16 sps:$4 sm:$0xff]  }
  0x20   : > { %1118 = vmatprep.subr.bf16.mxu1 %v1588_v10  ;;  %v1598_v17 = vld [vmem:[%s1845_s25 + $0x84] ss:$16 sps:$4 sm:$0xff]   ;;  %v1602_v19 = vld [vmem:[%s1845_s25 + $0x80] ss:$16 sps:$4 sm:$0xff]   ;;  %v1677_v10 = vld [vmem:[%s1845_s25 + $0x208] ss:$16 sps:$4 sm:$0xff]  }
  0x21   : > { %v1600_v18 = vld [vmem:[%s1845_s25 + $0x284] ss:$16 sps:$4 sm:$0xff]   ;;  %v1603_v20 = vld [vmem:[%s1845_s25 + $0x280] ss:$16 sps:$4 sm:$0xff]   ;;  %v1734_v49 = vld [vmem:[%s1845_s25 + $0x148] ss:$16 sps:$4 sm:$0xff]  }
  0x22   : > { %1078 = vmatpush1.bf16.msra.mxu0 %v1590_v11  ;;  %v1604_v21 = vld [vmem:[%s1845_s25 + $0xa4] ss:$16 sps:$4 sm:$0xff]   ;;  %v1608_v23 = vld [vmem:[%s1845_s25 + $0xa0] ss:$16 sps:$4 sm:$0xff]   ;;  %v1682_v11 = vld [vmem:[%s1845_s25 + $0x2c] ss:$16 sps:$4 sm:$0xff]  }
  0x23   : > { %1119 = vmatpush1.bf16.msra.mxu1 %v1591_v12  ;;  %1079 = vmatprep.subr.bf16.mxu0 %v1592_v13  ;;  %v1606_v22 = vld [vmem:[%s1845_s25 + $0x2a4] ss:$16 sps:$4 sm:$0xff]   ;;  %v1609_v24 = vld [vmem:[%s1845_s25 + $0x2a0] ss:$16 sps:$4 sm:$0xff]   ;;  %v1685_v12 = vld [vmem:[%s1845_s25 + $0x22c] ss:$16 sps:$4 sm:$0xff]  }
  0x24   : > { %1120 = vmatprep.subr.bf16.mxu1 %v1594_v14  ;;  %v1610_v25 = vld [vmem:[%s1845_s25 + $0xc4] ss:$16 sps:$4 sm:$0xff]   ;;  %v1614_v27 = vld [vmem:[%s1845_s25 + $0xc0] ss:$16 sps:$4 sm:$0xff]   ;;  %v1680_v13 = vld [vmem:[%s1845_s25 + $0x28] ss:$16 sps:$4 sm:$0xff]  }
  0x25   : > { %v1612_v26 = vld [vmem:[%s1845_s25 + $0x2c4] ss:$16 sps:$4 sm:$0xff]   ;;  %v1615_v28 = vld [vmem:[%s1845_s25 + $0x2c0] ss:$16 sps:$4 sm:$0xff]   ;;  %v1683_v14 = vld [vmem:[%s1845_s25 + $0x228] ss:$16 sps:$4 sm:$0xff]  }
  0x26   : > { %1080 = vmatpush1.bf16.msra.mxu0 %v1596_v15  ;;  %v1616_v29 = vld [vmem:[%s1845_s25 + $0xe4] ss:$16 sps:$4 sm:$0xff]   ;;  %v1620_v31 = vld [vmem:[%s1845_s25 + $0xe0] ss:$16 sps:$4 sm:$0xff]   ;;  %v1688_v15 = vld [vmem:[%s1845_s25 + $0x4c] ss:$16 sps:$4 sm:$0xff]  }
  0x27   : > { %1121 = vmatpush1.bf16.msra.mxu1 %v1597_v16  ;;  %1081 = vmatprep.subr.bf16.mxu0 %v1598_v17  ;;  %v1618_v30 = vld [vmem:[%s1845_s25 + $0x2e4] ss:$16 sps:$4 sm:$0xff]   ;;  %v1621_v32 = vld [vmem:[%s1845_s25 + $0x2e0] ss:$16 sps:$4 sm:$0xff]   ;;  %v1691_v16 = vld [vmem:[%s1845_s25 + $0x24c] ss:$16 sps:$4 sm:$0xff]  }
  0x28   : > { %1122 = vmatprep.subr.bf16.mxu1 %v1600_v18  ;;  %v1622_v33 = vld [vmem:[%s1845_s25 + $0x104] ss:$16 sps:$4 sm:$0xff]   ;;  %v1626_v35 = vld [vmem:[%s1845_s25 + $0x100] ss:$16 sps:$4 sm:$0xff]   ;;  %v1686_v17 = vld [vmem:[%s1845_s25 + $0x48] ss:$16 sps:$4 sm:$0xff]  }
  0x29   : > { %v1624_v34 = vld [vmem:[%s1845_s25 + $0x304] ss:$16 sps:$4 sm:$0xff]   ;;  %v1627_v36 = vld [vmem:[%s1845_s25 + $0x300] ss:$16 sps:$4 sm:$0xff]   ;;  %v1689_v18 = vld [vmem:[%s1845_s25 + $0x248] ss:$16 sps:$4 sm:$0xff]  }
  0x2a   : > { %1082 = vmatpush1.bf16.msra.mxu0 %v1602_v19  ;;  %v1628_v37 = vld [vmem:[%s1845_s25 + $0x124] ss:$16 sps:$4 sm:$0xff]   ;;  %v1632_v39 = vld [vmem:[%s1845_s25 + $0x120] ss:$16 sps:$4 sm:$0xff]   ;;  %v1694_v19 = vld [vmem:[%s1845_s25 + $0x6c] ss:$16 sps:$4 sm:$0xff]  }
  0x2b   : > { %1123 = vmatpush1.bf16.msra.mxu1 %v1603_v20  ;;  %1083 = vmatprep.subr.bf16.mxu0 %v1604_v21  ;;  %v1630_v38 = vld [vmem:[%s1845_s25 + $0x324] ss:$16 sps:$4 sm:$0xff]   ;;  %v1633_v40 = vld [vmem:[%s1845_s25 + $0x320] ss:$16 sps:$4 sm:$0xff]   ;;  %v1697_v20 = vld [vmem:[%s1845_s25 + $0x26c] ss:$16 sps:$4 sm:$0xff]  }
  0x2c   : > { %1124 = vmatprep.subr.bf16.mxu1 %v1606_v22  ;;  %v1634_v41 = vld [vmem:[%s1845_s25 + $0x144] ss:$16 sps:$4 sm:$0xff]   ;;  %v1638_v43 = vld [vmem:[%s1845_s25 + $0x140] ss:$16 sps:$4 sm:$0xff]   ;;  %v1692_v21 = vld [vmem:[%s1845_s25 + $0x68] ss:$16 sps:$4 sm:$0xff]  }
  0x2d   : > { %v1636_v42 = vld [vmem:[%s1845_s25 + $0x344] ss:$16 sps:$4 sm:$0xff]   ;;  %v1639_v44 = vld [vmem:[%s1845_s25 + $0x340] ss:$16 sps:$4 sm:$0xff]   ;;  %v1695_v22 = vld [vmem:[%s1845_s25 + $0x268] ss:$16 sps:$4 sm:$0xff]  }
  0x2e   : > { %1084 = vmatpush1.bf16.msra.mxu0 %v1608_v23  ;;  %v1640_v45 = vld [vmem:[%s1845_s25 + $0x164] ss:$16 sps:$4 sm:$0xff]   ;;  %v1644_v50 = vld [vmem:[%s1845_s25 + $0x160] ss:$16 sps:$4 sm:$0xff]   ;;  %v1700_v23 = vld [vmem:[%s1845_s25 + $0x8c] ss:$16 sps:$4 sm:$0xff]  }
  0x2f   : > { %1125 = vmatpush1.bf16.msra.mxu1 %v1609_v24  ;;  %1085 = vmatprep.subr.bf16.mxu0 %v1610_v25  ;;  %v1642_v46 = vld [vmem:[%s1845_s25 + $0x364] ss:$16 sps:$4 sm:$0xff]   ;;  %v1645_v51 = vld [vmem:[%s1845_s25 + $0x360] ss:$16 sps:$4 sm:$0xff]   ;;  %v1703_v24 = vld [vmem:[%s1845_s25 + $0x28c] ss:$16 sps:$4 sm:$0xff]  }
  0x30   : > { %1126 = vmatprep.subr.bf16.mxu1 %v1612_v26  ;;  %v289_v47 = vld [vmem:[%s1840_s21] sm:$0xff]  ;;  %v1698_v25 = vld [vmem:[%s1845_s25 + $0x88] ss:$16 sps:$4 sm:$0xff]  }
  0x31   : > { %v1895_v48 = vcombine.high %v289_v47, %v289_v47  ;;  %v1646_v53 = vld [vmem:[%s1845_s25 + $0x184] ss:$16 sps:$4 sm:$0xff]   ;;  %v1650_v55 = vld [vmem:[%s1845_s25 + $0x180] ss:$16 sps:$4 sm:$0xff]   ;;  %v1919_v7 = vcombine.low %v289_v47, %v289_v47  ;;  %v1701_v26 = vld [vmem:[%s1845_s25 + $0x288] ss:$16 sps:$4 sm:$0xff]  }
  0x32   : > { %1086 = vmatpush1.bf16.msra.mxu0 %v1614_v27  ;;  %v1648_v54 = vld [vmem:[%s1845_s25 + $0x384] ss:$16 sps:$4 sm:$0xff]   ;;  %v1651_v56 = vld [vmem:[%s1845_s25 + $0x380] ss:$16 sps:$4 sm:$0xff]   ;;  %v1706_v27 = vld [vmem:[%s1845_s25 + $0xac] ss:$16 sps:$4 sm:$0xff]  }
  0x33   : > { %1127 = vmatpush1.bf16.msra.mxu1 %v1615_v28  ;;  %1087 = vmatprep.subr.bf16.mxu0 %v1616_v29  ;;  %v1652_v57 = vld [vmem:[%s1845_s25 + $0x1a4] ss:$16 sps:$4 sm:$0xff]   ;;  %v1656_v59 = vld [vmem:[%s1845_s25 + $0x1a0] ss:$16 sps:$4 sm:$0xff]   ;;  %v1709_v28 = vld [vmem:[%s1845_s25 + $0x2ac] ss:$16 sps:$4 sm:$0xff]  }
  0x34   : > { %1128 = vmatprep.subr.bf16.mxu1 %v1618_v30  ;;  %1105 = vmatprep.mubr.bf16.mxu0 %v1895_v48  ;;  %v1654_v58 = vld [vmem:[%s1845_s25 + $0x3a4] ss:$16 sps:$4 sm:$0xff]   ;;  %v1657_v60 = vld [vmem:[%s1845_s25 + $0x3a0] ss:$16 sps:$4 sm:$0xff]   ;;  %v1704_v29 = vld [vmem:[%s1845_s25 + $0xa8] ss:$16 sps:$4 sm:$0xff]  }
  0x35   : > { %v1658_v61 = vld [vmem:[%s1845_s25 + $0x1c4] ss:$16 sps:$4 sm:$0xff]   ;;  %v1662_v63 = vld [vmem:[%s1845_s25 + $0x1c0] ss:$16 sps:$4 sm:$0xff]   ;;  %v1707_v30 = vld [vmem:[%s1845_s25 + $0x2a8] ss:$16 sps:$4 sm:$0xff]  }
  0x36   : > { %1088 = vmatpush1.bf16.msra.mxu0 %v1620_v31  ;;  %v1660_v62 = vld [vmem:[%s1845_s25 + $0x3c4] ss:$16 sps:$4 sm:$0xff]   ;;  %v1663_v0 = vld [vmem:[%s1845_s25 + $0x3c0] ss:$16 sps:$4 sm:$0xff]   ;;  %v1712_v31 = vld [vmem:[%s1845_s25 + $0xcc] ss:$16 sps:$4 sm:$0xff]  }
  0x37   : > { %1129 = vmatpush1.bf16.msra.mxu1 %v1621_v32  ;;  %1089 = vmatprep.subr.bf16.mxu0 %v1622_v33  ;;  %v1664_v1 = vld [vmem:[%s1845_s25 + $0x1e4] ss:$16 sps:$4 sm:$0xff]   ;;  %v1668_v3 = vld [vmem:[%s1845_s25 + $0x1e0] ss:$16 sps:$4 sm:$0xff]   ;;  %v1715_v32 = vld [vmem:[%s1845_s25 + $0x2cc] ss:$16 sps:$4 sm:$0xff]  }
  0x38   : > { %1130 = vmatprep.subr.bf16.mxu1 %v1624_v34  ;;  %v1666_v2 = vld [vmem:[%s1845_s25 + $0x3e4] ss:$16 sps:$4 sm:$0xff]   ;;  %v1669_v4 = vld [vmem:[%s1845_s25 + $0x3e0] ss:$16 sps:$4 sm:$0xff]   ;;  %v1710_v33 = vld [vmem:[%s1845_s25 + $0xc8] ss:$16 sps:$4 sm:$0xff]  }
  0x39   : > { %v1713_v34 = vld [vmem:[%s1845_s25 + $0x2c8] ss:$16 sps:$4 sm:$0xff]   ;;  %v1736_v47 = vld [vmem:[%s1845_s25 + $0x14c] ss:$16 sps:$4 sm:$0xff]  }
  0x3a   : > { %1090 = vmatpush1.bf16.msra.mxu0 %v1626_v35  ;;  %v1718_v35 = vld [vmem:[%s1845_s25 + $0xec] ss:$16 sps:$4 sm:$0xff]  }
  0x3b   : > { %1131 = vmatpush1.bf16.msra.mxu1 %v1627_v36  ;;  %1091 = vmatprep.subr.bf16.mxu0 %v1628_v37  ;;  %v1721_v36 = vld [vmem:[%s1845_s25 + $0x2ec] ss:$16 sps:$4 sm:$0xff]   ;;  %v1716_v37 = vld [vmem:[%s1845_s25 + $0xe8] ss:$16 sps:$4 sm:$0xff]  }
  0x3c   : > { %1132 = vmatprep.subr.bf16.mxu1 %v1630_v38  ;;  %v1719_v38 = vld [vmem:[%s1845_s25 + $0x2e8] ss:$16 sps:$4 sm:$0xff]  }
  0x3e   : > { %1092 = vmatpush1.bf16.msra.mxu0 %v1632_v39  ;;  %v1724_v39 = vld [vmem:[%s1845_s25 + $0x10c] ss:$16 sps:$4 sm:$0xff]  }
  0x3f   : > { %1133 = vmatpush1.bf16.msra.mxu1 %v1633_v40  ;;  %1093 = vmatprep.subr.bf16.mxu0 %v1634_v41  ;;  %v1727_v40 = vld [vmem:[%s1845_s25 + $0x30c] ss:$16 sps:$4 sm:$0xff]   ;;  %v1722_v41 = vld [vmem:[%s1845_s25 + $0x108] ss:$16 sps:$4 sm:$0xff]  }
  0x40   : > { %1134 = vmatprep.subr.bf16.mxu1 %v1636_v42  ;;  %v1725_v42 = vld [vmem:[%s1845_s25 + $0x308] ss:$16 sps:$4 sm:$0xff]  }
  0x42   : > { %1094 = vmatpush1.bf16.msra.mxu0 %v1638_v43  ;;  %v1730_v43 = vld [vmem:[%s1845_s25 + $0x12c] ss:$16 sps:$4 sm:$0xff]  }
  0x43   : > { %1135 = vmatpush1.bf16.msra.mxu1 %v1639_v44  ;;  %1095 = vmatprep.subr.bf16.mxu0 %v1640_v45  ;;  %v1733_v44 = vld [vmem:[%s1845_s25 + $0x32c] ss:$16 sps:$4 sm:$0xff]   ;;  %v1728_v45 = vld [vmem:[%s1845_s25 + $0x128] ss:$16 sps:$4 sm:$0xff]  }
  0x44   : > { %1136 = vmatprep.subr.bf16.mxu1 %v1642_v46  ;;  %v1731_v46 = vld [vmem:[%s1845_s25 + $0x328] ss:$16 sps:$4 sm:$0xff]  }
  0x46   : > { %1096 = vmatpush1.bf16.msra.mxu0 %v1644_v50  ;;  %v1737_v50 = vld [vmem:[%s1845_s25 + $0x348] ss:$16 sps:$4 sm:$0xff]  }
  0x47   : > { %1137 = vmatpush1.bf16.msra.mxu1 %v1645_v51  ;;  %1097 = vmatprep.subr.bf16.mxu0 %v1646_v53  ;;  %v1742_v51 = vld [vmem:[%s1845_s25 + $0x16c] ss:$16 sps:$4 sm:$0xff]   ;;  %v1740_v53 = vld [vmem:[%s1845_s25 + $0x168] ss:$16 sps:$4 sm:$0xff]  }
  0x48   : > { %1138 = vmatprep.subr.bf16.mxu1 %v1648_v54  ;;  %v1743_v54 = vld [vmem:[%s1845_s25 + $0x368] ss:$16 sps:$4 sm:$0xff]  }
  0x4a   : > { %1098 = vmatpush1.bf16.msra.mxu0 %v1650_v55  ;;  %v1748_v55 = vld [vmem:[%s1845_s25 + $0x18c] ss:$16 sps:$4 sm:$0xff]  }
  0x4b   : > { %1139 = vmatpush1.bf16.msra.mxu1 %v1651_v56  ;;  %1099 = vmatprep.subr.bf16.mxu0 %v1652_v57  ;;  %v1751_v56 = vld [vmem:[%s1845_s25 + $0x38c] ss:$16 sps:$4 sm:$0xff]   ;;  %v1746_v57 = vld [vmem:[%s1845_s25 + $0x188] ss:$16 sps:$4 sm:$0xff]  }
  0x4c   : > { %1140 = vmatprep.subr.bf16.mxu1 %v1654_v58  ;;  %v1749_v58 = vld [vmem:[%s1845_s25 + $0x388] ss:$16 sps:$4 sm:$0xff]  }
  0x4e   : > { %1100 = vmatpush1.bf16.msra.mxu0 %v1656_v59  ;;  %v1754_v59 = vld [vmem:[%s1845_s25 + $0x1ac] ss:$16 sps:$4 sm:$0xff]  }
  0x4f   : > { %1141 = vmatpush1.bf16.msra.mxu1 %v1657_v60  ;;  %1101 = vmatprep.subr.bf16.mxu0 %v1658_v61  ;;  %v1757_v60 = vld [vmem:[%s1845_s25 + $0x3ac] ss:$16 sps:$4 sm:$0xff]   ;;  %v1752_v61 = vld [vmem:[%s1845_s25 + $0x1a8] ss:$16 sps:$4 sm:$0xff]  }
  0x50   : > { %1142 = vmatprep.subr.bf16.mxu1 %v1660_v62  ;;  %v1755_v62 = vld [vmem:[%s1845_s25 + $0x3a8] ss:$16 sps:$4 sm:$0xff]  }
  0x52   : > { %1102 = vmatpush1.bf16.msra.mxu0 %v1662_v63  ;;  %v1760_v63 = vld [vmem:[%s1845_s25 + $0x1cc] ss:$16 sps:$4 sm:$0xff]  }
  0x53   : > { %1143 = vmatpush1.bf16.msra.mxu1 %v1663_v0  ;;  %1103 = vmatprep.subr.bf16.mxu0 %v1664_v1  ;;  %v1763_v0 = vld [vmem:[%s1845_s25 + $0x3cc] ss:$16 sps:$4 sm:$0xff]   ;;  %v1758_v1 = vld [vmem:[%s1845_s25 + $0x1c8] ss:$16 sps:$4 sm:$0xff]  }
  0x54   : > { %1144 = vmatprep.subr.bf16.mxu1 %v1666_v2  ;;  %v1761_v2 = vld [vmem:[%s1845_s25 + $0x3c8] ss:$16 sps:$4 sm:$0xff]  }
  0x56   : > { %1104 = vmatpush1.bf16.msra.mxu0 %v1668_v3  ;;  %v1766_v3 = vld [vmem:[%s1845_s25 + $0x1ec] ss:$16 sps:$4 sm:$0xff]  }
  0x57   : > { %1145 = vmatpush1.bf16.msra.mxu1 %v1669_v4  ;;  %1155 = vmatprep.subr.bf16.mxu0 %v1676_v5  ;;  %v1769_v4 = vld [vmem:[%s1845_s25 + $0x3ec] ss:$16 sps:$4 sm:$0xff]   ;;  %v1764_v5 = vld [vmem:[%s1845_s25 + $0x1e8] ss:$16 sps:$4 sm:$0xff]  }
  0x58   : > { %1196 = vmatprep.subr.bf16.mxu1 %v1679_v6  ;;  %v1767_v6 = vld [vmem:[%s1845_s25 + $0x3e8] ss:$16 sps:$4 sm:$0xff]  }
  0x59   : > { %1106 = vmatmul.mubr.bf16.vlgmr.msra.gmra.mrb[0].mxu0 %v1919_v7 }
  0x5a   : > { %1147 = vmatmul.mubr.bf16.vlgmr.msra.gmra.mrb[0].mxu1 %v1921_v8  ;;  %1156 = vmatpush1.bf16.msra.mxu0 %v1674_v9 }
  0x5b   : > { %1197 = vmatpush1.bf16.msra.mxu1 %v1677_v10  ;;  %1157 = vmatprep.subr.bf16.mxu0 %v1682_v11  ;;  %v285_v10 = vld [vmem:[#allocation2] sm:$0xff] }
  0x5c   : > { %1198 = vmatprep.subr.bf16.mxu1 %v1685_v12  ;;  %1187 = vmatprep.mubr.bf16.mxu0 %v1895_v48  ;;  %v1739_v48 = vld [vmem:[%s1845_s25 + $0x34c] ss:$16 sps:$4 sm:$0xff]  }
  0x5d   : > { %1228 = vmatprep.mubr.bf16.mxu1 %v1414_v52  ;;  %v1745_v52 = vld [vmem:[%s1845_s25 + $0x36c] ss:$16 sps:$4 sm:$0xff]  }
  0x5e   : > { %1158 = vmatpush1.bf16.msra.mxu0 %v1680_v13 }
  0x5f   : > { %1199 = vmatpush1.bf16.msra.mxu1 %v1683_v14  ;;  %1159 = vmatprep.subr.bf16.mxu0 %v1688_v15  ;;  %v286_v14 = vld [vmem:[#allocation2 + $0x8] sm:$0xff] }
  0x60   : > { %1200 = vmatprep.subr.bf16.mxu1 %v1691_v16 }
  0x62   : > { %1160 = vmatpush1.bf16.msra.mxu0 %v1686_v17 }
  0x63   : > { %1201 = vmatpush1.bf16.msra.mxu1 %v1689_v18  ;;  %1161 = vmatprep.subr.bf16.mxu0 %v1694_v19 }
  0x64   : > { %1202 = vmatprep.subr.bf16.mxu1 %v1697_v20 }
  0x66   : > { %1162 = vmatpush1.bf16.msra.mxu0 %v1692_v21 }
  0x67   : > { %1203 = vmatpush1.bf16.msra.mxu1 %v1695_v22  ;;  %1163 = vmatprep.subr.bf16.mxu0 %v1700_v23 }
  0x68   : > { %1204 = vmatprep.subr.bf16.mxu1 %v1703_v24 }
  0x6a   : > { %1164 = vmatpush1.bf16.msra.mxu0 %v1698_v25 }
  0x6b   : > { %1205 = vmatpush1.bf16.msra.mxu1 %v1701_v26  ;;  %1165 = vmatprep.subr.bf16.mxu0 %v1706_v27  ;;  %v288_v26 = vld [vmem:[#allocation2 + $0x18] sm:$0xff] }
  0x6c   : > { %1206 = vmatprep.subr.bf16.mxu1 %v1709_v28 }
  0x6e   : > { %1166 = vmatpush1.bf16.msra.mxu0 %v1704_v29 }
  0x6f   : > { %1207 = vmatpush1.bf16.msra.mxu1 %v1707_v30  ;;  %1167 = vmatprep.subr.bf16.mxu0 %v1712_v31 }
  0x70   : > { %1208 = vmatprep.subr.bf16.mxu1 %v1715_v32 }
  0x72   : > { %1168 = vmatpush1.bf16.msra.mxu0 %v1710_v33 }
  0x73   : > { %1209 = vmatpush1.bf16.msra.mxu1 %v1713_v34  ;;  %1169 = vmatprep.subr.bf16.mxu0 %v1718_v35  ;;  %v1255_v35 = vlaneseq (!%p1543_p7) }
  0x74   : > { %1210 = vmatprep.subr.bf16.mxu1 %v1721_v36 }
  0x75   : > { %v1256_v36 = vshrl.u32 (!%p1543_p7), %v1255_v35, 7 }
  0x76   : > { %1170 = vmatpush1.bf16.msra.mxu0 %v1716_v37  ;;  %v1253_v37 = vld [vmem:[%s2017_s2] sm:$0xf] (!%p1543_p7) }
  0x77   : > { %1211 = vmatpush1.bf16.msra.mxu1 %v1719_v38  ;;  %1171 = vmatprep.subr.bf16.mxu0 %v1724_v39  ;;  %v1257_v39 = vsub.s32 (!%p1543_p7), 0, %v1256_v36 }
  0x78   : > { %1212 = vmatprep.subr.bf16.mxu1 %v1727_v40  ;;  %v1261_v40 = vsub.s32 (!%p1543_p7), 1, %v1256_v36 }
  0x7a   : > { %1172 = vmatpush1.bf16.msra.mxu0 %v1722_v41  ;;  %v1265_v41 = vsub.s32 (!%p1543_p7), 2, %v1256_v36 }
  0x7b   : > { %1213 = vmatpush1.bf16.msra.mxu1 %v1725_v42  ;;  %1173 = vmatprep.subr.bf16.mxu0 %v1730_v43  ;;  %v1269_v42 = vsub.s32 (!%p1543_p7), 3, %v1256_v36 }
  0x7c   : > { %1214 = vmatprep.subr.bf16.mxu1 %v1733_v44 }
  0x7e   : > { %1174 = vmatpush1.bf16.msra.mxu0 %v1728_v45 }
  0x7f   : > { %1215 = vmatpush1.bf16.msra.mxu1 %v1731_v46  ;;  %1175 = vmatprep.subr.bf16.mxu0 %v1736_v47  ;;  %v1258_v46 = vrot.slane (!%p1543_p7), %v1253_v37, %v1257_v39  ;;  %v1262_v47 = vrot.slane (!%p1543_p7), %v1253_v37, %v1261_v40 }
  0x80   : > { %1216 = vmatprep.subr.bf16.mxu1 %v1739_v48  ;;  %v1266_v48 = vrot.slane (!%p1543_p7), %v1253_v37, %v1265_v41 }
  0x82   : > { %1176 = vmatpush1.bf16.msra.mxu0 %v1734_v49  ;;  %v1270_v49 = vrot.slane (!%p1543_p7), %v1253_v37, %v1269_v42 }
  0x83   : > { %1217 = vmatpush1.bf16.msra.mxu1 %v1737_v50  ;;  %1177 = vmatprep.subr.bf16.mxu0 %v1742_v51 }
  0x84   : > { %1218 = vmatprep.subr.bf16.mxu1 %v1745_v52 }
  0x86   : > { %1178 = vmatpush1.bf16.msra.mxu0 %v1740_v53 }
  0x87   : > { %1219 = vmatpush1.bf16.msra.mxu1 %v1743_v54  ;;  %1179 = vmatprep.subr.bf16.mxu0 %v1748_v55 }
  0x88   : > { %1220 = vmatprep.subr.bf16.mxu1 %v1751_v56 }
  0x8a   : > { %1180 = vmatpush1.bf16.msra.mxu0 %v1746_v57 }
  0x8b   : > { %1221 = vmatpush1.bf16.msra.mxu1 %v1749_v58  ;;  %1181 = vmatprep.subr.bf16.mxu0 %v1754_v59 }
  0x8c   : > { %1222 = vmatprep.subr.bf16.mxu1 %v1757_v60 }
  0x8e   : > { %1182 = vmatpush1.bf16.msra.mxu0 %v1752_v61 }
  0x8f   : > { %1223 = vmatpush1.bf16.msra.mxu1 %v1755_v62  ;;  %1183 = vmatprep.subr.bf16.mxu0 %v1760_v63 }
  0x90   : > { %1224 = vmatprep.subr.bf16.mxu1 %v1763_v0 }
  0x92   : > { %1184 = vmatpush1.bf16.msra.mxu0 %v1758_v1 }
  0x93   : > { %1225 = vmatpush1.bf16.msra.mxu1 %v1761_v2  ;;  %1185 = vmatprep.subr.bf16.mxu0 %v1766_v3 }
  0x94   : > { %1226 = vmatprep.subr.bf16.mxu1 %v1769_v4 }
  0x96   : > { %1186 = vmatpush1.bf16.msra.mxu0 %v1764_v5 }
  0x97   : > { %1227 = vmatpush1.bf16.msra.mxu1 %v1767_v6 }
  0x99   : > { %1188 = vmatmul.mubr.bf16.vlgmr.msra.gmra.mrb[4].mxu0 %v1919_v7  ;;  %v287_v7 = vld [vmem:[#allocation2 + $0x10] sm:$0xff] }
  0x9a   : > { %1229 = vmatmul.mubr.bf16.vlgmr.msra.gmra.mrb[4].mxu1 %v1921_v8 }
 0x12c   : > { %v1107_v9 = vpop.f32.mrb[0].mxu0 }
 0x12d   : > { %v1148_v11 = vpop.f32.mrb[0].mxu1  ;;  %v1109_v13 = vpop.f32.mrb[1].mxu0 }
 0x12e   : > { %v1149_v12 = vadd.f32 %v1148_v11, %v1107_v9  ;;  %v1150_v15 = vpop.f32.mrb[1].mxu1  ;;  %v1111_v17 = vpop.f32.mrb[2].mxu0 }
 0x12f   : > { %v1151_v16 = vadd.f32 %v1150_v15, %v1109_v13  ;;  %v1152_v18 = vpop.f32.mrb[2].mxu1  ;;  %v1112_v20 = vpop.f32.mrb[3].mxu0 }
 0x130   : > { %v1237_v19 = vadd.f32 %v1149_v12, %v285_v10  ;;  %v1153_v21 = vpop.f32.mrb[3].mxu1 }
 0x131   : > { %v1238_v22 = vadd.f32 %v1151_v16, %v286_v14 }
 0x132   : > { %1241 = vst [vmem:[#allocation2] sm:$0xff] %v1237_v19 }
 0x133   : > { %1242 = vst [vmem:[#allocation2 + $0x8] sm:$0xff] %v1238_v22 }
 0x139   : > { %v1249_v38 = vld [vmem:[#allocation2] sm:$0xff] (!%p1543_p7) }
 0x13a   : > { %v1250_v43 = vld [vmem:[#allocation2 + $0x8] sm:$0xff] (!%p1543_p7)  ;;  %v1275_v50 = vadd.f32 (!%p1543_p7), %v1258_v46, %v1249_v38 }
 0x13b   : > { %v1276_v51 = vadd.f32 (!%p1543_p7), %v1262_v47, %v1250_v43 }
 0x13c   : > { %1279 = vst [vmem:[%s2018_s3] sm:$0xff] (!%p1543_p7), %v1275_v50 }
 0x13d   : > { %1280 = vst [vmem:[%s2018_s3 + $0x8] sm:$0xff] (!%p1543_p7), %v1276_v51 }
 0x16c   : > { %v1189_v23 = vpop.f32.mrb[4].mxu0 }
 0x16d   : > { %v1230_v24 = vpop.f32.mrb[4].mxu1  ;;  %v1191_v25 = vpop.f32.mrb[5].mxu0  ;;  %1248 = sbr.rel (%p1543_p7) target bundleno = 382 (0x17e), region = 40 }
 0x16e   : > { %v1231_v8 = vadd.f32 %v1230_v24, %v1189_v23  ;;  %v1232_v27 = vpop.f32.mrb[5].mxu1  ;;  %v1193_v29 = vpop.f32.mrb[6].mxu0 }
 0x16f   : > { %v1233_v28 = vadd.f32 %v1232_v27, %v1191_v25  ;;  %v1234_v30 = vpop.f32.mrb[6].mxu1  ;;  %v1194_v32 = vpop.f32.mrb[7].mxu0 }
 0x170   : > { %v1239_v31 = vadd.f32 %v1231_v8, %v287_v7  ;;  %v1235_v33 = vpop.f32.mrb[7].mxu1 }
 0x171   : > { %v1240_v34 = vadd.f32 %v1233_v28, %v288_v26 }
 0x172   : > { %1243 = vst [vmem:[#allocation2 + $0x10] sm:$0xff] %v1239_v31 }
 0x173   : > { %1244 = vst [vmem:[#allocation2 + $0x18] sm:$0xff] %v1240_v34 }
 0x179   : > { %v1251_v44 = vld [vmem:[#allocation2 + $0x10] sm:$0xff] }
 0x17a   : > { %v1252_v45 = vld [vmem:[#allocation2 + $0x18] sm:$0xff]  ;;  %v1277_v52 = vadd.f32 %v1266_v48, %v1251_v44 }
 0x17b   : > { %v1278_v53 = vadd.f32 %v1270_v49, %v1252_v45 }
 0x17c   : > { %1281 = vst [vmem:[%s2018_s3 + $0x10] sm:$0xff] %v1277_v52 }
 0x17d   : > { %1282 = vst [vmem:[%s2018_s3 + $0x18] sm:$0xff] %v1278_v53 }
 0x17e PF: > { %s13_s14 = sadd.s32 1, %s1792_s14   ;;  %s2019_s12 = smov %s1788_s13 }
 0x17f   : > { %p10_p8 = scmp.ge.s32.totalorder %s13_s14, 11   ;;  %s2020_s13 = smov %s2022_s15 }
 0x181   :  { %12 = sbr.rel (!%p10_p8) target bundleno = 2 (0x2), region = 76 }

// kernel: quality_net_forward.39
= control target key start
LH: loop header
LB: loop body
LE: loop exit
PB: predicated region body
PF: predicated region fallthrough
CT: control target
= control target key end

     0   :  { %s943_s1 = inlined_call_operand.vmem [shape: bf16[256,512], index: 1, kind: input, shape index: {}]   ;;  %s944_s0 = inlined_call_operand.vmem [shape: bf16[8,256], index: 0, kind: input, shape index: {}]   ;;  %s945_s2 = inlined_call_operand.vmem [shape: f32[1,512], index: 2, kind: input, shape index: {}]   ;;  %s946_s3 = inlined_call_operand.vmem [shape: f32[8,512], index: 3, kind: output, shape index: {}]  }
   0x1   :  { %v615_v0 = vld [vmem:[%s943_s1 + $0x4] ss:$16 sps:$4 sm:$0xff]   ;;  %v617_v1 = vld [vmem:[%s943_s1 + $0xc] ss:$16 sps:$4 sm:$0xff]   ;;  %v619_v2 = vld [vmem:[%s943_s1] ss:$16 sps:$4 sm:$0xff]  }
   0x2   :  { %418 = vmatprep.subr.bf16.mxu0 %v615_v0  ;;  %v620_v3 = vld [vmem:[%s943_s1 + $0x8] ss:$16 sps:$4 sm:$0xff]   ;;  %459 = vmatprep.subr.bf16.mxu1 %v617_v1  ;;  %v621_v4 = vld [vmem:[%s943_s1 + $0x24] ss:$16 sps:$4 sm:$0xff]   ;;  %v623_v5 = vld [vmem:[%s943_s1 + $0x2c] ss:$16 sps:$4 sm:$0xff]  }
   0x3   :  { %419 = vmatpush1.bf16.msra.mxu0 %v619_v2  ;;  %460 = vmatpush1.bf16.msra.mxu1 %v620_v3  ;;  %v625_v6 = vld [vmem:[%s943_s1 + $0x20] ss:$16 sps:$4 sm:$0xff]   ;;  %v626_v7 = vld [vmem:[%s943_s1 + $0x28] ss:$16 sps:$4 sm:$0xff]   ;;  %v627_v8 = vld [vmem:[%s943_s1 + $0x44] ss:$16 sps:$4 sm:$0xff]   ;;  %v517_v3 = vlaneseq }
   0x4   :  { %420 = vmatprep.subr.bf16.mxu0 %v621_v4  ;;  %461 = vmatprep.subr.bf16.mxu1 %v623_v5  ;;  %v629_v9 = vld [vmem:[%s943_s1 + $0x4c] ss:$16 sps:$4 sm:$0xff]   ;;  %v631_v10 = vld [vmem:[%s943_s1 + $0x40] ss:$16 sps:$4 sm:$0xff]   ;;  %v632_v11 = vld [vmem:[%s943_s1 + $0x48] ss:$16 sps:$4 sm:$0xff]  }
   0x5   :  { %v633_v12 = vld [vmem:[%s943_s1 + $0x64] ss:$16 sps:$4 sm:$0xff]   ;;  %v635_v13 = vld [vmem:[%s943_s1 + $0x6c] ss:$16 sps:$4 sm:$0xff]   ;;  %v637_v14 = vld [vmem:[%s943_s1 + $0x60] ss:$16 sps:$4 sm:$0xff]  }
   0x6   :  { %v638_v15 = vld [vmem:[%s943_s1 + $0x68] ss:$16 sps:$4 sm:$0xff]   ;;  %v639_v16 = vld [vmem:[%s943_s1 + $0x84] ss:$16 sps:$4 sm:$0xff]   ;;  %v641_v17 = vld [vmem:[%s943_s1 + $0x8c] ss:$16 sps:$4 sm:$0xff]  }
   0x7   :  { %421 = vmatpush1.bf16.msra.mxu0 %v625_v6  ;;  %462 = vmatpush1.bf16.msra.mxu1 %v626_v7  ;;  %v643_v18 = vld [vmem:[%s943_s1 + $0x80] ss:$16 sps:$4 sm:$0xff]   ;;  %v644_v19 = vld [vmem:[%s943_s1 + $0x88] ss:$16 sps:$4 sm:$0xff]   ;;  %v645_v20 = vld [vmem:[%s943_s1 + $0xa4] ss:$16 sps:$4 sm:$0xff]  }
   0x8   :  { %422 = vmatprep.subr.bf16.mxu0 %v627_v8  ;;  %463 = vmatprep.subr.bf16.mxu1 %v629_v9  ;;  %v647_v21 = vld [vmem:[%s943_s1 + $0xac] ss:$16 sps:$4 sm:$0xff]   ;;  %v649_v22 = vld [vmem:[%s943_s1 + $0xa0] ss:$16 sps:$4 sm:$0xff]   ;;  %v650_v23 = vld [vmem:[%s943_s1 + $0xa8] ss:$16 sps:$4 sm:$0xff]  }
   0x9   :  { %v651_v24 = vld [vmem:[%s943_s1 + $0xc4] ss:$16 sps:$4 sm:$0xff]   ;;  %v653_v25 = vld [vmem:[%s943_s1 + $0xcc] ss:$16 sps:$4 sm:$0xff]   ;;  %v655_v26 = vld [vmem:[%s943_s1 + $0xc0] ss:$16 sps:$4 sm:$0xff]  }
   0xa   :  { %v656_v27 = vld [vmem:[%s943_s1 + $0xc8] ss:$16 sps:$4 sm:$0xff]   ;;  %v657_v28 = vld [vmem:[%s943_s1 + $0xe4] ss:$16 sps:$4 sm:$0xff]   ;;  %v659_v29 = vld [vmem:[%s943_s1 + $0xec] ss:$16 sps:$4 sm:$0xff]  }
   0xb   :  { %423 = vmatpush1.bf16.msra.mxu0 %v631_v10  ;;  %464 = vmatpush1.bf16.msra.mxu1 %v632_v11  ;;  %v661_v30 = vld [vmem:[%s943_s1 + $0xe0] ss:$16 sps:$4 sm:$0xff]   ;;  %v662_v31 = vld [vmem:[%s943_s1 + $0xe8] ss:$16 sps:$4 sm:$0xff]   ;;  %v663_v32 = vld [vmem:[%s943_s1 + $0x104] ss:$16 sps:$4 sm:$0xff]  }
   0xc   :  { %424 = vmatprep.subr.bf16.mxu0 %v633_v12  ;;  %465 = vmatprep.subr.bf16.mxu1 %v635_v13  ;;  %v665_v33 = vld [vmem:[%s943_s1 + $0x10c] ss:$16 sps:$4 sm:$0xff]   ;;  %v667_v34 = vld [vmem:[%s943_s1 + $0x100] ss:$16 sps:$4 sm:$0xff]   ;;  %v668_v35 = vld [vmem:[%s943_s1 + $0x108] ss:$16 sps:$4 sm:$0xff]  }
   0xd   :  { %v669_v36 = vld [vmem:[%s943_s1 + $0x124] ss:$16 sps:$4 sm:$0xff]   ;;  %v671_v37 = vld [vmem:[%s943_s1 + $0x12c] ss:$16 sps:$4 sm:$0xff]   ;;  %v673_v38 = vld [vmem:[%s943_s1 + $0x120] ss:$16 sps:$4 sm:$0xff]  }
   0xe   :  { %v674_v39 = vld [vmem:[%s943_s1 + $0x128] ss:$16 sps:$4 sm:$0xff]   ;;  %v675_v40 = vld [vmem:[%s943_s1 + $0x144] ss:$16 sps:$4 sm:$0xff]   ;;  %v677_v41 = vld [vmem:[%s943_s1 + $0x14c] ss:$16 sps:$4 sm:$0xff]  }
   0xf   :  { %425 = vmatpush1.bf16.msra.mxu0 %v637_v14  ;;  %466 = vmatpush1.bf16.msra.mxu1 %v638_v15  ;;  %v679_v42 = vld [vmem:[%s943_s1 + $0x140] ss:$16 sps:$4 sm:$0xff]   ;;  %v680_v43 = vld [vmem:[%s943_s1 + $0x148] ss:$16 sps:$4 sm:$0xff]   ;;  %v681_v44 = vld [vmem:[%s943_s1 + $0x164] ss:$16 sps:$4 sm:$0xff]  }
  0x10   :  { %426 = vmatprep.subr.bf16.mxu0 %v639_v16  ;;  %467 = vmatprep.subr.bf16.mxu1 %v641_v17  ;;  %v683_v45 = vld [vmem:[%s943_s1 + $0x16c] ss:$16 sps:$4 sm:$0xff]   ;;  %v26_v46 = vld [vmem:[%s944_s0] sm:$0xff]  ;;  %v686_v49 = vld [vmem:[%s943_s1 + $0x168] ss:$16 sps:$4 sm:$0xff]   ;;  %v518_v4 = vshrl.u32 %v517_v3, 7 }
  0x11   :  { %v550_v47 = vcombine.high %v26_v46, %v26_v46  ;;  %v685_v48 = vld [vmem:[%s943_s1 + $0x160] ss:$16 sps:$4 sm:$0xff]   ;;  %v687_v50 = vld [vmem:[%s943_s1 + $0x184] ss:$16 sps:$4 sm:$0xff]   ;;  %v689_v51 = vld [vmem:[%s943_s1 + $0x18c] ss:$16 sps:$4 sm:$0xff]   ;;  %v549_v2 = vcombine.low %v26_v46, %v26_v46 }
  0x12   :  { %v691_v52 = vld [vmem:[%s943_s1 + $0x180] ss:$16 sps:$4 sm:$0xff]   ;;  %v692_v53 = vld [vmem:[%s943_s1 + $0x188] ss:$16 sps:$4 sm:$0xff]   ;;  %v693_v54 = vld [vmem:[%s943_s1 + $0x1a4] ss:$16 sps:$4 sm:$0xff]  }
  0x13   :  { %427 = vmatpush1.bf16.msra.mxu0 %v643_v18  ;;  %468 = vmatpush1.bf16.msra.mxu1 %v644_v19  ;;  %v695_v55 = vld [vmem:[%s943_s1 + $0x1ac] ss:$16 sps:$4 sm:$0xff]   ;;  %v697_v56 = vld [vmem:[%s943_s1 + $0x1a0] ss:$16 sps:$4 sm:$0xff]   ;;  %v698_v57 = vld [vmem:[%s943_s1 + $0x1a8] ss:$16 sps:$4 sm:$0xff]  }
  0x14   :  { %428 = vmatprep.subr.bf16.mxu0 %v645_v20  ;;  %469 = vmatprep.subr.bf16.mxu1 %v647_v21  ;;  %v699_v58 = vld [vmem:[%s943_s1 + $0x1c4] ss:$16 sps:$4 sm:$0xff]   ;;  %v701_v59 = vld [vmem:[%s943_s1 + $0x1cc] ss:$16 sps:$4 sm:$0xff]   ;;  %v703_v60 = vld [vmem:[%s943_s1 + $0x1c0] ss:$16 sps:$4 sm:$0xff]  }
  0x15   :  { %450 = vmatprep.mubr.bf16.mxu0 %v550_v47  ;;  %491 = vmatprep.mubr.bf16.mxu1 %v550_v47  ;;  %v704_v61 = vld [vmem:[%s943_s1 + $0x1c8] ss:$16 sps:$4 sm:$0xff]   ;;  %v705_v62 = vld [vmem:[%s943_s1 + $0x1e4] ss:$16 sps:$4 sm:$0xff]   ;;  %v707_v63 = vld [vmem:[%s943_s1 + $0x1ec] ss:$16 sps:$4 sm:$0xff]  }
  0x16   :  { %v709_v0 = vld [vmem:[%s943_s1 + $0x1e0] ss:$16 sps:$4 sm:$0xff]   ;;  %v710_v1 = vld [vmem:[%s943_s1 + $0x1e8] ss:$16 sps:$4 sm:$0xff]   ;;  %v519_v5 = vsub.s32 0, %v518_v4  ;;  %v527_v6 = vsub.s32 2, %v518_v4 }
  0x17   :  { %429 = vmatpush1.bf16.msra.mxu0 %v649_v22  ;;  %470 = vmatpush1.bf16.msra.mxu1 %v650_v23  ;;  %v515_v7 = vld [vmem:[%s945_s2] sm:$0xf]  ;;  %v523_v8 = vsub.s32 1, %v518_v4  ;;  %v531_v9 = vsub.s32 3, %v518_v4 }
  0x18   :  { %430 = vmatprep.subr.bf16.mxu0 %v651_v24  ;;  %471 = vmatprep.subr.bf16.mxu1 %v653_v25  ;;  %v520_v10 = vrot.slane %v515_v7, %v519_v5  ;;  %v528_v11 = vrot.slane %v515_v7, %v527_v6 }
  0x19   :  { %v524_v12 = vrot.slane %v515_v7, %v523_v8  ;;  %v532_v13 = vrot.slane %v515_v7, %v531_v9 }
  0x1b   :  { %431 = vmatpush1.bf16.msra.mxu0 %v655_v26  ;;  %472 = vmatpush1.bf16.msra.mxu1 %v656_v27 }
  0x1c   :  { %432 = vmatprep.subr.bf16.mxu0 %v657_v28  ;;  %473 = vmatprep.subr.bf16.mxu1 %v659_v29 }
  0x1f   :  { %433 = vmatpush1.bf16.msra.mxu0 %v661_v30  ;;  %474 = vmatpush1.bf16.msra.mxu1 %v662_v31 }
  0x20   :  { %434 = vmatprep.subr.bf16.mxu0 %v663_v32  ;;  %475 = vmatprep.subr.bf16.mxu1 %v665_v33 }
  0x23   :  { %435 = vmatpush1.bf16.msra.mxu0 %v667_v34  ;;  %476 = vmatpush1.bf16.msra.mxu1 %v668_v35 }
  0x24   :  { %436 = vmatprep.subr.bf16.mxu0 %v669_v36  ;;  %477 = vmatprep.subr.bf16.mxu1 %v671_v37 }
  0x27   :  { %437 = vmatpush1.bf16.msra.mxu0 %v673_v38  ;;  %478 = vmatpush1.bf16.msra.mxu1 %v674_v39 }
  0x28   :  { %438 = vmatprep.subr.bf16.mxu0 %v675_v40  ;;  %479 = vmatprep.subr.bf16.mxu1 %v677_v41 }
  0x2b   :  { %439 = vmatpush1.bf16.msra.mxu0 %v679_v42  ;;  %480 = vmatpush1.bf16.msra.mxu1 %v680_v43 }
  0x2c   :  { %440 = vmatprep.subr.bf16.mxu0 %v681_v44  ;;  %481 = vmatprep.subr.bf16.mxu1 %v683_v45 }
  0x2f   :  { %441 = vmatpush1.bf16.msra.mxu0 %v685_v48  ;;  %482 = vmatpush1.bf16.msra.mxu1 %v686_v49 }
  0x30   :  { %442 = vmatprep.subr.bf16.mxu0 %v687_v50  ;;  %483 = vmatprep.subr.bf16.mxu1 %v689_v51 }
  0x33   :  { %443 = vmatpush1.bf16.msra.mxu0 %v691_v52  ;;  %484 = vmatpush1.bf16.msra.mxu1 %v692_v53 }
  0x34   :  { %444 = vmatprep.subr.bf16.mxu0 %v693_v54  ;;  %485 = vmatprep.subr.bf16.mxu1 %v695_v55 }
  0x37   :  { %445 = vmatpush1.bf16.msra.mxu0 %v697_v56  ;;  %486 = vmatpush1.bf16.msra.mxu1 %v698_v57 }
  0x38   :  { %446 = vmatprep.subr.bf16.mxu0 %v699_v58  ;;  %487 = vmatprep.subr.bf16.mxu1 %v701_v59 }
  0x3b   :  { %447 = vmatpush1.bf16.msra.mxu0 %v703_v60  ;;  %488 = vmatpush1.bf16.msra.mxu1 %v704_v61 }
  0x3c   :  { %448 = vmatprep.subr.bf16.mxu0 %v705_v62  ;;  %489 = vmatprep.subr.bf16.mxu1 %v707_v63 }
  0x3f   :  { %449 = vmatpush1.bf16.msra.mxu0 %v709_v0  ;;  %490 = vmatpush1.bf16.msra.mxu1 %v710_v1 }
  0x42   :  { %451 = vmatmul.mubr.bf16.vlgmr.msra.gmra.mrb[0].mxu0 %v549_v2  ;;  %492 = vmatmul.mubr.bf16.vlgmr.msra.gmra.mrb[0].mxu1 %v549_v2 }
 0x115   :  { %v452_v14 = vpop.f32.mrb[0].mxu0  ;;  %v493_v15 = vpop.f32.mrb[0].mxu1 }
 0x116   :  { %v537_v16 = vadd.f32 %v520_v10, %v452_v14  ;;  %v539_v17 = vadd.f32 %v528_v11, %v493_v15  ;;  %v454_v18 = vpop.f32.mrb[1].mxu0  ;;  %v495_v19 = vpop.f32.mrb[1].mxu1 }
 0x117   :  { %v538_v20 = vadd.f32 %v524_v12, %v454_v18  ;;  %v540_v21 = vadd.f32 %v532_v13, %v495_v19  ;;  %v456_v22 = vpop.f32.mrb[2].mxu0  ;;  %v497_v23 = vpop.f32.mrb[2].mxu1 }
 0x118   :  { %541 = vst [vmem:[%s946_s3] sm:$0xff] %v537_v16  ;;  %543 = vst [vmem:[%s946_s3 + $0x10] sm:$0xff] %v539_v17  ;;  %v457_v24 = vpop.f32.mrb[3].mxu0  ;;  %v498_v25 = vpop.f32.mrb[3].mxu1 }
 0x119   :  { %542 = vst [vmem:[%s946_s3 + $0x8] sm:$0xff] %v538_v20  ;;  %544 = vst [vmem:[%s946_s3 + $0x18] sm:$0xff] %v540_v21 }

// kernel: quality_net_forward.42
= control target key start
LH: loop header
LB: loop body
LE: loop exit
PB: predicated region body
PF: predicated region fallthrough
CT: control target
= control target key end

     0   :  { %s453_s12 = smov 0   ;;  %s455_s13 = smov 0   ;;  %s485_s0 = inlined_call_operand.vmem [shape: f32[2,1,512], index: 0, kind: input, shape index: {}]   ;;  %s486_s1 = inlined_call_operand.vmem [shape: f32[2,1,512], index: 1, kind: input, shape index: {}]   ;;  %s487_s2 = inlined_call_operand.vmem [shape: f32[2,1,512], index: 2, kind: input, shape index: {}]   ;;  %s488_s3 = inlined_call_operand.vmem [shape: f32[2,1,512], index: 3, kind: output, shape index: {}]  }
   0x1   :  { %s457_s14 = smov 0  }
   0x2 LB: > { %s25_s15 = sadd.s32 1, %s427_s13  ;;  %p378_p0 = scmp.ge.s32.totalorder %s431_s14, 1  ;;  %s431_s14 = sphi %s457_s14, %s13_s14   ;;  %s427_s13 = sphi %s455_s13, %s490_s13   ;;  %s423_s12 = sphi %s453_s12, %s489_s12  }
   0x3   : > { %p27_p1 = scmp.ge.s32.totalorder %s25_s15, 2  ;;  %p180_p2 = scmp.lt.s32.totalorder %s431_s14, 3 }
   0x5   : > { %s492_s15 = smov (%p27_p1, %s25_s15), 0  ;;  %p181_p3 = pnand %p378_p0, %p180_p2 }
   0x6   : > { %p222_p4 = scmp.lt.s32.totalorder (!%p181_p3), %s423_s12, 1  ;;  %v256_v2 = vlaneseq (!%p181_p3) }
   0x7   : > { %184 = sbr.rel (%p181_p3) target bundleno = 26 (0x1a), region = 32 }
   0x8   : > { %vm258_vm0 = vcmp.lt.s32.totalorder (!%p181_p3), %v256_v2, 512 }
   0xe   : > { %s494_s12 = smov (!%p222_p4, %s423_s12), 1 }
   0xf   : > { %s379_s16 = sshll.u32 %s494_s12, 2 }
  0x10   : > { %s229_s19 = scalar_lea.vmem %s485_s0, %s379_s16  ;;  %s233_s22 = scalar_lea.vmem %s486_s1, %s379_s16 }
  0x11   : > { %s241_s25 = scalar_lea.vmem %s487_s2, %s379_s16  ;;  %v250_v0 = vld [vmem:[%s229_s19] sm:$0xf]  ;;  %s249_s28 = scalar_lea.vmem %s488_s3, %s379_s16 }
  0x12   : > { %v251_v1 = vld [vmem:[%s233_s22] sm:$0xf] }
  0x13   : > { %v252_v3 = vmul.f32 %v251_v1, %v250_v0  ;;  %v253_v4 = vld [vmem:[%s241_s25] sm:$0xf] }
  0x15   : > { %v254_v5 = vadd.f32 %v253_v4, %v252_v3 }
  0x17   : > { %v255_v6 = vmax.f32 %v254_v5, 0.0 }
  0x19   : > { %260 = vst.msk [vmem:[%s249_s28] sm:$0xf] %vm258_vm0, %v255_v6 }
  0x1a PF: > { %s13_s14 = sadd.s32 1, %s431_s14   ;;  %s489_s12 = smov %s427_s13 }
  0x1b   : > { %p10_p5 = scmp.ge.s32.totalorder %s13_s14, 4   ;;  %s490_s13 = smov %s492_s15 }
  0x1d   :  { %12 = sbr.rel (!%p10_p5) target bundleno = 2 (0x2), region = 68 }

// kernel: quality_net_forward.43
= control target key start
LH: loop header
LB: loop body
LE: loop exit
PB: predicated region body
PF: predicated region fallthrough
CT: control target
= control target key end

     0   :  { %s1167_s12 = smov 0   ;;  %s1169_s13 = smov 0   ;;  %s1285_s0 = inlined_call_operand.vmem [shape: bf16[8,4608], index: 0, kind: input, shape index: {}]   ;;  %s1286_s1 = inlined_call_operand.vmem [shape: bf16[4608,256], index: 1, kind: input, shape index: {}]   ;;  %s1287_s2 = inlined_call_operand.vmem [shape: f32[1,256], index: 2, kind: input, shape index: {}]   ;;  %s1288_s3 = inlined_call_operand.vmem [shape: f32[8,256], index: 3, kind: output, shape index: {}]  }
   0x1   :  { %s1171_s14 = smov 0  }
   0x2 LB: > { %s25_s15 = sadd.s32 1, %s1140_s13  ;;  %p916_p0 = scmp.ge.s32.totalorder %s1144_s14, 1  ;;  %s1144_s14 = sphi %s1171_s14, %s13_s14   ;;  %s1140_s13 = sphi %s1169_s13, %s1290_s13   ;;  %s1136_s12 = sphi %s1167_s12, %s1289_s12  }
   0x3   : > { %p26_p1 = scmp.ge.s32.totalorder %s25_s15, 9  ;;  %p194_p2 = scmp.lt.s32.totalorder %s1144_s14, 10 }
   0x5   : > { %s1292_s15 = smov (%p26_p1, %s25_s15), 0  ;;  %p195_p3 = pnand %p916_p0, %p194_p2 }
   0x6   : > { %s917_s16 = sshll.u32 (!%p195_p3), %s1136_s12, 2  ;;  %s919_s17 = sshll.u32 (!%p195_p3), %s1136_s12, 6 }
   0x7   : > { %198 = sbr.rel (%p195_p3) target bundleno = 320 (0x140), region = 32  ;;  %p243_p4 = scmp.lt.s32.totalorder (!%p195_p3), %s917_s16, 35 }
   0x8   : > { %p252_p5 = scmp.lt.s32.totalorder (!%p195_p3), %s919_s17, 575  ;;  %p922_p6 = scmp.ne.s32.totalorder (!%p195_p3), %s1136_s12, 0 }
   0xe   : > { %s1294_s16 = smov (!%p243_p4, %s917_s16), 35  ;;  %s1296_s17 = smov (!%p252_p5, %s919_s17), 575 }
   0xf   : > { %s918_s18 = sshll.u32 %s1294_s16, 2  ;;  %s996_s22 = sshll.u32 %s1296_s17, 3  ;;  %v1146_v0 = vmov (!%p922_p6), 0.0  }
  0x10   : > { %s1192_s21 = scalar_lea.vmem %s1285_s0, %s918_s18  ;;  %s1197_s25 = scalar_lea.vmem %s1286_s1, %s996_s22  ;;  %281 = vst [vmem:[#allocation2] sm:$0xff] (!%p922_p6), %v1146_v0  ;;  %282 = vst [vmem:[#allocation2 + $0x8] sm:$0xff] (!%p922_p6), %v1146_v0 }
  0x11   : > { %280 = sbr.rel (%p922_p6) target bundleno = 24 (0x18), region = 36 }
  0x18 PF: > { %v1022_v1 = vld [vmem:[%s1197_s25 + $0x4] ss:$8 sps:$4 sm:$0xff]   ;;  %v1026_v3 = vld [vmem:[%s1197_s25] ss:$8 sps:$4 sm:$0xff]   ;;  %v1028_v5 = vld [vmem:[%s1197_s25 + $0x14] ss:$8 sps:$4 sm:$0xff]  }
  0x19   : > { %v1024_v2 = vld [vmem:[%s1197_s25 + $0x104] ss:$8 sps:$4 sm:$0xff]   ;;  %685 = vmatprep.subr.bf16.mxu0 %v1022_v1  ;;  %v1027_v4 = vld [vmem:[%s1197_s25 + $0x100] ss:$8 sps:$4 sm:$0xff]   ;;  %v1030_v6 = vld [vmem:[%s1197_s25 + $0x114] ss:$8 sps:$4 sm:$0xff]  }
  0x1a   : > { %726 = vmatprep.subr.bf16.mxu1 %v1024_v2  ;;  %686 = vmatpush1.bf16.msra.mxu0 %v1026_v3  ;;  %v1032_v7 = vld [vmem:[%s1197_s25 + $0x10] ss:$8 sps:$4 sm:$0xff]   ;;  %v1034_v9 = vld [vmem:[%s1197_s25 + $0x24] ss:$8 sps:$4 sm:$0xff]   ;;  %v1038_v11 = vld [vmem:[%s1197_s25 + $0x20] ss:$8 sps:$4 sm:$0xff]  }
  0x1b   : > { %727 = vmatpush1.bf16.msra.mxu1 %v1027_v4  ;;  %687 = vmatprep.subr.bf16.mxu0 %v1028_v5  ;;  %v1033_v8 = vld [vmem:[%s1197_s25 + $0x110] ss:$8 sps:$4 sm:$0xff]   ;;  %v1036_v10 = vld [vmem:[%s1197_s25 + $0x124] ss:$8 sps:$4 sm:$0xff]   ;;  %v1039_v12 = vld [vmem:[%s1197_s25 + $0x120] ss:$8 sps:$4 sm:$0xff]  }
  0x1c   : > { %728 = vmatprep.subr.bf16.mxu1 %v1030_v6  ;;  %v1040_v13 = vld [vmem:[%s1197_s25 + $0x34] ss:$8 sps:$4 sm:$0xff]   ;;  %v1044_v15 = vld [vmem:[%s1197_s25 + $0x30] ss:$8 sps:$4 sm:$0xff]   ;;  %v1046_v17 = vld [vmem:[%s1197_s25 + $0x44] ss:$8 sps:$4 sm:$0xff]  }
  0x1d   : > { %v1042_v14 = vld [vmem:[%s1197_s25 + $0x134] ss:$8 sps:$4 sm:$0xff]   ;;  %v1045_v16 = vld [vmem:[%s1197_s25 + $0x130] ss:$8 sps:$4 sm:$0xff]   ;;  %v1048_v18 = vld [vmem:[%s1197_s25 + $0x144] ss:$8 sps:$4 sm:$0xff]  }
  0x1e   : > { %688 = vmatpush1.bf16.msra.mxu0 %v1032_v7  ;;  %v1050_v19 = vld [vmem:[%s1197_s25 + $0x40] ss:$8 sps:$4 sm:$0xff]   ;;  %v1052_v21 = vld [vmem:[%s1197_s25 + $0x54] ss:$8 sps:$4 sm:$0xff]   ;;  %v1056_v23 = vld [vmem:[%s1197_s25 + $0x50] ss:$8 sps:$4 sm:$0xff]  }
  0x1f   : > { %729 = vmatpush1.bf16.msra.mxu1 %v1033_v8  ;;  %689 = vmatprep.subr.bf16.mxu0 %v1034_v9  ;;  %v1051_v20 = vld [vmem:[%s1197_s25 + $0x140] ss:$8 sps:$4 sm:$0xff]   ;;  %v1054_v22 = vld [vmem:[%s1197_s25 + $0x154] ss:$8 sps:$4 sm:$0xff]   ;;  %v1057_v24 = vld [vmem:[%s1197_s25 + $0x150] ss:$8 sps:$4 sm:$0xff]  }
  0x20   : > { %730 = vmatprep.subr.bf16.mxu1 %v1036_v10  ;;  %v1058_v25 = vld [vmem:[%s1197_s25 + $0x64] ss:$8 sps:$4 sm:$0xff]   ;;  %v1062_v27 = vld [vmem:[%s1197_s25 + $0x60] ss:$8 sps:$4 sm:$0xff]   ;;  %v1064_v29 = vld [vmem:[%s1197_s25 + $0x74] ss:$8 sps:$4 sm:$0xff]  }
  0x21   : > { %v1060_v26 = vld [vmem:[%s1197_s25 + $0x164] ss:$8 sps:$4 sm:$0xff]   ;;  %v1063_v28 = vld [vmem:[%s1197_s25 + $0x160] ss:$8 sps:$4 sm:$0xff]   ;;  %v1066_v30 = vld [vmem:[%s1197_s25 + $0x174] ss:$8 sps:$4 sm:$0xff]  }
  0x22   : > { %690 = vmatpush1.bf16.msra.mxu0 %v1038_v11  ;;  %v1068_v31 = vld [vmem:[%s1197_s25 + $0x70] ss:$8 sps:$4 sm:$0xff]   ;;  %v1070_v33 = vld [vmem:[%s1197_s25 + $0x84] ss:$8 sps:$4 sm:$0xff]   ;;  %v1074_v35 = vld [vmem:[%s1197_s25 + $0x80] ss:$8 sps:$4 sm:$0xff]  }
  0x23   : > { %731 = vmatpush1.bf16.msra.mxu1 %v1039_v12  ;;  %691 = vmatprep.subr.bf16.mxu0 %v1040_v13  ;;  %v1069_v32 = vld [vmem:[%s1197_s25 + $0x170] ss:$8 sps:$4 sm:$0xff]   ;;  %v1072_v34 = vld [vmem:[%s1197_s25 + $0x184] ss:$8 sps:$4 sm:$0xff]   ;;  %v1075_v36 = vld [vmem:[%s1197_s25 + $0x180] ss:$8 sps:$4 sm:$0xff]  }
  0x24   : > { %732 = vmatprep.subr.bf16.mxu1 %v1042_v14  ;;  %v1076_v37 = vld [vmem:[%s1197_s25 + $0x94] ss:$8 sps:$4 sm:$0xff]   ;;  %v1080_v39 = vld [vmem:[%s1197_s25 + $0x90] ss:$8 sps:$4 sm:$0xff]   ;;  %v1082_v41 = vld [vmem:[%s1197_s25 + $0xa4] ss:$8 sps:$4 sm:$0xff]  }
  0x25   : > { %v1078_v38 = vld [vmem:[%s1197_s25 + $0x194] ss:$8 sps:$4 sm:$0xff]   ;;  %v1081_v40 = vld [vmem:[%s1197_s25 + $0x190] ss:$8 sps:$4 sm:$0xff]   ;;  %v1084_v42 = vld [vmem:[%s1197_s25 + $0x1a4] ss:$8 sps:$4 sm:$0xff]  }
  0x26   : > { %692 = vmatpush1.bf16.msra.mxu0 %v1044_v15  ;;  %v1086_v43 = vld [vmem:[%s1197_s25 + $0xa0] ss:$8 sps:$4 sm:$0xff]   ;;  %v1088_v45 = vld [vmem:[%s1197_s25 + $0xb4] ss:$8 sps:$4 sm:$0xff]   ;;  %v1092_v50 = vld [vmem:[%s1197_s25 + $0xb0] ss:$8 sps:$4 sm:$0xff]  }
  0x27   : > { %733 = vmatpush1.bf16.msra.mxu1 %v1045_v16  ;;  %693 = vmatprep.subr.bf16.mxu0 %v1046_v17  ;;  %v1087_v44 = vld [vmem:[%s1197_s25 + $0x1a0] ss:$8 sps:$4 sm:$0xff]   ;;  %v1090_v46 = vld [vmem:[%s1197_s25 + $0x1b4] ss:$8 sps:$4 sm:$0xff]   ;;  %v1093_v51 = vld [vmem:[%s1197_s25 + $0x1b0] ss:$8 sps:$4 sm:$0xff]  }
  0x28   : > { %734 = vmatprep.subr.bf16.mxu1 %v1048_v18  ;;  %v285_v47 = vld [vmem:[%s1192_s21] sm:$0xff]  ;;  %v286_v49 = vld [vmem:[%s1192_s21 + $0x8] sm:$0xff]  ;;  %v1100_v57 = vld [vmem:[%s1197_s25 + $0xd4] ss:$8 sps:$4 sm:$0xff]   ;;  %p991_p7 = scmp.ne.s32.totalorder %s1136_s12, 8 }
  0x29   : > { %v924_v48 = vcombine.high %v285_v47, %v285_v47  ;;  %v926_v52 = vcombine.high %v286_v49, %v286_v49  ;;  %v1094_v53 = vld [vmem:[%s1197_s25 + $0xc4] ss:$8 sps:$4 sm:$0xff]   ;;  %v1098_v55 = vld [vmem:[%s1197_s25 + $0xc0] ss:$8 sps:$4 sm:$0xff]   ;;  %v1102_v58 = vld [vmem:[%s1197_s25 + $0x1d4] ss:$8 sps:$4 sm:$0xff]   ;;  %v923_v5 = vcombine.low %v285_v47, %v285_v47  ;;  %v925_v6 = vcombine.low %v286_v49, %v286_v49 }
  0x2a   : > { %694 = vmatpush1.bf16.msra.mxu0 %v1050_v19  ;;  %v1096_v54 = vld [vmem:[%s1197_s25 + $0x1c4] ss:$8 sps:$4 sm:$0xff]   ;;  %v1099_v56 = vld [vmem:[%s1197_s25 + $0x1c0] ss:$8 sps:$4 sm:$0xff]   ;;  %v1104_v59 = vld [vmem:[%s1197_s25 + $0xd0] ss:$8 sps:$4 sm:$0xff]  }
  0x2b   : > { %735 = vmatpush1.bf16.msra.mxu1 %v1051_v20  ;;  %695 = vmatprep.subr.bf16.mxu0 %v1052_v21  ;;  %v1105_v60 = vld [vmem:[%s1197_s25 + $0x1d0] ss:$8 sps:$4 sm:$0xff]   ;;  %v1106_v61 = vld [vmem:[%s1197_s25 + $0xe4] ss:$8 sps:$4 sm:$0xff]   ;;  %v1110_v63 = vld [vmem:[%s1197_s25 + $0xe0] ss:$8 sps:$4 sm:$0xff]   ;;  %v779_v21 = vlaneseq (!%p991_p7) }
  0x2c   : > { %736 = vmatprep.subr.bf16.mxu1 %v1054_v22  ;;  %717 = vmatprep.mubr.bf16.mxu0 %v924_v48  ;;  %v1108_v62 = vld [vmem:[%s1197_s25 + $0x1e4] ss:$8 sps:$4 sm:$0xff]   ;;  %v1111_v0 = vld [vmem:[%s1197_s25 + $0x1e0] ss:$8 sps:$4 sm:$0xff]   ;;  %v1112_v1 = vld [vmem:[%s1197_s25 + $0xf4] ss:$8 sps:$4 sm:$0xff]  }
  0x2d   : > { %758 = vmatprep.mubr.bf16.mxu1 %v926_v52  ;;  %v1114_v2 = vld [vmem:[%s1197_s25 + $0x1f4] ss:$8 sps:$4 sm:$0xff]   ;;  %v1116_v3 = vld [vmem:[%s1197_s25 + $0xf0] ss:$8 sps:$4 sm:$0xff]   ;;  %v283_v8 = vld [vmem:[#allocation2] sm:$0xff]  ;;  %v780_v22 = vshrl.u32 (!%p991_p7), %v779_v21, 7 }
  0x2e   : > { %696 = vmatpush1.bf16.msra.mxu0 %v1056_v23  ;;  %v1117_v4 = vld [vmem:[%s1197_s25 + $0x1f0] ss:$8 sps:$4 sm:$0xff]   ;;  %v284_v12 = vld [vmem:[#allocation2 + $0x8] sm:$0xff]  ;;  %v777_v23 = vld [vmem:[%s1287_s2] sm:$0x3] (!%p991_p7) }
  0x2f   : > { %737 = vmatpush1.bf16.msra.mxu1 %v1057_v24  ;;  %697 = vmatprep.subr.bf16.mxu0 %v1058_v25  ;;  %v781_v24 = vsub.s32 (!%p991_p7), 0, %v780_v22  ;;  %v785_v25 = vsub.s32 (!%p991_p7), 1, %v780_v22 }
  0x30   : > { %738 = vmatprep.subr.bf16.mxu1 %v1060_v26 }
  0x32   : > { %698 = vmatpush1.bf16.msra.mxu0 %v1062_v27 }
  0x33   : > { %739 = vmatpush1.bf16.msra.mxu1 %v1063_v28  ;;  %699 = vmatprep.subr.bf16.mxu0 %v1064_v29  ;;  %v782_v28 = vrot.slane (!%p991_p7), %v777_v23, %v781_v24  ;;  %v786_v29 = vrot.slane (!%p991_p7), %v777_v23, %v785_v25 }
  0x34   : > { %740 = vmatprep.subr.bf16.mxu1 %v1066_v30 }
  0x36   : > { %700 = vmatpush1.bf16.msra.mxu0 %v1068_v31 }
  0x37   : > { %741 = vmatpush1.bf16.msra.mxu1 %v1069_v32  ;;  %701 = vmatprep.subr.bf16.mxu0 %v1070_v33 }
  0x38   : > { %742 = vmatprep.subr.bf16.mxu1 %v1072_v34 }
  0x3a   : > { %702 = vmatpush1.bf16.msra.mxu0 %v1074_v35 }
  0x3b   : > { %743 = vmatpush1.bf16.msra.mxu1 %v1075_v36  ;;  %703 = vmatprep.subr.bf16.mxu0 %v1076_v37 }
  0x3c   : > { %744 = vmatprep.subr.bf16.mxu1 %v1078_v38 }
  0x3e   : > { %704 = vmatpush1.bf16.msra.mxu0 %v1080_v39 }
  0x3f   : > { %745 = vmatpush1.bf16.msra.mxu1 %v1081_v40  ;;  %705 = vmatprep.subr.bf16.mxu0 %v1082_v41 }
  0x40   : > { %746 = vmatprep.subr.bf16.mxu1 %v1084_v42 }
  0x42   : > { %706 = vmatpush1.bf16.msra.mxu0 %v1086_v43 }
  0x43   : > { %747 = vmatpush1.bf16.msra.mxu1 %v1087_v44  ;;  %707 = vmatprep.subr.bf16.mxu0 %v1088_v45 }
  0x44   : > { %748 = vmatprep.subr.bf16.mxu1 %v1090_v46 }
  0x46   : > { %708 = vmatpush1.bf16.msra.mxu0 %v1092_v50 }
  0x47   : > { %749 = vmatpush1.bf16.msra.mxu1 %v1093_v51  ;;  %709 = vmatprep.subr.bf16.mxu0 %v1094_v53 }
  0x48   : > { %750 = vmatprep.subr.bf16.mxu1 %v1096_v54 }
  0x4a   : > { %710 = vmatpush1.bf16.msra.mxu0 %v1098_v55 }
  0x4b   : > { %751 = vmatpush1.bf16.msra.mxu1 %v1099_v56  ;;  %711 = vmatprep.subr.bf16.mxu0 %v1100_v57 }
  0x4c   : > { %752 = vmatprep.subr.bf16.mxu1 %v1102_v58 }
  0x4e   : > { %712 = vmatpush1.bf16.msra.mxu0 %v1104_v59 }
  0x4f   : > { %753 = vmatpush1.bf16.msra.mxu1 %v1105_v60  ;;  %713 = vmatprep.subr.bf16.mxu0 %v1106_v61 }
  0x50   : > { %754 = vmatprep.subr.bf16.mxu1 %v1108_v62 }
  0x52   : > { %714 = vmatpush1.bf16.msra.mxu0 %v1110_v63 }
  0x53   : > { %755 = vmatpush1.bf16.msra.mxu1 %v1111_v0  ;;  %715 = vmatprep.subr.bf16.mxu0 %v1112_v1 }
  0x54   : > { %756 = vmatprep.subr.bf16.mxu1 %v1114_v2 }
  0x56   : > { %716 = vmatpush1.bf16.msra.mxu0 %v1116_v3 }
  0x57   : > { %757 = vmatpush1.bf16.msra.mxu1 %v1117_v4 }
  0x59   : > { %718 = vmatmul.mubr.bf16.vlgmr.msra.gmra.mrb[0].mxu0 %v923_v5 }
  0x5a   : > { %759 = vmatmul.mubr.bf16.vlgmr.msra.gmra.mrb[0].mxu1 %v925_v6 }
 0x12c   : > { %v719_v7 = vpop.f32.mrb[0].mxu0 }
 0x12d   : > { %v760_v9 = vpop.f32.mrb[0].mxu1  ;;  %v721_v11 = vpop.f32.mrb[1].mxu0  ;;  %774 = sbr.rel (%p991_p7) target bundleno = 320 (0x140), region = 40 }
 0x12e   : > { %v761_v10 = vadd.f32 %v760_v9, %v719_v7  ;;  %v762_v13 = vpop.f32.mrb[1].mxu1  ;;  %v723_v15 = vpop.f32.mrb[2].mxu0 }
 0x12f   : > { %v763_v14 = vadd.f32 %v762_v13, %v721_v11  ;;  %v764_v16 = vpop.f32.mrb[2].mxu1  ;;  %v724_v18 = vpop.f32.mrb[3].mxu0 }
 0x130   : > { %v767_v17 = vadd.f32 %v761_v10, %v283_v8  ;;  %v765_v19 = vpop.f32.mrb[3].mxu1 }
 0x131   : > { %v768_v20 = vadd.f32 %v763_v14, %v284_v12 }
 0x132   : > { %769 = vst [vmem:[#allocation2] sm:$0xff] %v767_v17 }
 0x133   : > { %770 = vst [vmem:[#allocation2 + $0x8] sm:$0xff] %v768_v20 }
 0x139   : > { %v775_v26 = vld [vmem:[#allocation2] sm:$0xff] }
 0x13a   : > { %v776_v27 = vld [vmem:[#allocation2 + $0x8] sm:$0xff]  ;;  %v789_v30 = vadd.f32 %v782_v28, %v775_v26 }
 0x13b   : > { %v790_v31 = vadd.f32 %v786_v29, %v776_v27 }
 0x13c   : > { %v791_v32 = vmax.f32 %v789_v30, 0.0 }
 0x13d   : > { %v792_v33 = vmax.f32 %v790_v31, 0.0 }
 0x13e   : > { %793 = vst [vmem:[%s1288_s3] sm:$0xff] %v791_v32 }
 0x13f   : > { %794 = vst [vmem:[%s1288_s3 + $0x8] sm:$0xff] %v792_v33 }
 0x140 PF: > { %s13_s14 = sadd.s32 1, %s1144_s14   ;;  %s1289_s12 = smov %s1140_s13 }
 0x141   : > { %p10_p8 = scmp.ge.s32.totalorder %s13_s14, 11   ;;  %s1290_s13 = smov %s1292_s15 }
 0x143   :  { %12 = sbr.rel (!%p10_p8) target bundleno = 2 (0x2), region = 76 }

// kernel: quality_net_forward.44
= control target key start
LH: loop header
LB: loop body
LE: loop exit
PB: predicated region body
PF: predicated region fallthrough
CT: control target
= control target key end

     0   :  { %s941_s12 = smov 0   ;;  %s943_s13 = smov 0   ;;  %s1024_s0 = inlined_call_operand.vmem [shape: bf16[8,2560], index: 0, kind: input, shape index: {}]   ;;  %s1025_s1 = inlined_call_operand.vmem [shape: bf16[2560,128], index: 1, kind: input, shape index: {}]   ;;  %s1026_s2 = inlined_call_operand.vmem [shape: f32[1,128], index: 2, kind: input, shape index: {}]   ;;  %s1027_s3 = inlined_call_operand.vmem [shape: f32[8,128], index: 3, kind: output, shape index: {}]  }
   0x1   :  { %s945_s14 = smov 0  }
   0x2 LB: > { %s25_s15 = sadd.s32 1, %s914_s13  ;;  %p744_p0 = scmp.ge.s32.totalorder %s918_s14, 1  ;;  %s918_s14 = sphi %s945_s14, %s13_s14   ;;  %s914_s13 = sphi %s943_s13, %s1029_s13   ;;  %s910_s12 = sphi %s941_s12, %s1028_s12  }
   0x3   : > { %p26_p1 = scmp.ge.s32.totalorder %s25_s15, 5  ;;  %p189_p2 = scmp.lt.s32.totalorder %s918_s14, 6 }
   0x5   : > { %s1031_s15 = smov (%p26_p1, %s25_s15), 0  ;;  %p190_p3 = pnand %p744_p0, %p189_p2 }
   0x6   : > { %s745_s16 = sshll.u32 (!%p190_p3), %s910_s12, 2  ;;  %s747_s17 = sshll.u32 (!%p190_p3), %s910_s12, 6 }
   0x7   : > { %193 = sbr.rel (%p190_p3) target bundleno = 291 (0x123), region = 32  ;;  %p233_p4 = scmp.lt.s32.totalorder (!%p190_p3), %s745_s16, 19 }
   0x8   : > { %p241_p5 = scmp.lt.s32.totalorder (!%p190_p3), %s747_s17, 319  ;;  %p749_p6 = scmp.ne.s32.totalorder (!%p190_p3), %s910_s12, 0 }
   0xe   : > { %s1033_s16 = smov (!%p233_p4, %s745_s16), 19  ;;  %s1035_s17 = smov (!%p241_p5, %s747_s17), 319 }
   0xf   : > { %s746_s18 = sshll.u32 %s1033_s16, 2  ;;  %s748_s22 = sshll.u32 %s1035_s17, 2  ;;  %v920_v0 = vmov (!%p749_p6), 0.0  }
  0x10   : > { %s966_s21 = scalar_lea.vmem %s1024_s0, %s746_s18  ;;  %s971_s25 = scalar_lea.vmem %s1025_s1, %s748_s22  ;;  %264 = vst [vmem:[#allocation2] sm:$0xff] (!%p749_p6), %v920_v0 }
  0x11   : > { %263 = sbr.rel (%p749_p6) target bundleno = 24 (0x18), region = 36 }
  0x18 PF: > { %v860_v1 = vld [vmem:[%s971_s25 + $0x40] sm:$0xff]   ;;  %v864_v5 = vld [vmem:[%s971_s25 + $0x48] sm:$0xff]   ;;  %v868_v9 = vld [vmem:[%s971_s25 + $0x50] sm:$0xff]   ;;  %p786_p7 = scmp.ne.s32.totalorder %s910_s12, 4 }
  0x19   : > { %v861_v2 = vld [vmem:[%s971_s25 + $0xc0] sm:$0xff]   ;;  %791 = vmatprep.subr.bf16.mxu0 %v860_v1  ;;  %v865_v6 = vld [vmem:[%s971_s25 + $0xc8] sm:$0xff]   ;;  %v869_v10 = vld [vmem:[%s971_s25 + $0xd0] sm:$0xff]  }
  0x1a   : > { %v862_v3 = vld [vmem:[%s971_s25] sm:$0xff]   ;;  %813 = vmatprep.subr.bf16.mxu1 %v861_v2  ;;  %v866_v7 = vld [vmem:[%s971_s25 + $0x8] sm:$0xff]   ;;  %v870_v11 = vld [vmem:[%s971_s25 + $0x10] sm:$0xff]  }
  0x1b   : > { %v863_v4 = vld [vmem:[%s971_s25 + $0x80] sm:$0xff]   ;;  %792 = vmatpush3.bf16.msra.mxu0 %v862_v3  ;;  %v867_v8 = vld [vmem:[%s971_s25 + $0x88] sm:$0xff]   ;;  %v871_v12 = vld [vmem:[%s971_s25 + $0x90] sm:$0xff]  }
  0x1c   : > { %814 = vmatpush3.bf16.msra.mxu1 %v863_v4  ;;  %793 = vmatprep.subr.bf16.mxu0 %v864_v5  ;;  %v872_v13 = vld [vmem:[%s971_s25 + $0x58] sm:$0xff]   ;;  %v876_v17 = vld [vmem:[%s971_s25 + $0x60] sm:$0xff]   ;;  %v880_v21 = vld [vmem:[%s971_s25 + $0x68] sm:$0xff]  }
  0x1d   : > { %815 = vmatprep.subr.bf16.mxu1 %v865_v6  ;;  %v873_v14 = vld [vmem:[%s971_s25 + $0xd8] sm:$0xff]   ;;  %v877_v18 = vld [vmem:[%s971_s25 + $0xe0] sm:$0xff]   ;;  %v881_v22 = vld [vmem:[%s971_s25 + $0xe8] sm:$0xff]  }
  0x1e   : > { %v874_v15 = vld [vmem:[%s971_s25 + $0x18] sm:$0xff]   ;;  %v878_v19 = vld [vmem:[%s971_s25 + $0x20] sm:$0xff]   ;;  %v882_v23 = vld [vmem:[%s971_s25 + $0x28] sm:$0xff]  }
  0x1f   : > { %794 = vmatpush3.bf16.msra.mxu0 %v866_v7  ;;  %v875_v16 = vld [vmem:[%s971_s25 + $0x98] sm:$0xff]   ;;  %v879_v20 = vld [vmem:[%s971_s25 + $0xa0] sm:$0xff]   ;;  %v883_v24 = vld [vmem:[%s971_s25 + $0xa8] sm:$0xff]  }
  0x20   : > { %816 = vmatpush3.bf16.msra.mxu1 %v867_v8  ;;  %795 = vmatprep.subr.bf16.mxu0 %v868_v9  ;;  %v884_v25 = vld [vmem:[%s971_s25 + $0x70] sm:$0xff]   ;;  %v888_v29 = vld [vmem:[%s971_s25 + $0x78] sm:$0xff]   ;;  %v266_v33 = vld [vmem:[%s966_s21] sm:$0xff] }
  0x21   : > { %817 = vmatprep.subr.bf16.mxu1 %v869_v10  ;;  %v885_v26 = vld [vmem:[%s971_s25 + $0xf0] sm:$0xff]   ;;  %v889_v30 = vld [vmem:[%s971_s25 + $0xf8] sm:$0xff]   ;;  %v267_v34 = vld [vmem:[%s966_s21 + $0x8] sm:$0xff]  ;;  %v750_v35 = vcombine.low %v266_v33, %v266_v33  ;;  %v751_v36 = vcombine.high %v266_v33, %v266_v33 }
  0x22   : > { %v886_v27 = vld [vmem:[%s971_s25 + $0x30] sm:$0xff]   ;;  %v890_v31 = vld [vmem:[%s971_s25 + $0x38] sm:$0xff]   ;;  %v752_v37 = vcombine.low %v267_v34, %v267_v34  ;;  %v753_v38 = vcombine.high %v267_v34, %v267_v34  ;;  %v265_v47 = vld [vmem:[#allocation2] sm:$0xff] }
  0x23   : > { %796 = vmatpush3.bf16.msra.mxu0 %v870_v11  ;;  %v887_v28 = vld [vmem:[%s971_s25 + $0xb0] sm:$0xff]   ;;  %v891_v32 = vld [vmem:[%s971_s25 + $0xb8] sm:$0xff]   ;;  %570 = vmatprep.mubr.bf16.mxu0 %v751_v36  ;;  %v787_v53 = vld [vmem:[%s1026_s2] ss:$0 sm:$0xff] (!%p786_p7) }
  0x24   : > { %818 = vmatpush3.bf16.msra.mxu1 %v871_v12  ;;  %797 = vmatprep.subr.bf16.mxu0 %v872_v13 }
  0x25   : > { %819 = vmatprep.subr.bf16.mxu1 %v873_v14  ;;  %610 = vmatprep.mubr.bf16.mxu1 %v753_v38 }
  0x27   : > { %798 = vmatpush3.bf16.msra.mxu0 %v874_v15 }
  0x28   : > { %820 = vmatpush3.bf16.msra.mxu1 %v875_v16  ;;  %799 = vmatprep.subr.bf16.mxu0 %v876_v17 }
  0x29   : > { %821 = vmatprep.subr.bf16.mxu1 %v877_v18 }
  0x2b   : > { %800 = vmatpush3.bf16.msra.mxu0 %v878_v19 }
  0x2c   : > { %822 = vmatpush3.bf16.msra.mxu1 %v879_v20  ;;  %801 = vmatprep.subr.bf16.mxu0 %v880_v21 }
  0x2d   : > { %823 = vmatprep.subr.bf16.mxu1 %v881_v22 }
  0x2f   : > { %802 = vmatpush3.bf16.msra.mxu0 %v882_v23 }
  0x30   : > { %824 = vmatpush3.bf16.msra.mxu1 %v883_v24  ;;  %803 = vmatprep.subr.bf16.mxu0 %v884_v25 }
  0x31   : > { %825 = vmatprep.subr.bf16.mxu1 %v885_v26 }
  0x33   : > { %804 = vmatpush3.bf16.msra.mxu0 %v886_v27 }
  0x34   : > { %826 = vmatpush3.bf16.msra.mxu1 %v887_v28  ;;  %805 = vmatprep.subr.bf16.mxu0 %v888_v29 }
  0x35   : > { %827 = vmatprep.subr.bf16.mxu1 %v889_v30 }
  0x37   : > { %806 = vmatpush3.bf16.msra.mxu0 %v890_v31 }
  0x38   : > { %828 = vmatpush3.bf16.msra.mxu1 %v891_v32 }
  0x3a   : > { %571 = vmatmul.mubr.bf16.vlgmr.msra.gmra.mrb[0].mxu0 %v750_v35 }
  0x3b   : > { %611 = vmatmul.mubr.bf16.vlgmr.msra.gmra.mrb[0].mxu1 %v752_v37 }
 0x10d   : > { %v807_v39 = vpop.f32.mrb[0].mxu0 }
 0x10e   : > { %v829_v40 = vpop.f32.mrb[0].mxu1  ;;  %v808_v41 = vpop.f32.mrb[1].mxu0 }
 0x10f   : > { %v830_v42 = vpop.f32.mrb[1].mxu1  ;;  %v809_v43 = vadd.f32 %v808_v41, %v807_v39  ;;  %v810_v45 = vpop.f32.mrb[2].mxu0 }
 0x110   : > { %v831_v44 = vadd.f32 %v830_v42, %v829_v40  ;;  %v832_v46 = vpop.f32.mrb[2].mxu1  ;;  %v811_v48 = vpop.f32.mrb[3].mxu0  ;;  %623 = sbr.rel (%p786_p7) target bundleno = 291 (0x123), region = 40 }
 0x111   : > { %v833_v49 = vpop.f32.mrb[3].mxu1 }
 0x112   : > { %v613_v50 = vadd.f32 %v831_v44, %v809_v43 }
 0x114   : > { %v618_v51 = vadd.f32 %v613_v50, %v265_v47 }
 0x116   : > { %619 = vst [vmem:[#allocation2] sm:$0xff] %v618_v51 }
 0x11d   : > { %v624_v52 = vld [vmem:[#allocation2] sm:$0xff] }
 0x11e   : > { %v632_v54 = vadd.f32 %v787_v53, %v624_v52 }
 0x120   : > { %v633_v55 = vmax.f32 %v632_v54, 0.0 }
 0x122   : > { %634 = vst [vmem:[%s1027_s3] sm:$0xff] %v633_v55 }
 0x123 PF: > { %s13_s14 = sadd.s32 1, %s918_s14   ;;  %s1028_s12 = smov %s914_s13 }
 0x124   : > { %p10_p8 = scmp.ge.s32.totalorder %s13_s14, 7   ;;  %s1029_s13 = smov %s1031_s15 }
 0x126   :  { %12 = sbr.rel (!%p10_p8) target bundleno = 2 (0x2), region = 76 }

// kernel: quality_net_forward.45
= control target key start
LH: loop header
LB: loop body
LE: loop exit
PB: predicated region body
PF: predicated region fallthrough
CT: control target
= control target key end

     0   :  { %s951_s12 = smov 0   ;;  %s953_s13 = smov 0   ;;  %s1034_s0 = inlined_call_operand.vmem [shape: bf16[8,1536], index: 0, kind: input, shape index: {}]   ;;  %s1035_s1 = inlined_call_operand.vmem [shape: bf16[1536,128], index: 1, kind: input, shape index: {}]   ;;  %s1036_s2 = inlined_call_operand.vmem [shape: f32[1,128], index: 2, kind: input, shape index: {}]   ;;  %s1037_s3 = inlined_call_operand.vmem [shape: f32[8,128], index: 3, kind: output, shape index: {}]  }
   0x1   :  { %s955_s14 = smov 0  }
   0x2 LB: > { %s25_s15 = sadd.s32 1, %s924_s13  ;;  %p749_p0 = scmp.ge.s32.totalorder %s928_s14, 1  ;;  %s928_s14 = sphi %s955_s14, %s13_s14   ;;  %s924_s13 = sphi %s953_s13, %s1039_s13   ;;  %s920_s12 = sphi %s951_s12, %s1038_s12  }
   0x3   : > { %p26_p1 = scmp.ge.s32.totalorder %s25_s15, 3  ;;  %p189_p2 = scmp.lt.s32.totalorder %s928_s14, 4 }
   0x5   : > { %s1041_s15 = smov (%p26_p1, %s25_s15), 0  ;;  %p190_p3 = pnand %p749_p0, %p189_p2 }
   0x6   : > { %s750_s16 = sshll.u32 (!%p190_p3), %s920_s12, 2  ;;  %s752_s17 = sshll.u32 (!%p190_p3), %s920_s12, 6 }
   0x7   : > { %193 = sbr.rel (%p190_p3) target bundleno = 315 (0x13b), region = 32  ;;  %p233_p4 = scmp.lt.s32.totalorder (!%p190_p3), %s750_s16, 11 }
   0x8   : > { %p241_p5 = scmp.lt.s32.totalorder (!%p190_p3), %s752_s17, 191  ;;  %p754_p6 = scmp.ne.s32.totalorder (!%p190_p3), %s920_s12, 0 }
   0xe   : > { %s1043_s16 = smov (!%p233_p4, %s750_s16), 11  ;;  %s1045_s17 = smov (!%p241_p5, %s752_s17), 191 }
   0xf   : > { %s751_s18 = sshll.u32 %s1043_s16, 2  ;;  %s753_s22 = sshll.u32 %s1045_s17, 2  ;;  %v930_v0 = vmov (!%p754_p6), 0.0  }
  0x10   : > { %s976_s21 = scalar_lea.vmem %s1034_s0, %s751_s18  ;;  %s981_s25 = scalar_lea.vmem %s1035_s1, %s753_s22  ;;  %264 = vst [vmem:[#allocation2] sm:$0xff] (!%p754_p6), %v930_v0 }
  0x11   : > { %263 = sbr.rel (%p754_p6) target bundleno = 24 (0x18), region = 36 }
  0x18 PF: > { %v866_v1 = vld [vmem:[%s981_s25 + $0x40] sm:$0xff]   ;;  %v870_v5 = vld [vmem:[%s981_s25 + $0x48] sm:$0xff]   ;;  %v874_v9 = vld [vmem:[%s981_s25 + $0x50] sm:$0xff]   ;;  %p791_p7 = scmp.ne.s32.totalorder %s920_s12, 2 }
  0x19   : > { %v867_v2 = vld [vmem:[%s981_s25 + $0xc0] sm:$0xff]   ;;  %797 = vmatprep.subr.bf16.mxu0 %v866_v1  ;;  %v871_v6 = vld [vmem:[%s981_s25 + $0xc8] sm:$0xff]   ;;  %v875_v10 = vld [vmem:[%s981_s25 + $0xd0] sm:$0xff]  }
  0x1a   : > { %v868_v3 = vld [vmem:[%s981_s25] sm:$0xff]   ;;  %819 = vmatprep.subr.bf16.mxu1 %v867_v2  ;;  %v872_v7 = vld [vmem:[%s981_s25 + $0x8] sm:$0xff]   ;;  %v876_v11 = vld [vmem:[%s981_s25 + $0x10] sm:$0xff]  }
  0x1b   : > { %v869_v4 = vld [vmem:[%s981_s25 + $0x80] sm:$0xff]   ;;  %798 = vmatpush3.bf16.msra.mxu0 %v868_v3  ;;  %v873_v8 = vld [vmem:[%s981_s25 + $0x88] sm:$0xff]   ;;  %v877_v12 = vld [vmem:[%s981_s25 + $0x90] sm:$0xff]  }
  0x1c   : > { %820 = vmatpush3.bf16.msra.mxu1 %v869_v4  ;;  %799 = vmatprep.subr.bf16.mxu0 %v870_v5  ;;  %v878_v13 = vld [vmem:[%s981_s25 + $0x58] sm:$0xff]   ;;  %v882_v17 = vld [vmem:[%s981_s25 + $0x60] sm:$0xff]   ;;  %v886_v21 = vld [vmem:[%s981_s25 + $0x68] sm:$0xff]  }
  0x1d   : > { %821 = vmatprep.subr.bf16.mxu1 %v871_v6  ;;  %v879_v14 = vld [vmem:[%s981_s25 + $0xd8] sm:$0xff]   ;;  %v883_v18 = vld [vmem:[%s981_s25 + $0xe0] sm:$0xff]   ;;  %v887_v22 = vld [vmem:[%s981_s25 + $0xe8] sm:$0xff]  }
  0x1e   : > { %v880_v15 = vld [vmem:[%s981_s25 + $0x18] sm:$0xff]   ;;  %v884_v19 = vld [vmem:[%s981_s25 + $0x20] sm:$0xff]   ;;  %v888_v23 = vld [vmem:[%s981_s25 + $0x28] sm:$0xff]  }
  0x1f   : > { %800 = vmatpush3.bf16.msra.mxu0 %v872_v7  ;;  %v881_v16 = vld [vmem:[%s981_s25 + $0x98] sm:$0xff]   ;;  %v885_v20 = vld [vmem:[%s981_s25 + $0xa0] sm:$0xff]   ;;  %v889_v24 = vld [vmem:[%s981_s25 + $0xa8] sm:$0xff]  }
  0x20   : > { %822 = vmatpush3.bf16.msra.mxu1 %v873_v8  ;;  %801 = vmatprep.subr.bf16.mxu0 %v874_v9  ;;  %v890_v25 = vld [vmem:[%s981_s25 + $0x70] sm:$0xff]   ;;  %v894_v29 = vld [vmem:[%s981_s25 + $0x78] sm:$0xff]   ;;  %v266_v33 = vld [vmem:[%s976_s21] sm:$0xff] }
  0x21   : > { %823 = vmatprep.subr.bf16.mxu1 %v875_v10  ;;  %v891_v26 = vld [vmem:[%s981_s25 + $0xf0] sm:$0xff]   ;;  %v895_v30 = vld [vmem:[%s981_s25 + $0xf8] sm:$0xff]   ;;  %v267_v34 = vld [vmem:[%s976_s21 + $0x8] sm:$0xff]  ;;  %v755_v35 = vcombine.low %v266_v33, %v266_v33  ;;  %v756_v36 = vcombine.high %v266_v33, %v266_v33 }
  0x22   : > { %v892_v27 = vld [vmem:[%s981_s25 + $0x30] sm:$0xff]   ;;  %v896_v31 = vld [vmem:[%s981_s25 + $0x38] sm:$0xff]   ;;  %v757_v37 = vcombine.low %v267_v34, %v267_v34  ;;  %v758_v38 = vcombine.high %v267_v34, %v267_v34  ;;  %v265_v47 = vld [vmem:[#allocation2] sm:$0xff] }
  0x23   : > { %802 = vmatpush3.bf16.msra.mxu0 %v876_v11  ;;  %v893_v28 = vld [vmem:[%s981_s25 + $0xb0] sm:$0xff]   ;;  %v897_v32 = vld [vmem:[%s981_s25 + $0xb8] sm:$0xff]   ;;  %570 = vmatprep.mubr.bf16.mxu0 %v756_v36  ;;  %v792_v53 = vld [vmem:[%s1036_s2] ss:$0 sm:$0xff] (!%p791_p7) }
  0x24   : > { %824 = vmatpush3.bf16.msra.mxu1 %v877_v12  ;;  %803 = vmatprep.subr.bf16.mxu0 %v878_v13 }
  0x25   : > { %825 = vmatprep.subr.bf16.mxu1 %v879_v14  ;;  %610 = vmatprep.mubr.bf16.mxu1 %v758_v38 }
  0x27   : > { %804 = vmatpush3.bf16.msra.mxu0 %v880_v15 }
  0x28   : > { %826 = vmatpush3.bf16.msra.mxu1 %v881_v16  ;;  %805 = vmatprep.subr.bf16.mxu0 %v882_v17 }
  0x29   : > { %827 = vmatprep.subr.bf16.mxu1 %v883_v18 }
  0x2b   : > { %806 = vmatpush3.bf16.msra.mxu0 %v884_v19 }
  0x2c   : > { %828 = vmatpush3.bf16.msra.mxu1 %v885_v20  ;;  %807 = vmatprep.subr.bf16.mxu0 %v886_v21 }
  0x2d   : > { %829 = vmatprep.subr.bf16.mxu1 %v887_v22 }
  0x2f   : > { %808 = vmatpush3.bf16.msra.mxu0 %v888_v23 }
  0x30   : > { %830 = vmatpush3.bf16.msra.mxu1 %v889_v24  ;;  %809 = vmatprep.subr.bf16.mxu0 %v890_v25 }
  0x31   : > { %831 = vmatprep.subr.bf16.mxu1 %v891_v26 }
  0x33   : > { %810 = vmatpush3.bf16.msra.mxu0 %v892_v27 }
  0x34   : > { %832 = vmatpush3.bf16.msra.mxu1 %v893_v28  ;;  %811 = vmatprep.subr.bf16.mxu0 %v894_v29 }
  0x35   : > { %833 = vmatprep.subr.bf16.mxu1 %v895_v30 }
  0x37   : > { %812 = vmatpush3.bf16.msra.mxu0 %v896_v31 }
  0x38   : > { %834 = vmatpush3.bf16.msra.mxu1 %v897_v32 }
  0x3a   : > { %571 = vmatmul.mubr.bf16.vlgmr.msra.gmra.mrb[0].mxu0 %v755_v35 }
  0x3b   : > { %611 = vmatmul.mubr.bf16.vlgmr.msra.gmra.mrb[0].mxu1 %v757_v37 }
 0x10d   : > { %v813_v39 = vpop.f32.mrb[0].mxu0 }
 0x10e   : > { %v835_v40 = vpop.f32.mrb[0].mxu1  ;;  %v814_v41 = vpop.f32.mrb[1].mxu0 }
 0x10f   : > { %v836_v42 = vpop.f32.mrb[1].mxu1  ;;  %v815_v43 = vadd.f32 %v814_v41, %v813_v39  ;;  %v816_v45 = vpop.f32.mrb[2].mxu0 }
 0x110   : > { %v837_v44 = vadd.f32 %v836_v42, %v835_v40  ;;  %v838_v46 = vpop.f32.mrb[2].mxu1  ;;  %v817_v48 = vpop.f32.mrb[3].mxu0  ;;  %623 = sbr.rel (%p791_p7) target bundleno = 315 (0x13b), region = 40 }
 0x111   : > { %v839_v49 = vpop.f32.mrb[3].mxu1 }
 0x112   : > { %v613_v50 = vadd.f32 %v837_v44, %v815_v43 }
 0x114   : > { %v618_v51 = vadd.f32 %v613_v50, %v265_v47 }
 0x116   : > { %619 = vst [vmem:[#allocation2] sm:$0xff] %v618_v51 }
 0x11d   : > { %v624_v52 = vld [vmem:[#allocation2] sm:$0xff] }
 0x11e   : > { %v632_v54 = vadd.f32 %v792_v53, %v624_v52 }
 0x120   : > { %v793_v55 = vmul.f32 -1.442695, %v632_v54 }
 0x122   : > { %902 = vpow2.f32 %v793_v55 }
 0x12c   : > { %v903_v56 = vpop.eup %902 }
 0x12d   : > { %v636_v57 = vadd.f32 1.0, %v903_v56 }
 0x12f   : > { %904 = vrcp.f32 %v636_v57 }
 0x139   : > { %v905_v58 = vpop.eup %904 }
 0x13a   : > { %639 = vst [vmem:[%s1037_s3] sm:$0xff] %v905_v58 }
 0x13b PF: > { %s13_s14 = sadd.s32 1, %s928_s14   ;;  %s1038_s12 = smov %s924_s13 }
 0x13c   : > { %p10_p8 = scmp.ge.s32.totalorder %s13_s14, 5   ;;  %s1039_s13 = smov %s1041_s15 }
 0x13e   :  { %12 = sbr.rel (!%p10_p8) target bundleno = 2 (0x2), region = 76 }

</bundles_post_ra>
